<compile_context>
chip_gen: v7x
topology: tpu7x:2x2x1
jax: 0.10.0
libtpu: 0.0.40
codegen_flags: <defaults>
</compile_context>

<pallas_src>
import functools
import math

import jax
import jax.numpy as jnp
import numpy as np
from jax.experimental import pallas as pl
from jax.experimental.pallas import tpu as pltpu

NUM_CLASSES = 6
BN_EPS = 1e-5
ACT_DTYPE = jnp.bfloat16   # matmul operands / stored activations (f32 accumulation)


def _round_up(x, m):
    return ((x + m - 1) // m) * m


# ---------------------------------------------------------------------------
# Pallas kernels
# ---------------------------------------------------------------------------
def _conv_kernel(w_ref, scale_ref, bias_ref, a_ref, out_ref, *, relu):
    """out[Cout, tm] = maybe_relu(scale * (W[Cout, K] @ A[K, tm]) + bias)."""
    acc = jnp.dot(w_ref[...], a_ref[...], preferred_element_type=jnp.float32)
    y = acc * scale_ref[...] + bias_ref[...]          # [Cout,1] broadcast over lanes
    if relu:
        y = jnp.maximum(y, 0.0)
    out_ref[...] = y.astype(out_ref.dtype)


def _max4_kernel(a_ref, b_ref, c_ref, d_ref, o_ref):
    """Elementwise max of the 4 taps of a 2x2 max-pool."""
    o_ref[...] = jnp.maximum(jnp.maximum(a_ref[...], b_ref[...]),
                             jnp.maximum(c_ref[...], d_ref[...]))


def _fc_kernel(a_ref, w_ref, bias_ref, out_ref):
    """out[N, C] = bias + sum_k A[N, k] * W[C, k], accumulated over the K grid axis."""
    @pl.when(pl.program_id(0) == 0)
    def _init():
        out_ref[...] = jnp.broadcast_to(bias_ref[...], out_ref.shape)

    out_ref[...] += jnp.dot(a_ref[...], w_ref[...].T,
                            preferred_element_type=jnp.float32)


# ---------------------------------------------------------------------------
# Wrappers around pallas_call
# ---------------------------------------------------------------------------
def conv_bn_relu(w_t, scale, bias, a_t, *, relu=True, n_blocks=4):
    """y[Cout, M] = maybe_relu(scale * (w_t @ a_t) + bias).

    w_t: [Cout, K] bf16, a_t: [K, M] bf16, scale/bias: [Cout, 1] f32.
    Single full-K block; 1-D parallel grid over lane-dense M blocks.
    """
    Cout, K = w_t.shape
    _, M = a_t.shape
    tm = _round_up(pl.cdiv(M, n_blocks), 128)
    tm = max(128, min(tm, _round_up(M, 128)))
    grid = (pl.cdiv(M, tm),)

    return pl.pallas_call(
        functools.partial(_conv_kernel, relu=relu),
        out_shape=jax.ShapeDtypeStruct((Cout, M), ACT_DTYPE),
        grid_spec=pltpu.PrefetchScalarGridSpec(
            num_scalar_prefetch=0,
            grid=grid,
            in_specs=[
                pl.BlockSpec((Cout, K), lambda i: (0, 0)),
                pl.BlockSpec((Cout, 1), lambda i: (0, 0)),
                pl.BlockSpec((Cout, 1), lambda i: (0, 0)),
                pl.BlockSpec((K, tm), lambda i: (0, i)),
            ],
            out_specs=pl.BlockSpec((Cout, tm), lambda i: (0, i)),
        ),
        compiler_params=pltpu.CompilerParams(dimension_semantics=("parallel",)),
    )(w_t, scale, bias, a_t)


def maxpool2x2(y_cm, C, N, H, W):
    """2x2 max-pool (stride 2).  y_cm: [C, N*H*W] -> [C, N*(H/2)*(W/2)] (lane-dense)."""
    Ho, Wo = H // 2, W // 2
    y4 = y_cm.reshape(C, N, H, W)
    taps = [y4[:, :, dh::2, dw::2].reshape(C, N * Ho * Wo)
            for dh in (0, 1) for dw in (0, 1)]
    return pl.pallas_call(
        _max4_kernel,
        out_shape=jax.ShapeDtypeStruct((C, N * Ho * Wo), y_cm.dtype),
    )(*taps)


def fc_layer(flat, w_fc, bias, *, tk=8192):
    """out[N, 6] = flat @ w_fc.T + bias.  flat: [N, Kp] bf16, w_fc: [6, Kp] bf16."""
    Nb, Kp = flat.shape
    Cout = w_fc.shape[0]
    assert Kp % tk == 0
    grid = (Kp // tk,)

    return pl.pallas_call(
        _fc_kernel,
        out_shape=jax.ShapeDtypeStruct((Nb, Cout), jnp.float32),
        grid_spec=pltpu.PrefetchScalarGridSpec(
            num_scalar_prefetch=0,
            grid=grid,
            in_specs=[
                pl.BlockSpec((Nb, tk), lambda k: (0, k)),
                pl.BlockSpec((Cout, tk), lambda k: (0, k)),
                pl.BlockSpec((1, Cout), lambda k: (0, 0)),
            ],
            out_specs=pl.BlockSpec((Nb, Cout), lambda k: (0, 0)),
        ),
        compiler_params=pltpu.CompilerParams(dimension_semantics=("arbitrary",)),
    )(flat, w_fc, bias)


# ---------------------------------------------------------------------------
# Glue: transposed im2col, one-time parameter prep, forward pass
# ---------------------------------------------------------------------------
def im2col_3x3_T(x_cnhw):
    """[C, N, H, W] -> [C*9, N*H*W] bf16; row order (c, kh, kw), col order (n, h, w)."""
    C, N, H, W = x_cnhw.shape
    xp = jnp.pad(x_cnhw, ((0, 0), (0, 0), (1, 1), (1, 1)))
    taps = [xp[:, :, kh:kh + H, kw:kw + W] for kh in range(3) for kw in range(3)]
    p = jnp.stack(taps, axis=1)              # [C, 9, N, H, W]
    return p.reshape(C * 9, N * H * W).astype(ACT_DTYPE)


def _bn_fold(gamma, beta, mean, var, conv_bias):
    scale = gamma / jnp.sqrt(var + BN_EPS)
    offset = beta - mean * scale + conv_bias * scale
    return scale, offset


def prepare_params(p, *, fc_tk=8192):
    """One-time (outside jit) weight reshaping / BN folding / FC padding."""
    f32 = jnp.float32
    s1, o1 = _bn_fold(p["bn1_gamma"], p["bn1_beta"], p["bn1_mean"], p["bn1_var"],
                      p["conv1_b"])
    s3, o3 = _bn_fold(p["bn2_gamma"], p["bn2_beta"], p["bn2_mean"], p["bn2_var"],
                      p["conv3_b"])

    K_fc = p["fc_w"].shape[1]                       # 32 * 75 * 75
    Kp_fc = _round_up(K_fc, fc_tk)
    w_fc = jnp.zeros((NUM_CLASSES, Kp_fc), f32).at[:, :K_fc].set(
        p["fc_w"].astype(f32)).astype(ACT_DTYPE)     # [6, Kp] lane-dense, (c,h,w) col order

    return {
        "w1": p["conv1_w"].reshape(12, 27).astype(ACT_DTYPE),
        "s1": s1.reshape(12, 1).astype(f32),
        "o1": o1.reshape(12, 1).astype(f32),
        "w2": p["conv2_w"].reshape(20, 108).astype(ACT_DTYPE),
        "s2": jnp.ones((20, 1), f32),
        "o2": p["conv2_b"].reshape(20, 1).astype(f32),
        "w3": p["conv3_w"].reshape(32, 180).astype(ACT_DTYPE),
        "s3": s3.reshape(32, 1).astype(f32),
        "o3": o3.reshape(32, 1).astype(f32),
        "w_fc": w_fc,
        "b_fc": p["fc_b"].reshape(1, NUM_CLASSES).astype(f32),
    }


def convnet_forward(x, pp):
    """Pallas implementation of ConvNet.forward.  x: [N, 3, 150, 150] f32."""
    N, _, H, W = x.shape
    Hp, Wp = H // 2, W // 2

    x_c = jnp.transpose(x, (1, 0, 2, 3))                        # [3, N, H, W]

    # conv1 (3->12) + BN1 + ReLU
    a1 = im2col_3x3_T(x_c)                                      # [27, N*H*W]
    y1 = conv_bn_relu(pp["w1"], pp["s1"], pp["o1"], a1)         # [12, N*H*W]

    # MaxPool2d(2)
    p1 = maxpool2x2(y1, 12, N, H, W)                            # [12, N*Hp*Wp]

    # conv2 (12->20) + ReLU
    a2 = im2col_3x3_T(p1.reshape(12, N, Hp, Wp))                # [108, N*Hp*Wp]
    y2 = conv_bn_relu(pp["w2"], pp["s2"], pp["o2"], a2)         # [20, N*Hp*Wp]

    # conv3 (20->32) + BN2 + ReLU
    a3 = im2col_3x3_T(y2.reshape(20, N, Hp, Wp))                # [180, N*Hp*Wp]
    y3 = conv_bn_relu(pp["w3"], pp["s3"], pp["o3"], a3)         # [32, N*Hp*Wp]

    # flatten in PyTorch NCHW order (c, h, w) per sample, pad K, then fc (->6)
    K_fc = 32 * Hp * Wp
    Kp_fc = pp["w_fc"].shape[1]
    flat = y3.reshape(32, N, Hp * Wp).transpose(1, 0, 2).reshape(N, K_fc)
    flat = jnp.pad(flat, ((0, 0), (0, Kp_fc - K_fc)))
    return fc_layer(flat, pp["w_fc"], pp["b_fc"])               # [N, 6] f32


# ---------------------------------------------------------------------------
# Pure-JAX reference (for a sanity check of the Pallas path)
# ---------------------------------------------------------------------------
def convnet_forward_ref(x, p):
    hi = jax.lax.Precision.HIGHEST

    def conv(x, w, b):
        y = jax.lax.conv_general_dilated(
            x, w, window_strides=(1, 1), padding=((1, 1), (1, 1)),
            dimension_numbers=("NCHW", "OIHW", "NCHW"), precision=hi)
        return y + b[None, :, None, None]

    def bn(x, g, b, m, v):
        return (x - m[None, :, None, None]) / jnp.sqrt(v[None, :, None, None] + BN_EPS) \
            * g[None, :, None, None] + b[None, :, None, None]

    y = jax.nn.relu(bn(conv(x, p["conv1_w"], p["conv1_b"]),
                       p["bn1_gamma"], p["bn1_beta"], p["bn1_mean"], p["bn1_var"]))
    N, C, H, W = y.shape
    y = y.reshape(N, C, H // 2, 2, W // 2, 2).max(axis=(3, 5))
    y = jax.nn.relu(conv(y, p["conv2_w"], p["conv2_b"]))
    y = jax.nn.relu(bn(conv(y, p["conv3_w"], p["conv3_b"]),
                       p["bn2_gamma"], p["bn2_beta"], p["bn2_mean"], p["bn2_var"]))
    flat = y.reshape(N, -1)
    return jnp.dot(flat, p["fc_w"].T, precision=hi) + p["fc_b"]


# ---------------------------------------------------------------------------
def make_params(key):
    ks = jax.random.split(key, 20)
    f32 = jnp.float32

    def n(k, shape, scale):
        return (scale * jax.random.normal(k, shape)).astype(f32)

    return {
        "conv1_w": n(ks[0], (12, 3, 3, 3), 1.0 / math.sqrt(27)),
        "conv1_b": n(ks[1], (12,), 0.1),
        "bn1_gamma": (1.0 + 0.1 * jax.random.normal(ks[2], (12,))).astype(f32),
        "bn1_beta": n(ks[3], (12,), 0.1),
        "bn1_mean": n(ks[4], (12,), 0.1),
        "bn1_var": (1.0 + 0.1 * jnp.abs(jax.random.normal(ks[5], (12,)))).astype(f32),
        "conv2_w": n(ks[6], (20, 12, 3, 3), 1.0 / math.sqrt(108)),
        "conv2_b": n(ks[7], (20,), 0.1),
        "conv3_w": n(ks[8], (32, 20, 3, 3), 1.0 / math.sqrt(180)),
        "conv3_b": n(ks[9], (32,), 0.1),
        "bn2_gamma": (1.0 + 0.1 * jax.random.normal(ks[10], (32,))).astype(f32),
        "bn2_beta": n(ks[11], (32,), 0.1),
        "bn2_mean": n(ks[12], (32,), 0.1),
        "bn2_var": (1.0 + 0.1 * jnp.abs(jax.random.normal(ks[13], (32,)))).astype(f32),
        "fc_w": n(ks[14], (NUM_CLASSES, 32 * 75 * 75), 1.0 / math.sqrt(32 * 75 * 75)),
        "fc_b": n(ks[15], (NUM_CLASSES,), 0.1),
    }


if __name__ == "__main__":
    key = jax.random.PRNGKey(0)
    k_params, k_x = jax.random.split(key)
    params = make_params(k_params)

    # One-time parameter prep (BN folding, weight reshape/cast, FC padding) outside jit.
    pp = prepare_params(params)

    # The fc layer (75*75*32 features) pins spatial size to 150x150; keep batch small.
    x = jax.random.normal(k_x, (2, 3, 150, 150), dtype=jnp.float32)

    fwd = jax.jit(convnet_forward)
    out = jax.block_until_ready(fwd(x, pp))

    ref = jax.block_until_ready(jax.jit(convnet_forward_ref)(x, params))

    assert out.shape == (2, NUM_CLASSES), out.shape
    err = float(jnp.max(jnp.abs(out - ref)))
    if not np.isfinite(err) or err > 5e-2:
        raise RuntimeError(f"Pallas output mismatch vs reference, max abs err = {err}")
    print("KERNEL_OK")
</pallas_src>

<mosaic_0001>
module attributes {stable_mosaic.version = 11 : i64} {
  func.func @_conv_kernel(%arg0: i32, %arg1: memref<12x27xbf16, #tpu.memory_space<vmem>>, %arg2: memref<12x1xf32, #tpu.memory_space<vmem>>, %arg3: memref<12x1xf32, #tpu.memory_space<vmem>>, %arg4: memref<27x11264xbf16, #tpu.memory_space<vmem>>, %arg5: memref<12x11264xbf16, #tpu.memory_space<vmem>>) attributes {dimension_semantics = [#tpu.dimension_semantics<parallel>], iteration_bounds = array<i64: 4>, scalar_prefetch = 0 : i64, scratch_operands = 0 : i64, tpu.core_type = #tpu.core_type<tc>, window_params = [{pipeline_mode = #tpu.pipeline_mode<synchronous>, transform_indices = @transform_0, window_bounds = array<i64: 12, 27>}, {pipeline_mode = #tpu.pipeline_mode<synchronous>, transform_indices = @transform_1, window_bounds = array<i64: 12, 1>}, {pipeline_mode = #tpu.pipeline_mode<synchronous>, transform_indices = @transform_2, window_bounds = array<i64: 12, 1>}, {transform_indices = @transform_3, window_bounds = array<i64: 27, 11264>}, {transform_indices = @transform_4, window_bounds = array<i64: 12, 11264>}]} {
    %c0 = arith.constant 0 : index
    %c0_0 = arith.constant 0 : index
    %0 = vector.load %arg1[%c0, %c0_0] : memref<12x27xbf16, #tpu.memory_space<vmem>>, vector<12x27xbf16>
    %c0_1 = arith.constant 0 : index
    %c0_2 = arith.constant 0 : index
    %1 = vector.load %arg4[%c0_1, %c0_2] : memref<27x11264xbf16, #tpu.memory_space<vmem>>, vector<27x11264xbf16>
    %cst = arith.constant dense<0.000000e+00> : vector<12x11264xf32>
    %2 = tpu.matmul %0, %1, %cst {dimension_numbers = #tpu.dot_dimension_numbers<[1], [0], [0], [1], [0, 0, 1, 1], [], []>} : vector<12x27xbf16>, vector<27x11264xbf16>, vector<12x11264xf32> -> vector<12x11264xf32>
    %c0_3 = arith.constant 0 : index
    %c0_4 = arith.constant 0 : index
    %3 = vector.load %arg2[%c0_3, %c0_4] : memref<12x1xf32, #tpu.memory_space<vmem>>, vector<12x1xf32>
    %4 = vector.broadcast %3 : vector<12x1xf32> to vector<12x11264xf32>
    %5 = arith.mulf %2, %4 : vector<12x11264xf32>
    %c0_5 = arith.constant 0 : index
    %c0_6 = arith.constant 0 : index
    %6 = vector.load %arg3[%c0_5, %c0_6] : memref<12x1xf32, #tpu.memory_space<vmem>>, vector<12x1xf32>
    %7 = vector.broadcast %6 : vector<12x1xf32> to vector<12x11264xf32>
    %8 = arith.addf %5, %7 : vector<12x11264xf32>
    %cst_7 = arith.constant 0.000000e+00 : f32
    %9 = vector.broadcast %cst_7 : f32 to vector<12x11264xf32>
    %10 = arith.maximumf %8, %9 : vector<12x11264xf32>
    %11 = arith.truncf %10 : vector<12x11264xf32> to vector<12x11264xbf16>
    %c0_8 = arith.constant 0 : index
    %c0_9 = arith.constant 0 : index
    %12 = vector.load %arg5[%c0_8, %c0_9] : memref<12x11264xbf16, #tpu.memory_space<vmem>>, vector<12x11264xbf16>
    tpu.vector_store %arg5[%c0_8, %c0_9], %11 {strides = array<i32>} : memref<12x11264xbf16, #tpu.memory_space<vmem>>, vector<12x11264xbf16>,
    return
  }
  func.func @transform_0(%arg0: i32) -> (i32, i32) {
    %c0_i32 = arith.constant 0 : i32
    %c0_i32_0 = arith.constant 0 : i32
    %c0_i32_1 = arith.constant 0 : i32
    return %c0_i32, %c0_i32_0 : i32, i32
  }
  func.func @transform_1(%arg0: i32) -> (i32, i32) {
    %c0_i32 = arith.constant 0 : i32
    %c0_i32_0 = arith.constant 0 : i32
    %c0_i32_1 = arith.constant 0 : i32
    return %c0_i32, %c0_i32_0 : i32, i32
  }
  func.func @transform_2(%arg0: i32) -> (i32, i32) {
    %c0_i32 = arith.constant 0 : i32
    %c0_i32_0 = arith.constant 0 : i32
    %c0_i32_1 = arith.constant 0 : i32
    return %c0_i32, %c0_i32_0 : i32, i32
  }
  func.func @transform_3(%arg0: i32) -> (i32, i32) {
    %c0_i32 = arith.constant 0 : i32
    %c0_i32_0 = arith.constant 0 : i32
    return %c0_i32, %arg0 : i32, i32
  }
  func.func @transform_4(%arg0: i32) -> (i32, i32) {
    %c0_i32 = arith.constant 0 : i32
    %c0_i32_0 = arith.constant 0 : i32
    return %c0_i32, %arg0 : i32, i32
  }
}

module attributes {stable_mosaic.version = 11 : i64} {
  func.func @_max4_kernel(%arg0: memref<12x11250xbf16, #tpu.memory_space<vmem>>, %arg1: memref<12x11250xbf16, #tpu.memory_space<vmem>>, %arg2: memref<12x11250xbf16, #tpu.memory_space<vmem>>, %arg3: memref<12x11250xbf16, #tpu.memory_space<vmem>>, %arg4: memref<12x11250xbf16, #tpu.memory_space<vmem>>) attributes {dimension_semantics = [], scalar_prefetch = 0 : i64, scratch_operands = 0 : i64, tpu.core_type = #tpu.core_type<tc>} {
    %c0 = arith.constant 0 : index
    %c0_0 = arith.constant 0 : index
    %0 = vector.load %arg0[%c0, %c0_0] : memref<12x11250xbf16, #tpu.memory_space<vmem>>, vector<12x11250xbf16>
    %c0_1 = arith.constant 0 : index
    %c0_2 = arith.constant 0 : index
    %1 = vector.load %arg1[%c0_1, %c0_2] : memref<12x11250xbf16, #tpu.memory_space<vmem>>, vector<12x11250xbf16>
    %2 = arith.maximumf %0, %1 : vector<12x11250xbf16>
    %c0_3 = arith.constant 0 : index
    %c0_4 = arith.constant 0 : index
    %3 = vector.load %arg2[%c0_3, %c0_4] : memref<12x11250xbf16, #tpu.memory_space<vmem>>, vector<12x11250xbf16>
    %c0_5 = arith.constant 0 : index
    %c0_6 = arith.constant 0 : index
    %4 = vector.load %arg3[%c0_5, %c0_6] : memref<12x11250xbf16, #tpu.memory_space<vmem>>, vector<12x11250xbf16>
    %5 = arith.maximumf %3, %4 : vector<12x11250xbf16>
    %6 = arith.maximumf %2, %5 : vector<12x11250xbf16>
    %c0_7 = arith.constant 0 : index
    %c0_8 = arith.constant 0 : index
    %7 = vector.load %arg4[%c0_7, %c0_8] : memref<12x11250xbf16, #tpu.memory_space<vmem>>, vector<12x11250xbf16>
    tpu.vector_store %arg4[%c0_7, %c0_8], %6 {strides = array<i32>} : memref<12x11250xbf16, #tpu.memory_space<vmem>>, vector<12x11250xbf16>,
    return
  }
}

module attributes {stable_mosaic.version = 11 : i64} {
  func.func @_conv_kernel(%arg0: i32, %arg1: memref<20x108xbf16, #tpu.memory_space<vmem>>, %arg2: memref<20x1xf32, #tpu.memory_space<vmem>>, %arg3: memref<20x1xf32, #tpu.memory_space<vmem>>, %arg4: memref<108x2816xbf16, #tpu.memory_space<vmem>>, %arg5: memref<20x2816xbf16, #tpu.memory_space<vmem>>) attributes {dimension_semantics = [#tpu.dimension_semantics<parallel>], iteration_bounds = array<i64: 4>, scalar_prefetch = 0 : i64, scratch_operands = 0 : i64, tpu.core_type = #tpu.core_type<tc>, window_params = [{pipeline_mode = #tpu.pipeline_mode<synchronous>, transform_indices = @transform_0, window_bounds = array<i64: 20, 108>}, {pipeline_mode = #tpu.pipeline_mode<synchronous>, transform_indices = @transform_1, window_bounds = array<i64: 20, 1>}, {pipeline_mode = #tpu.pipeline_mode<synchronous>, transform_indices = @transform_2, window_bounds = array<i64: 20, 1>}, {transform_indices = @transform_3, window_bounds = array<i64: 108, 2816>}, {transform_indices = @transform_4, window_bounds = array<i64: 20, 2816>}]} {
    %c0 = arith.constant 0 : index
    %c0_0 = arith.constant 0 : index
    %0 = vector.load %arg1[%c0, %c0_0] : memref<20x108xbf16, #tpu.memory_space<vmem>>, vector<20x108xbf16>
    %c0_1 = arith.constant 0 : index
    %c0_2 = arith.constant 0 : index
    %1 = vector.load %arg4[%c0_1, %c0_2] : memref<108x2816xbf16, #tpu.memory_space<vmem>>, vector<108x2816xbf16>
    %cst = arith.constant dense<0.000000e+00> : vector<20x2816xf32>
    %2 = tpu.matmul %0, %1, %cst {dimension_numbers = #tpu.dot_dimension_numbers<[1], [0], [0], [1], [0, 0, 1, 1], [], []>} : vector<20x108xbf16>, vector<108x2816xbf16>, vector<20x2816xf32> -> vector<20x2816xf32>
    %c0_3 = arith.constant 0 : index
    %c0_4 = arith.constant 0 : index
    %3 = vector.load %arg2[%c0_3, %c0_4] : memref<20x1xf32, #tpu.memory_space<vmem>>, vector<20x1xf32>
    %4 = vector.broadcast %3 : vector<20x1xf32> to vector<20x2816xf32>
    %5 = arith.mulf %2, %4 : vector<20x2816xf32>
    %c0_5 = arith.constant 0 : index
    %c0_6 = arith.constant 0 : index
    %6 = vector.load %arg3[%c0_5, %c0_6] : memref<20x1xf32, #tpu.memory_space<vmem>>, vector<20x1xf32>
    %7 = vector.broadcast %6 : vector<20x1xf32> to vector<20x2816xf32>
    %8 = arith.addf %5, %7 : vector<20x2816xf32>
    %cst_7 = arith.constant 0.000000e+00 : f32
    %9 = vector.broadcast %cst_7 : f32 to vector<20x2816xf32>
    %10 = arith.maximumf %8, %9 : vector<20x2816xf32>
    %11 = arith.truncf %10 : vector<20x2816xf32> to vector<20x2816xbf16>
    %c0_8 = arith.constant 0 : index
    %c0_9 = arith.constant 0 : index
    %12 = vector.load %arg5[%c0_8, %c0_9] : memref<20x2816xbf16, #tpu.memory_space<vmem>>, vector<20x2816xbf16>
    tpu.vector_store %arg5[%c0_8, %c0_9], %11 {strides = array<i32>} : memref<20x2816xbf16, #tpu.memory_space<vmem>>, vector<20x2816xbf16>,
    return
  }
  func.func @transform_0(%arg0: i32) -> (i32, i32) {
    %c0_i32 = arith.constant 0 : i32
    %c0_i32_0 = arith.constant 0 : i32
    %c0_i32_1 = arith.constant 0 : i32
    return %c0_i32, %c0_i32_0 : i32, i32
  }
  func.func @transform_1(%arg0: i32) -> (i32, i32) {
    %c0_i32 = arith.constant 0 : i32
    %c0_i32_0 = arith.constant 0 : i32
    %c0_i32_1 = arith.constant 0 : i32
    return %c0_i32, %c0_i32_0 : i32, i32
  }
  func.func @transform_2(%arg0: i32) -> (i32, i32) {
    %c0_i32 = arith.constant 0 : i32
    %c0_i32_0 = arith.constant 0 : i32
    %c0_i32_1 = arith.constant 0 : i32
    return %c0_i32, %c0_i32_0 : i32, i32
  }
  func.func @transform_3(%arg0: i32) -> (i32, i32) {
    %c0_i32 = arith.constant 0 : i32
    %c0_i32_0 = arith.constant 0 : i32
    return %c0_i32, %arg0 : i32, i32
  }
  func.func @transform_4(%arg0: i32) -> (i32, i32) {
    %c0_i32 = arith.constant 0 : i32
    %c0_i32_0 = arith.constant 0 : i32
    return %c0_i32, %arg0 : i32, i32
  }
}

module attributes {stable_mosaic.version = 11 : i64} {
  func.func @_conv_kernel(%arg0: i32, %arg1: memref<32x180xbf16, #tpu.memory_space<vmem>>, %arg2: memref<32x1xf32, #tpu.memory_space<vmem>>, %arg3: memref<32x1xf32, #tpu.memory_space<vmem>>, %arg4: memref<180x2816xbf16, #tpu.memory_space<vmem>>, %arg5: memref<32x2816xbf16, #tpu.memory_space<vmem>>) attributes {dimension_semantics = [#tpu.dimension_semantics<parallel>], iteration_bounds = array<i64: 4>, scalar_prefetch = 0 : i64, scratch_operands = 0 : i64, tpu.core_type = #tpu.core_type<tc>, window_params = [{pipeline_mode = #tpu.pipeline_mode<synchronous>, transform_indices = @transform_0, window_bounds = array<i64: 32, 180>}, {pipeline_mode = #tpu.pipeline_mode<synchronous>, transform_indices = @transform_1, window_bounds = array<i64: 32, 1>}, {pipeline_mode = #tpu.pipeline_mode<synchronous>, transform_indices = @transform_2, window_bounds = array<i64: 32, 1>}, {transform_indices = @transform_3, window_bounds = array<i64: 180, 2816>}, {transform_indices = @transform_4, window_bounds = array<i64: 32, 2816>}]} {
    %c0 = arith.constant 0 : index
    %c0_0 = arith.constant 0 : index
    %0 = vector.load %arg1[%c0, %c0_0] : memref<32x180xbf16, #tpu.memory_space<vmem>>, vector<32x180xbf16>
    %c0_1 = arith.constant 0 : index
    %c0_2 = arith.constant 0 : index
    %1 = vector.load %arg4[%c0_1, %c0_2] : memref<180x2816xbf16, #tpu.memory_space<vmem>>, vector<180x2816xbf16>
    %cst = arith.constant dense<0.000000e+00> : vector<32x2816xf32>
    %2 = tpu.matmul %0, %1, %cst {dimension_numbers = #tpu.dot_dimension_numbers<[1], [0], [0], [1], [0, 0, 1, 1], [], []>} : vector<32x180xbf16>, vector<180x2816xbf16>, vector<32x2816xf32> -> vector<32x2816xf32>
    %c0_3 = arith.constant 0 : index
    %c0_4 = arith.constant 0 : index
    %3 = vector.load %arg2[%c0_3, %c0_4] : memref<32x1xf32, #tpu.memory_space<vmem>>, vector<32x1xf32>
    %4 = vector.broadcast %3 : vector<32x1xf32> to vector<32x2816xf32>
    %5 = arith.mulf %2, %4 : vector<32x2816xf32>
    %c0_5 = arith.constant 0 : index
    %c0_6 = arith.constant 0 : index
    %6 = vector.load %arg3[%c0_5, %c0_6] : memref<32x1xf32, #tpu.memory_space<vmem>>, vector<32x1xf32>
    %7 = vector.broadcast %6 : vector<32x1xf32> to vector<32x2816xf32>
    %8 = arith.addf %5, %7 : vector<32x2816xf32>
    %cst_7 = arith.constant 0.000000e+00 : f32
    %9 = vector.broadcast %cst_7 : f32 to vector<32x2816xf32>
    %10 = arith.maximumf %8, %9 : vector<32x2816xf32>
    %11 = arith.truncf %10 : vector<32x2816xf32> to vector<32x2816xbf16>
    %c0_8 = arith.constant 0 : index
    %c0_9 = arith.constant 0 : index
    %12 = vector.load %arg5[%c0_8, %c0_9] : memref<32x2816xbf16, #tpu.memory_space<vmem>>, vector<32x2816xbf16>
    tpu.vector_store %arg5[%c0_8, %c0_9], %11 {strides = array<i32>} : memref<32x2816xbf16, #tpu.memory_space<vmem>>, vector<32x2816xbf16>,
    return
  }
  func.func @transform_0(%arg0: i32) -> (i32, i32) {
    %c0_i32 = arith.constant 0 : i32
    %c0_i32_0 = arith.constant 0 : i32
    %c0_i32_1 = arith.constant 0 : i32
    return %c0_i32, %c0_i32_0 : i32, i32
  }
  func.func @transform_1(%arg0: i32) -> (i32, i32) {
    %c0_i32 = arith.constant 0 : i32
    %c0_i32_0 = arith.constant 0 : i32
    %c0_i32_1 = arith.constant 0 : i32
    return %c0_i32, %c0_i32_0 : i32, i32
  }
  func.func @transform_2(%arg0: i32) -> (i32, i32) {
    %c0_i32 = arith.constant 0 : i32
    %c0_i32_0 = arith.constant 0 : i32
    %c0_i32_1 = arith.constant 0 : i32
    return %c0_i32, %c0_i32_0 : i32, i32
  }
  func.func @transform_3(%arg0: i32) -> (i32, i32) {
    %c0_i32 = arith.constant 0 : i32
    %c0_i32_0 = arith.constant 0 : i32
    return %c0_i32, %arg0 : i32, i32
  }
  func.func @transform_4(%arg0: i32) -> (i32, i32) {
    %c0_i32 = arith.constant 0 : i32
    %c0_i32_0 = arith.constant 0 : i32
    return %c0_i32, %arg0 : i32, i32
  }
}

module attributes {stable_mosaic.version = 11 : i64} {
  func.func @_fc_kernel(%arg0: i32, %arg1: memref<2x8192xbf16, #tpu.memory_space<vmem>>, %arg2: memref<6x8192xbf16, #tpu.memory_space<vmem>>, %arg3: memref<1x6xf32, #tpu.memory_space<vmem>>, %arg4: memref<2x6xf32, #tpu.memory_space<vmem>>) attributes {dimension_semantics = [#tpu.dimension_semantics<arbitrary>], iteration_bounds = array<i64: 22>, scalar_prefetch = 0 : i64, scratch_operands = 0 : i64, tpu.core_type = #tpu.core_type<tc>, window_params = [{transform_indices = @transform_0, window_bounds = array<i64: 2, 8192>}, {transform_indices = @transform_1, window_bounds = array<i64: 6, 8192>}, {pipeline_mode = #tpu.pipeline_mode<synchronous>, transform_indices = @transform_2, window_bounds = array<i64: 1, 6>}, {pipeline_mode = #tpu.pipeline_mode<synchronous>, transform_indices = @transform_3, window_bounds = array<i64: 2, 6>}]} {
    %c0_i32 = arith.constant 0 : i32
    %0 = arith.cmpi eq, %arg0, %c0_i32 : i32
    %1 = arith.extui %0 : i1 to i32
    %c0_i32_0 = arith.constant 0 : i32
    %2 = arith.cmpi ne, %1, %c0_i32_0 : i32
    scf.if %2 {
      %c0_8 = arith.constant 0 : index
      %c0_9 = arith.constant 0 : index
      %10 = vector.load %arg3[%c0_8, %c0_9] : memref<1x6xf32, #tpu.memory_space<vmem>>, vector<1x6xf32>
      %11 = vector.shape_cast %10 : vector<1x6xf32> to vector<1x6xf32>
      %12 = vector.broadcast %11 : vector<1x6xf32> to vector<2x6xf32>
      %c0_10 = arith.constant 0 : index
      %c0_11 = arith.constant 0 : index
      %13 = vector.load %arg4[%c0_10, %c0_11] : memref<2x6xf32, #tpu.memory_space<vmem>>, vector<2x6xf32>
      tpu.vector_store %arg4[%c0_10, %c0_11], %12 {strides = array<i32>} : memref<2x6xf32, #tpu.memory_space<vmem>>, vector<2x6xf32>,
    } else {
    }
    %c0 = arith.constant 0 : index
    %c0_1 = arith.constant 0 : index
    %3 = vector.load %arg4[%c0, %c0_1] : memref<2x6xf32, #tpu.memory_space<vmem>>, vector<2x6xf32>
    %c0_2 = arith.constant 0 : index
    %c0_3 = arith.constant 0 : index
    %4 = vector.load %arg1[%c0_2, %c0_3] : memref<2x8192xbf16, #tpu.memory_space<vmem>>, vector<2x8192xbf16>
    %c0_4 = arith.constant 0 : index
    %c0_5 = arith.constant 0 : index
    %5 = vector.load %arg2[%c0_4, %c0_5] : memref<6x8192xbf16, #tpu.memory_space<vmem>>, vector<6x8192xbf16>
    %6 = tpu.transpose %5, [1, 0] : vector<6x8192xbf16> -> vector<8192x6xbf16>
    %cst = arith.constant dense<0.000000e+00> : vector<2x6xf32>
    %7 = tpu.matmul %4, %6, %cst {dimension_numbers = #tpu.dot_dimension_numbers<[1], [0], [0], [1], [0, 0, 1, 1], [], []>} : vector<2x8192xbf16>, vector<8192x6xbf16>, vector<2x6xf32> -> vector<2x6xf32>
    %8 = arith.addf %3, %7 : vector<2x6xf32>
    %c0_6 = arith.constant 0 : index
    %c0_7 = arith.constant 0 : index
    %9 = vector.load %arg4[%c0_6, %c0_7] : memref<2x6xf32, #tpu.memory_space<vmem>>, vector<2x6xf32>
    tpu.vector_store %arg4[%c0_6, %c0_7], %8 {strides = array<i32>} : memref<2x6xf32, #tpu.memory_space<vmem>>, vector<2x6xf32>,
    return
  }
  func.func @transform_0(%arg0: i32) -> (i32, i32) {
    %c0_i32 = arith.constant 0 : i32
    %c0_i32_0 = arith.constant 0 : i32
    return %c0_i32, %arg0 : i32, i32
  }
  func.func @transform_1(%arg0: i32) -> (i32, i32) {
    %c0_i32 = arith.constant 0 : i32
    %c0_i32_0 = arith.constant 0 : i32
    return %c0_i32, %arg0 : i32, i32
  }
  func.func @transform_2(%arg0: i32) -> (i32, i32) {
    %c0_i32 = arith.constant 0 : i32
    %c0_i32_0 = arith.constant 0 : i32
    %c0_i32_1 = arith.constant 0 : i32
    return %c0_i32, %c0_i32_0 : i32, i32
  }
  func.func @transform_3(%arg0: i32) -> (i32, i32) {
    %c0_i32 = arith.constant 0 : i32
    %c0_i32_0 = arith.constant 0 : i32
    %c0_i32_1 = arith.constant 0 : i32
    return %c0_i32, %c0_i32_0 : i32, i32
  }
}

</mosaic_0001>

<bundles_post_ra>
// kernel: convnet_forward.5
= control target key start
LH: loop header
LB: loop body
LE: loop exit
PB: predicated region body
PF: predicated region fallthrough
CT: control target
= control target key end

     0   :  { %s5621_s15 = smov 0   ;;  %s5623_s16 = smov 0   ;;  %s7094_s0 = inlined_call_operand.vmem [shape: bf16[12,27], index: 0, kind: input, shape index: {}]   ;;  %s7095_s1 = inlined_call_operand.vmem [shape: f32[12,1], index: 1, kind: input, shape index: {}]   ;;  %s7096_s2 = inlined_call_operand.vmem [shape: f32[12,1], index: 2, kind: input, shape index: {}]   ;;  %s7097_s3 = inlined_call_operand.vmem [shape: bf16[27,45000], index: 3, kind: input, shape index: {}]   ;;  %s7098_s4 = inlined_call_operand.vmem [shape: bf16[12,45000], index: 4, kind: output, shape index: {}]  }
   0x1   :  { %s5625_s17 = smov 0  }
   0x2 LB: > { %s5129_s18 = sadd.s32 4294967295, %s5592_s17   ;;  %s5638_s19 = sadd.s32 1, %s5592_s17   ;;  %s5592_s17 = sphi %s5625_s17, %s7102_s17   ;;  %s5588_s16 = sphi %s5623_s16, %s7101_s16   ;;  %s5584_s15 = sphi %s5621_s15, %s7100_s15  }
   0x3   : > { %s81_s20 = ssub.s32 %s5592_s17, %s5638_s19  ;;  %s84_s21 = sadd.s32 1, %s5588_s16 }
   0x4   : > { %p82_p0 = scmp.eq.s32.totalorder %s81_s20, 0  ;;  %p91_p1 = scmp.ne.s32.totalorder %s5588_s16, %s5584_s15 }
   0x5   : > { %p92_p2 = scmp.eq.s32.totalorder %s5592_s17, 0  ;;  %p121_p3 = scmp.eq.s32.totalorder %s5129_s18, 3 }
   0x6   : > { %s5649_s22 = scalar_select %p82_p0, %s5588_s16, %s84_s21  }
   0x7   : > { %p93_p4 = por %p92_p2, %p91_p1  ;;  %p5651_p5 = por %p121_p3, %p91_p1 }
   0x8   : > { %p5132_p6 = scmp.ge.s32.totalorder %s5592_s17, 4 }
   0xa   : > { %152 = sbr.rel (%p5132_p6) target bundleno = 110 (0x6e), region = 28 }
  0x11   : > { %155 = sbr.rel (!%p93_p4) target bundleno = 110 (0x6e), region = 32  ;;  %s157_s24 = sand.u32 (%p93_p4), 1, %s5588_s16  }
  0x12   : > { %s5447_s25 = smul.u32 (%p93_p4), 352, %s5592_s17 }
  0x13   : > { %s5537_s26 = smul.u32 (%p93_p4), 1408, %s157_s24 }
  0x14   : > { %s5661_s29 = scalar_lea.vmem (%p93_p4), %s7097_s3, %s5447_s25 }
  0x15   : > { %v175_v0 = vld [vmem:[%s5661_s29] sm:$0xff] (%p93_p4)  ;;  %v177_v1 = vld [vmem:[%s5661_s29 + $0x8] sm:$0xff] (%p93_p4)  ;;  %v179_v2 = vld [vmem:[%s5661_s29 + $0x10] sm:$0xff] (%p93_p4)  ;;  %s5666_s30 = scalar_lea.vmem (%p93_p4), [#allocation2], %s5537_s26 }
  0x16   : > { %176 = vst [vmem:[%s5666_s30] sm:$0xff] (%p93_p4), %v175_v0  ;;  %178 = vst [vmem:[%s5666_s30 + $0x8] sm:$0xff] (%p93_p4), %v177_v1  ;;  %v181_v3 = vld [vmem:[%s5661_s29 + $0x18] sm:$0xff] (%p93_p4)  ;;  %v183_v4 = vld [vmem:[%s5661_s29 + $0x20] sm:$0xff] (%p93_p4) }
  0x17   : > { %180 = vst [vmem:[%s5666_s30 + $0x10] sm:$0xff] (%p93_p4), %v179_v2  ;;  %v185_v5 = vld [vmem:[%s5661_s29 + $0x28] sm:$0xff] (%p93_p4)  ;;  %182 = vst [vmem:[%s5666_s30 + $0x18] sm:$0xff] (%p93_p4), %v181_v3  ;;  %v187_v6 = vld [vmem:[%s5661_s29 + $0x30] sm:$0xff] (%p93_p4) }
  0x18   : > { %184 = vst [vmem:[%s5666_s30 + $0x20] sm:$0xff] %v183_v4  ;;  %186 = vst [vmem:[%s5666_s30 + $0x28] sm:$0xff] %v185_v5  ;;  %v189_v7 = vld [vmem:[%s5661_s29 + $0x38] sm:$0xff]  ;;  %v191_v8 = vld [vmem:[%s5661_s29 + $0x40] sm:$0xff] }
  0x19   : > { %188 = vst [vmem:[%s5666_s30 + $0x30] sm:$0xff] %v187_v6  ;;  %190 = vst [vmem:[%s5666_s30 + $0x38] sm:$0xff] %v189_v7  ;;  %v193_v9 = vld [vmem:[%s5661_s29 + $0x48] sm:$0xff]  ;;  %v195_v10 = vld [vmem:[%s5661_s29 + $0x50] sm:$0xff] }
  0x1a   : > { %192 = vst [vmem:[%s5666_s30 + $0x40] sm:$0xff] %v191_v8  ;;  %v197_v11 = vld [vmem:[%s5661_s29 + $0x58] sm:$0xff]  ;;  %194 = vst [vmem:[%s5666_s30 + $0x48] sm:$0xff] %v193_v9  ;;  %v199_v12 = vld [vmem:[%s5661_s29 + $0x60] sm:$0xff] }
  0x1b   : > { %196 = vst [vmem:[%s5666_s30 + $0x50] sm:$0xff] %v195_v10  ;;  %198 = vst [vmem:[%s5666_s30 + $0x58] sm:$0xff] %v197_v11  ;;  %v201_v13 = vld [vmem:[%s5661_s29 + $0x68] sm:$0xff]  ;;  %v203_v14 = vld [vmem:[%s5661_s29 + $0x70] sm:$0xff] }
  0x1c   : > { %200 = vst [vmem:[%s5666_s30 + $0x60] sm:$0xff] %v199_v12  ;;  %202 = vst [vmem:[%s5666_s30 + $0x68] sm:$0xff] %v201_v13  ;;  %v205_v15 = vld [vmem:[%s5661_s29 + $0x78] sm:$0xff]  ;;  %v207_v16 = vld [vmem:[%s5661_s29 + $0x80] sm:$0xff] }
  0x1d   : > { %204 = vst [vmem:[%s5666_s30 + $0x70] sm:$0xff] %v203_v14  ;;  %v209_v17 = vld [vmem:[%s5661_s29 + $0x88] sm:$0xff]  ;;  %206 = vst [vmem:[%s5666_s30 + $0x78] sm:$0xff] %v205_v15  ;;  %v211_v18 = vld [vmem:[%s5661_s29 + $0x90] sm:$0xff] }
  0x1e   : > { %208 = vst [vmem:[%s5666_s30 + $0x80] sm:$0xff] %v207_v16  ;;  %210 = vst [vmem:[%s5666_s30 + $0x88] sm:$0xff] %v209_v17  ;;  %v213_v19 = vld [vmem:[%s5661_s29 + $0x98] sm:$0xff]  ;;  %v215_v20 = vld [vmem:[%s5661_s29 + $0xa0] sm:$0xff] }
  0x1f   : > { %212 = vst [vmem:[%s5666_s30 + $0x90] sm:$0xff] %v211_v18  ;;  %214 = vst [vmem:[%s5666_s30 + $0x98] sm:$0xff] %v213_v19  ;;  %v217_v21 = vld [vmem:[%s5661_s29 + $0xa8] sm:$0xff]  ;;  %v219_v22 = vld [vmem:[%s5661_s29 + $0xb0] sm:$0xff] }
  0x20   : > { %216 = vst [vmem:[%s5666_s30 + $0xa0] sm:$0xff] %v215_v20  ;;  %v221_v23 = vld [vmem:[%s5661_s29 + $0xb8] sm:$0xff]  ;;  %218 = vst [vmem:[%s5666_s30 + $0xa8] sm:$0xff] %v217_v21  ;;  %v223_v24 = vld [vmem:[%s5661_s29 + $0xc0] sm:$0xff] }
  0x21   : > { %220 = vst [vmem:[%s5666_s30 + $0xb0] sm:$0xff] %v219_v22  ;;  %222 = vst [vmem:[%s5666_s30 + $0xb8] sm:$0xff] %v221_v23  ;;  %v225_v25 = vld [vmem:[%s5661_s29 + $0xc8] sm:$0xff]  ;;  %v227_v26 = vld [vmem:[%s5661_s29 + $0xd0] sm:$0xff] }
  0x22   : > { %224 = vst [vmem:[%s5666_s30 + $0xc0] sm:$0xff] %v223_v24  ;;  %226 = vst [vmem:[%s5666_s30 + $0xc8] sm:$0xff] %v225_v25  ;;  %v229_v27 = vld [vmem:[%s5661_s29 + $0xd8] sm:$0xff]  ;;  %v231_v28 = vld [vmem:[%s5661_s29 + $0xe0] sm:$0xff] }
  0x23   : > { %228 = vst [vmem:[%s5666_s30 + $0xd0] sm:$0xff] %v227_v26  ;;  %v233_v29 = vld [vmem:[%s5661_s29 + $0xe8] sm:$0xff]  ;;  %230 = vst [vmem:[%s5666_s30 + $0xd8] sm:$0xff] %v229_v27  ;;  %v235_v30 = vld [vmem:[%s5661_s29 + $0xf0] sm:$0xff] }
  0x24   : > { %232 = vst [vmem:[%s5666_s30 + $0xe0] sm:$0xff] %v231_v28  ;;  %234 = vst [vmem:[%s5666_s30 + $0xe8] sm:$0xff] %v233_v29  ;;  %v237_v31 = vld [vmem:[%s5661_s29 + $0xf8] sm:$0xff]  ;;  %v239_v32 = vld [vmem:[%s5661_s29 + $0x100] sm:$0xff] }
  0x25   : > { %236 = vst [vmem:[%s5666_s30 + $0xf0] sm:$0xff] %v235_v30  ;;  %238 = vst [vmem:[%s5666_s30 + $0xf8] sm:$0xff] %v237_v31  ;;  %v241_v33 = vld [vmem:[%s5661_s29 + $0x108] sm:$0xff]  ;;  %v243_v34 = vld [vmem:[%s5661_s29 + $0x110] sm:$0xff] }
  0x26   : > { %240 = vst [vmem:[%s5666_s30 + $0x100] sm:$0xff] %v239_v32  ;;  %v245_v35 = vld [vmem:[%s5661_s29 + $0x118] sm:$0xff]  ;;  %242 = vst [vmem:[%s5666_s30 + $0x108] sm:$0xff] %v241_v33  ;;  %v247_v36 = vld [vmem:[%s5661_s29 + $0x120] sm:$0xff] }
  0x27   : > { %244 = vst [vmem:[%s5666_s30 + $0x110] sm:$0xff] %v243_v34  ;;  %246 = vst [vmem:[%s5666_s30 + $0x118] sm:$0xff] %v245_v35  ;;  %v249_v37 = vld [vmem:[%s5661_s29 + $0x128] sm:$0xff]  ;;  %v251_v38 = vld [vmem:[%s5661_s29 + $0x130] sm:$0xff] }
  0x28   : > { %248 = vst [vmem:[%s5666_s30 + $0x120] sm:$0xff] %v247_v36  ;;  %250 = vst [vmem:[%s5666_s30 + $0x128] sm:$0xff] %v249_v37  ;;  %v253_v39 = vld [vmem:[%s5661_s29 + $0x138] sm:$0xff]  ;;  %v255_v40 = vld [vmem:[%s5661_s29 + $0x140] sm:$0xff] }
  0x29   : > { %252 = vst [vmem:[%s5666_s30 + $0x130] sm:$0xff] %v251_v38  ;;  %v257_v41 = vld [vmem:[%s5661_s29 + $0x148] sm:$0xff]  ;;  %254 = vst [vmem:[%s5666_s30 + $0x138] sm:$0xff] %v253_v39  ;;  %v259_v42 = vld [vmem:[%s5661_s29 + $0x150] sm:$0xff] }
  0x2a   : > { %256 = vst [vmem:[%s5666_s30 + $0x140] sm:$0xff] %v255_v40  ;;  %258 = vst [vmem:[%s5666_s30 + $0x148] sm:$0xff] %v257_v41  ;;  %v261_v43 = vld [vmem:[%s5661_s29 + $0x158] sm:$0xff]  ;;  %v263_v44 = vld [vmem:[%s5661_s29 + $0x580] sm:$0xff] }
  0x2b   : > { %260 = vst [vmem:[%s5666_s30 + $0x150] sm:$0xff] %v259_v42  ;;  %262 = vst [vmem:[%s5666_s30 + $0x158] sm:$0xff] %v261_v43  ;;  %v265_v45 = vld [vmem:[%s5661_s29 + $0x588] sm:$0xff]  ;;  %v267_v46 = vld [vmem:[%s5661_s29 + $0x590] sm:$0xff] }
  0x2c   : > { %264 = vst [vmem:[%s5666_s30 + $0x160] sm:$0xff] %v263_v44  ;;  %v269_v47 = vld [vmem:[%s5661_s29 + $0x598] sm:$0xff]  ;;  %266 = vst [vmem:[%s5666_s30 + $0x168] sm:$0xff] %v265_v45  ;;  %v271_v48 = vld [vmem:[%s5661_s29 + $0x5a0] sm:$0xff] }
  0x2d   : > { %268 = vst [vmem:[%s5666_s30 + $0x170] sm:$0xff] %v267_v46  ;;  %270 = vst [vmem:[%s5666_s30 + $0x178] sm:$0xff] %v269_v47  ;;  %v273_v49 = vld [vmem:[%s5661_s29 + $0x5a8] sm:$0xff]  ;;  %v275_v50 = vld [vmem:[%s5661_s29 + $0x5b0] sm:$0xff] }
  0x2e   : > { %272 = vst [vmem:[%s5666_s30 + $0x180] sm:$0xff] %v271_v48  ;;  %274 = vst [vmem:[%s5666_s30 + $0x188] sm:$0xff] %v273_v49  ;;  %v277_v51 = vld [vmem:[%s5661_s29 + $0x5b8] sm:$0xff]  ;;  %v279_v52 = vld [vmem:[%s5661_s29 + $0x5c0] sm:$0xff] }
  0x2f   : > { %276 = vst [vmem:[%s5666_s30 + $0x190] sm:$0xff] %v275_v50  ;;  %v281_v53 = vld [vmem:[%s5661_s29 + $0x5c8] sm:$0xff]  ;;  %278 = vst [vmem:[%s5666_s30 + $0x198] sm:$0xff] %v277_v51  ;;  %v283_v54 = vld [vmem:[%s5661_s29 + $0x5d0] sm:$0xff] }
  0x30   : > { %280 = vst [vmem:[%s5666_s30 + $0x1a0] sm:$0xff] %v279_v52  ;;  %282 = vst [vmem:[%s5666_s30 + $0x1a8] sm:$0xff] %v281_v53  ;;  %v285_v55 = vld [vmem:[%s5661_s29 + $0x5d8] sm:$0xff]  ;;  %v287_v56 = vld [vmem:[%s5661_s29 + $0x5e0] sm:$0xff] }
  0x31   : > { %284 = vst [vmem:[%s5666_s30 + $0x1b0] sm:$0xff] %v283_v54  ;;  %286 = vst [vmem:[%s5666_s30 + $0x1b8] sm:$0xff] %v285_v55  ;;  %v289_v57 = vld [vmem:[%s5661_s29 + $0x5e8] sm:$0xff]  ;;  %v291_v58 = vld [vmem:[%s5661_s29 + $0x5f0] sm:$0xff] }
  0x32   : > { %288 = vst [vmem:[%s5666_s30 + $0x1c0] sm:$0xff] %v287_v56  ;;  %v293_v59 = vld [vmem:[%s5661_s29 + $0x5f8] sm:$0xff]  ;;  %290 = vst [vmem:[%s5666_s30 + $0x1c8] sm:$0xff] %v289_v57  ;;  %v295_v60 = vld [vmem:[%s5661_s29 + $0x600] sm:$0xff] }
  0x33   : > { %292 = vst [vmem:[%s5666_s30 + $0x1d0] sm:$0xff] %v291_v58  ;;  %294 = vst [vmem:[%s5666_s30 + $0x1d8] sm:$0xff] %v293_v59  ;;  %v297_v61 = vld [vmem:[%s5661_s29 + $0x608] sm:$0xff]  ;;  %v299_v62 = vld [vmem:[%s5661_s29 + $0x610] sm:$0xff] }
  0x34   : > { %296 = vst [vmem:[%s5666_s30 + $0x1e0] sm:$0xff] %v295_v60  ;;  %298 = vst [vmem:[%s5666_s30 + $0x1e8] sm:$0xff] %v297_v61  ;;  %v301_v63 = vld [vmem:[%s5661_s29 + $0x618] sm:$0xff]  ;;  %v303_v0 = vld [vmem:[%s5661_s29 + $0x620] sm:$0xff] }
  0x35   : > { %300 = vst [vmem:[%s5666_s30 + $0x1f0] sm:$0xff] %v299_v62  ;;  %v305_v1 = vld [vmem:[%s5661_s29 + $0x628] sm:$0xff]  ;;  %302 = vst [vmem:[%s5666_s30 + $0x1f8] sm:$0xff] %v301_v63  ;;  %v307_v2 = vld [vmem:[%s5661_s29 + $0x630] sm:$0xff] }
  0x36   : > { %304 = vst [vmem:[%s5666_s30 + $0x200] sm:$0xff] %v303_v0  ;;  %306 = vst [vmem:[%s5666_s30 + $0x208] sm:$0xff] %v305_v1  ;;  %v309_v3 = vld [vmem:[%s5661_s29 + $0x638] sm:$0xff]  ;;  %v311_v4 = vld [vmem:[%s5661_s29 + $0x640] sm:$0xff] }
  0x37   : > { %308 = vst [vmem:[%s5666_s30 + $0x210] sm:$0xff] %v307_v2  ;;  %310 = vst [vmem:[%s5666_s30 + $0x218] sm:$0xff] %v309_v3  ;;  %v313_v5 = vld [vmem:[%s5661_s29 + $0x648] sm:$0xff]  ;;  %v315_v6 = vld [vmem:[%s5661_s29 + $0x650] sm:$0xff] }
  0x38   : > { %312 = vst [vmem:[%s5666_s30 + $0x220] sm:$0xff] %v311_v4  ;;  %v317_v7 = vld [vmem:[%s5661_s29 + $0x658] sm:$0xff]  ;;  %314 = vst [vmem:[%s5666_s30 + $0x228] sm:$0xff] %v313_v5  ;;  %v319_v8 = vld [vmem:[%s5661_s29 + $0x660] sm:$0xff] }
  0x39   : > { %316 = vst [vmem:[%s5666_s30 + $0x230] sm:$0xff] %v315_v6  ;;  %318 = vst [vmem:[%s5666_s30 + $0x238] sm:$0xff] %v317_v7  ;;  %v321_v9 = vld [vmem:[%s5661_s29 + $0x668] sm:$0xff]  ;;  %v323_v10 = vld [vmem:[%s5661_s29 + $0x670] sm:$0xff] }
  0x3a   : > { %320 = vst [vmem:[%s5666_s30 + $0x240] sm:$0xff] %v319_v8  ;;  %322 = vst [vmem:[%s5666_s30 + $0x248] sm:$0xff] %v321_v9  ;;  %v325_v11 = vld [vmem:[%s5661_s29 + $0x678] sm:$0xff]  ;;  %v327_v12 = vld [vmem:[%s5661_s29 + $0x680] sm:$0xff] }
  0x3b   : > { %324 = vst [vmem:[%s5666_s30 + $0x250] sm:$0xff] %v323_v10  ;;  %v329_v13 = vld [vmem:[%s5661_s29 + $0x688] sm:$0xff]  ;;  %326 = vst [vmem:[%s5666_s30 + $0x258] sm:$0xff] %v325_v11  ;;  %v331_v14 = vld [vmem:[%s5661_s29 + $0x690] sm:$0xff] }
  0x3c   : > { %328 = vst [vmem:[%s5666_s30 + $0x260] sm:$0xff] %v327_v12  ;;  %330 = vst [vmem:[%s5666_s30 + $0x268] sm:$0xff] %v329_v13  ;;  %v333_v15 = vld [vmem:[%s5661_s29 + $0x698] sm:$0xff]  ;;  %v335_v16 = vld [vmem:[%s5661_s29 + $0x6a0] sm:$0xff] }
  0x3d   : > { %332 = vst [vmem:[%s5666_s30 + $0x270] sm:$0xff] %v331_v14  ;;  %334 = vst [vmem:[%s5666_s30 + $0x278] sm:$0xff] %v333_v15  ;;  %v337_v17 = vld [vmem:[%s5661_s29 + $0x6a8] sm:$0xff]  ;;  %v339_v18 = vld [vmem:[%s5661_s29 + $0x6b0] sm:$0xff] }
  0x3e   : > { %336 = vst [vmem:[%s5666_s30 + $0x280] sm:$0xff] %v335_v16  ;;  %v341_v19 = vld [vmem:[%s5661_s29 + $0x6b8] sm:$0xff]  ;;  %338 = vst [vmem:[%s5666_s30 + $0x288] sm:$0xff] %v337_v17  ;;  %v343_v20 = vld [vmem:[%s5661_s29 + $0x6c0] sm:$0xff] }
  0x3f   : > { %340 = vst [vmem:[%s5666_s30 + $0x290] sm:$0xff] %v339_v18  ;;  %342 = vst [vmem:[%s5666_s30 + $0x298] sm:$0xff] %v341_v19  ;;  %v345_v21 = vld [vmem:[%s5661_s29 + $0x6c8] sm:$0xff]  ;;  %v347_v22 = vld [vmem:[%s5661_s29 + $0x6d0] sm:$0xff] }
  0x40   : > { %344 = vst [vmem:[%s5666_s30 + $0x2a0] sm:$0xff] %v343_v20  ;;  %346 = vst [vmem:[%s5666_s30 + $0x2a8] sm:$0xff] %v345_v21  ;;  %v349_v23 = vld [vmem:[%s5661_s29 + $0x6d8] sm:$0xff]  ;;  %v351_v24 = vld [vmem:[%s5661_s29 + $0xb00] sm:$0xff] }
  0x41   : > { %348 = vst [vmem:[%s5666_s30 + $0x2b0] sm:$0xff] %v347_v22  ;;  %v353_v25 = vld [vmem:[%s5661_s29 + $0xb08] sm:$0xff]  ;;  %350 = vst [vmem:[%s5666_s30 + $0x2b8] sm:$0xff] %v349_v23  ;;  %v355_v26 = vld [vmem:[%s5661_s29 + $0xb10] sm:$0xff] }
  0x42   : > { %352 = vst [vmem:[%s5666_s30 + $0x2c0] sm:$0xff] %v351_v24  ;;  %354 = vst [vmem:[%s5666_s30 + $0x2c8] sm:$0xff] %v353_v25  ;;  %v357_v27 = vld [vmem:[%s5661_s29 + $0xb18] sm:$0xff]  ;;  %v359_v28 = vld [vmem:[%s5661_s29 + $0xb20] sm:$0xff] }
  0x43   : > { %356 = vst [vmem:[%s5666_s30 + $0x2d0] sm:$0xff] %v355_v26  ;;  %358 = vst [vmem:[%s5666_s30 + $0x2d8] sm:$0xff] %v357_v27  ;;  %v361_v29 = vld [vmem:[%s5661_s29 + $0xb28] sm:$0xff]  ;;  %v363_v30 = vld [vmem:[%s5661_s29 + $0xb30] sm:$0xff] }
  0x44   : > { %360 = vst [vmem:[%s5666_s30 + $0x2e0] sm:$0xff] %v359_v28  ;;  %v365_v31 = vld [vmem:[%s5661_s29 + $0xb38] sm:$0xff]  ;;  %362 = vst [vmem:[%s5666_s30 + $0x2e8] sm:$0xff] %v361_v29  ;;  %v367_v32 = vld [vmem:[%s5661_s29 + $0xb40] sm:$0xff] }
  0x45   : > { %364 = vst [vmem:[%s5666_s30 + $0x2f0] sm:$0xff] %v363_v30  ;;  %366 = vst [vmem:[%s5666_s30 + $0x2f8] sm:$0xff] %v365_v31  ;;  %v369_v33 = vld [vmem:[%s5661_s29 + $0xb48] sm:$0xff]  ;;  %v371_v34 = vld [vmem:[%s5661_s29 + $0xb50] sm:$0xff] }
  0x46   : > { %368 = vst [vmem:[%s5666_s30 + $0x300] sm:$0xff] %v367_v32  ;;  %370 = vst [vmem:[%s5666_s30 + $0x308] sm:$0xff] %v369_v33  ;;  %v373_v35 = vld [vmem:[%s5661_s29 + $0xb58] sm:$0xff]  ;;  %v375_v36 = vld [vmem:[%s5661_s29 + $0xb60] sm:$0xff] }
  0x47   : > { %372 = vst [vmem:[%s5666_s30 + $0x310] sm:$0xff] %v371_v34  ;;  %v377_v37 = vld [vmem:[%s5661_s29 + $0xb68] sm:$0xff]  ;;  %374 = vst [vmem:[%s5666_s30 + $0x318] sm:$0xff] %v373_v35  ;;  %v379_v38 = vld [vmem:[%s5661_s29 + $0xb70] sm:$0xff] }
  0x48   : > { %376 = vst [vmem:[%s5666_s30 + $0x320] sm:$0xff] %v375_v36  ;;  %378 = vst [vmem:[%s5666_s30 + $0x328] sm:$0xff] %v377_v37  ;;  %v381_v39 = vld [vmem:[%s5661_s29 + $0xb78] sm:$0xff]  ;;  %v383_v40 = vld [vmem:[%s5661_s29 + $0xb80] sm:$0xff] }
  0x49   : > { %380 = vst [vmem:[%s5666_s30 + $0x330] sm:$0xff] %v379_v38  ;;  %382 = vst [vmem:[%s5666_s30 + $0x338] sm:$0xff] %v381_v39  ;;  %v385_v41 = vld [vmem:[%s5661_s29 + $0xb88] sm:$0xff]  ;;  %v387_v42 = vld [vmem:[%s5661_s29 + $0xb90] sm:$0xff] }
  0x4a   : > { %384 = vst [vmem:[%s5666_s30 + $0x340] sm:$0xff] %v383_v40  ;;  %v389_v43 = vld [vmem:[%s5661_s29 + $0xb98] sm:$0xff]  ;;  %386 = vst [vmem:[%s5666_s30 + $0x348] sm:$0xff] %v385_v41  ;;  %v391_v44 = vld [vmem:[%s5661_s29 + $0xba0] sm:$0xff] }
  0x4b   : > { %388 = vst [vmem:[%s5666_s30 + $0x350] sm:$0xff] %v387_v42  ;;  %390 = vst [vmem:[%s5666_s30 + $0x358] sm:$0xff] %v389_v43  ;;  %v393_v45 = vld [vmem:[%s5661_s29 + $0xba8] sm:$0xff]  ;;  %v395_v46 = vld [vmem:[%s5661_s29 + $0xbb0] sm:$0xff] }
  0x4c   : > { %392 = vst [vmem:[%s5666_s30 + $0x360] sm:$0xff] %v391_v44  ;;  %394 = vst [vmem:[%s5666_s30 + $0x368] sm:$0xff] %v393_v45  ;;  %v397_v47 = vld [vmem:[%s5661_s29 + $0xbb8] sm:$0xff]  ;;  %v399_v48 = vld [vmem:[%s5661_s29 + $0xbc0] sm:$0xff] }
  0x4d   : > { %396 = vst [vmem:[%s5666_s30 + $0x370] sm:$0xff] %v395_v46  ;;  %v401_v49 = vld [vmem:[%s5661_s29 + $0xbc8] sm:$0xff]  ;;  %398 = vst [vmem:[%s5666_s30 + $0x378] sm:$0xff] %v397_v47  ;;  %v403_v50 = vld [vmem:[%s5661_s29 + $0xbd0] sm:$0xff] }
  0x4e   : > { %400 = vst [vmem:[%s5666_s30 + $0x380] sm:$0xff] %v399_v48  ;;  %402 = vst [vmem:[%s5666_s30 + $0x388] sm:$0xff] %v401_v49  ;;  %v405_v51 = vld [vmem:[%s5661_s29 + $0xbd8] sm:$0xff]  ;;  %v407_v52 = vld [vmem:[%s5661_s29 + $0xbe0] sm:$0xff] }
  0x4f   : > { %404 = vst [vmem:[%s5666_s30 + $0x390] sm:$0xff] %v403_v50  ;;  %406 = vst [vmem:[%s5666_s30 + $0x398] sm:$0xff] %v405_v51  ;;  %v409_v53 = vld [vmem:[%s5661_s29 + $0xbe8] sm:$0xff]  ;;  %v411_v54 = vld [vmem:[%s5661_s29 + $0xbf0] sm:$0xff] }
  0x50   : > { %408 = vst [vmem:[%s5666_s30 + $0x3a0] sm:$0xff] %v407_v52  ;;  %v413_v55 = vld [vmem:[%s5661_s29 + $0xbf8] sm:$0xff]  ;;  %410 = vst [vmem:[%s5666_s30 + $0x3a8] sm:$0xff] %v409_v53  ;;  %v415_v56 = vld [vmem:[%s5661_s29 + $0xc00] sm:$0xff] }
  0x51   : > { %412 = vst [vmem:[%s5666_s30 + $0x3b0] sm:$0xff] %v411_v54  ;;  %414 = vst [vmem:[%s5666_s30 + $0x3b8] sm:$0xff] %v413_v55  ;;  %v417_v57 = vld [vmem:[%s5661_s29 + $0xc08] sm:$0xff]  ;;  %v419_v58 = vld [vmem:[%s5661_s29 + $0xc10] sm:$0xff] }
  0x52   : > { %416 = vst [vmem:[%s5666_s30 + $0x3c0] sm:$0xff] %v415_v56  ;;  %418 = vst [vmem:[%s5666_s30 + $0x3c8] sm:$0xff] %v417_v57  ;;  %v421_v59 = vld [vmem:[%s5661_s29 + $0xc18] sm:$0xff]  ;;  %v423_v60 = vld [vmem:[%s5661_s29 + $0xc20] sm:$0xff] }
  0x53   : > { %420 = vst [vmem:[%s5666_s30 + $0x3d0] sm:$0xff] %v419_v58  ;;  %v425_v61 = vld [vmem:[%s5661_s29 + $0xc28] sm:$0xff]  ;;  %422 = vst [vmem:[%s5666_s30 + $0x3d8] sm:$0xff] %v421_v59  ;;  %v427_v62 = vld [vmem:[%s5661_s29 + $0xc30] sm:$0xff] }
  0x54   : > { %424 = vst [vmem:[%s5666_s30 + $0x3e0] sm:$0xff] %v423_v60  ;;  %426 = vst [vmem:[%s5666_s30 + $0x3e8] sm:$0xff] %v425_v61  ;;  %v429_v63 = vld [vmem:[%s5661_s29 + $0xc38] sm:$0xff]  ;;  %v431_v0 = vld [vmem:[%s5661_s29 + $0xc40] sm:$0xff] }
  0x55   : > { %428 = vst [vmem:[%s5666_s30 + $0x3f0] sm:$0xff] %v427_v62  ;;  %430 = vst [vmem:[%s5666_s30 + $0x3f8] sm:$0xff] %v429_v63  ;;  %v433_v1 = vld [vmem:[%s5661_s29 + $0xc48] sm:$0xff]  ;;  %v435_v2 = vld [vmem:[%s5661_s29 + $0xc50] sm:$0xff] }
  0x56   : > { %432 = vst [vmem:[%s5666_s30 + $0x400] sm:$0xff] %v431_v0  ;;  %v437_v3 = vld [vmem:[%s5661_s29 + $0xc58] sm:$0xff]  ;;  %434 = vst [vmem:[%s5666_s30 + $0x408] sm:$0xff] %v433_v1  ;;  %v439_v4 = vld [vmem:[%s5661_s29 + $0x1080] sm:$0xff] }
  0x57   : > { %436 = vst [vmem:[%s5666_s30 + $0x410] sm:$0xff] %v435_v2  ;;  %438 = vst [vmem:[%s5666_s30 + $0x418] sm:$0xff] %v437_v3  ;;  %v441_v5 = vld [vmem:[%s5661_s29 + $0x1088] sm:$0xff]  ;;  %v443_v6 = vld [vmem:[%s5661_s29 + $0x1090] sm:$0xff] }
  0x58   : > { %440 = vst [vmem:[%s5666_s30 + $0x420] sm:$0xff] %v439_v4  ;;  %442 = vst [vmem:[%s5666_s30 + $0x428] sm:$0xff] %v441_v5  ;;  %v445_v7 = vld [vmem:[%s5661_s29 + $0x1098] sm:$0xff]  ;;  %v447_v8 = vld [vmem:[%s5661_s29 + $0x10a0] sm:$0xff] }
  0x59   : > { %444 = vst [vmem:[%s5666_s30 + $0x430] sm:$0xff] %v443_v6  ;;  %v449_v9 = vld [vmem:[%s5661_s29 + $0x10a8] sm:$0xff]  ;;  %446 = vst [vmem:[%s5666_s30 + $0x438] sm:$0xff] %v445_v7  ;;  %v451_v10 = vld [vmem:[%s5661_s29 + $0x10b0] sm:$0xff] }
  0x5a   : > { %448 = vst [vmem:[%s5666_s30 + $0x440] sm:$0xff] %v447_v8  ;;  %450 = vst [vmem:[%s5666_s30 + $0x448] sm:$0xff] %v449_v9  ;;  %v453_v11 = vld [vmem:[%s5661_s29 + $0x10b8] sm:$0xff]  ;;  %v455_v12 = vld [vmem:[%s5661_s29 + $0x10c0] sm:$0xff] }
  0x5b   : > { %452 = vst [vmem:[%s5666_s30 + $0x450] sm:$0xff] %v451_v10  ;;  %454 = vst [vmem:[%s5666_s30 + $0x458] sm:$0xff] %v453_v11  ;;  %v457_v13 = vld [vmem:[%s5661_s29 + $0x10c8] sm:$0xff]  ;;  %v459_v14 = vld [vmem:[%s5661_s29 + $0x10d0] sm:$0xff] }
  0x5c   : > { %456 = vst [vmem:[%s5666_s30 + $0x460] sm:$0xff] %v455_v12  ;;  %v461_v15 = vld [vmem:[%s5661_s29 + $0x10d8] sm:$0xff]  ;;  %458 = vst [vmem:[%s5666_s30 + $0x468] sm:$0xff] %v457_v13  ;;  %v463_v16 = vld [vmem:[%s5661_s29 + $0x10e0] sm:$0xff] }
  0x5d   : > { %460 = vst [vmem:[%s5666_s30 + $0x470] sm:$0xff] %v459_v14  ;;  %462 = vst [vmem:[%s5666_s30 + $0x478] sm:$0xff] %v461_v15  ;;  %v465_v17 = vld [vmem:[%s5661_s29 + $0x10e8] sm:$0xff]  ;;  %v467_v18 = vld [vmem:[%s5661_s29 + $0x10f0] sm:$0xff] }
  0x5e   : > { %464 = vst [vmem:[%s5666_s30 + $0x480] sm:$0xff] %v463_v16  ;;  %466 = vst [vmem:[%s5666_s30 + $0x488] sm:$0xff] %v465_v17  ;;  %v469_v19 = vld [vmem:[%s5661_s29 + $0x10f8] sm:$0xff]  ;;  %v471_v20 = vld [vmem:[%s5661_s29 + $0x1100] sm:$0xff] }
  0x5f   : > { %468 = vst [vmem:[%s5666_s30 + $0x490] sm:$0xff] %v467_v18  ;;  %v473_v21 = vld [vmem:[%s5661_s29 + $0x1108] sm:$0xff]  ;;  %470 = vst [vmem:[%s5666_s30 + $0x498] sm:$0xff] %v469_v19  ;;  %v475_v22 = vld [vmem:[%s5661_s29 + $0x1110] sm:$0xff] }
  0x60   : > { %472 = vst [vmem:[%s5666_s30 + $0x4a0] sm:$0xff] %v471_v20  ;;  %474 = vst [vmem:[%s5666_s30 + $0x4a8] sm:$0xff] %v473_v21  ;;  %v477_v23 = vld [vmem:[%s5661_s29 + $0x1118] sm:$0xff]  ;;  %v479_v24 = vld [vmem:[%s5661_s29 + $0x1120] sm:$0xff] }
  0x61   : > { %476 = vst [vmem:[%s5666_s30 + $0x4b0] sm:$0xff] %v475_v22  ;;  %478 = vst [vmem:[%s5666_s30 + $0x4b8] sm:$0xff] %v477_v23  ;;  %v481_v25 = vld [vmem:[%s5661_s29 + $0x1128] sm:$0xff]  ;;  %v483_v26 = vld [vmem:[%s5661_s29 + $0x1130] sm:$0xff] }
  0x62   : > { %480 = vst [vmem:[%s5666_s30 + $0x4c0] sm:$0xff] %v479_v24  ;;  %v485_v27 = vld [vmem:[%s5661_s29 + $0x1138] sm:$0xff]  ;;  %482 = vst [vmem:[%s5666_s30 + $0x4c8] sm:$0xff] %v481_v25  ;;  %v487_v28 = vld [vmem:[%s5661_s29 + $0x1140] sm:$0xff] }
  0x63   : > { %484 = vst [vmem:[%s5666_s30 + $0x4d0] sm:$0xff] %v483_v26  ;;  %486 = vst [vmem:[%s5666_s30 + $0x4d8] sm:$0xff] %v485_v27  ;;  %v489_v29 = vld [vmem:[%s5661_s29 + $0x1148] sm:$0xff]  ;;  %v491_v30 = vld [vmem:[%s5661_s29 + $0x1150] sm:$0xff] }
  0x64   : > { %488 = vst [vmem:[%s5666_s30 + $0x4e0] sm:$0xff] %v487_v28  ;;  %490 = vst [vmem:[%s5666_s30 + $0x4e8] sm:$0xff] %v489_v29  ;;  %v493_v31 = vld [vmem:[%s5661_s29 + $0x1158] sm:$0xff]  ;;  %v495_v32 = vld [vmem:[%s5661_s29 + $0x1160] sm:$0xff] }
  0x65   : > { %492 = vst [vmem:[%s5666_s30 + $0x4f0] sm:$0xff] %v491_v30  ;;  %v497_v33 = vld [vmem:[%s5661_s29 + $0x1168] sm:$0xff]  ;;  %494 = vst [vmem:[%s5666_s30 + $0x4f8] sm:$0xff] %v493_v31  ;;  %v499_v34 = vld [vmem:[%s5661_s29 + $0x1170] sm:$0xff] }
  0x66   : > { %496 = vst [vmem:[%s5666_s30 + $0x500] sm:$0xff] %v495_v32  ;;  %498 = vst [vmem:[%s5666_s30 + $0x508] sm:$0xff] %v497_v33  ;;  %v501_v35 = vld [vmem:[%s5661_s29 + $0x1178] sm:$0xff]  ;;  %v503_v36 = vld [vmem:[%s5661_s29 + $0x1180] sm:$0xff] }
  0x67   : > { %500 = vst [vmem:[%s5666_s30 + $0x510] sm:$0xff] %v499_v34  ;;  %502 = vst [vmem:[%s5666_s30 + $0x518] sm:$0xff] %v501_v35  ;;  %v505_v37 = vld [vmem:[%s5661_s29 + $0x1188] sm:$0xff]  ;;  %v507_v38 = vld [vmem:[%s5661_s29 + $0x1190] sm:$0xff] }
  0x68   : > { %504 = vst [vmem:[%s5666_s30 + $0x520] sm:$0xff] %v503_v36  ;;  %v509_v39 = vld [vmem:[%s5661_s29 + $0x1198] sm:$0xff]  ;;  %506 = vst [vmem:[%s5666_s30 + $0x528] sm:$0xff] %v505_v37  ;;  %v511_v40 = vld [vmem:[%s5661_s29 + $0x11a0] sm:$0xff] }
  0x69   : > { %508 = vst [vmem:[%s5666_s30 + $0x530] sm:$0xff] %v507_v38  ;;  %510 = vst [vmem:[%s5666_s30 + $0x538] sm:$0xff] %v509_v39  ;;  %v513_v41 = vld [vmem:[%s5661_s29 + $0x11a8] sm:$0xff]  ;;  %v515_v42 = vld [vmem:[%s5661_s29 + $0x11b0] sm:$0xff] }
  0x6a   : > { %512 = vst [vmem:[%s5666_s30 + $0x540] sm:$0xff] %v511_v40  ;;  %514 = vst [vmem:[%s5666_s30 + $0x548] sm:$0xff] %v513_v41  ;;  %v517_v43 = vld [vmem:[%s5661_s29 + $0x11b8] sm:$0xff]  ;;  %v519_v44 = vld [vmem:[%s5661_s29 + $0x11c0] sm:$0xff] }
  0x6b   : > { %516 = vst [vmem:[%s5666_s30 + $0x550] sm:$0xff] %v515_v42  ;;  %v521_v45 = vld [vmem:[%s5661_s29 + $0x11c8] sm:$0xff]  ;;  %518 = vst [vmem:[%s5666_s30 + $0x558] sm:$0xff] %v517_v43  ;;  %v523_v46 = vld [vmem:[%s5661_s29 + $0x11d0] sm:$0xff] }
  0x6c   : > { %520 = vst [vmem:[%s5666_s30 + $0x560] sm:$0xff] %v519_v44  ;;  %522 = vst [vmem:[%s5666_s30 + $0x568] sm:$0xff] %v521_v45  ;;  %v525_v47 = vld [vmem:[%s5661_s29 + $0x11d8] sm:$0xff] }
  0x6d   : > { %524 = vst [vmem:[%s5666_s30 + $0x570] sm:$0xff] %v523_v46  ;;  %526 = vst [vmem:[%s5666_s30 + $0x578] sm:$0xff] %v525_v47 }
  0x6e PF: > { %p5134_p7 = scmp.ge.s32.totalorder %s5592_s17, 1  ;;  %p531_p8 = scmp.lt.s32.totalorder %s5592_s17, 5 }
  0x70   : > { %p532_p9 = pnand %p5134_p7, %p531_p8 }
  0x71   : > { %s538_s5 = sand.u32 (!%p532_p9), 1, %s5584_s15   ;;  %vm1544_vm0 = vcmask (!%p532_p9), 1044480   ;;  %v3704_v48 = vld [vmem:[%s7095_s1] sm:$0xff] (!%p532_p9)  ;;  %v5594_v49 = vmov (!%p532_p9), 0   ;;  %vm1545_vm1 = vcmask (!%p532_p9), 1045504   ;;  %v5595_v50 = vmov (!%p532_p9), 65535  }
  0x72   : > { %535 = sbr.rel (%p532_p9) target bundleno = 556 (0x22c), region = 55  ;;  %1844 = vmatprep.mubr.bf16.mxu0 (!%p532_p9), %v5594_v49  ;;  %1887 = vmatprep.mubr.bf16.mxu1 (!%p532_p9), %v5594_v49  ;;  %v1546_v51 = vsel (!%p532_p9), %vm1544_vm0, 4294967295, %v5595_v50  ;;  %v3892_v52 = vld [vmem:[%s7096_s2] sm:$0xff] (!%p532_p9)  ;;  %v3705_v53 = vld [vmem:[%s7095_s1 + $0x8] sm:$0xf] (!%p532_p9)  ;;  %vm1540_vm2 = vcmask (!%p532_p9), 220160  }
  0x73   : > { %s5538_s8 = smul.u32 (!%p532_p9), 1408, %s538_s5  ;;  %5566 = vset.pattern.permute.xlu0 (!%p532_p9), %v5594_v49  ;;  %5567 = vset.pattern.permute.xlu1 (!%p532_p9), %v5594_v49  ;;  %v6044_v62 = vsel (!%p532_p9), %vm1545_vm1, %v1546_v51, 0  ;;  %v6063_v22 = vld [vmem:[%s7094_s0] sm:$0x3f] (!%p532_p9)  }
  0x74   : > { %3708 = vperm.xlu0 (!%p532_p9), %5566, %v3704_v48   ;;  %3896 = vperm.xlu1 (!%p532_p9), %5567, %v3892_v52   ;;  %s5539_s27 = smul.u32 (!%p532_p9), 704, %s538_s5 }
  0x75   : > { %s6035_s13 = scalar_lea.vmem (!%p532_p9), [#allocation2], %s5538_s8 }
  0x76   : > { %v567_v54 = vld [vmem:[%s6035_s13] sm:$0xff] (!%p532_p9)  ;;  %v568_v56 = vld [vmem:[%s6035_s13 + $0x8] sm:$0xff] (!%p532_p9)  ;;  %v569_v5 = vld [vmem:[%s6035_s13 + $0x10] sm:$0xff] (!%p532_p9)  ;;  %s6474_s15 = scalar_lea.vmem (!%p532_p9), [#allocation3], %s5539_s27 }
  0x77   : > { %v611_v55 = vld [vmem:[%s6035_s13 + $0x160] sm:$0xff] (!%p532_p9)  ;;  %v612_v58 = vld [vmem:[%s6035_s13 + $0x168] sm:$0xff] (!%p532_p9)  ;;  %v613_v8 = vld [vmem:[%s6035_s13 + $0x170] sm:$0xff] (!%p532_p9) }
  0x78   : > { %v5137_v57 = vcombine.high (!%p532_p9), %v567_v54, %v611_v55  ;;  %v5136_v59 = vcombine.low (!%p532_p9), %v567_v54, %v611_v55  ;;  %v655_v60 = vld [vmem:[%s6035_s13 + $0x2c0] sm:$0xff] (!%p532_p9)  ;;  %v5139_v63 = vcombine.high (!%p532_p9), %v568_v56, %v612_v58  ;;  %v5138_v0 = vcombine.low (!%p532_p9), %v568_v56, %v612_v58  ;;  %v656_v2 = vld [vmem:[%s6035_s13 + $0x2c8] sm:$0xff] (!%p532_p9)  ;;  %v570_v9 = vld [vmem:[%s6035_s13 + $0x18] sm:$0xff] (!%p532_p9)  ;;  %3713 = vperm.xlu0 (!%p532_p9), %5566, %v3705_v53  }
  0x79   : > { %v699_v61 = vld [vmem:[%s6035_s13 + $0x420] sm:$0x33]  ;;  %v700_v3 = vld [vmem:[%s6035_s13 + $0x428] sm:$0x33]  ;;  %v614_v10 = vld [vmem:[%s6035_s13 + $0x178] sm:$0xff]  ;;  %v5141_v18 = vcombine.high %v569_v5, %v613_v8  ;;  %v5140_v24 = vcombine.low %v569_v5, %v613_v8  ;;  %s5536_s28 = smul.u32 (%p5651_p5), 352, %s5129_s18 }
  0x7a   : > { %v5225_v1 = vcombine.high %v655_v60, %v699_v61  ;;  %v5224_v4 = vcombine.low %v655_v60, %v699_v61  ;;  %1812 = vmatprep.subr.bf16.mxu0 %v5137_v57  ;;  %v5227_v6 = vcombine.high %v656_v2, %v700_v3  ;;  %v5226_v7 = vcombine.low %v656_v2, %v700_v3  ;;  %v657_v13 = vld [vmem:[%s6035_s13 + $0x2d0] sm:$0xff]  ;;  %v658_v15 = vld [vmem:[%s6035_s13 + $0x2d8] sm:$0xff]  ;;  %v571_v29 = vld [vmem:[%s6035_s13 + $0x20] sm:$0xff] }
  0x7b   : > { %1855 = vmatprep.subr.bf16.mxu1 %v5139_v63  ;;  %1813 = vmatpush1.bf16.msra.mxu0 %v5136_v59  ;;  %v701_v14 = vld [vmem:[%s6035_s13 + $0x430] sm:$0x33]  ;;  %v702_v19 = vld [vmem:[%s6035_s13 + $0x438] sm:$0x33]  ;;  %v5143_v20 = vcombine.high %v570_v9, %v614_v10  ;;  %v5142_v26 = vcombine.low %v570_v9, %v614_v10  ;;  %v615_v30 = vld [vmem:[%s6035_s13 + $0x180] sm:$0xff]  ;;  %s6912_s29 = scalar_lea.vmem (%p5651_p5), %s7098_s4, %s5536_s28 }
  0x7c   : > { %v1552_v11 = vand.u32 %v5225_v1, %v6044_v62  ;;  %v1549_v12 = vand.u32 %v5224_v4, %v6044_v62  ;;  %1856 = vmatpush1.bf16.msra.mxu1 %v5138_v0  ;;  %v1558_v16 = vand.u32 %v5227_v6, %v6044_v62  ;;  %v1555_v17 = vand.u32 %v5226_v7, %v6044_v62  ;;  %v572_v32 = vld [vmem:[%s6035_s13 + $0x28] sm:$0xff]  ;;  %v659_v33 = vld [vmem:[%s6035_s13 + $0x2e0] sm:$0xff]  ;;  %v573_v50 = vld [vmem:[%s6035_s13 + $0x30] sm:$0xff] }
  0x7d   : > { %v5229_v21 = vcombine.high %v657_v13, %v701_v14  ;;  %v5231_v23 = vcombine.high %v658_v15, %v702_v19  ;;  %v5228_v25 = vcombine.low %v657_v13, %v701_v14  ;;  %v5230_v28 = vcombine.low %v658_v15, %v702_v19  ;;  %v703_v34 = vld [vmem:[%s6035_s13 + $0x440] sm:$0x33]  ;;  %v616_v35 = vld [vmem:[%s6035_s13 + $0x188] sm:$0xff]  ;;  %v617_v51 = vld [vmem:[%s6035_s13 + $0x190] sm:$0xff] }
  0x7e   : > { %1814 = vmatprep.subr.bf16.mxu0 %v1552_v11  ;;  %1857 = vmatprep.subr.bf16.mxu1 %v1558_v16  ;;  %v660_v36 = vld [vmem:[%s6035_s13 + $0x2e8] sm:$0xff]  ;;  %v5145_v40 = vcombine.high %v571_v29, %v615_v30  ;;  %v5233_v41 = vcombine.high %v659_v33, %v703_v34  ;;  %v5147_v42 = vcombine.high %v572_v32, %v616_v35  ;;  %v574_v53 = vld [vmem:[%s6035_s13 + $0x38] sm:$0xff]  ;;  %v661_v54 = vld [vmem:[%s6035_s13 + $0x2f0] sm:$0xff] }
  0x7f   : > { %1815 = vmatpush1.bf16.msra.mxu0 %v1549_v12  ;;  %v1564_v27 = vand.u32 %v5229_v21, %v6044_v62  ;;  %v1570_v31 = vand.u32 %v5231_v23, %v6044_v62  ;;  %v704_v37 = vld [vmem:[%s6035_s13 + $0x448] sm:$0x33]  ;;  %v1561_v38 = vand.u32 %v5228_v25, %v6044_v62  ;;  %v1567_v39 = vand.u32 %v5230_v28, %v6044_v62  ;;  %v705_v55 = vld [vmem:[%s6035_s13 + $0x450] sm:$0x33]  ;;  %v618_v56 = vld [vmem:[%s6035_s13 + $0x198] sm:$0xff] }
  0x80   : > { %1858 = vmatpush1.bf16.msra.mxu1 %v1555_v17  ;;  %1898 = vmatprep.subr.bf16.mxu0 %v5141_v18  ;;  %v5235_v43 = vcombine.high %v660_v36, %v704_v37  ;;  %v5144_v44 = vcombine.low %v571_v29, %v615_v30  ;;  %v5232_v45 = vcombine.low %v659_v33, %v703_v34  ;;  %v662_v57 = vld [vmem:[%s6035_s13 + $0x2f8] sm:$0xff]  ;;  %v575_v7 = vld [vmem:[%s6035_s13 + $0x40] sm:$0xff]  ;;  %v576_v10 = vld [vmem:[%s6035_s13 + $0x48] sm:$0xff] }
  0x81   : > { %1941 = vmatprep.subr.bf16.mxu1 %v5143_v20  ;;  %v5146_v46 = vcombine.low %v572_v32, %v616_v35  ;;  %v1576_v47 = vand.u32 %v5233_v41, %v6044_v62  ;;  %v5234_v48 = vcombine.low %v660_v36, %v704_v37  ;;  %v706_v58 = vld [vmem:[%s6035_s13 + $0x458] sm:$0x33]  ;;  %v5149_v61 = vcombine.high %v573_v50, %v617_v51  ;;  %v619_v8 = vld [vmem:[%s6035_s13 + $0x1a0] sm:$0xff]  ;;  %v620_v13 = vld [vmem:[%s6035_s13 + $0x1a8] sm:$0xff] }
  0x82   : > { %5312 = vmatmul.mubr.msk.bf16.vlgmr.msra.gmra.mrb[0].mxu0 %vm1540_vm2, %v6063_v22  ;;  %v1582_v52 = vand.u32 %v5235_v43, %v6044_v62  ;;  %v1573_v59 = vand.u32 %v5232_v45, %v6044_v62  ;;  %v5237_v63 = vcombine.high %v661_v54, %v705_v55  ;;  %v5151_v0 = vcombine.high %v574_v53, %v618_v56  ;;  %v663_v11 = vld [vmem:[%s6035_s13 + $0x300] sm:$0xff]  ;;  %v664_v14 = vld [vmem:[%s6035_s13 + $0x308] sm:$0xff]  ;;  %v577_v28 = vld [vmem:[%s6035_s13 + $0x50] sm:$0xff] }
  0x83   : > { %5313 = vmatmul.mubr.msk.bf16.vlgmr.msra.gmra.mrb[0].mxu1 %vm1540_vm2, %v6063_v22  ;;  %1899 = vmatpush1.bf16.msra.mxu0 %v5140_v24  ;;  %v1579_v60 = vand.u32 %v5234_v48, %v6044_v62  ;;  %v5239_v1 = vcombine.high %v662_v57, %v706_v58  ;;  %v5148_v2 = vcombine.low %v573_v50, %v617_v51  ;;  %v707_v12 = vld [vmem:[%s6035_s13 + $0x460] sm:$0x33]  ;;  %v708_v15 = vld [vmem:[%s6035_s13 + $0x468] sm:$0x33]  ;;  %v621_v29 = vld [vmem:[%s6035_s13 + $0x1b0] sm:$0xff] }
  0x84   : > { %1942 = vmatpush1.bf16.msra.mxu1 %v5142_v26  ;;  %1900 = vmatprep.subr.bf16.mxu0 %v1564_v27  ;;  %v5236_v3 = vcombine.low %v661_v54, %v705_v55  ;;  %v5150_v4 = vcombine.low %v574_v53, %v618_v56  ;;  %v1588_v5 = vand.u32 %v5237_v63, %v6044_v62  ;;  %v665_v32 = vld [vmem:[%s6035_s13 + $0x310] sm:$0xff]  ;;  %v622_v34 = vld [vmem:[%s6035_s13 + $0x1b8] sm:$0xff]  ;;  %v3893_v43 = vld [vmem:[%s7096_s2 + $0x8] sm:$0xf] }
  0x85   : > { %1943 = vmatprep.subr.bf16.mxu1 %v1570_v31  ;;  %1930 = vmatprep.mubr.bf16.mxu0 %v5594_v49  ;;  %v5238_v6 = vcombine.low %v662_v57, %v706_v58  ;;  %v1594_v9 = vand.u32 %v5239_v1, %v6044_v62  ;;  %v5153_v18 = vcombine.high %v575_v7, %v619_v8  ;;  %v578_v31 = vld [vmem:[%s6035_s13 + $0x58] sm:$0xff]  ;;  %v709_v33 = vld [vmem:[%s6035_s13 + $0x470] sm:$0x33]  ;;  %v579_v50 = vld [vmem:[%s6035_s13 + $0x60] sm:$0xff] }
  0x86   : > { %1973 = vmatprep.mubr.bf16.mxu1 %v5594_v49  ;;  %v1585_v16 = vand.u32 %v5236_v3, %v6044_v62  ;;  %v5241_v19 = vcombine.high %v663_v11, %v707_v12  ;;  %v5155_v20 = vcombine.high %v576_v10, %v620_v13  ;;  %v5243_v21 = vcombine.high %v664_v14, %v708_v15  ;;  %v666_v35 = vld [vmem:[%s6035_s13 + $0x318] sm:$0xff]  ;;  %v623_v51 = vld [vmem:[%s6035_s13 + $0x1c0] sm:$0xff]  ;;  %v580_v53 = vld [vmem:[%s6035_s13 + $0x68] sm:$0xff] }
  0x87   : > { %1901 = vmatpush1.bf16.msra.mxu0 %v1561_v38  ;;  %v1591_v17 = vand.u32 %v5238_v6, %v6044_v62  ;;  %v5152_v23 = vcombine.low %v575_v7, %v619_v8  ;;  %v5240_v24 = vcombine.low %v663_v11, %v707_v12  ;;  %v5154_v25 = vcombine.low %v576_v10, %v620_v13  ;;  %v710_v36 = vld [vmem:[%s6035_s13 + $0x478] sm:$0x33]  ;;  %v667_v54 = vld [vmem:[%s6035_s13 + $0x320] sm:$0xff]  ;;  %v624_v56 = vld [vmem:[%s6035_s13 + $0x1c8] sm:$0xff] }
  0x88   : > { %1944 = vmatpush1.bf16.msra.mxu1 %v1567_v39  ;;  %1984 = vmatprep.subr.bf16.mxu0 %v5145_v40  ;;  %v1600_v26 = vand.u32 %v5241_v19, %v6044_v62  ;;  %v5242_v27 = vcombine.low %v664_v14, %v708_v15  ;;  %v1606_v30 = vand.u32 %v5243_v21, %v6044_v62  ;;  %v711_v55 = vld [vmem:[%s6035_s13 + $0x480] sm:$0x33]  ;;  %v668_v57 = vld [vmem:[%s6035_s13 + $0x328] sm:$0xff]  ;;  %v581_v7 = vld [vmem:[%s6035_s13 + $0x70] sm:$0xff] }
  0x89   : > { %2027 = vmatprep.subr.bf16.mxu1 %v5147_v42  ;;  %v1597_v37 = vand.u32 %v5240_v24, %v6044_v62  ;;  %v5157_v39 = vcombine.high %v577_v28, %v621_v29  ;;  %v5245_v40 = vcombine.high %v665_v32, %v709_v33  ;;  %v5159_v41 = vcombine.high %v578_v31, %v622_v34  ;;  %v712_v58 = vld [vmem:[%s6035_s13 + $0x488] sm:$0x33]  ;;  %v625_v8 = vld [vmem:[%s6035_s13 + $0x1d0] sm:$0xff]  ;;  %v582_v10 = vld [vmem:[%s6035_s13 + $0x78] sm:$0xff] }
  0x8a   : > { %5314 = vmatmul.mubr.msk.bf16.vlgmr.msra.gmra.mrb[4].mxu0 %vm1540_vm2, %v6063_v22  ;;  %v1603_v38 = vand.u32 %v5242_v27, %v6044_v62  ;;  %v5247_v42 = vcombine.high %v666_v35, %v710_v36  ;;  %v5244_v45 = vcombine.low %v665_v32, %v709_v33  ;;  %v5246_v48 = vcombine.low %v666_v35, %v710_v36  ;;  %v669_v11 = vld [vmem:[%s6035_s13 + $0x330] sm:$0xff]  ;;  %v626_v13 = vld [vmem:[%s6035_s13 + $0x1d8] sm:$0xff]  ;;  %v671_v32 = vld [vmem:[%s6035_s13 + $0x340] sm:$0xff] }
  0x8b   : > { %5315 = vmatmul.mubr.msk.bf16.vlgmr.msra.gmra.mrb[4].mxu1 %vm1540_vm2, %v6063_v22  ;;  %1985 = vmatpush1.bf16.msra.mxu0 %v5144_v44  ;;  %v5156_v44 = vcombine.low %v577_v28, %v621_v29  ;;  %v5249_v63 = vcombine.high %v667_v54, %v711_v55  ;;  %v5251_v1 = vcombine.high %v668_v57, %v712_v58  ;;  %v713_v12 = vld [vmem:[%s6035_s13 + $0x490] sm:$0x33]  ;;  %v670_v14 = vld [vmem:[%s6035_s13 + $0x338] sm:$0xff]  ;;  %v583_v28 = vld [vmem:[%s6035_s13 + $0x80] sm:$0xff] }
  0x8c   : > { %2028 = vmatpush1.bf16.msra.mxu1 %v5146_v46  ;;  %1986 = vmatprep.subr.bf16.mxu0 %v1576_v47  ;;  %v5158_v46 = vcombine.low %v578_v31, %v622_v34  ;;  %v1612_v47 = vand.u32 %v5245_v40, %v6044_v62  ;;  %v5248_v3 = vcombine.low %v667_v54, %v711_v55  ;;  %v714_v15 = vld [vmem:[%s6035_s13 + $0x498] sm:$0x33]  ;;  %v627_v29 = vld [vmem:[%s6035_s13 + $0x1e0] sm:$0xff]  ;;  %v584_v31 = vld [vmem:[%s6035_s13 + $0x88] sm:$0xff] }
  0x8d   : > { %2029 = vmatprep.subr.bf16.mxu1 %v1582_v52  ;;  %2016 = vmatprep.mubr.bf16.mxu0 %v5594_v49  ;;  %v1618_v52 = vand.u32 %v5247_v42, %v6044_v62  ;;  %v5250_v6 = vcombine.low %v668_v57, %v712_v58  ;;  %v5253_v19 = vcombine.high %v669_v11, %v713_v12  ;;  %v715_v33 = vld [vmem:[%s6035_s13 + $0x4a0] sm:$0x33]  ;;  %v628_v34 = vld [vmem:[%s6035_s13 + $0x1e8] sm:$0xff]  ;;  %v717_v54 = vld [vmem:[%s6035_s13 + $0x4b0] sm:$0x33] }
  0x8e   : > { %2059 = vmatprep.mubr.bf16.mxu1 %v5594_v49  ;;  %3901 = vperm.xlu1 %5567, %v3893_v43   ;;  %v5255_v21 = vcombine.high %v670_v14, %v714_v15  ;;  %v5252_v24 = vcombine.low %v669_v11, %v713_v12  ;;  %v5254_v27 = vcombine.low %v670_v14, %v714_v15  ;;  %v672_v35 = vld [vmem:[%s6035_s13 + $0x348] sm:$0xff]  ;;  %v630_v55 = vld [vmem:[%s6035_s13 + $0x1f8] sm:$0xff]  ;;  %v719_v11 = vld [vmem:[%s6035_s13 + $0x4c0] sm:$0x33] }
  0x8f   : > { %1987 = vmatpush1.bf16.msra.mxu0 %v1573_v59  ;;  %v1609_v59 = vand.u32 %v5244_v45, %v6044_v62  ;;  %v716_v36 = vld [vmem:[%s6035_s13 + $0x4a8] sm:$0x33]  ;;  %v5257_v40 = vcombine.high %v671_v32, %v715_v33  ;;  %v5168_v43 = vcombine.low %v583_v28, %v627_v29  ;;  %v5170_v45 = vcombine.low %v584_v31, %v628_v34  ;;  %v718_v57 = vld [vmem:[%s6035_s13 + $0x4b8] sm:$0x33] }
  0x90   : > { %2030 = vmatpush1.bf16.msra.mxu1 %v1579_v60  ;;  %2070 = vmatprep.subr.bf16.mxu0 %v5149_v61  ;;  %v1615_v60 = vand.u32 %v5246_v48, %v6044_v62  ;;  %v5161_v61 = vcombine.high %v579_v50, %v623_v51  ;;  %v5259_v42 = vcombine.high %v672_v35, %v716_v36  ;;  %v585_v48 = vld [vmem:[%s6035_s13 + $0x90] sm:$0xff]  ;;  %v632_v12 = vld [vmem:[%s6035_s13 + $0x208] sm:$0xff] }
  0x91   : > { %2113 = vmatprep.subr.bf16.mxu1 %v5151_v0  ;;  %v5163_v0 = vcombine.high %v580_v53, %v624_v56  ;;  %v720_v14 = vld [vmem:[%s6035_s13 + $0x4c8] sm:$0x33] }
  0x92   : > { %5316 = vmatmul.mubr.msk.bf16.vlgmr.msra.gmra.mrb[8].mxu0 %vm1540_vm2, %v6063_v22 }
  0x93   : > { %5317 = vmatmul.mubr.msk.bf16.vlgmr.msra.gmra.mrb[8].mxu1 %vm1540_vm2, %v6063_v22  ;;  %2071 = vmatpush1.bf16.msra.mxu0 %v5148_v2  ;;  %v5160_v2 = vcombine.low %v579_v50, %v623_v51  ;;  %v629_v50 = vld [vmem:[%s6035_s13 + $0x1f0] sm:$0xff]  ;;  %v1654_v51 = vand.u32 %v5259_v42, %v6044_v62 }
  0x94   : > { %2114 = vmatpush1.bf16.msra.mxu1 %v5150_v4  ;;  %2072 = vmatprep.subr.bf16.mxu0 %v1588_v5  ;;  %v5162_v4 = vcombine.low %v580_v53, %v624_v56  ;;  %v1624_v5 = vand.u32 %v5249_v63, %v6044_v62  ;;  %v673_v53 = vld [vmem:[%s6035_s13 + $0x350] sm:$0xff]  ;;  %v674_v56 = vld [vmem:[%s6035_s13 + $0x358] sm:$0xff] }
  0x95   : > { %2115 = vmatprep.subr.bf16.mxu1 %v1594_v9  ;;  %2102 = vmatprep.mubr.bf16.mxu0 %v5594_v49  ;;  %v1630_v9 = vand.u32 %v5251_v1, %v6044_v62  ;;  %v5172_v1 = vcombine.low %v585_v48, %v629_v50 }
  0x96   : > { %2145 = vmatprep.mubr.bf16.mxu1 %v5594_v49 }
  0x97   : > { %2073 = vmatpush1.bf16.msra.mxu0 %v1585_v16  ;;  %v1621_v16 = vand.u32 %v5248_v3, %v6044_v62 }
  0x98   : > { %2116 = vmatpush1.bf16.msra.mxu1 %v1591_v17  ;;  %2156 = vmatprep.subr.bf16.mxu0 %v5153_v18  ;;  %v1627_v17 = vand.u32 %v5250_v6, %v6044_v62  ;;  %v5165_v18 = vcombine.high %v581_v7, %v625_v8  ;;  %v587_v6 = vld [vmem:[%s6035_s13 + $0xa0] sm:$0xff] }
  0x99   : > { %2199 = vmatprep.subr.bf16.mxu1 %v5155_v20  ;;  %v5167_v20 = vcombine.high %v582_v10, %v626_v13 }
  0x9a   : > { %5318 = vmatmul.mubr.msk.bf16.vlgmr.msra.gmra.mrb[12].mxu0 %vm1540_vm2, %v6063_v22 }
  0x9b   : > { %5319 = vmatmul.mubr.msk.bf16.vlgmr.msra.gmra.mrb[12].mxu1 %vm1540_vm2, %v6063_v22  ;;  %2157 = vmatpush1.bf16.msra.mxu0 %v5152_v23  ;;  %v5164_v23 = vcombine.low %v581_v7, %v625_v8  ;;  %v631_v7 = vld [vmem:[%s6035_s13 + $0x200] sm:$0xff] }
  0x9c   : > { %2200 = vmatpush1.bf16.msra.mxu1 %v5154_v25  ;;  %2158 = vmatprep.subr.bf16.mxu0 %v1600_v26  ;;  %v5166_v25 = vcombine.low %v582_v10, %v626_v13  ;;  %v1636_v26 = vand.u32 %v5253_v19, %v6044_v62  ;;  %v675_v10 = vld [vmem:[%s6035_s13 + $0x360] sm:$0xff]  ;;  %v676_v13 = vld [vmem:[%s6035_s13 + $0x368] sm:$0xff] }
  0x9d   : > { %2201 = vmatprep.subr.bf16.mxu1 %v1606_v30  ;;  %2188 = vmatprep.mubr.bf16.mxu0 %v5594_v49  ;;  %v1642_v30 = vand.u32 %v5255_v21, %v6044_v62  ;;  %v5176_v21 = vcombine.low %v587_v6, %v631_v7 }
  0x9e   : > { %2231 = vmatprep.mubr.bf16.mxu1 %v5594_v49 }
  0x9f   : > { %2159 = vmatpush1.bf16.msra.mxu0 %v1597_v37  ;;  %v1633_v37 = vand.u32 %v5252_v24, %v6044_v62 }
  0xa0   : > { %2202 = vmatpush1.bf16.msra.mxu1 %v1603_v38  ;;  %2242 = vmatprep.subr.bf16.mxu0 %v5157_v39  ;;  %v1639_v38 = vand.u32 %v5254_v27, %v6044_v62  ;;  %v5169_v39 = vcombine.high %v583_v28, %v627_v29  ;;  %v589_v27 = vld [vmem:[%s6035_s13 + $0xb0] sm:$0xff] }
  0xa1   : > { %2285 = vmatprep.subr.bf16.mxu1 %v5159_v41  ;;  %v5171_v41 = vcombine.high %v584_v31, %v628_v34  ;;  %v633_v28 = vld [vmem:[%s6035_s13 + $0x210] sm:$0xff]  ;;  %v678_v34 = vld [vmem:[%s6035_s13 + $0x378] sm:$0xff] }
  0xa2   : > { %5320 = vmatmul.mubr.msk.bf16.vlgmr.msra.gmra.mrb[16].mxu0 %vm1540_vm2, %v6063_v22  ;;  %v677_v31 = vld [vmem:[%s6035_s13 + $0x370] sm:$0xff]  ;;  %v5180_v42 = vcombine.low %v589_v27, %v633_v28 }
  0xa3   : > { %5321 = vmatmul.mubr.msk.bf16.vlgmr.msra.gmra.mrb[16].mxu1 %vm1540_vm2, %v6063_v22  ;;  %2243 = vmatpush1.bf16.msra.mxu0 %v5156_v44  ;;  %v5256_v44 = vcombine.low %v671_v32, %v715_v33  ;;  %v721_v32 = vld [vmem:[%s6035_s13 + $0x4d0] sm:$0x33]  ;;  %v634_v33 = vld [vmem:[%s6035_s13 + $0x218] sm:$0xff] }
  0xa4   : > { %2286 = vmatpush1.bf16.msra.mxu1 %v5158_v46  ;;  %2244 = vmatprep.subr.bf16.mxu0 %v1612_v47  ;;  %v1648_v46 = vand.u32 %v5257_v40, %v6044_v62  ;;  %v5258_v47 = vcombine.low %v672_v35, %v716_v36  ;;  %v722_v35 = vld [vmem:[%s6035_s13 + $0x4d8] sm:$0x33] }
  0xa5   : > { %2287 = vmatprep.subr.bf16.mxu1 %v1618_v52  ;;  %2274 = vmatprep.mubr.bf16.mxu0 %v5594_v49  ;;  %v586_v52 = vld [vmem:[%s6035_s13 + $0x98] sm:$0xff]  ;;  %v1645_v58 = vand.u32 %v5256_v44, %v6044_v62 }
  0xa6   : > { %2317 = vmatprep.mubr.bf16.mxu1 %v5594_v49  ;;  %v5175_v63 = vcombine.high %v586_v52, %v630_v55  ;;  %v5174_v3 = vcombine.low %v586_v52, %v630_v55  ;;  %v679_v52 = vld [vmem:[%s6035_s13 + $0x380] sm:$0xff]  ;;  %v680_v55 = vld [vmem:[%s6035_s13 + $0x388] sm:$0xff] }
  0xa7   : > { %2245 = vmatpush1.bf16.msra.mxu0 %v1609_v59  ;;  %v1651_v59 = vand.u32 %v5258_v47, %v6044_v62  ;;  %v591_v47 = vld [vmem:[%s6035_s13 + $0xc0] sm:$0xff] }
  0xa8   : > { %2288 = vmatpush1.bf16.msra.mxu1 %v1615_v60  ;;  %2328 = vmatprep.subr.bf16.mxu0 %v5161_v61  ;;  %v5173_v60 = vcombine.high %v585_v48, %v629_v50  ;;  %v5261_v61 = vcombine.high %v673_v53, %v717_v54  ;;  %v635_v48 = vld [vmem:[%s6035_s13 + $0x220] sm:$0xff] }
  0xa9   : > { %2371 = vmatprep.subr.bf16.mxu1 %v5163_v0  ;;  %v5263_v0 = vcombine.high %v674_v56, %v718_v57 }
  0xaa   : > { %5322 = vmatmul.mubr.msk.bf16.vlgmr.msra.gmra.mrb[20].mxu0 %vm1540_vm2, %v6063_v22 }
  0xab   : > { %5323 = vmatmul.mubr.msk.bf16.vlgmr.msra.gmra.mrb[20].mxu1 %vm1540_vm2, %v6063_v22  ;;  %2329 = vmatpush1.bf16.msra.mxu0 %v5160_v2  ;;  %v5260_v2 = vcombine.low %v673_v53, %v717_v54  ;;  %v1666_v8 = vand.u32 %v5263_v0, %v6044_v62  ;;  %v723_v53 = vld [vmem:[%s6035_s13 + $0x4e0] sm:$0x33]  ;;  %v636_v54 = vld [vmem:[%s6035_s13 + $0x228] sm:$0xff]  ;;  %v5184_v0 = vcombine.low %v591_v47, %v635_v48 }
  0xac   : > { %2372 = vmatpush1.bf16.msra.mxu1 %v5162_v4  ;;  %2330 = vmatprep.subr.bf16.mxu0 %v1624_v5  ;;  %v1660_v4 = vand.u32 %v5261_v61, %v6044_v62  ;;  %v5262_v5 = vcombine.low %v674_v56, %v718_v57  ;;  %v724_v56 = vld [vmem:[%s6035_s13 + $0x4e8] sm:$0x33] }
  0xad   : > { %2373 = vmatprep.subr.bf16.mxu1 %v1630_v9  ;;  %2360 = vmatprep.mubr.bf16.mxu0 %v5594_v49  ;;  %v588_v9 = vld [vmem:[%s6035_s13 + $0xa8] sm:$0xff]  ;;  %v1657_v15 = vand.u32 %v5260_v2, %v6044_v62 }
  0xae   : > { %2403 = vmatprep.mubr.bf16.mxu1 %v5594_v49  ;;  %v5179_v19 = vcombine.high %v588_v9, %v632_v12  ;;  %v5178_v24 = vcombine.low %v588_v9, %v632_v12  ;;  %v681_v9 = vld [vmem:[%s6035_s13 + $0x390] sm:$0xff]  ;;  %v682_v12 = vld [vmem:[%s6035_s13 + $0x398] sm:$0xff] }
  0xaf   : > { %2331 = vmatpush1.bf16.msra.mxu0 %v1621_v16  ;;  %v1663_v16 = vand.u32 %v5262_v5, %v6044_v62  ;;  %v593_v5 = vld [vmem:[%s6035_s13 + $0xd0] sm:$0xff] }
  0xb0   : > { %2374 = vmatpush1.bf16.msra.mxu1 %v1627_v17  ;;  %2414 = vmatprep.subr.bf16.mxu0 %v5165_v18  ;;  %v5177_v17 = vcombine.high %v587_v6, %v631_v7  ;;  %v5265_v18 = vcombine.high %v675_v10, %v719_v11  ;;  %v637_v6 = vld [vmem:[%s6035_s13 + $0x230] sm:$0xff] }
  0xb1   : > { %2457 = vmatprep.subr.bf16.mxu1 %v5167_v20  ;;  %v5267_v20 = vcombine.high %v676_v13, %v720_v14 }
  0xb2   : > { %5324 = vmatmul.mubr.msk.bf16.vlgmr.msra.gmra.mrb[24].mxu0 %vm1540_vm2, %v6063_v22 }
  0xb3   : > { %5325 = vmatmul.mubr.msk.bf16.vlgmr.msra.gmra.mrb[24].mxu1 %vm1540_vm2, %v6063_v22  ;;  %2415 = vmatpush1.bf16.msra.mxu0 %v5164_v23  ;;  %v5264_v23 = vcombine.low %v675_v10, %v719_v11  ;;  %v1678_v29 = vand.u32 %v5267_v20, %v6044_v62  ;;  %v725_v10 = vld [vmem:[%s6035_s13 + $0x4f0] sm:$0x33]  ;;  %v638_v11 = vld [vmem:[%s6035_s13 + $0x238] sm:$0xff]  ;;  %v5188_v20 = vcombine.low %v593_v5, %v637_v6 }
  0xb4   : > { %2458 = vmatpush1.bf16.msra.mxu1 %v5166_v25  ;;  %2416 = vmatprep.subr.bf16.mxu0 %v1636_v26  ;;  %v1672_v25 = vand.u32 %v5265_v18, %v6044_v62  ;;  %v5266_v26 = vcombine.low %v676_v13, %v720_v14  ;;  %v726_v13 = vld [vmem:[%s6035_s13 + $0x4f8] sm:$0x33] }
  0xb5   : > { %2459 = vmatprep.subr.bf16.mxu1 %v1642_v30  ;;  %2446 = vmatprep.mubr.bf16.mxu0 %v5594_v49  ;;  %v590_v30 = vld [vmem:[%s6035_s13 + $0xb8] sm:$0xff]  ;;  %v1669_v36 = vand.u32 %v5264_v23, %v6044_v62 }
  0xb6   : > { %2489 = vmatprep.mubr.bf16.mxu1 %v5594_v49  ;;  %v5183_v40 = vcombine.high %v590_v30, %v634_v33  ;;  %v5182_v44 = vcombine.low %v590_v30, %v634_v33  ;;  %v683_v30 = vld [vmem:[%s6035_s13 + $0x3a0] sm:$0xff]  ;;  %v684_v33 = vld [vmem:[%s6035_s13 + $0x3a8] sm:$0xff] }
  0xb7   : > { %2417 = vmatpush1.bf16.msra.mxu0 %v1633_v37  ;;  %v1675_v37 = vand.u32 %v5266_v26, %v6044_v62  ;;  %v595_v26 = vld [vmem:[%s6035_s13 + $0xe0] sm:$0xff] }
  0xb8   : > { %2460 = vmatpush1.bf16.msra.mxu1 %v1639_v38  ;;  %2500 = vmatprep.subr.bf16.mxu0 %v5169_v39  ;;  %v5181_v38 = vcombine.high %v589_v27, %v633_v28  ;;  %v5269_v39 = vcombine.high %v677_v31, %v721_v32  ;;  %v639_v27 = vld [vmem:[%s6035_s13 + $0x240] sm:$0xff] }
  0xb9   : > { %2543 = vmatprep.subr.bf16.mxu1 %v5171_v41  ;;  %v5271_v41 = vcombine.high %v678_v34, %v722_v35 }
  0xba   : > { %5326 = vmatmul.mubr.msk.bf16.vlgmr.msra.gmra.mrb[28].mxu0 %vm1540_vm2, %v6063_v22 }
  0xbb   : > { %5327 = vmatmul.mubr.msk.bf16.vlgmr.msra.gmra.mrb[28].mxu1 %vm1540_vm2, %v6063_v22  ;;  %2501 = vmatpush1.bf16.msra.mxu0 %v5168_v43  ;;  %v5268_v43 = vcombine.low %v677_v31, %v721_v32  ;;  %v1690_v50 = vand.u32 %v5271_v41, %v6044_v62  ;;  %v727_v31 = vld [vmem:[%s6035_s13 + $0x500] sm:$0x33]  ;;  %v640_v32 = vld [vmem:[%s6035_s13 + $0x248] sm:$0xff]  ;;  %v5192_v41 = vcombine.low %v595_v26, %v639_v27 }
  0xbc   : > { %2544 = vmatpush1.bf16.msra.mxu1 %v5170_v45  ;;  %2502 = vmatprep.subr.bf16.mxu0 %v1648_v46  ;;  %v1684_v45 = vand.u32 %v5269_v39, %v6044_v62  ;;  %v5270_v46 = vcombine.low %v678_v34, %v722_v35  ;;  %v728_v34 = vld [vmem:[%s6035_s13 + $0x508] sm:$0x33] }
  0xbd   : > { %2545 = vmatprep.subr.bf16.mxu1 %v1654_v51  ;;  %2532 = vmatprep.mubr.bf16.mxu0 %v5594_v49  ;;  %v592_v51 = vld [vmem:[%s6035_s13 + $0xc8] sm:$0xff]  ;;  %v1681_v57 = vand.u32 %v5268_v43, %v6044_v62 }
  0xbe   : > { %2575 = vmatprep.mubr.bf16.mxu1 %v5594_v49  ;;  %v5187_v61 = vcombine.high %v592_v51, %v636_v54  ;;  %v5186_v2 = vcombine.low %v592_v51, %v636_v54  ;;  %v685_v51 = vld [vmem:[%s6035_s13 + $0x3b0] sm:$0xff]  ;;  %v686_v54 = vld [vmem:[%s6035_s13 + $0x3b8] sm:$0xff] }
  0xbf   : > { %2503 = vmatpush1.bf16.msra.mxu0 %v1645_v58  ;;  %v1687_v58 = vand.u32 %v5270_v46, %v6044_v62  ;;  %v597_v46 = vld [vmem:[%s6035_s13 + $0xf0] sm:$0xff] }
  0xc0   : > { %2546 = vmatpush1.bf16.msra.mxu1 %v1651_v59  ;;  %2586 = vmatprep.subr.bf16.mxu0 %v5173_v60  ;;  %v5185_v59 = vcombine.high %v591_v47, %v635_v48  ;;  %v5273_v60 = vcombine.high %v679_v52, %v723_v53  ;;  %v641_v47 = vld [vmem:[%s6035_s13 + $0x250] sm:$0xff] }
  0xc1   : > { %2629 = vmatprep.subr.bf16.mxu1 %v5175_v63  ;;  %v5275_v63 = vcombine.high %v680_v55, %v724_v56 }
  0xc2   : > { %5328 = vmatmul.mubr.msk.bf16.vlgmr.msra.gmra.mrb[32].mxu0 %vm1540_vm2, %v6063_v22 }
  0xc3   : > { %5329 = vmatmul.mubr.msk.bf16.vlgmr.msra.gmra.mrb[32].mxu1 %vm1540_vm2, %v6063_v22  ;;  %2587 = vmatpush1.bf16.msra.mxu0 %v5172_v1  ;;  %v5272_v1 = vcombine.low %v679_v52, %v723_v53  ;;  %v1702_v7 = vand.u32 %v5275_v63, %v6044_v62  ;;  %v729_v52 = vld [vmem:[%s6035_s13 + $0x510] sm:$0x33]  ;;  %v642_v53 = vld [vmem:[%s6035_s13 + $0x258] sm:$0xff]  ;;  %v5196_v63 = vcombine.low %v597_v46, %v641_v47 }
  0xc4   : > { %2630 = vmatpush1.bf16.msra.mxu1 %v5174_v3  ;;  %2588 = vmatprep.subr.bf16.mxu0 %v1660_v4  ;;  %v1696_v3 = vand.u32 %v5273_v60, %v6044_v62  ;;  %v5274_v4 = vcombine.low %v680_v55, %v724_v56  ;;  %v730_v55 = vld [vmem:[%s6035_s13 + $0x518] sm:$0x33] }
  0xc5   : > { %2631 = vmatprep.subr.bf16.mxu1 %v1666_v8  ;;  %2618 = vmatprep.mubr.bf16.mxu0 %v5594_v49  ;;  %v594_v8 = vld [vmem:[%s6035_s13 + $0xd8] sm:$0xff]  ;;  %v1693_v14 = vand.u32 %v5272_v1, %v6044_v62 }
  0xc6   : > { %2661 = vmatprep.mubr.bf16.mxu1 %v5594_v49  ;;  %v5191_v18 = vcombine.high %v594_v8, %v638_v11  ;;  %v5190_v23 = vcombine.low %v594_v8, %v638_v11  ;;  %v687_v8 = vld [vmem:[%s6035_s13 + $0x3c0] sm:$0xff]  ;;  %v688_v11 = vld [vmem:[%s6035_s13 + $0x3c8] sm:$0xff] }
  0xc7   : > { %2589 = vmatpush1.bf16.msra.mxu0 %v1657_v15  ;;  %v1699_v15 = vand.u32 %v5274_v4, %v6044_v62  ;;  %v599_v4 = vld [vmem:[%s6035_s13 + $0x100] sm:$0xff] }
  0xc8   : > { %2632 = vmatpush1.bf16.msra.mxu1 %v1663_v16  ;;  %2672 = vmatprep.subr.bf16.mxu0 %v5177_v17  ;;  %v5189_v16 = vcombine.high %v593_v5, %v637_v6  ;;  %v5277_v17 = vcombine.high %v681_v9, %v725_v10  ;;  %v643_v5 = vld [vmem:[%s6035_s13 + $0x260] sm:$0xff] }
  0xc9   : > { %2715 = vmatprep.subr.bf16.mxu1 %v5179_v19  ;;  %v5279_v19 = vcombine.high %v682_v12, %v726_v13 }
  0xca   : > { %5330 = vmatmul.mubr.msk.bf16.vlgmr.msra.gmra.mrb[36].mxu0 %vm1540_vm2, %v6063_v22 }
  0xcb   : > { %5331 = vmatmul.mubr.msk.bf16.vlgmr.msra.gmra.mrb[36].mxu1 %vm1540_vm2, %v6063_v22  ;;  %2673 = vmatpush1.bf16.msra.mxu0 %v5176_v21  ;;  %v5276_v21 = vcombine.low %v681_v9, %v725_v10  ;;  %v1714_v28 = vand.u32 %v5279_v19, %v6044_v62  ;;  %v731_v9 = vld [vmem:[%s6035_s13 + $0x520] sm:$0x33]  ;;  %v644_v10 = vld [vmem:[%s6035_s13 + $0x268] sm:$0xff]  ;;  %v5200_v19 = vcombine.low %v599_v4, %v643_v5 }
  0xcc   : > { %2716 = vmatpush1.bf16.msra.mxu1 %v5178_v24  ;;  %2674 = vmatprep.subr.bf16.mxu0 %v1672_v25  ;;  %v1708_v24 = vand.u32 %v5277_v17, %v6044_v62  ;;  %v5278_v25 = vcombine.low %v682_v12, %v726_v13  ;;  %v732_v12 = vld [vmem:[%s6035_s13 + $0x528] sm:$0x33] }
  0xcd   : > { %2717 = vmatprep.subr.bf16.mxu1 %v1678_v29  ;;  %2704 = vmatprep.mubr.bf16.mxu0 %v5594_v49  ;;  %v596_v29 = vld [vmem:[%s6035_s13 + $0xe8] sm:$0xff]  ;;  %v1705_v35 = vand.u32 %v5276_v21, %v6044_v62 }
  0xce   : > { %2747 = vmatprep.mubr.bf16.mxu1 %v5594_v49  ;;  %v5195_v39 = vcombine.high %v596_v29, %v640_v32  ;;  %v5194_v43 = vcombine.low %v596_v29, %v640_v32  ;;  %v689_v29 = vld [vmem:[%s6035_s13 + $0x3d0] sm:$0xff]  ;;  %v690_v32 = vld [vmem:[%s6035_s13 + $0x3d8] sm:$0xff] }
  0xcf   : > { %2675 = vmatpush1.bf16.msra.mxu0 %v1669_v36  ;;  %v1711_v36 = vand.u32 %v5278_v25, %v6044_v62  ;;  %v601_v25 = vld [vmem:[%s6035_s13 + $0x110] sm:$0xff] }
  0xd0   : > { %2718 = vmatpush1.bf16.msra.mxu1 %v1675_v37  ;;  %2758 = vmatprep.subr.bf16.mxu0 %v5181_v38  ;;  %v5193_v37 = vcombine.high %v595_v26, %v639_v27  ;;  %v5281_v38 = vcombine.high %v683_v30, %v727_v31  ;;  %v645_v26 = vld [vmem:[%s6035_s13 + $0x270] sm:$0xff] }
  0xd1   : > { %2801 = vmatprep.subr.bf16.mxu1 %v5183_v40  ;;  %v5283_v40 = vcombine.high %v684_v33, %v728_v34 }
  0xd2   : > { %5332 = vmatmul.mubr.msk.bf16.vlgmr.msra.gmra.mrb[40].mxu0 %vm1540_vm2, %v6063_v22 }
  0xd3   : > { %5333 = vmatmul.mubr.msk.bf16.vlgmr.msra.gmra.mrb[40].mxu1 %vm1540_vm2, %v6063_v22  ;;  %2759 = vmatpush1.bf16.msra.mxu0 %v5180_v42  ;;  %v5280_v42 = vcombine.low %v683_v30, %v727_v31  ;;  %v1726_v48 = vand.u32 %v5283_v40, %v6044_v62  ;;  %v733_v30 = vld [vmem:[%s6035_s13 + $0x530] sm:$0x33]  ;;  %v646_v31 = vld [vmem:[%s6035_s13 + $0x278] sm:$0xff] }
  0xd4   : > { %2802 = vmatpush1.bf16.msra.mxu1 %v5182_v44  ;;  %2760 = vmatprep.subr.bf16.mxu0 %v1684_v45  ;;  %v1720_v44 = vand.u32 %v5281_v38, %v6044_v62  ;;  %v5282_v45 = vcombine.low %v684_v33, %v728_v34  ;;  %v734_v33 = vld [vmem:[%s6035_s13 + $0x538] sm:$0x33]  ;;  %v5292_v40 = vcombine.low %v689_v29, %v733_v30 }
  0xd5   : > { %2803 = vmatprep.subr.bf16.mxu1 %v1690_v50  ;;  %2790 = vmatprep.mubr.bf16.mxu0 %v5594_v49  ;;  %v598_v50 = vld [vmem:[%s6035_s13 + $0xf8] sm:$0xff]  ;;  %v1717_v56 = vand.u32 %v5280_v42, %v6044_v62 }
  0xd6   : > { %2833 = vmatprep.mubr.bf16.mxu1 %v5594_v49  ;;  %v5199_v60 = vcombine.high %v598_v50, %v642_v53  ;;  %v5198_v1 = vcombine.low %v598_v50, %v642_v53  ;;  %v735_v50 = vld [vmem:[%s6035_s13 + $0x540] sm:$0x33]  ;;  %v692_v53 = vld [vmem:[%s6035_s13 + $0x3e8] sm:$0xff] }
  0xd7   : > { %2761 = vmatpush1.bf16.msra.mxu0 %v1681_v57  ;;  %v1723_v57 = vand.u32 %v5282_v45, %v6044_v62  ;;  %v647_v45 = vld [vmem:[%s6035_s13 + $0x280] sm:$0xff] }
  0xd8   : > { %2804 = vmatpush1.bf16.msra.mxu1 %v1687_v58  ;;  %2844 = vmatprep.subr.bf16.mxu0 %v5185_v59  ;;  %v5197_v58 = vcombine.high %v597_v46, %v641_v47  ;;  %v5285_v59 = vcombine.high %v685_v51, %v729_v52  ;;  %v604_v47 = vld [vmem:[%s6035_s13 + $0x128] sm:$0xff] }
  0xd9   : > { %2887 = vmatprep.subr.bf16.mxu1 %v5187_v61  ;;  %v5287_v61 = vcombine.high %v686_v54, %v730_v55 }
  0xda   : > { %5334 = vmatmul.mubr.msk.bf16.vlgmr.msra.gmra.mrb[44].mxu0 %vm1540_vm2, %v6063_v22 }
  0xdb   : > { %5335 = vmatmul.mubr.msk.bf16.vlgmr.msra.gmra.mrb[44].mxu1 %vm1540_vm2, %v6063_v22  ;;  %2845 = vmatpush1.bf16.msra.mxu0 %v5184_v0  ;;  %v5284_v0 = vcombine.low %v685_v51, %v729_v52  ;;  %v1738_v6 = vand.u32 %v5287_v61, %v6044_v62  ;;  %v6366_v51 = vld [vmem:[%s7094_s0] sm:$0x3f]   ;;  %v648_v52 = vld [vmem:[%s6035_s13 + $0x288] sm:$0xff] }
  0xdc   : > { %2888 = vmatpush1.bf16.msra.mxu1 %v5186_v2  ;;  %2846 = vmatprep.subr.bf16.mxu0 %v1696_v3  ;;  %v1732_v2 = vand.u32 %v5285_v59, %v6044_v62  ;;  %v5286_v3 = vcombine.low %v686_v54, %v730_v55  ;;  %v736_v54 = vld [vmem:[%s6035_s13 + $0x548] sm:$0x33]  ;;  %v1753_v55 = vand.u32 %v5292_v40, %v6044_v62 }
  0xdd   : > { %2889 = vmatprep.subr.bf16.mxu1 %v1702_v7  ;;  %2876 = vmatprep.mubr.bf16.mxu0 %v5594_v49  ;;  %v600_v7 = vld [vmem:[%s6035_s13 + $0x108] sm:$0xff]  ;;  %v1729_v13 = vand.u32 %v5284_v0, %v6044_v62  ;;  %v5211_v59 = vcombine.high %v604_v47, %v648_v52  ;;  %v5210_v0 = vcombine.low %v604_v47, %v648_v52  ;;  %v697_v47 = vld [vmem:[%s6035_s13 + $0x410] sm:$0xff]  ;;  %v698_v52 = vld [vmem:[%s6035_s13 + $0x418] sm:$0xff] }
  0xde   : > { %2919 = vmatprep.mubr.bf16.mxu1 %v5594_v49  ;;  %v5203_v17 = vcombine.high %v600_v7, %v644_v10  ;;  %v5202_v21 = vcombine.low %v600_v7, %v644_v10  ;;  %v693_v7 = vld [vmem:[%s6035_s13 + $0x3f0] sm:$0xff]  ;;  %v694_v10 = vld [vmem:[%s6035_s13 + $0x3f8] sm:$0xff] }
  0xdf   : > { %2847 = vmatpush1.bf16.msra.mxu0 %v1693_v14  ;;  %v1735_v14 = vand.u32 %v5286_v3, %v6044_v62  ;;  %v605_v3 = vld [vmem:[%s6035_s13 + $0x130] sm:$0xff] }
  0xe0   : > { %2890 = vmatpush1.bf16.msra.mxu1 %v1699_v15  ;;  %2930 = vmatprep.subr.bf16.mxu0 %v5189_v16  ;;  %v5201_v15 = vcombine.high %v599_v4, %v643_v5  ;;  %v5289_v16 = vcombine.high %v687_v8, %v731_v9  ;;  %v649_v4 = vld [vmem:[%s6035_s13 + $0x290] sm:$0xff] }
  0xe1   : > { %2973 = vmatprep.subr.bf16.mxu1 %v5191_v18  ;;  %v5291_v18 = vcombine.high %v688_v11, %v732_v12 }
  0xe2   : > { %5336 = vmatmul.mubr.msk.bf16.vlgmr.msra.gmra.mrb[48].mxu0 %vm1540_vm2, %v6063_v22 }
  0xe3   : > { %5337 = vmatmul.mubr.msk.bf16.vlgmr.msra.gmra.mrb[48].mxu1 %vm1540_vm2, %v6063_v22  ;;  %2931 = vmatpush1.bf16.msra.mxu0 %v5188_v20  ;;  %v5288_v20 = vcombine.low %v687_v8, %v731_v9  ;;  %v1750_v27 = vand.u32 %v5291_v18, %v6044_v62  ;;  %v737_v8 = vld [vmem:[%s6035_s13 + $0x550] sm:$0x33]  ;;  %v650_v9 = vld [vmem:[%s6035_s13 + $0x298] sm:$0xff]  ;;  %v5212_v18 = vcombine.low %v605_v3, %v649_v4 }
  0xe4   : > { %2974 = vmatpush1.bf16.msra.mxu1 %v5190_v23  ;;  %2932 = vmatprep.subr.bf16.mxu0 %v1708_v24  ;;  %v1744_v23 = vand.u32 %v5289_v16, %v6044_v62  ;;  %v5290_v24 = vcombine.low %v688_v11, %v732_v12  ;;  %v738_v11 = vld [vmem:[%s6035_s13 + $0x558] sm:$0x33] }
  0xe5   : > { %2975 = vmatprep.subr.bf16.mxu1 %v1714_v28  ;;  %2962 = vmatprep.mubr.bf16.mxu0 %v5594_v49  ;;  %v602_v28 = vld [vmem:[%s6035_s13 + $0x118] sm:$0xff]  ;;  %v1741_v34 = vand.u32 %v5288_v20, %v6044_v62 }
  0xe6   : > { %3005 = vmatprep.mubr.bf16.mxu1 %v5594_v49  ;;  %v5207_v38 = vcombine.high %v602_v28, %v646_v31 }
  0xe7   : > { %2933 = vmatpush1.bf16.msra.mxu0 %v1705_v35  ;;  %v1747_v35 = vand.u32 %v5290_v24, %v6044_v62  ;;  %v607_v24 = vld [vmem:[%s6035_s13 + $0x140] sm:$0xff] }
  0xe8   : > { %2976 = vmatpush1.bf16.msra.mxu1 %v1711_v36  ;;  %3016 = vmatprep.subr.bf16.mxu0 %v5193_v37  ;;  %v5205_v36 = vcombine.high %v601_v25, %v645_v26  ;;  %v5293_v37 = vcombine.high %v689_v29, %v733_v30  ;;  %v739_v29 = vld [vmem:[%s6035_s13 + $0x560] sm:$0x33]  ;;  %v652_v30 = vld [vmem:[%s6035_s13 + $0x2a8] sm:$0xff] }
  0xe9   : > { %3059 = vmatprep.subr.bf16.mxu1 %v5195_v39  ;;  %v5295_v39 = vcombine.high %v690_v32, %v734_v33 }
  0xea   : > { %5338 = vmatmul.mubr.msk.bf16.vlgmr.msra.gmra.mrb[52].mxu0 %vm1540_vm2, %v6063_v22  ;;  %v1756_v42 = vand.u32 %v5293_v37, %v6044_v62 }
  0xeb   : > { %5339 = vmatmul.mubr.msk.bf16.vlgmr.msra.gmra.mrb[52].mxu1 %vm1540_vm2, %v6063_v22  ;;  %3017 = vmatpush1.bf16.msra.mxu0 %v5192_v41  ;;  %v5206_v41 = vcombine.low %v602_v28, %v646_v31  ;;  %v1762_v46 = vand.u32 %v5295_v39, %v6044_v62  ;;  %v695_v28 = vld [vmem:[%s6035_s13 + $0x400] sm:$0xff]  ;;  %v696_v31 = vld [vmem:[%s6035_s13 + $0x408] sm:$0xff] }
  0xec   : > { %3060 = vmatpush1.bf16.msra.mxu1 %v5194_v43  ;;  %3018 = vmatprep.subr.bf16.mxu0 %v1720_v44  ;;  %v5294_v43 = vcombine.low %v690_v32, %v734_v33  ;;  %v603_v44 = vld [vmem:[%s6035_s13 + $0x120] sm:$0xff]  ;;  %v740_v32 = vld [vmem:[%s6035_s13 + $0x568] sm:$0x33] }
  0xed   : > { %3061 = vmatprep.subr.bf16.mxu1 %v1726_v48  ;;  %3048 = vmatprep.mubr.bf16.mxu0 %v5594_v49  ;;  %v691_v48 = vld [vmem:[%s6035_s13 + $0x3e0] sm:$0xff]  ;;  %v5208_v61 = vcombine.low %v603_v44, %v647_v45 }
  0xee   : > { %3091 = vmatprep.mubr.bf16.mxu1 %v5594_v49 }
  0xef   : > { %3019 = vmatpush1.bf16.msra.mxu0 %v1717_v56  ;;  %v1759_v56 = vand.u32 %v5294_v43, %v6044_v62  ;;  %v609_v43 = vld [vmem:[%s6035_s13 + $0x150] sm:$0xff] }
  0xf0   : > { %3062 = vmatpush1.bf16.msra.mxu1 %v1723_v57  ;;  %3102 = vmatprep.subr.bf16.mxu0 %v5197_v58  ;;  %v5209_v57 = vcombine.high %v603_v44, %v647_v45  ;;  %v5297_v58 = vcombine.high %v691_v48, %v735_v50  ;;  %v653_v44 = vld [vmem:[%s6035_s13 + $0x2b0] sm:$0xff] }
  0xf1   : > { %3145 = vmatprep.subr.bf16.mxu1 %v5199_v60  ;;  %v5299_v60 = vcombine.high %v692_v53, %v736_v54 }
  0xf2   : > { %5340 = vmatmul.mubr.msk.bf16.vlgmr.msra.gmra.mrb[56].mxu0 %vm1540_vm2, %v6063_v22 }
  0xf3   : > { %5341 = vmatmul.mubr.msk.bf16.vlgmr.msra.gmra.mrb[56].mxu1 %vm1540_vm2, %v6063_v22  ;;  %3103 = vmatpush1.bf16.msra.mxu0 %v5196_v63  ;;  %v5296_v63 = vcombine.low %v691_v48, %v735_v50  ;;  %v1774_v5 = vand.u32 %v5299_v60, %v6044_v62  ;;  %v741_v48 = vld [vmem:[%s6035_s13 + $0x570] sm:$0x33]  ;;  %v654_v50 = vld [vmem:[%s6035_s13 + $0x2b8] sm:$0xff]  ;;  %v5220_v60 = vcombine.low %v609_v43, %v653_v44 }
  0xf4   : > { %3146 = vmatpush1.bf16.msra.mxu1 %v5198_v1  ;;  %3104 = vmatprep.subr.bf16.mxu0 %v1732_v2  ;;  %v1768_v1 = vand.u32 %v5297_v58, %v6044_v62  ;;  %v5298_v2 = vcombine.low %v692_v53, %v736_v54  ;;  %v742_v53 = vld [vmem:[%s6035_s13 + $0x578] sm:$0x33] }
  0xf5   : > { %3147 = vmatprep.subr.bf16.mxu1 %v1738_v6  ;;  %3134 = vmatprep.mubr.bf16.mxu0 %v5594_v49  ;;  %v606_v6 = vld [vmem:[%s6035_s13 + $0x138] sm:$0xff]  ;;  %v1765_v12 = vand.u32 %v5296_v63, %v6044_v62 }
  0xf6   : > { %3177 = vmatprep.mubr.bf16.mxu1 %v5594_v49  ;;  %v5215_v16 = vcombine.high %v606_v6, %v650_v9  ;;  %v5214_v20 = vcombine.low %v606_v6, %v650_v9  ;;  %v6449_v6 = vpop.permute.xlu1 %3896 }
  0xf7   : > { %3105 = vmatpush1.bf16.msra.mxu0 %v1729_v13  ;;  %v1771_v13 = vand.u32 %v5298_v2, %v6044_v62 }
  0xf8   : > { %3148 = vmatpush1.bf16.msra.mxu1 %v1735_v14  ;;  %3188 = vmatprep.subr.bf16.mxu0 %v5201_v15  ;;  %v5213_v14 = vcombine.high %v605_v3, %v649_v4  ;;  %v5301_v15 = vcombine.high %v693_v7, %v737_v8 }
  0xf9   : > { %3231 = vmatprep.subr.bf16.mxu1 %v5203_v17  ;;  %v5303_v17 = vcombine.high %v694_v10, %v738_v11 }
  0xfa   : > { %5342 = vmatmul.mubr.msk.bf16.vlgmr.msra.gmra.mrb[60].mxu0 %vm1540_vm2, %v6063_v22 }
  0xfb   : > { %5343 = vmatmul.mubr.msk.bf16.vlgmr.msra.gmra.mrb[60].mxu1 %vm1540_vm2, %v6063_v22  ;;  %3189 = vmatpush1.bf16.msra.mxu0 %v5200_v19  ;;  %v5204_v22 = vcombine.low %v601_v25, %v645_v26  ;;  %v5300_v19 = vcombine.low %v693_v7, %v737_v8  ;;  %v651_v25 = vld [vmem:[%s6035_s13 + $0x2a0] sm:$0xff]  ;;  %v1786_v26 = vand.u32 %v5303_v17, %v6044_v62 }
  0xfc   : > { %3232 = vmatpush1.bf16.msra.mxu1 %v5202_v21  ;;  %3190 = vmatprep.subr.bf16.mxu0 %v1744_v23  ;;  %v1780_v21 = vand.u32 %v5301_v15, %v6044_v62  ;;  %v5302_v23 = vcombine.low %v694_v10, %v738_v11  ;;  %v5216_v39 = vcombine.low %v607_v24, %v651_v25 }
  0xfd   : > { %3233 = vmatprep.subr.bf16.mxu1 %v1750_v27  ;;  %3220 = vmatprep.mubr.bf16.mxu0 %v5594_v49  ;;  %v608_v27 = vld [vmem:[%s6035_s13 + $0x148] sm:$0xff]  ;;  %v1777_v33 = vand.u32 %v5300_v19, %v6044_v62 }
  0xfe   : > { %3263 = vmatprep.mubr.bf16.mxu1 %v5594_v49  ;;  %v5219_v37 = vcombine.high %v608_v27, %v652_v30  ;;  %v5218_v40 = vcombine.low %v608_v27, %v652_v30 }
  0xff   : > { %3191 = vmatpush1.bf16.msra.mxu0 %v1741_v34  ;;  %v1783_v34 = vand.u32 %v5302_v23, %v6044_v62 }
 0x100   : > { %3234 = vmatpush1.bf16.msra.mxu1 %v1747_v35  ;;  %3274 = vmatprep.subr.bf16.mxu0 %v5205_v36  ;;  %v5217_v35 = vcombine.high %v607_v24, %v651_v25  ;;  %v5305_v36 = vcombine.high %v695_v28, %v739_v29 }
 0x101   : > { %3317 = vmatprep.subr.bf16.mxu1 %v5207_v38  ;;  %v5307_v38 = vcombine.high %v696_v31, %v740_v32 }
 0x102   : > { %5344 = vmatmul.mubr.msk.bf16.vlgmr.msra.gmra.mrb[64].mxu0 %vm1540_vm2, %v6366_v51 }
 0x103   : > { %5345 = vmatmul.mubr.msk.bf16.vlgmr.msra.gmra.mrb[64].mxu1 %vm1540_vm2, %v6366_v51  ;;  %3275 = vmatpush1.bf16.msra.mxu0 %v5204_v22  ;;  %v5304_v22 = vcombine.low %v695_v28, %v739_v29  ;;  %v1798_v45 = vand.u32 %v5307_v38, %v6044_v62 }
 0x104   : > { %3318 = vmatpush1.bf16.msra.mxu1 %v5206_v41  ;;  %3276 = vmatprep.subr.bf16.mxu0 %v1756_v42  ;;  %v1792_v41 = vand.u32 %v5305_v36, %v6044_v62  ;;  %v5306_v42 = vcombine.low %v696_v31, %v740_v32 }
 0x105   : > { %3319 = vmatprep.subr.bf16.mxu1 %v1762_v46  ;;  %3306 = vmatprep.mubr.bf16.mxu0 %v5594_v49  ;;  %v610_v46 = vld [vmem:[%s6035_s13 + $0x158] sm:$0xff]  ;;  %v1789_v54 = vand.u32 %v5304_v22, %v6044_v62 }
 0x106   : > { %3349 = vmatprep.mubr.bf16.mxu1 %v5594_v49  ;;  %v5223_v58 = vcombine.high %v610_v46, %v654_v50  ;;  %v5222_v63 = vcombine.low %v610_v46, %v654_v50 }
 0x107   : > { %3277 = vmatpush1.bf16.msra.mxu0 %v1753_v55  ;;  %v1795_v55 = vand.u32 %v5306_v42, %v6044_v62 }
 0x108   : > { %3320 = vmatpush1.bf16.msra.mxu1 %v1759_v56  ;;  %3360 = vmatprep.subr.bf16.mxu0 %v5209_v57  ;;  %v5221_v56 = vcombine.high %v609_v43, %v653_v44  ;;  %v5309_v57 = vcombine.high %v697_v47, %v741_v48 }
 0x109   : > { %3403 = vmatprep.subr.bf16.mxu1 %v5211_v59  ;;  %v5311_v59 = vcombine.high %v698_v52, %v742_v53 }
 0x10a   : > { %5346 = vmatmul.mubr.msk.bf16.vlgmr.msra.gmra.mrb[68].mxu0 %vm1540_vm2, %v6366_v51 }
 0x10b   : > { %5347 = vmatmul.mubr.msk.bf16.vlgmr.msra.gmra.mrb[68].mxu1 %vm1540_vm2, %v6366_v51  ;;  %3361 = vmatpush1.bf16.msra.mxu0 %v5208_v61  ;;  %v5308_v61 = vcombine.low %v697_v47, %v741_v48  ;;  %v1810_v2 = vand.u32 %v5311_v59, %v6044_v62 }
 0x10c   : > { %3404 = vmatpush1.bf16.msra.mxu1 %v5210_v0  ;;  %3362 = vmatprep.subr.bf16.mxu0 %v1768_v1  ;;  %v1804_v0 = vand.u32 %v5309_v57, %v6044_v62  ;;  %v5310_v1 = vcombine.low %v698_v52, %v742_v53 }
 0x10d   : > { %3405 = vmatprep.subr.bf16.mxu1 %v1774_v5  ;;  %3392 = vmatprep.mubr.bf16.mxu0 %v5594_v49  ;;  %v1801_v3 = vand.u32 %v5308_v61, %v6044_v62  ;;  %v6447_v5 = vpop.permute.xlu0 %3708  ;;  %v6453_v8 = vpop.permute.xlu1 %3901 }
 0x10e   : > { %3435 = vmatprep.mubr.bf16.mxu1 %v5594_v49  ;;  %v1807_v4 = vand.u32 %v5310_v1, %v6044_v62 }
 0x10f   : > { %3363 = vmatpush1.bf16.msra.mxu0 %v1765_v12 }
 0x110   : > { %3406 = vmatpush1.bf16.msra.mxu1 %v1771_v13  ;;  %3446 = vmatprep.subr.bf16.mxu0 %v5213_v14 }
 0x111   : > { %3489 = vmatprep.subr.bf16.mxu1 %v5215_v16  ;;  %v6451_v7 = vpop.permute.xlu0 %3713 }
 0x112   : > { %5348 = vmatmul.mubr.msk.bf16.vlgmr.msra.gmra.mrb[72].mxu0 %vm1540_vm2, %v6366_v51 }
 0x113   : > { %5349 = vmatmul.mubr.msk.bf16.vlgmr.msra.gmra.mrb[72].mxu1 %vm1540_vm2, %v6366_v51  ;;  %3447 = vmatpush1.bf16.msra.mxu0 %v5212_v18 }
 0x114   : > { %3490 = vmatpush1.bf16.msra.mxu1 %v5214_v20  ;;  %3448 = vmatprep.subr.bf16.mxu0 %v1780_v21 }
 0x115   : > { %3491 = vmatprep.subr.bf16.mxu1 %v1786_v26  ;;  %3478 = vmatprep.mubr.bf16.mxu0 %v5594_v49 }
 0x116   : > { %3521 = vmatprep.mubr.bf16.mxu1 %v5594_v49 }
 0x117   : > { %3449 = vmatpush1.bf16.msra.mxu0 %v1777_v33 }
 0x118   : > { %3492 = vmatpush1.bf16.msra.mxu1 %v1783_v34  ;;  %3532 = vmatprep.subr.bf16.mxu0 %v5217_v35 }
 0x119   : > { %3575 = vmatprep.subr.bf16.mxu1 %v5219_v37 }
 0x11a   : > { %5350 = vmatmul.mubr.msk.bf16.vlgmr.msra.gmra.mrb[76].mxu0 %vm1540_vm2, %v6366_v51 }
 0x11b   : > { %5351 = vmatmul.mubr.msk.bf16.vlgmr.msra.gmra.mrb[76].mxu1 %vm1540_vm2, %v6366_v51  ;;  %3533 = vmatpush1.bf16.msra.mxu0 %v5216_v39 }
 0x11c   : > { %3576 = vmatpush1.bf16.msra.mxu1 %v5218_v40  ;;  %3534 = vmatprep.subr.bf16.mxu0 %v1792_v41 }
 0x11d   : > { %3577 = vmatprep.subr.bf16.mxu1 %v1798_v45  ;;  %3564 = vmatprep.mubr.bf16.mxu0 %v5594_v49 }
 0x11e   : > { %3607 = vmatprep.mubr.bf16.mxu1 %v5594_v49 }
 0x11f   : > { %3535 = vmatpush1.bf16.msra.mxu0 %v1789_v54 }
 0x120   : > { %3578 = vmatpush1.bf16.msra.mxu1 %v1795_v55  ;;  %3618 = vmatprep.subr.bf16.mxu0 %v5221_v56 }
 0x121   : > { %3661 = vmatprep.subr.bf16.mxu1 %v5223_v58 }
 0x122   : > { %5352 = vmatmul.mubr.msk.bf16.vlgmr.msra.gmra.mrb[80].mxu0 %vm1540_vm2, %v6366_v51 }
 0x123   : > { %5353 = vmatmul.mubr.msk.bf16.vlgmr.msra.gmra.mrb[80].mxu1 %vm1540_vm2, %v6366_v51  ;;  %3619 = vmatpush1.bf16.msra.mxu0 %v5220_v60 }
 0x124   : > { %3662 = vmatpush1.bf16.msra.mxu1 %v5222_v63  ;;  %3620 = vmatprep.subr.bf16.mxu0 %v1804_v0 }
 0x125   : > { %3663 = vmatprep.subr.bf16.mxu1 %v1810_v2  ;;  %3650 = vmatprep.mubr.bf16.mxu0 %v5594_v49 }
 0x126   : > { %3693 = vmatprep.mubr.bf16.mxu1 %v5594_v49 }
 0x127   : > { %3621 = vmatpush1.bf16.msra.mxu0 %v1801_v3 }
 0x128   : > { %3664 = vmatpush1.bf16.msra.mxu1 %v1807_v4 }
 0x12a   : > { %5354 = vmatmul.mubr.msk.bf16.vlgmr.msra.gmra.mrb[84].mxu0 %vm1540_vm2, %v6366_v51 }
 0x12b   : > { %5355 = vmatmul.mubr.msk.bf16.vlgmr.msra.gmra.mrb[84].mxu1 %vm1540_vm2, %v6366_v51 }
 0x155   : > { %v1846_v62 = vpop.f32.mrb[0].mxu0 }
 0x156   : > { %v3716_v49 = vmul.f32 %v6447_v5, %v1846_v62  ;;  %v1889_v9 = vpop.f32.mrb[0].mxu1  ;;  %v1848_v10 = vpop.f32.mrb[1].mxu0 }
 0x157   : > { %v3718_v11 = vmul.f32 %v6447_v5, %v1889_v9  ;;  %v3717_v12 = vmul.f32 %v6447_v5, %v1848_v10  ;;  %v1891_v13 = vpop.f32.mrb[1].mxu1  ;;  %v1850_v14 = vpop.f32.mrb[2].mxu0 }
 0x158   : > { %v3904_v51 = vadd.f32 %v6449_v6, %v3716_v49  ;;  %v3719_v15 = vmul.f32 %v6447_v5, %v1891_v13  ;;  %v3804_v16 = vmul.f32 %v6451_v7, %v1850_v14  ;;  %v1893_v17 = vpop.f32.mrb[2].mxu1  ;;  %v1852_v18 = vpop.f32.mrb[3].mxu0 }
 0x159   : > { %v3906_v19 = vadd.f32 %v6449_v6, %v3718_v11  ;;  %v3905_v20 = vadd.f32 %v6449_v6, %v3717_v12  ;;  %v3806_v21 = vmul.f32 %v6451_v7, %v1893_v17  ;;  %v3805_v23 = vmul.f32 %v6451_v7, %v1852_v18  ;;  %v1895_v24 = vpop.f32.mrb[3].mxu1 }
 0x15a   : > { %v4080_v25 = vmax.f32 %v3904_v51, 0.0  ;;  %v3907_v26 = vadd.f32 %v6449_v6, %v3719_v15  ;;  %v3807_v27 = vmul.f32 %v6451_v7, %v1895_v24  ;;  %v3992_v28 = vadd.f32 %v6453_v8, %v3804_v16 }
 0x15b   : > { %v4082_v29 = vmax.f32 %v3906_v19, 0.0  ;;  %v4081_v30 = vmax.f32 %v3905_v20, 0.0  ;;  %v3993_v31 = vadd.f32 %v6453_v8, %v3805_v23  ;;  %v3994_v32 = vadd.f32 %v6453_v8, %v3806_v21 }
 0x15c   : > { %v4083_v33 = vmax.f32 %v3907_v26, 0.0  ;;  %v3995_v34 = vadd.f32 %v6453_v8, %v3807_v27  ;;  %v4168_v35 = vmax.f32 %v3992_v28, 0.0 }
 0x15d   : > { %v5448_v36 = vpack.c.bf16 %v4081_v30, %v4080_v25  ;;  %v4169_v37 = vmax.f32 %v3993_v31, 0.0  ;;  %v4170_v38 = vmax.f32 %v3994_v32, 0.0  ;;  %v1932_v39 = vpop.f32.mrb[4].mxu0 }
 0x15e   : > { %v5449_v22 = vpack.c.bf16 %v4083_v33, %v4082_v29  ;;  %v4171_v40 = vmax.f32 %v3995_v34, 0.0  ;;  %v3720_v41 = vmul.f32 %v6447_v5, %v1932_v39  ;;  %v1975_v42 = vpop.f32.mrb[4].mxu1  ;;  %v1934_v43 = vpop.f32.mrb[5].mxu0 }
 0x15f   : > { %4784 = vst [vmem:[%s6474_s15] sm:$0xff] %v5448_v36  ;;  %v5492_v44 = vpack.c.bf16 %v4169_v37, %v4168_v35  ;;  %v3722_v45 = vmul.f32 %v6447_v5, %v1975_v42  ;;  %v3721_v46 = vmul.f32 %v6447_v5, %v1934_v43  ;;  %v1977_v47 = vpop.f32.mrb[5].mxu1  ;;  %v1936_v48 = vpop.f32.mrb[6].mxu0 }
 0x160   : > { %4785 = vst [vmem:[%s6474_s15 + $0x8] sm:$0xff] %v5449_v22  ;;  %v5493_v50 = vpack.c.bf16 %v4171_v40, %v4170_v38  ;;  %v3908_v52 = vadd.f32 %v6449_v6, %v3720_v41  ;;  %v3723_v53 = vmul.f32 %v6447_v5, %v1977_v47  ;;  %v3808_v54 = vmul.f32 %v6451_v7, %v1936_v48  ;;  %v1979_v55 = vpop.f32.mrb[6].mxu1  ;;  %v1938_v56 = vpop.f32.mrb[7].mxu0 }
 0x161   : > { %4828 = vst [vmem:[%s6474_s15 + $0x160] sm:$0x33] %v5492_v44  ;;  %v3910_v57 = vadd.f32 %v6449_v6, %v3722_v45  ;;  %v3909_v58 = vadd.f32 %v6449_v6, %v3721_v46  ;;  %v3810_v59 = vmul.f32 %v6451_v7, %v1979_v55  ;;  %v3809_v60 = vmul.f32 %v6451_v7, %v1938_v56  ;;  %v1981_v61 = vpop.f32.mrb[7].mxu1 }
 0x162   : > { %4829 = vst [vmem:[%s6474_s15 + $0x168] sm:$0x33] %v5493_v50  ;;  %v4084_v63 = vmax.f32 %v3908_v52, 0.0  ;;  %v3911_v0 = vadd.f32 %v6449_v6, %v3723_v53  ;;  %v3996_v1 = vadd.f32 %v6453_v8, %v3808_v54  ;;  %v3811_v2 = vmul.f32 %v6451_v7, %v1981_v61 }
 0x163   : > { %v4086_v3 = vmax.f32 %v3910_v57, 0.0  ;;  %v4085_v4 = vmax.f32 %v3909_v58, 0.0  ;;  %v3998_v62 = vadd.f32 %v6453_v8, %v3810_v59  ;;  %v3997_v49 = vadd.f32 %v6453_v8, %v3809_v60 }
 0x164   : > { %v4087_v9 = vmax.f32 %v3911_v0, 0.0  ;;  %v4172_v10 = vmax.f32 %v3996_v1, 0.0  ;;  %v3999_v11 = vadd.f32 %v6453_v8, %v3811_v2 }
 0x165   : > { %v5450_v12 = vpack.c.bf16 %v4085_v4, %v4084_v63  ;;  %v4174_v13 = vmax.f32 %v3998_v62, 0.0  ;;  %v4173_v14 = vmax.f32 %v3997_v49, 0.0  ;;  %v2018_v51 = vpop.f32.mrb[8].mxu0 }
 0x166   : > { %v5451_v15 = vpack.c.bf16 %v4087_v9, %v4086_v3  ;;  %v4175_v16 = vmax.f32 %v3999_v11, 0.0  ;;  %v3724_v17 = vmul.f32 %v6447_v5, %v2018_v51  ;;  %v2061_v18 = vpop.f32.mrb[8].mxu1  ;;  %v2020_v19 = vpop.f32.mrb[9].mxu0 }
 0x167   : > { %4786 = vst [vmem:[%s6474_s15 + $0x10] sm:$0xff] %v5450_v12  ;;  %v5494_v20 = vpack.c.bf16 %v4173_v14, %v4172_v10  ;;  %v3726_v21 = vmul.f32 %v6447_v5, %v2061_v18  ;;  %v3725_v23 = vmul.f32 %v6447_v5, %v2020_v19  ;;  %v2063_v24 = vpop.f32.mrb[9].mxu1  ;;  %v2022_v25 = vpop.f32.mrb[10].mxu0 }
 0x168   : > { %4787 = vst [vmem:[%s6474_s15 + $0x18] sm:$0xff] %v5451_v15  ;;  %v5495_v26 = vpack.c.bf16 %v4175_v16, %v4174_v13  ;;  %v3912_v27 = vadd.f32 %v6449_v6, %v3724_v17  ;;  %v3727_v28 = vmul.f32 %v6447_v5, %v2063_v24  ;;  %v3812_v29 = vmul.f32 %v6451_v7, %v2022_v25  ;;  %v2065_v30 = vpop.f32.mrb[10].mxu1  ;;  %v2024_v31 = vpop.f32.mrb[11].mxu0 }
 0x169   : > { %4830 = vst [vmem:[%s6474_s15 + $0x170] sm:$0x33] %v5494_v20  ;;  %v3914_v32 = vadd.f32 %v6449_v6, %v3726_v21  ;;  %v3913_v33 = vadd.f32 %v6449_v6, %v3725_v23  ;;  %v3814_v34 = vmul.f32 %v6451_v7, %v2065_v30  ;;  %v3813_v35 = vmul.f32 %v6451_v7, %v2024_v31  ;;  %v2067_v36 = vpop.f32.mrb[11].mxu1 }
 0x16a   : > { %4831 = vst [vmem:[%s6474_s15 + $0x178] sm:$0x33] %v5495_v26  ;;  %v4088_v37 = vmax.f32 %v3912_v27, 0.0  ;;  %v3915_v38 = vadd.f32 %v6449_v6, %v3727_v28  ;;  %v4000_v39 = vadd.f32 %v6453_v8, %v3812_v29  ;;  %v3815_v22 = vmul.f32 %v6451_v7, %v2067_v36 }
 0x16b   : > { %v4090_v40 = vmax.f32 %v3914_v32, 0.0  ;;  %v4089_v41 = vmax.f32 %v3913_v33, 0.0  ;;  %v4002_v42 = vadd.f32 %v6453_v8, %v3814_v34  ;;  %v4001_v43 = vadd.f32 %v6453_v8, %v3813_v35 }
 0x16c   : > { %v4091_v44 = vmax.f32 %v3915_v38, 0.0  ;;  %v4176_v45 = vmax.f32 %v4000_v39, 0.0  ;;  %v4003_v46 = vadd.f32 %v6453_v8, %v3815_v22 }
 0x16d   : > { %v5452_v47 = vpack.c.bf16 %v4089_v41, %v4088_v37  ;;  %v4178_v48 = vmax.f32 %v4002_v42, 0.0  ;;  %v4177_v50 = vmax.f32 %v4001_v43, 0.0  ;;  %v2104_v52 = vpop.f32.mrb[12].mxu0 }
 0x16e   : > { %v5453_v53 = vpack.c.bf16 %v4091_v44, %v4090_v40  ;;  %v4179_v54 = vmax.f32 %v4003_v46, 0.0  ;;  %v3728_v55 = vmul.f32 %v6447_v5, %v2104_v52  ;;  %v2147_v56 = vpop.f32.mrb[12].mxu1  ;;  %v2106_v57 = vpop.f32.mrb[13].mxu0 }
 0x16f   : > { %4788 = vst [vmem:[%s6474_s15 + $0x20] sm:$0xff] %v5452_v47  ;;  %v5496_v58 = vpack.c.bf16 %v4177_v50, %v4176_v45  ;;  %v3730_v59 = vmul.f32 %v6447_v5, %v2147_v56  ;;  %v3729_v60 = vmul.f32 %v6447_v5, %v2106_v57  ;;  %v2149_v61 = vpop.f32.mrb[13].mxu1  ;;  %v2108_v63 = vpop.f32.mrb[14].mxu0 }
 0x170   : > { %4789 = vst [vmem:[%s6474_s15 + $0x28] sm:$0xff] %v5453_v53  ;;  %v5497_v0 = vpack.c.bf16 %v4179_v54, %v4178_v48  ;;  %v3916_v1 = vadd.f32 %v6449_v6, %v3728_v55  ;;  %v3731_v2 = vmul.f32 %v6447_v5, %v2149_v61  ;;  %v3816_v3 = vmul.f32 %v6451_v7, %v2108_v63  ;;  %v2151_v4 = vpop.f32.mrb[14].mxu1  ;;  %v2110_v62 = vpop.f32.mrb[15].mxu0 }
 0x171   : > { %4832 = vst [vmem:[%s6474_s15 + $0x180] sm:$0x33] %v5496_v58  ;;  %v3918_v49 = vadd.f32 %v6449_v6, %v3730_v59  ;;  %v3917_v9 = vadd.f32 %v6449_v6, %v3729_v60  ;;  %v3818_v10 = vmul.f32 %v6451_v7, %v2151_v4  ;;  %v3817_v11 = vmul.f32 %v6451_v7, %v2110_v62  ;;  %v2153_v12 = vpop.f32.mrb[15].mxu1 }
 0x172   : > { %4833 = vst [vmem:[%s6474_s15 + $0x188] sm:$0x33] %v5497_v0  ;;  %v4092_v13 = vmax.f32 %v3916_v1, 0.0  ;;  %v3919_v14 = vadd.f32 %v6449_v6, %v3731_v2  ;;  %v4004_v51 = vadd.f32 %v6453_v8, %v3816_v3  ;;  %v3819_v15 = vmul.f32 %v6451_v7, %v2153_v12 }
 0x173   : > { %v4094_v16 = vmax.f32 %v3918_v49, 0.0  ;;  %v4093_v17 = vmax.f32 %v3917_v9, 0.0  ;;  %v4006_v18 = vadd.f32 %v6453_v8, %v3818_v10  ;;  %v4005_v19 = vadd.f32 %v6453_v8, %v3817_v11 }
 0x174   : > { %v4095_v20 = vmax.f32 %v3919_v14, 0.0  ;;  %v4180_v21 = vmax.f32 %v4004_v51, 0.0  ;;  %v4007_v23 = vadd.f32 %v6453_v8, %v3819_v15 }
 0x175   : > { %v5454_v24 = vpack.c.bf16 %v4093_v17, %v4092_v13  ;;  %v4182_v25 = vmax.f32 %v4006_v18, 0.0  ;;  %v4181_v26 = vmax.f32 %v4005_v19, 0.0  ;;  %v2190_v27 = vpop.f32.mrb[16].mxu0 }
 0x176   : > { %v5455_v28 = vpack.c.bf16 %v4095_v20, %v4094_v16  ;;  %v4183_v29 = vmax.f32 %v4007_v23, 0.0  ;;  %v3732_v30 = vmul.f32 %v6447_v5, %v2190_v27  ;;  %v2233_v31 = vpop.f32.mrb[16].mxu1  ;;  %v2192_v32 = vpop.f32.mrb[17].mxu0 }
 0x177   : > { %4790 = vst [vmem:[%s6474_s15 + $0x30] sm:$0xff] %v5454_v24  ;;  %v5498_v33 = vpack.c.bf16 %v4181_v26, %v4180_v21  ;;  %v3734_v34 = vmul.f32 %v6447_v5, %v2233_v31  ;;  %v3733_v35 = vmul.f32 %v6447_v5, %v2192_v32  ;;  %v2235_v36 = vpop.f32.mrb[17].mxu1  ;;  %v2194_v37 = vpop.f32.mrb[18].mxu0 }
 0x178   : > { %4791 = vst [vmem:[%s6474_s15 + $0x38] sm:$0xff] %v5455_v28  ;;  %v5499_v38 = vpack.c.bf16 %v4183_v29, %v4182_v25  ;;  %v3920_v39 = vadd.f32 %v6449_v6, %v3732_v30  ;;  %v3735_v22 = vmul.f32 %v6447_v5, %v2235_v36  ;;  %v3820_v40 = vmul.f32 %v6451_v7, %v2194_v37  ;;  %v2237_v41 = vpop.f32.mrb[18].mxu1  ;;  %v2196_v42 = vpop.f32.mrb[19].mxu0 }
 0x179   : > { %4834 = vst [vmem:[%s6474_s15 + $0x190] sm:$0x33] %v5498_v33  ;;  %v3922_v43 = vadd.f32 %v6449_v6, %v3734_v34  ;;  %v3921_v44 = vadd.f32 %v6449_v6, %v3733_v35  ;;  %v3822_v45 = vmul.f32 %v6451_v7, %v2237_v41  ;;  %v3821_v46 = vmul.f32 %v6451_v7, %v2196_v42  ;;  %v2239_v47 = vpop.f32.mrb[19].mxu1 }
 0x17a   : > { %4835 = vst [vmem:[%s6474_s15 + $0x198] sm:$0x33] %v5499_v38  ;;  %v4096_v48 = vmax.f32 %v3920_v39, 0.0  ;;  %v3923_v50 = vadd.f32 %v6449_v6, %v3735_v22  ;;  %v4008_v52 = vadd.f32 %v6453_v8, %v3820_v40  ;;  %v3823_v53 = vmul.f32 %v6451_v7, %v2239_v47 }
 0x17b   : > { %v4098_v54 = vmax.f32 %v3922_v43, 0.0  ;;  %v4097_v55 = vmax.f32 %v3921_v44, 0.0  ;;  %v4010_v56 = vadd.f32 %v6453_v8, %v3822_v45  ;;  %v4009_v57 = vadd.f32 %v6453_v8, %v3821_v46 }
 0x17c   : > { %v4099_v58 = vmax.f32 %v3923_v50, 0.0  ;;  %v4184_v59 = vmax.f32 %v4008_v52, 0.0  ;;  %v4011_v60 = vadd.f32 %v6453_v8, %v3823_v53 }
 0x17d   : > { %v5456_v61 = vpack.c.bf16 %v4097_v55, %v4096_v48  ;;  %v4186_v63 = vmax.f32 %v4010_v56, 0.0  ;;  %v4185_v0 = vmax.f32 %v4009_v57, 0.0  ;;  %v2276_v1 = vpop.f32.mrb[20].mxu0 }
 0x17e   : > { %v5457_v2 = vpack.c.bf16 %v4099_v58, %v4098_v54  ;;  %v4187_v3 = vmax.f32 %v4011_v60, 0.0  ;;  %v3736_v4 = vmul.f32 %v6447_v5, %v2276_v1  ;;  %v2319_v62 = vpop.f32.mrb[20].mxu1  ;;  %v2278_v49 = vpop.f32.mrb[21].mxu0 }
 0x17f   : > { %4792 = vst [vmem:[%s6474_s15 + $0x40] sm:$0xff] %v5456_v61  ;;  %v5500_v9 = vpack.c.bf16 %v4185_v0, %v4184_v59  ;;  %v3738_v10 = vmul.f32 %v6447_v5, %v2319_v62  ;;  %v3737_v11 = vmul.f32 %v6447_v5, %v2278_v49  ;;  %v2321_v12 = vpop.f32.mrb[21].mxu1  ;;  %v2280_v13 = vpop.f32.mrb[22].mxu0 }
 0x180   : > { %4793 = vst [vmem:[%s6474_s15 + $0x48] sm:$0xff] %v5457_v2  ;;  %v5501_v14 = vpack.c.bf16 %v4187_v3, %v4186_v63  ;;  %v3924_v51 = vadd.f32 %v6449_v6, %v3736_v4  ;;  %v3739_v15 = vmul.f32 %v6447_v5, %v2321_v12  ;;  %v3824_v16 = vmul.f32 %v6451_v7, %v2280_v13  ;;  %v2323_v17 = vpop.f32.mrb[22].mxu1  ;;  %v2282_v18 = vpop.f32.mrb[23].mxu0 }
 0x181   : > { %4836 = vst [vmem:[%s6474_s15 + $0x1a0] sm:$0x33] %v5500_v9  ;;  %v3926_v19 = vadd.f32 %v6449_v6, %v3738_v10  ;;  %v3925_v20 = vadd.f32 %v6449_v6, %v3737_v11  ;;  %v3826_v21 = vmul.f32 %v6451_v7, %v2323_v17  ;;  %v3825_v23 = vmul.f32 %v6451_v7, %v2282_v18  ;;  %v2325_v24 = vpop.f32.mrb[23].mxu1 }
 0x182   : > { %4837 = vst [vmem:[%s6474_s15 + $0x1a8] sm:$0x33] %v5501_v14  ;;  %v4100_v25 = vmax.f32 %v3924_v51, 0.0  ;;  %v3927_v26 = vadd.f32 %v6449_v6, %v3739_v15  ;;  %v4012_v27 = vadd.f32 %v6453_v8, %v3824_v16  ;;  %v3827_v28 = vmul.f32 %v6451_v7, %v2325_v24 }
 0x183   : > { %v4102_v29 = vmax.f32 %v3926_v19, 0.0  ;;  %v4101_v30 = vmax.f32 %v3925_v20, 0.0  ;;  %v4014_v31 = vadd.f32 %v6453_v8, %v3826_v21  ;;  %v4013_v32 = vadd.f32 %v6453_v8, %v3825_v23 }
 0x184   : > { %v4103_v33 = vmax.f32 %v3927_v26, 0.0  ;;  %v4188_v34 = vmax.f32 %v4012_v27, 0.0  ;;  %v4015_v35 = vadd.f32 %v6453_v8, %v3827_v28 }
 0x185   : > { %v5458_v36 = vpack.c.bf16 %v4101_v30, %v4100_v25  ;;  %v4190_v37 = vmax.f32 %v4014_v31, 0.0  ;;  %v4189_v38 = vmax.f32 %v4013_v32, 0.0  ;;  %v2362_v39 = vpop.f32.mrb[24].mxu0 }
 0x186   : > { %v5459_v22 = vpack.c.bf16 %v4103_v33, %v4102_v29  ;;  %v4191_v40 = vmax.f32 %v4015_v35, 0.0  ;;  %v3740_v41 = vmul.f32 %v6447_v5, %v2362_v39  ;;  %v2405_v42 = vpop.f32.mrb[24].mxu1  ;;  %v2364_v43 = vpop.f32.mrb[25].mxu0 }
 0x187   : > { %4794 = vst [vmem:[%s6474_s15 + $0x50] sm:$0xff] %v5458_v36  ;;  %v5502_v44 = vpack.c.bf16 %v4189_v38, %v4188_v34  ;;  %v3742_v45 = vmul.f32 %v6447_v5, %v2405_v42  ;;  %v3741_v46 = vmul.f32 %v6447_v5, %v2364_v43  ;;  %v2407_v47 = vpop.f32.mrb[25].mxu1  ;;  %v2366_v48 = vpop.f32.mrb[26].mxu0 }
 0x188   : > { %4795 = vst [vmem:[%s6474_s15 + $0x58] sm:$0xff] %v5459_v22  ;;  %v5503_v50 = vpack.c.bf16 %v4191_v40, %v4190_v37  ;;  %v3928_v52 = vadd.f32 %v6449_v6, %v3740_v41  ;;  %v3743_v53 = vmul.f32 %v6447_v5, %v2407_v47  ;;  %v3828_v54 = vmul.f32 %v6451_v7, %v2366_v48  ;;  %v2409_v55 = vpop.f32.mrb[26].mxu1  ;;  %v2368_v56 = vpop.f32.mrb[27].mxu0 }
 0x189   : > { %4838 = vst [vmem:[%s6474_s15 + $0x1b0] sm:$0x33] %v5502_v44  ;;  %v3930_v57 = vadd.f32 %v6449_v6, %v3742_v45  ;;  %v3929_v58 = vadd.f32 %v6449_v6, %v3741_v46  ;;  %v3830_v59 = vmul.f32 %v6451_v7, %v2409_v55  ;;  %v3829_v60 = vmul.f32 %v6451_v7, %v2368_v56  ;;  %v2411_v61 = vpop.f32.mrb[27].mxu1 }
 0x18a   : > { %4839 = vst [vmem:[%s6474_s15 + $0x1b8] sm:$0x33] %v5503_v50  ;;  %v4104_v63 = vmax.f32 %v3928_v52, 0.0  ;;  %v3931_v0 = vadd.f32 %v6449_v6, %v3743_v53  ;;  %v4016_v1 = vadd.f32 %v6453_v8, %v3828_v54  ;;  %v3831_v2 = vmul.f32 %v6451_v7, %v2411_v61 }
 0x18b   : > { %v4106_v3 = vmax.f32 %v3930_v57, 0.0  ;;  %v4105_v4 = vmax.f32 %v3929_v58, 0.0  ;;  %v4018_v62 = vadd.f32 %v6453_v8, %v3830_v59  ;;  %v4017_v49 = vadd.f32 %v6453_v8, %v3829_v60 }
 0x18c   : > { %v4107_v9 = vmax.f32 %v3931_v0, 0.0  ;;  %v4192_v10 = vmax.f32 %v4016_v1, 0.0  ;;  %v4019_v11 = vadd.f32 %v6453_v8, %v3831_v2 }
 0x18d   : > { %v5460_v12 = vpack.c.bf16 %v4105_v4, %v4104_v63  ;;  %v4194_v13 = vmax.f32 %v4018_v62, 0.0  ;;  %v4193_v14 = vmax.f32 %v4017_v49, 0.0  ;;  %v2448_v51 = vpop.f32.mrb[28].mxu0 }
 0x18e   : > { %v5461_v15 = vpack.c.bf16 %v4107_v9, %v4106_v3  ;;  %v4195_v16 = vmax.f32 %v4019_v11, 0.0  ;;  %v3744_v17 = vmul.f32 %v6447_v5, %v2448_v51  ;;  %v2491_v18 = vpop.f32.mrb[28].mxu1  ;;  %v2450_v19 = vpop.f32.mrb[29].mxu0 }
 0x18f   : > { %4796 = vst [vmem:[%s6474_s15 + $0x60] sm:$0xff] %v5460_v12  ;;  %v5504_v20 = vpack.c.bf16 %v4193_v14, %v4192_v10  ;;  %v3746_v21 = vmul.f32 %v6447_v5, %v2491_v18  ;;  %v3745_v23 = vmul.f32 %v6447_v5, %v2450_v19  ;;  %v2493_v24 = vpop.f32.mrb[29].mxu1  ;;  %v2452_v25 = vpop.f32.mrb[30].mxu0 }
 0x190   : > { %4797 = vst [vmem:[%s6474_s15 + $0x68] sm:$0xff] %v5461_v15  ;;  %v5505_v26 = vpack.c.bf16 %v4195_v16, %v4194_v13  ;;  %v3932_v27 = vadd.f32 %v6449_v6, %v3744_v17  ;;  %v3747_v28 = vmul.f32 %v6447_v5, %v2493_v24  ;;  %v3832_v29 = vmul.f32 %v6451_v7, %v2452_v25  ;;  %v2495_v30 = vpop.f32.mrb[30].mxu1  ;;  %v2454_v31 = vpop.f32.mrb[31].mxu0 }
 0x191   : > { %4840 = vst [vmem:[%s6474_s15 + $0x1c0] sm:$0x33] %v5504_v20  ;;  %v3934_v32 = vadd.f32 %v6449_v6, %v3746_v21  ;;  %v3933_v33 = vadd.f32 %v6449_v6, %v3745_v23  ;;  %v3834_v34 = vmul.f32 %v6451_v7, %v2495_v30  ;;  %v3833_v35 = vmul.f32 %v6451_v7, %v2454_v31  ;;  %v2497_v36 = vpop.f32.mrb[31].mxu1 }
 0x192   : > { %4841 = vst [vmem:[%s6474_s15 + $0x1c8] sm:$0x33] %v5505_v26  ;;  %v4108_v37 = vmax.f32 %v3932_v27, 0.0  ;;  %v3935_v38 = vadd.f32 %v6449_v6, %v3747_v28  ;;  %v4020_v39 = vadd.f32 %v6453_v8, %v3832_v29  ;;  %v3835_v22 = vmul.f32 %v6451_v7, %v2497_v36 }
 0x193   : > { %v4110_v40 = vmax.f32 %v3934_v32, 0.0  ;;  %v4109_v41 = vmax.f32 %v3933_v33, 0.0  ;;  %v4022_v42 = vadd.f32 %v6453_v8, %v3834_v34  ;;  %v4021_v43 = vadd.f32 %v6453_v8, %v3833_v35 }
 0x194   : > { %v4111_v44 = vmax.f32 %v3935_v38, 0.0  ;;  %v4196_v45 = vmax.f32 %v4020_v39, 0.0  ;;  %v4023_v46 = vadd.f32 %v6453_v8, %v3835_v22 }
 0x195   : > { %v5462_v47 = vpack.c.bf16 %v4109_v41, %v4108_v37  ;;  %v4198_v48 = vmax.f32 %v4022_v42, 0.0  ;;  %v4197_v50 = vmax.f32 %v4021_v43, 0.0  ;;  %v2534_v52 = vpop.f32.mrb[32].mxu0 }
 0x196   : > { %v5463_v53 = vpack.c.bf16 %v4111_v44, %v4110_v40  ;;  %v4199_v54 = vmax.f32 %v4023_v46, 0.0  ;;  %v3748_v55 = vmul.f32 %v6447_v5, %v2534_v52  ;;  %v2577_v56 = vpop.f32.mrb[32].mxu1  ;;  %v2536_v57 = vpop.f32.mrb[33].mxu0 }
 0x197   : > { %4798 = vst [vmem:[%s6474_s15 + $0x70] sm:$0xff] %v5462_v47  ;;  %v5506_v58 = vpack.c.bf16 %v4197_v50, %v4196_v45  ;;  %v3750_v59 = vmul.f32 %v6447_v5, %v2577_v56  ;;  %v3749_v60 = vmul.f32 %v6447_v5, %v2536_v57  ;;  %v2579_v61 = vpop.f32.mrb[33].mxu1  ;;  %v2538_v63 = vpop.f32.mrb[34].mxu0 }
 0x198   : > { %4799 = vst [vmem:[%s6474_s15 + $0x78] sm:$0xff] %v5463_v53  ;;  %v5507_v0 = vpack.c.bf16 %v4199_v54, %v4198_v48  ;;  %v3936_v1 = vadd.f32 %v6449_v6, %v3748_v55  ;;  %v3751_v2 = vmul.f32 %v6447_v5, %v2579_v61  ;;  %v3836_v3 = vmul.f32 %v6451_v7, %v2538_v63  ;;  %v2581_v4 = vpop.f32.mrb[34].mxu1  ;;  %v2540_v62 = vpop.f32.mrb[35].mxu0 }
 0x199   : > { %4842 = vst [vmem:[%s6474_s15 + $0x1d0] sm:$0x33] %v5506_v58  ;;  %v3938_v49 = vadd.f32 %v6449_v6, %v3750_v59  ;;  %v3937_v9 = vadd.f32 %v6449_v6, %v3749_v60  ;;  %v3838_v10 = vmul.f32 %v6451_v7, %v2581_v4  ;;  %v3837_v11 = vmul.f32 %v6451_v7, %v2540_v62  ;;  %v2583_v12 = vpop.f32.mrb[35].mxu1 }
 0x19a   : > { %4843 = vst [vmem:[%s6474_s15 + $0x1d8] sm:$0x33] %v5507_v0  ;;  %v4112_v13 = vmax.f32 %v3936_v1, 0.0  ;;  %v3939_v14 = vadd.f32 %v6449_v6, %v3751_v2  ;;  %v4024_v51 = vadd.f32 %v6453_v8, %v3836_v3  ;;  %v3839_v15 = vmul.f32 %v6451_v7, %v2583_v12 }
 0x19b   : > { %v4114_v16 = vmax.f32 %v3938_v49, 0.0  ;;  %v4113_v17 = vmax.f32 %v3937_v9, 0.0  ;;  %v4026_v18 = vadd.f32 %v6453_v8, %v3838_v10  ;;  %v4025_v19 = vadd.f32 %v6453_v8, %v3837_v11 }
 0x19c   : > { %v4115_v20 = vmax.f32 %v3939_v14, 0.0  ;;  %v4200_v21 = vmax.f32 %v4024_v51, 0.0  ;;  %v4027_v23 = vadd.f32 %v6453_v8, %v3839_v15 }
 0x19d   : > { %v5464_v24 = vpack.c.bf16 %v4113_v17, %v4112_v13  ;;  %v4202_v25 = vmax.f32 %v4026_v18, 0.0  ;;  %v4201_v26 = vmax.f32 %v4025_v19, 0.0  ;;  %v2620_v27 = vpop.f32.mrb[36].mxu0 }
 0x19e   : > { %v5465_v28 = vpack.c.bf16 %v4115_v20, %v4114_v16  ;;  %v4203_v29 = vmax.f32 %v4027_v23, 0.0  ;;  %v3752_v30 = vmul.f32 %v6447_v5, %v2620_v27  ;;  %v2663_v31 = vpop.f32.mrb[36].mxu1  ;;  %v2622_v32 = vpop.f32.mrb[37].mxu0 }
 0x19f   : > { %4800 = vst [vmem:[%s6474_s15 + $0x80] sm:$0xff] %v5464_v24  ;;  %v5508_v33 = vpack.c.bf16 %v4201_v26, %v4200_v21  ;;  %v3754_v34 = vmul.f32 %v6447_v5, %v2663_v31  ;;  %v3753_v35 = vmul.f32 %v6447_v5, %v2622_v32  ;;  %v2665_v36 = vpop.f32.mrb[37].mxu1  ;;  %v2624_v37 = vpop.f32.mrb[38].mxu0 }
 0x1a0   : > { %4801 = vst [vmem:[%s6474_s15 + $0x88] sm:$0xff] %v5465_v28  ;;  %v5509_v38 = vpack.c.bf16 %v4203_v29, %v4202_v25  ;;  %v3940_v39 = vadd.f32 %v6449_v6, %v3752_v30  ;;  %v3755_v22 = vmul.f32 %v6447_v5, %v2665_v36  ;;  %v3840_v40 = vmul.f32 %v6451_v7, %v2624_v37  ;;  %v2667_v41 = vpop.f32.mrb[38].mxu1  ;;  %v2626_v42 = vpop.f32.mrb[39].mxu0 }
 0x1a1   : > { %4844 = vst [vmem:[%s6474_s15 + $0x1e0] sm:$0x33] %v5508_v33  ;;  %v3942_v43 = vadd.f32 %v6449_v6, %v3754_v34  ;;  %v3941_v44 = vadd.f32 %v6449_v6, %v3753_v35  ;;  %v3842_v45 = vmul.f32 %v6451_v7, %v2667_v41  ;;  %v3841_v46 = vmul.f32 %v6451_v7, %v2626_v42  ;;  %v2669_v47 = vpop.f32.mrb[39].mxu1 }
 0x1a2   : > { %4845 = vst [vmem:[%s6474_s15 + $0x1e8] sm:$0x33] %v5509_v38  ;;  %v4116_v48 = vmax.f32 %v3940_v39, 0.0  ;;  %v3943_v50 = vadd.f32 %v6449_v6, %v3755_v22  ;;  %v4028_v52 = vadd.f32 %v6453_v8, %v3840_v40  ;;  %v3843_v53 = vmul.f32 %v6451_v7, %v2669_v47 }
 0x1a3   : > { %v4118_v54 = vmax.f32 %v3942_v43, 0.0  ;;  %v4117_v55 = vmax.f32 %v3941_v44, 0.0  ;;  %v4030_v56 = vadd.f32 %v6453_v8, %v3842_v45  ;;  %v4029_v57 = vadd.f32 %v6453_v8, %v3841_v46 }
 0x1a4   : > { %v4119_v58 = vmax.f32 %v3943_v50, 0.0  ;;  %v4204_v59 = vmax.f32 %v4028_v52, 0.0  ;;  %v4031_v60 = vadd.f32 %v6453_v8, %v3843_v53 }
 0x1a5   : > { %v5466_v61 = vpack.c.bf16 %v4117_v55, %v4116_v48  ;;  %v4206_v63 = vmax.f32 %v4030_v56, 0.0  ;;  %v4205_v0 = vmax.f32 %v4029_v57, 0.0  ;;  %v2706_v1 = vpop.f32.mrb[40].mxu0 }
 0x1a6   : > { %v5467_v2 = vpack.c.bf16 %v4119_v58, %v4118_v54  ;;  %v4207_v3 = vmax.f32 %v4031_v60, 0.0  ;;  %v3756_v4 = vmul.f32 %v6447_v5, %v2706_v1  ;;  %v2749_v62 = vpop.f32.mrb[40].mxu1  ;;  %v2708_v49 = vpop.f32.mrb[41].mxu0 }
 0x1a7   : > { %4802 = vst [vmem:[%s6474_s15 + $0x90] sm:$0xff] %v5466_v61  ;;  %v5510_v9 = vpack.c.bf16 %v4205_v0, %v4204_v59  ;;  %v3758_v10 = vmul.f32 %v6447_v5, %v2749_v62  ;;  %v3757_v11 = vmul.f32 %v6447_v5, %v2708_v49  ;;  %v2751_v12 = vpop.f32.mrb[41].mxu1  ;;  %v2710_v13 = vpop.f32.mrb[42].mxu0 }
 0x1a8   : > { %4803 = vst [vmem:[%s6474_s15 + $0x98] sm:$0xff] %v5467_v2  ;;  %v5511_v14 = vpack.c.bf16 %v4207_v3, %v4206_v63  ;;  %v3944_v51 = vadd.f32 %v6449_v6, %v3756_v4  ;;  %v3759_v15 = vmul.f32 %v6447_v5, %v2751_v12  ;;  %v3844_v16 = vmul.f32 %v6451_v7, %v2710_v13  ;;  %v2753_v17 = vpop.f32.mrb[42].mxu1  ;;  %v2712_v18 = vpop.f32.mrb[43].mxu0 }
 0x1a9   : > { %4846 = vst [vmem:[%s6474_s15 + $0x1f0] sm:$0x33] %v5510_v9  ;;  %v3946_v19 = vadd.f32 %v6449_v6, %v3758_v10  ;;  %v3945_v20 = vadd.f32 %v6449_v6, %v3757_v11  ;;  %v3846_v21 = vmul.f32 %v6451_v7, %v2753_v17  ;;  %v3845_v23 = vmul.f32 %v6451_v7, %v2712_v18  ;;  %v2755_v24 = vpop.f32.mrb[43].mxu1 }
 0x1aa   : > { %4847 = vst [vmem:[%s6474_s15 + $0x1f8] sm:$0x33] %v5511_v14  ;;  %v4120_v25 = vmax.f32 %v3944_v51, 0.0  ;;  %v3947_v26 = vadd.f32 %v6449_v6, %v3759_v15  ;;  %v4032_v27 = vadd.f32 %v6453_v8, %v3844_v16  ;;  %v3847_v28 = vmul.f32 %v6451_v7, %v2755_v24 }
 0x1ab   : > { %v4122_v29 = vmax.f32 %v3946_v19, 0.0  ;;  %v4121_v30 = vmax.f32 %v3945_v20, 0.0  ;;  %v4034_v31 = vadd.f32 %v6453_v8, %v3846_v21  ;;  %v4033_v32 = vadd.f32 %v6453_v8, %v3845_v23 }
 0x1ac   : > { %v4123_v33 = vmax.f32 %v3947_v26, 0.0  ;;  %v4208_v34 = vmax.f32 %v4032_v27, 0.0  ;;  %v4035_v35 = vadd.f32 %v6453_v8, %v3847_v28 }
 0x1ad   : > { %v5468_v36 = vpack.c.bf16 %v4121_v30, %v4120_v25  ;;  %v4210_v37 = vmax.f32 %v4034_v31, 0.0  ;;  %v4209_v38 = vmax.f32 %v4033_v32, 0.0  ;;  %v2792_v39 = vpop.f32.mrb[44].mxu0 }
 0x1ae   : > { %v5469_v22 = vpack.c.bf16 %v4123_v33, %v4122_v29  ;;  %v4211_v40 = vmax.f32 %v4035_v35, 0.0  ;;  %v3760_v41 = vmul.f32 %v6447_v5, %v2792_v39  ;;  %v2835_v42 = vpop.f32.mrb[44].mxu1  ;;  %v2794_v43 = vpop.f32.mrb[45].mxu0 }
 0x1af   : > { %4804 = vst [vmem:[%s6474_s15 + $0xa0] sm:$0xff] %v5468_v36  ;;  %v5512_v44 = vpack.c.bf16 %v4209_v38, %v4208_v34  ;;  %v3762_v45 = vmul.f32 %v6447_v5, %v2835_v42  ;;  %v3761_v46 = vmul.f32 %v6447_v5, %v2794_v43  ;;  %v2837_v47 = vpop.f32.mrb[45].mxu1  ;;  %v2796_v48 = vpop.f32.mrb[46].mxu0 }
 0x1b0   : > { %4805 = vst [vmem:[%s6474_s15 + $0xa8] sm:$0xff] %v5469_v22  ;;  %v5513_v50 = vpack.c.bf16 %v4211_v40, %v4210_v37  ;;  %v3948_v52 = vadd.f32 %v6449_v6, %v3760_v41  ;;  %v3763_v53 = vmul.f32 %v6447_v5, %v2837_v47  ;;  %v3848_v54 = vmul.f32 %v6451_v7, %v2796_v48  ;;  %v2839_v55 = vpop.f32.mrb[46].mxu1  ;;  %v2798_v56 = vpop.f32.mrb[47].mxu0 }
 0x1b1   : > { %4848 = vst [vmem:[%s6474_s15 + $0x200] sm:$0x33] %v5512_v44  ;;  %v3950_v57 = vadd.f32 %v6449_v6, %v3762_v45  ;;  %v3949_v58 = vadd.f32 %v6449_v6, %v3761_v46  ;;  %v3850_v59 = vmul.f32 %v6451_v7, %v2839_v55  ;;  %v3849_v60 = vmul.f32 %v6451_v7, %v2798_v56  ;;  %v2841_v61 = vpop.f32.mrb[47].mxu1 }
 0x1b2   : > { %4849 = vst [vmem:[%s6474_s15 + $0x208] sm:$0x33] %v5513_v50  ;;  %v4124_v63 = vmax.f32 %v3948_v52, 0.0  ;;  %v3951_v0 = vadd.f32 %v6449_v6, %v3763_v53  ;;  %v4036_v1 = vadd.f32 %v6453_v8, %v3848_v54  ;;  %v3851_v2 = vmul.f32 %v6451_v7, %v2841_v61 }
 0x1b3   : > { %v4126_v3 = vmax.f32 %v3950_v57, 0.0  ;;  %v4125_v4 = vmax.f32 %v3949_v58, 0.0  ;;  %v4038_v62 = vadd.f32 %v6453_v8, %v3850_v59  ;;  %v4037_v49 = vadd.f32 %v6453_v8, %v3849_v60 }
 0x1b4   : > { %v4127_v9 = vmax.f32 %v3951_v0, 0.0  ;;  %v4212_v10 = vmax.f32 %v4036_v1, 0.0  ;;  %v4039_v11 = vadd.f32 %v6453_v8, %v3851_v2 }
 0x1b5   : > { %v5470_v12 = vpack.c.bf16 %v4125_v4, %v4124_v63  ;;  %v4214_v13 = vmax.f32 %v4038_v62, 0.0  ;;  %v4213_v14 = vmax.f32 %v4037_v49, 0.0  ;;  %v2878_v51 = vpop.f32.mrb[48].mxu0 }
 0x1b6   : > { %v5471_v15 = vpack.c.bf16 %v4127_v9, %v4126_v3  ;;  %v4215_v16 = vmax.f32 %v4039_v11, 0.0  ;;  %v3764_v17 = vmul.f32 %v6447_v5, %v2878_v51  ;;  %v2921_v18 = vpop.f32.mrb[48].mxu1  ;;  %v2880_v19 = vpop.f32.mrb[49].mxu0 }
 0x1b7   : > { %4806 = vst [vmem:[%s6474_s15 + $0xb0] sm:$0xff] %v5470_v12  ;;  %v5514_v20 = vpack.c.bf16 %v4213_v14, %v4212_v10  ;;  %v3766_v21 = vmul.f32 %v6447_v5, %v2921_v18  ;;  %v3765_v23 = vmul.f32 %v6447_v5, %v2880_v19  ;;  %v2923_v24 = vpop.f32.mrb[49].mxu1  ;;  %v2882_v25 = vpop.f32.mrb[50].mxu0 }
 0x1b8   : > { %4807 = vst [vmem:[%s6474_s15 + $0xb8] sm:$0xff] %v5471_v15  ;;  %v5515_v26 = vpack.c.bf16 %v4215_v16, %v4214_v13  ;;  %v3952_v27 = vadd.f32 %v6449_v6, %v3764_v17  ;;  %v3767_v28 = vmul.f32 %v6447_v5, %v2923_v24  ;;  %v3852_v29 = vmul.f32 %v6451_v7, %v2882_v25  ;;  %v2925_v30 = vpop.f32.mrb[50].mxu1  ;;  %v2884_v31 = vpop.f32.mrb[51].mxu0 }
 0x1b9   : > { %4850 = vst [vmem:[%s6474_s15 + $0x210] sm:$0x33] %v5514_v20  ;;  %v3954_v32 = vadd.f32 %v6449_v6, %v3766_v21  ;;  %v3953_v33 = vadd.f32 %v6449_v6, %v3765_v23  ;;  %v3854_v34 = vmul.f32 %v6451_v7, %v2925_v30  ;;  %v3853_v35 = vmul.f32 %v6451_v7, %v2884_v31  ;;  %v2927_v36 = vpop.f32.mrb[51].mxu1 }
 0x1ba   : > { %4851 = vst [vmem:[%s6474_s15 + $0x218] sm:$0x33] %v5515_v26  ;;  %v4128_v37 = vmax.f32 %v3952_v27, 0.0  ;;  %v3955_v38 = vadd.f32 %v6449_v6, %v3767_v28  ;;  %v4040_v39 = vadd.f32 %v6453_v8, %v3852_v29  ;;  %v3855_v22 = vmul.f32 %v6451_v7, %v2927_v36 }
 0x1bb   : > { %v4130_v40 = vmax.f32 %v3954_v32, 0.0  ;;  %v4129_v41 = vmax.f32 %v3953_v33, 0.0  ;;  %v4042_v42 = vadd.f32 %v6453_v8, %v3854_v34  ;;  %v4041_v43 = vadd.f32 %v6453_v8, %v3853_v35 }
 0x1bc   : > { %v4131_v44 = vmax.f32 %v3955_v38, 0.0  ;;  %v4216_v45 = vmax.f32 %v4040_v39, 0.0  ;;  %v4043_v46 = vadd.f32 %v6453_v8, %v3855_v22 }
 0x1bd   : > { %v5472_v47 = vpack.c.bf16 %v4129_v41, %v4128_v37  ;;  %v4218_v48 = vmax.f32 %v4042_v42, 0.0  ;;  %v4217_v50 = vmax.f32 %v4041_v43, 0.0  ;;  %v2964_v52 = vpop.f32.mrb[52].mxu0 }
 0x1be   : > { %v5473_v53 = vpack.c.bf16 %v4131_v44, %v4130_v40  ;;  %v4219_v54 = vmax.f32 %v4043_v46, 0.0  ;;  %v3768_v55 = vmul.f32 %v6447_v5, %v2964_v52  ;;  %v3007_v56 = vpop.f32.mrb[52].mxu1  ;;  %v2966_v57 = vpop.f32.mrb[53].mxu0 }
 0x1bf   : > { %4808 = vst [vmem:[%s6474_s15 + $0xc0] sm:$0xff] %v5472_v47  ;;  %v5516_v58 = vpack.c.bf16 %v4217_v50, %v4216_v45  ;;  %v3770_v59 = vmul.f32 %v6447_v5, %v3007_v56  ;;  %v3769_v60 = vmul.f32 %v6447_v5, %v2966_v57  ;;  %v3009_v61 = vpop.f32.mrb[53].mxu1  ;;  %v2968_v63 = vpop.f32.mrb[54].mxu0 }
 0x1c0   : > { %4809 = vst [vmem:[%s6474_s15 + $0xc8] sm:$0xff] %v5473_v53  ;;  %v5517_v0 = vpack.c.bf16 %v4219_v54, %v4218_v48  ;;  %v3956_v1 = vadd.f32 %v6449_v6, %v3768_v55  ;;  %v3771_v2 = vmul.f32 %v6447_v5, %v3009_v61  ;;  %v3856_v3 = vmul.f32 %v6451_v7, %v2968_v63  ;;  %v3011_v4 = vpop.f32.mrb[54].mxu1  ;;  %v2970_v62 = vpop.f32.mrb[55].mxu0 }
 0x1c1   : > { %4852 = vst [vmem:[%s6474_s15 + $0x220] sm:$0x33] %v5516_v58  ;;  %v3958_v49 = vadd.f32 %v6449_v6, %v3770_v59  ;;  %v3957_v9 = vadd.f32 %v6449_v6, %v3769_v60  ;;  %v3858_v10 = vmul.f32 %v6451_v7, %v3011_v4  ;;  %v3857_v11 = vmul.f32 %v6451_v7, %v2970_v62  ;;  %v3013_v12 = vpop.f32.mrb[55].mxu1 }
 0x1c2   : > { %4853 = vst [vmem:[%s6474_s15 + $0x228] sm:$0x33] %v5517_v0  ;;  %v4132_v13 = vmax.f32 %v3956_v1, 0.0  ;;  %v3959_v14 = vadd.f32 %v6449_v6, %v3771_v2  ;;  %v4044_v51 = vadd.f32 %v6453_v8, %v3856_v3  ;;  %v3859_v15 = vmul.f32 %v6451_v7, %v3013_v12 }
 0x1c3   : > { %v4134_v16 = vmax.f32 %v3958_v49, 0.0  ;;  %v4133_v17 = vmax.f32 %v3957_v9, 0.0  ;;  %v4046_v18 = vadd.f32 %v6453_v8, %v3858_v10  ;;  %v4045_v19 = vadd.f32 %v6453_v8, %v3857_v11 }
 0x1c4   : > { %v4135_v20 = vmax.f32 %v3959_v14, 0.0  ;;  %v4220_v21 = vmax.f32 %v4044_v51, 0.0  ;;  %v4047_v23 = vadd.f32 %v6453_v8, %v3859_v15 }
 0x1c5   : > { %v5474_v24 = vpack.c.bf16 %v4133_v17, %v4132_v13  ;;  %v4222_v25 = vmax.f32 %v4046_v18, 0.0  ;;  %v4221_v26 = vmax.f32 %v4045_v19, 0.0  ;;  %v3050_v27 = vpop.f32.mrb[56].mxu0 }
 0x1c6   : > { %v5475_v28 = vpack.c.bf16 %v4135_v20, %v4134_v16  ;;  %v4223_v29 = vmax.f32 %v4047_v23, 0.0  ;;  %v3772_v30 = vmul.f32 %v6447_v5, %v3050_v27  ;;  %v3093_v31 = vpop.f32.mrb[56].mxu1  ;;  %v3052_v32 = vpop.f32.mrb[57].mxu0 }
 0x1c7   : > { %4810 = vst [vmem:[%s6474_s15 + $0xd0] sm:$0xff] %v5474_v24  ;;  %v5518_v33 = vpack.c.bf16 %v4221_v26, %v4220_v21  ;;  %v3774_v34 = vmul.f32 %v6447_v5, %v3093_v31  ;;  %v3773_v35 = vmul.f32 %v6447_v5, %v3052_v32  ;;  %v3095_v36 = vpop.f32.mrb[57].mxu1  ;;  %v3054_v37 = vpop.f32.mrb[58].mxu0 }
 0x1c8   : > { %4811 = vst [vmem:[%s6474_s15 + $0xd8] sm:$0xff] %v5475_v28  ;;  %v5519_v38 = vpack.c.bf16 %v4223_v29, %v4222_v25  ;;  %v3960_v39 = vadd.f32 %v6449_v6, %v3772_v30  ;;  %v3775_v22 = vmul.f32 %v6447_v5, %v3095_v36  ;;  %v3860_v40 = vmul.f32 %v6451_v7, %v3054_v37  ;;  %v3097_v41 = vpop.f32.mrb[58].mxu1  ;;  %v3056_v42 = vpop.f32.mrb[59].mxu0 }
 0x1c9   : > { %4854 = vst [vmem:[%s6474_s15 + $0x230] sm:$0x33] %v5518_v33  ;;  %v3962_v43 = vadd.f32 %v6449_v6, %v3774_v34  ;;  %v3961_v44 = vadd.f32 %v6449_v6, %v3773_v35  ;;  %v3862_v45 = vmul.f32 %v6451_v7, %v3097_v41  ;;  %v3861_v46 = vmul.f32 %v6451_v7, %v3056_v42  ;;  %v3099_v47 = vpop.f32.mrb[59].mxu1 }
 0x1ca   : > { %4855 = vst [vmem:[%s6474_s15 + $0x238] sm:$0x33] %v5519_v38  ;;  %v4136_v48 = vmax.f32 %v3960_v39, 0.0  ;;  %v3963_v50 = vadd.f32 %v6449_v6, %v3775_v22  ;;  %v4048_v52 = vadd.f32 %v6453_v8, %v3860_v40  ;;  %v3863_v53 = vmul.f32 %v6451_v7, %v3099_v47 }
 0x1cb   : > { %v4138_v54 = vmax.f32 %v3962_v43, 0.0  ;;  %v4137_v55 = vmax.f32 %v3961_v44, 0.0  ;;  %v4050_v56 = vadd.f32 %v6453_v8, %v3862_v45  ;;  %v4049_v57 = vadd.f32 %v6453_v8, %v3861_v46 }
 0x1cc   : > { %v4139_v58 = vmax.f32 %v3963_v50, 0.0  ;;  %v4224_v59 = vmax.f32 %v4048_v52, 0.0  ;;  %v4051_v60 = vadd.f32 %v6453_v8, %v3863_v53 }
 0x1cd   : > { %v5476_v61 = vpack.c.bf16 %v4137_v55, %v4136_v48  ;;  %v4226_v63 = vmax.f32 %v4050_v56, 0.0  ;;  %v4225_v0 = vmax.f32 %v4049_v57, 0.0  ;;  %v3136_v1 = vpop.f32.mrb[60].mxu0 }
 0x1ce   : > { %v5477_v2 = vpack.c.bf16 %v4139_v58, %v4138_v54  ;;  %v4227_v3 = vmax.f32 %v4051_v60, 0.0  ;;  %v3776_v4 = vmul.f32 %v6447_v5, %v3136_v1  ;;  %v3179_v62 = vpop.f32.mrb[60].mxu1  ;;  %v3138_v49 = vpop.f32.mrb[61].mxu0 }
 0x1cf   : > { %4812 = vst [vmem:[%s6474_s15 + $0xe0] sm:$0xff] %v5476_v61  ;;  %v5520_v9 = vpack.c.bf16 %v4225_v0, %v4224_v59  ;;  %v3778_v10 = vmul.f32 %v6447_v5, %v3179_v62  ;;  %v3777_v11 = vmul.f32 %v6447_v5, %v3138_v49  ;;  %v3181_v12 = vpop.f32.mrb[61].mxu1  ;;  %v3140_v13 = vpop.f32.mrb[62].mxu0 }
 0x1d0   : > { %4813 = vst [vmem:[%s6474_s15 + $0xe8] sm:$0xff] %v5477_v2  ;;  %v5521_v14 = vpack.c.bf16 %v4227_v3, %v4226_v63  ;;  %v3964_v51 = vadd.f32 %v6449_v6, %v3776_v4  ;;  %v3779_v15 = vmul.f32 %v6447_v5, %v3181_v12  ;;  %v3864_v16 = vmul.f32 %v6451_v7, %v3140_v13  ;;  %v3183_v17 = vpop.f32.mrb[62].mxu1  ;;  %v3142_v18 = vpop.f32.mrb[63].mxu0 }
 0x1d1   : > { %4856 = vst [vmem:[%s6474_s15 + $0x240] sm:$0x33] %v5520_v9  ;;  %v3966_v19 = vadd.f32 %v6449_v6, %v3778_v10  ;;  %v3965_v20 = vadd.f32 %v6449_v6, %v3777_v11  ;;  %v3866_v21 = vmul.f32 %v6451_v7, %v3183_v17  ;;  %v3865_v23 = vmul.f32 %v6451_v7, %v3142_v18  ;;  %v3185_v24 = vpop.f32.mrb[63].mxu1 }
 0x1d2   : > { %4857 = vst [vmem:[%s6474_s15 + $0x248] sm:$0x33] %v5521_v14  ;;  %v4140_v25 = vmax.f32 %v3964_v51, 0.0  ;;  %v3967_v26 = vadd.f32 %v6449_v6, %v3779_v15  ;;  %v4052_v27 = vadd.f32 %v6453_v8, %v3864_v16  ;;  %v3867_v28 = vmul.f32 %v6451_v7, %v3185_v24 }
 0x1d3   : > { %v4142_v29 = vmax.f32 %v3966_v19, 0.0  ;;  %v4141_v30 = vmax.f32 %v3965_v20, 0.0  ;;  %v4054_v31 = vadd.f32 %v6453_v8, %v3866_v21  ;;  %v4053_v32 = vadd.f32 %v6453_v8, %v3865_v23 }
 0x1d4   : > { %v4143_v33 = vmax.f32 %v3967_v26, 0.0  ;;  %v4228_v34 = vmax.f32 %v4052_v27, 0.0  ;;  %v4055_v35 = vadd.f32 %v6453_v8, %v3867_v28 }
 0x1d5   : > { %v5478_v36 = vpack.c.bf16 %v4141_v30, %v4140_v25  ;;  %v4230_v37 = vmax.f32 %v4054_v31, 0.0  ;;  %v4229_v38 = vmax.f32 %v4053_v32, 0.0  ;;  %v3222_v39 = vpop.f32.mrb[64].mxu0 }
 0x1d6   : > { %v5479_v22 = vpack.c.bf16 %v4143_v33, %v4142_v29  ;;  %v4231_v40 = vmax.f32 %v4055_v35, 0.0  ;;  %v3780_v41 = vmul.f32 %v6447_v5, %v3222_v39  ;;  %v3265_v42 = vpop.f32.mrb[64].mxu1  ;;  %v3224_v43 = vpop.f32.mrb[65].mxu0 }
 0x1d7   : > { %4814 = vst [vmem:[%s6474_s15 + $0xf0] sm:$0xff] %v5478_v36  ;;  %v5522_v44 = vpack.c.bf16 %v4229_v38, %v4228_v34  ;;  %v3782_v45 = vmul.f32 %v6447_v5, %v3265_v42  ;;  %v3781_v46 = vmul.f32 %v6447_v5, %v3224_v43  ;;  %v3267_v47 = vpop.f32.mrb[65].mxu1  ;;  %v3226_v48 = vpop.f32.mrb[66].mxu0 }
 0x1d8   : > { %4815 = vst [vmem:[%s6474_s15 + $0xf8] sm:$0xff] %v5479_v22  ;;  %v5523_v50 = vpack.c.bf16 %v4231_v40, %v4230_v37  ;;  %v3968_v52 = vadd.f32 %v6449_v6, %v3780_v41  ;;  %v3783_v53 = vmul.f32 %v6447_v5, %v3267_v47  ;;  %v3868_v54 = vmul.f32 %v6451_v7, %v3226_v48  ;;  %v3269_v55 = vpop.f32.mrb[66].mxu1  ;;  %v3228_v56 = vpop.f32.mrb[67].mxu0 }
 0x1d9   : > { %4858 = vst [vmem:[%s6474_s15 + $0x250] sm:$0x33] %v5522_v44  ;;  %v3970_v57 = vadd.f32 %v6449_v6, %v3782_v45  ;;  %v3969_v58 = vadd.f32 %v6449_v6, %v3781_v46  ;;  %v3870_v59 = vmul.f32 %v6451_v7, %v3269_v55  ;;  %v3869_v60 = vmul.f32 %v6451_v7, %v3228_v56  ;;  %v3271_v61 = vpop.f32.mrb[67].mxu1 }
 0x1da   : > { %4859 = vst [vmem:[%s6474_s15 + $0x258] sm:$0x33] %v5523_v50  ;;  %v4144_v63 = vmax.f32 %v3968_v52, 0.0  ;;  %v3971_v0 = vadd.f32 %v6449_v6, %v3783_v53  ;;  %v4056_v1 = vadd.f32 %v6453_v8, %v3868_v54  ;;  %v3871_v2 = vmul.f32 %v6451_v7, %v3271_v61 }
 0x1db   : > { %v4146_v3 = vmax.f32 %v3970_v57, 0.0  ;;  %v4145_v4 = vmax.f32 %v3969_v58, 0.0  ;;  %v4058_v62 = vadd.f32 %v6453_v8, %v3870_v59  ;;  %v4057_v49 = vadd.f32 %v6453_v8, %v3869_v60 }
 0x1dc   : > { %v4147_v9 = vmax.f32 %v3971_v0, 0.0  ;;  %v4232_v10 = vmax.f32 %v4056_v1, 0.0  ;;  %v4059_v11 = vadd.f32 %v6453_v8, %v3871_v2 }
 0x1dd   : > { %v5480_v12 = vpack.c.bf16 %v4145_v4, %v4144_v63  ;;  %v4234_v13 = vmax.f32 %v4058_v62, 0.0  ;;  %v4233_v14 = vmax.f32 %v4057_v49, 0.0  ;;  %v3308_v51 = vpop.f32.mrb[68].mxu0 }
 0x1de   : > { %v5481_v15 = vpack.c.bf16 %v4147_v9, %v4146_v3  ;;  %v4235_v16 = vmax.f32 %v4059_v11, 0.0  ;;  %v3784_v17 = vmul.f32 %v6447_v5, %v3308_v51  ;;  %v3351_v18 = vpop.f32.mrb[68].mxu1  ;;  %v3310_v19 = vpop.f32.mrb[69].mxu0 }
 0x1df   : > { %4816 = vst [vmem:[%s6474_s15 + $0x100] sm:$0xff] %v5480_v12  ;;  %v5524_v20 = vpack.c.bf16 %v4233_v14, %v4232_v10  ;;  %v3786_v21 = vmul.f32 %v6447_v5, %v3351_v18  ;;  %v3785_v23 = vmul.f32 %v6447_v5, %v3310_v19  ;;  %v3353_v24 = vpop.f32.mrb[69].mxu1  ;;  %v3312_v25 = vpop.f32.mrb[70].mxu0 }
 0x1e0   : > { %4817 = vst [vmem:[%s6474_s15 + $0x108] sm:$0xff] %v5481_v15  ;;  %v5525_v26 = vpack.c.bf16 %v4235_v16, %v4234_v13  ;;  %v3972_v27 = vadd.f32 %v6449_v6, %v3784_v17  ;;  %v3787_v28 = vmul.f32 %v6447_v5, %v3353_v24  ;;  %v3872_v29 = vmul.f32 %v6451_v7, %v3312_v25  ;;  %v3355_v30 = vpop.f32.mrb[70].mxu1  ;;  %v3314_v31 = vpop.f32.mrb[71].mxu0 }
 0x1e1   : > { %4860 = vst [vmem:[%s6474_s15 + $0x260] sm:$0x33] %v5524_v20  ;;  %v3974_v32 = vadd.f32 %v6449_v6, %v3786_v21  ;;  %v3973_v33 = vadd.f32 %v6449_v6, %v3785_v23  ;;  %v3874_v34 = vmul.f32 %v6451_v7, %v3355_v30  ;;  %v3873_v35 = vmul.f32 %v6451_v7, %v3314_v31  ;;  %v3357_v36 = vpop.f32.mrb[71].mxu1 }
 0x1e2   : > { %4861 = vst [vmem:[%s6474_s15 + $0x268] sm:$0x33] %v5525_v26  ;;  %v4148_v37 = vmax.f32 %v3972_v27, 0.0  ;;  %v3975_v38 = vadd.f32 %v6449_v6, %v3787_v28  ;;  %v4060_v39 = vadd.f32 %v6453_v8, %v3872_v29  ;;  %v3875_v22 = vmul.f32 %v6451_v7, %v3357_v36 }
 0x1e3   : > { %v4150_v40 = vmax.f32 %v3974_v32, 0.0  ;;  %v4149_v41 = vmax.f32 %v3973_v33, 0.0  ;;  %v4062_v42 = vadd.f32 %v6453_v8, %v3874_v34  ;;  %v4061_v43 = vadd.f32 %v6453_v8, %v3873_v35 }
 0x1e4   : > { %v4151_v44 = vmax.f32 %v3975_v38, 0.0  ;;  %v4236_v45 = vmax.f32 %v4060_v39, 0.0  ;;  %v4063_v46 = vadd.f32 %v6453_v8, %v3875_v22 }
 0x1e5   : > { %v5482_v47 = vpack.c.bf16 %v4149_v41, %v4148_v37  ;;  %v4238_v48 = vmax.f32 %v4062_v42, 0.0  ;;  %v4237_v50 = vmax.f32 %v4061_v43, 0.0  ;;  %v3394_v52 = vpop.f32.mrb[72].mxu0 }
 0x1e6   : > { %v5483_v53 = vpack.c.bf16 %v4151_v44, %v4150_v40  ;;  %v4239_v54 = vmax.f32 %v4063_v46, 0.0  ;;  %v3788_v55 = vmul.f32 %v6447_v5, %v3394_v52  ;;  %v3437_v56 = vpop.f32.mrb[72].mxu1  ;;  %v3396_v57 = vpop.f32.mrb[73].mxu0 }
 0x1e7   : > { %4818 = vst [vmem:[%s6474_s15 + $0x110] sm:$0xff] %v5482_v47  ;;  %v5526_v58 = vpack.c.bf16 %v4237_v50, %v4236_v45  ;;  %v3790_v59 = vmul.f32 %v6447_v5, %v3437_v56  ;;  %v3789_v60 = vmul.f32 %v6447_v5, %v3396_v57  ;;  %v3439_v61 = vpop.f32.mrb[73].mxu1  ;;  %v3398_v63 = vpop.f32.mrb[74].mxu0 }
 0x1e8   : > { %4819 = vst [vmem:[%s6474_s15 + $0x118] sm:$0xff] %v5483_v53  ;;  %v5527_v0 = vpack.c.bf16 %v4239_v54, %v4238_v48  ;;  %v3976_v1 = vadd.f32 %v6449_v6, %v3788_v55  ;;  %v3791_v2 = vmul.f32 %v6447_v5, %v3439_v61  ;;  %v3876_v3 = vmul.f32 %v6451_v7, %v3398_v63  ;;  %v3441_v4 = vpop.f32.mrb[74].mxu1  ;;  %v3400_v62 = vpop.f32.mrb[75].mxu0 }
 0x1e9   : > { %4862 = vst [vmem:[%s6474_s15 + $0x270] sm:$0x33] %v5526_v58  ;;  %v3978_v49 = vadd.f32 %v6449_v6, %v3790_v59  ;;  %v3977_v9 = vadd.f32 %v6449_v6, %v3789_v60  ;;  %v3878_v10 = vmul.f32 %v6451_v7, %v3441_v4  ;;  %v3877_v11 = vmul.f32 %v6451_v7, %v3400_v62  ;;  %v3443_v12 = vpop.f32.mrb[75].mxu1 }
 0x1ea   : > { %4863 = vst [vmem:[%s6474_s15 + $0x278] sm:$0x33] %v5527_v0  ;;  %v4152_v13 = vmax.f32 %v3976_v1, 0.0  ;;  %v3979_v14 = vadd.f32 %v6449_v6, %v3791_v2  ;;  %v4064_v51 = vadd.f32 %v6453_v8, %v3876_v3  ;;  %v3879_v15 = vmul.f32 %v6451_v7, %v3443_v12 }
 0x1eb   : > { %v4154_v16 = vmax.f32 %v3978_v49, 0.0  ;;  %v4153_v17 = vmax.f32 %v3977_v9, 0.0  ;;  %v4066_v18 = vadd.f32 %v6453_v8, %v3878_v10  ;;  %v4065_v19 = vadd.f32 %v6453_v8, %v3877_v11 }
 0x1ec   : > { %v4155_v20 = vmax.f32 %v3979_v14, 0.0  ;;  %v4240_v21 = vmax.f32 %v4064_v51, 0.0  ;;  %v4067_v23 = vadd.f32 %v6453_v8, %v3879_v15 }
 0x1ed   : > { %v5484_v24 = vpack.c.bf16 %v4153_v17, %v4152_v13  ;;  %v4242_v25 = vmax.f32 %v4066_v18, 0.0  ;;  %v4241_v26 = vmax.f32 %v4065_v19, 0.0  ;;  %v3480_v27 = vpop.f32.mrb[76].mxu0 }
 0x1ee   : > { %v5485_v28 = vpack.c.bf16 %v4155_v20, %v4154_v16  ;;  %v4243_v29 = vmax.f32 %v4067_v23, 0.0  ;;  %v3792_v30 = vmul.f32 %v6447_v5, %v3480_v27  ;;  %v3523_v31 = vpop.f32.mrb[76].mxu1  ;;  %v3482_v32 = vpop.f32.mrb[77].mxu0 }
 0x1ef   : > { %4820 = vst [vmem:[%s6474_s15 + $0x120] sm:$0xff] %v5484_v24  ;;  %v5528_v33 = vpack.c.bf16 %v4241_v26, %v4240_v21  ;;  %v3794_v34 = vmul.f32 %v6447_v5, %v3523_v31  ;;  %v3793_v35 = vmul.f32 %v6447_v5, %v3482_v32  ;;  %v3525_v36 = vpop.f32.mrb[77].mxu1  ;;  %v3484_v37 = vpop.f32.mrb[78].mxu0 }
 0x1f0   : > { %4821 = vst [vmem:[%s6474_s15 + $0x128] sm:$0xff] %v5485_v28  ;;  %v5529_v38 = vpack.c.bf16 %v4243_v29, %v4242_v25  ;;  %v3980_v39 = vadd.f32 %v6449_v6, %v3792_v30  ;;  %v3795_v22 = vmul.f32 %v6447_v5, %v3525_v36  ;;  %v3880_v40 = vmul.f32 %v6451_v7, %v3484_v37  ;;  %v3527_v41 = vpop.f32.mrb[78].mxu1  ;;  %v3486_v42 = vpop.f32.mrb[79].mxu0 }
 0x1f1   : > { %4864 = vst [vmem:[%s6474_s15 + $0x280] sm:$0x33] %v5528_v33  ;;  %v3982_v43 = vadd.f32 %v6449_v6, %v3794_v34  ;;  %v3981_v44 = vadd.f32 %v6449_v6, %v3793_v35  ;;  %v3882_v45 = vmul.f32 %v6451_v7, %v3527_v41  ;;  %v3881_v46 = vmul.f32 %v6451_v7, %v3486_v42  ;;  %v3529_v47 = vpop.f32.mrb[79].mxu1 }
 0x1f2   : > { %4865 = vst [vmem:[%s6474_s15 + $0x288] sm:$0x33] %v5529_v38  ;;  %v4156_v48 = vmax.f32 %v3980_v39, 0.0  ;;  %v3983_v50 = vadd.f32 %v6449_v6, %v3795_v22  ;;  %v4068_v52 = vadd.f32 %v6453_v8, %v3880_v40  ;;  %v3883_v53 = vmul.f32 %v6451_v7, %v3529_v47 }
 0x1f3   : > { %v4158_v54 = vmax.f32 %v3982_v43, 0.0  ;;  %v4157_v55 = vmax.f32 %v3981_v44, 0.0  ;;  %v4070_v56 = vadd.f32 %v6453_v8, %v3882_v45  ;;  %v4069_v57 = vadd.f32 %v6453_v8, %v3881_v46 }
 0x1f4   : > { %v4159_v58 = vmax.f32 %v3983_v50, 0.0  ;;  %v4244_v59 = vmax.f32 %v4068_v52, 0.0  ;;  %v4071_v60 = vadd.f32 %v6453_v8, %v3883_v53 }
 0x1f5   : > { %v5486_v61 = vpack.c.bf16 %v4157_v55, %v4156_v48  ;;  %v4246_v63 = vmax.f32 %v4070_v56, 0.0  ;;  %v4245_v0 = vmax.f32 %v4069_v57, 0.0  ;;  %v3566_v1 = vpop.f32.mrb[80].mxu0 }
 0x1f6   : > { %v5487_v2 = vpack.c.bf16 %v4159_v58, %v4158_v54  ;;  %v4247_v3 = vmax.f32 %v4071_v60, 0.0  ;;  %v3796_v4 = vmul.f32 %v6447_v5, %v3566_v1  ;;  %v3609_v62 = vpop.f32.mrb[80].mxu1  ;;  %v3568_v49 = vpop.f32.mrb[81].mxu0 }
 0x1f7   : > { %4822 = vst [vmem:[%s6474_s15 + $0x130] sm:$0xff] %v5486_v61  ;;  %v5530_v9 = vpack.c.bf16 %v4245_v0, %v4244_v59  ;;  %v3798_v10 = vmul.f32 %v6447_v5, %v3609_v62  ;;  %v3797_v11 = vmul.f32 %v6447_v5, %v3568_v49  ;;  %v3611_v12 = vpop.f32.mrb[81].mxu1  ;;  %v3570_v13 = vpop.f32.mrb[82].mxu0 }
 0x1f8   : > { %4823 = vst [vmem:[%s6474_s15 + $0x138] sm:$0xff] %v5487_v2  ;;  %v5531_v14 = vpack.c.bf16 %v4247_v3, %v4246_v63  ;;  %v3984_v51 = vadd.f32 %v6449_v6, %v3796_v4  ;;  %v3799_v15 = vmul.f32 %v6447_v5, %v3611_v12  ;;  %v3884_v16 = vmul.f32 %v6451_v7, %v3570_v13  ;;  %v3613_v17 = vpop.f32.mrb[82].mxu1  ;;  %v3572_v18 = vpop.f32.mrb[83].mxu0 }
 0x1f9   : > { %4866 = vst [vmem:[%s6474_s15 + $0x290] sm:$0x33] %v5530_v9  ;;  %v3986_v19 = vadd.f32 %v6449_v6, %v3798_v10  ;;  %v3985_v20 = vadd.f32 %v6449_v6, %v3797_v11  ;;  %v3886_v21 = vmul.f32 %v6451_v7, %v3613_v17  ;;  %v3885_v23 = vmul.f32 %v6451_v7, %v3572_v18  ;;  %v3615_v24 = vpop.f32.mrb[83].mxu1  ;;  %v4900_v17 = vld [vmem:[%s6474_s15 + $0x18] sm:$0xff] (%p5651_p5)  ;;  %v4902_v18 = vld [vmem:[%s6474_s15 + $0x20] sm:$0xff] (%p5651_p5) }
 0x1fa   : > { %4867 = vst [vmem:[%s6474_s15 + $0x298] sm:$0x33] %v5531_v14  ;;  %v4160_v25 = vmax.f32 %v3984_v51, 0.0  ;;  %v3987_v26 = vadd.f32 %v6449_v6, %v3799_v15  ;;  %v4072_v27 = vadd.f32 %v6453_v8, %v3884_v16  ;;  %v3887_v28 = vmul.f32 %v6451_v7, %v3615_v24  ;;  %v4896_v15 = vld [vmem:[%s6474_s15 + $0x8] sm:$0xff] (%p5651_p5)  ;;  %v4898_v16 = vld [vmem:[%s6474_s15 + $0x10] sm:$0xff] (%p5651_p5)  ;;  %4901 = vst [vmem:[%s6912_s29 + $0x18] sm:$0xff] (%p5651_p5), %v4900_v17 }
 0x1fb   : > { %v4162_v29 = vmax.f32 %v3986_v19, 0.0  ;;  %v4161_v30 = vmax.f32 %v3985_v20, 0.0  ;;  %v4074_v31 = vadd.f32 %v6453_v8, %v3886_v21  ;;  %v4073_v32 = vadd.f32 %v6453_v8, %v3885_v23  ;;  %v4904_v19 = vld [vmem:[%s6474_s15 + $0x28] sm:$0xff] (%p5651_p5)  ;;  %v4906_v20 = vld [vmem:[%s6474_s15 + $0x30] sm:$0xff] (%p5651_p5)  ;;  %v4908_v21 = vld [vmem:[%s6474_s15 + $0x38] sm:$0xff] (%p5651_p5)  ;;  %4897 = vst [vmem:[%s6912_s29 + $0x8] sm:$0xff] (%p5651_p5), %v4896_v15 }
 0x1fc   : > { %v4163_v33 = vmax.f32 %v3987_v26, 0.0  ;;  %v4248_v34 = vmax.f32 %v4072_v27, 0.0  ;;  %v4075_v35 = vadd.f32 %v6453_v8, %v3887_v28  ;;  %v4910_v23 = vld [vmem:[%s6474_s15 + $0x40] sm:$0xff] (%p5651_p5)  ;;  %4899 = vst [vmem:[%s6912_s29 + $0x10] sm:$0xff] (%p5651_p5), %v4898_v16  ;;  %4903 = vst [vmem:[%s6912_s29 + $0x20] sm:$0xff] (%p5651_p5), %v4902_v18  ;;  %v4912_v24 = vld [vmem:[%s6474_s15 + $0x48] sm:$0xff] (%p5651_p5) }
 0x1fd   : > { %v5488_v36 = vpack.c.bf16 %v4161_v30, %v4160_v25  ;;  %v4250_v37 = vmax.f32 %v4074_v31, 0.0  ;;  %v4249_v38 = vmax.f32 %v4073_v32, 0.0  ;;  %v3652_v39 = vpop.f32.mrb[84].mxu0  ;;  %4905 = vst [vmem:[%s6912_s29 + $0x28] sm:$0xff] (%p5651_p5), %v4904_v19  ;;  %4907 = vst [vmem:[%s6912_s29 + $0x30] sm:$0xff] (%p5651_p5), %v4906_v20  ;;  %v4914_v25 = vld [vmem:[%s6474_s15 + $0x50] sm:$0xff] (%p5651_p5) }
 0x1fe   : > { %v5489_v22 = vpack.c.bf16 %v4163_v33, %v4162_v29  ;;  %v4251_v40 = vmax.f32 %v4075_v35, 0.0  ;;  %v3800_v41 = vmul.f32 %v6447_v5, %v3652_v39  ;;  %v3695_v42 = vpop.f32.mrb[84].mxu1  ;;  %v3654_v43 = vpop.f32.mrb[85].mxu0  ;;  %4909 = vst [vmem:[%s6912_s29 + $0x38] sm:$0xff] (%p5651_p5), %v4908_v21  ;;  %4911 = vst [vmem:[%s6912_s29 + $0x40] sm:$0xff] (%p5651_p5), %v4910_v23  ;;  %v4916_v26 = vld [vmem:[%s6474_s15 + $0x58] sm:$0xff] (%p5651_p5) }
 0x1ff   : > { %4824 = vst [vmem:[%s6474_s15 + $0x140] sm:$0xff] %v5488_v36  ;;  %v5532_v44 = vpack.c.bf16 %v4249_v38, %v4248_v34  ;;  %v3802_v45 = vmul.f32 %v6447_v5, %v3695_v42  ;;  %v3801_v46 = vmul.f32 %v6447_v5, %v3654_v43  ;;  %v3697_v47 = vpop.f32.mrb[85].mxu1  ;;  %v3656_v48 = vpop.f32.mrb[86].mxu0  ;;  %4913 = vst [vmem:[%s6912_s29 + $0x48] sm:$0xff] (%p5651_p5), %v4912_v24  ;;  %v4918_v27 = vld [vmem:[%s6474_s15 + $0x60] sm:$0xff] (%p5651_p5)  ;;  %v4920_v28 = vld [vmem:[%s6474_s15 + $0x68] sm:$0xff] (%p5651_p5) }
 0x200   : > { %4825 = vst [vmem:[%s6474_s15 + $0x148] sm:$0xff] %v5489_v22  ;;  %v5533_v50 = vpack.c.bf16 %v4251_v40, %v4250_v37  ;;  %v3988_v52 = vadd.f32 %v6449_v6, %v3800_v41  ;;  %v3803_v53 = vmul.f32 %v6447_v5, %v3697_v47  ;;  %v3888_v54 = vmul.f32 %v6451_v7, %v3656_v48  ;;  %v3699_v55 = vpop.f32.mrb[86].mxu1  ;;  %v3658_v56 = vpop.f32.mrb[87].mxu0  ;;  %v4922_v29 = vld [vmem:[%s6474_s15 + $0x70] sm:$0xff] (%p5651_p5)  ;;  %v4924_v30 = vld [vmem:[%s6474_s15 + $0x78] sm:$0xff] (%p5651_p5)  ;;  %v4926_v31 = vld [vmem:[%s6474_s15 + $0x80] sm:$0xff] (%p5651_p5) }
 0x201   : > { %4868 = vst [vmem:[%s6474_s15 + $0x2a0] sm:$0x33] %v5532_v44  ;;  %v3990_v57 = vadd.f32 %v6449_v6, %v3802_v45  ;;  %v3989_v58 = vadd.f32 %v6449_v6, %v3801_v46  ;;  %v3890_v59 = vmul.f32 %v6451_v7, %v3699_v55  ;;  %v3889_v60 = vmul.f32 %v6451_v7, %v3658_v56  ;;  %v3701_v61 = vpop.f32.mrb[87].mxu1  ;;  %v4928_v32 = vld [vmem:[%s6474_s15 + $0x88] sm:$0xff] (%p5651_p5)  ;;  %v4930_v33 = vld [vmem:[%s6474_s15 + $0x90] sm:$0xff] (%p5651_p5)  ;;  %v4932_v34 = vld [vmem:[%s6474_s15 + $0x98] sm:$0xff] (%p5651_p5) }
 0x202   : > { %4869 = vst [vmem:[%s6474_s15 + $0x2a8] sm:$0x33] %v5533_v50  ;;  %v4164_v63 = vmax.f32 %v3988_v52, 0.0  ;;  %v3991_v0 = vadd.f32 %v6449_v6, %v3803_v53  ;;  %v4076_v5 = vadd.f32 %v6453_v8, %v3888_v54  ;;  %v3891_v1 = vmul.f32 %v6451_v7, %v3701_v61  ;;  %4915 = vst [vmem:[%s6912_s29 + $0x50] sm:$0xff] (%p5651_p5), %v4914_v25  ;;  %v4934_v35 = vld [vmem:[%s6474_s15 + $0xa0] sm:$0xff] (%p5651_p5)  ;;  %v4936_v36 = vld [vmem:[%s6474_s15 + $0xa8] sm:$0xff] (%p5651_p5) }
 0x203   : > { %v4166_v2 = vmax.f32 %v3990_v57, 0.0  ;;  %v4165_v3 = vmax.f32 %v3989_v58, 0.0  ;;  %v4078_v4 = vadd.f32 %v6453_v8, %v3890_v59  ;;  %v4077_v62 = vadd.f32 %v6453_v8, %v3889_v60  ;;  %4917 = vst [vmem:[%s6912_s29 + $0x58] sm:$0xff] (%p5651_p5), %v4916_v26  ;;  %4919 = vst [vmem:[%s6912_s29 + $0x60] sm:$0xff] (%p5651_p5), %v4918_v27  ;;  %v4938_v37 = vld [vmem:[%s6474_s15 + $0xb0] sm:$0xff] (%p5651_p5)  ;;  %v4940_v38 = vld [vmem:[%s6474_s15 + $0xb8] sm:$0xff] (%p5651_p5) }
 0x204   : > { %v4167_v49 = vmax.f32 %v3991_v0, 0.0  ;;  %v4252_v9 = vmax.f32 %v4076_v5, 0.0  ;;  %v4079_v10 = vadd.f32 %v6453_v8, %v3891_v1  ;;  %4878 = sbr.rel (!%p5651_p5) target bundleno = 556 (0x22c), region = 63  ;;  %v4894_v8 = vld [vmem:[%s6474_s15] sm:$0xff] (%p5651_p5)  ;;  %4921 = vst [vmem:[%s6912_s29 + $0x68] sm:$0xff] (%p5651_p5), %v4920_v28  ;;  %4923 = vst [vmem:[%s6912_s29 + $0x70] sm:$0xff] (%p5651_p5), %v4922_v29 }
 0x205   : > { %v5490_v11 = vpack.c.bf16 %v4165_v3, %v4164_v63  ;;  %v4254_v12 = vmax.f32 %v4078_v4, 0.0  ;;  %v4253_v6 = vmax.f32 %v4077_v62, 0.0  ;;  %4895 = vst [vmem:[%s6912_s29] sm:$0xff] (%p5651_p5), %v4894_v8  ;;  %4925 = vst [vmem:[%s6912_s29 + $0x78] sm:$0xff] (%p5651_p5), %v4924_v30  ;;  %v4942_v39 = vld [vmem:[%s6474_s15 + $0xc0] sm:$0xff] (%p5651_p5)  ;;  %v4944_v22 = vld [vmem:[%s6474_s15 + $0xc8] sm:$0xff] (%p5651_p5) }
 0x206   : > { %v5491_v13 = vpack.c.bf16 %v4167_v49, %v4166_v2  ;;  %v4255_v14 = vmax.f32 %v4079_v10, 0.0  ;;  %4927 = vst [vmem:[%s6912_s29 + $0x80] sm:$0xff] (%p5651_p5), %v4926_v31  ;;  %4929 = vst [vmem:[%s6912_s29 + $0x88] sm:$0xff] (%p5651_p5), %v4928_v32  ;;  %v4946_v40 = vld [vmem:[%s6474_s15 + $0xd0] sm:$0xff] (%p5651_p5)  ;;  %v4948_v41 = vld [vmem:[%s6474_s15 + $0xd8] sm:$0xff] (%p5651_p5) }
 0x207   : > { %4826 = vst [vmem:[%s6474_s15 + $0x150] sm:$0xff] %v5490_v11  ;;  %v5534_v51 = vpack.c.bf16 %v4253_v6, %v4252_v9  ;;  %4931 = vst [vmem:[%s6912_s29 + $0x90] sm:$0xff] (%p5651_p5), %v4930_v33  ;;  %v4950_v42 = vld [vmem:[%s6474_s15 + $0xe0] sm:$0xff] (%p5651_p5)  ;;  %v4952_v43 = vld [vmem:[%s6474_s15 + $0xe8] sm:$0xff] (%p5651_p5) }
 0x208   : > { %4827 = vst [vmem:[%s6474_s15 + $0x158] sm:$0xff] %v5491_v13  ;;  %v5535_v7 = vpack.c.bf16 %v4255_v14, %v4254_v12  ;;  %4933 = vst [vmem:[%s6912_s29 + $0x98] sm:$0xff] (%p5651_p5), %v4932_v34  ;;  %v4954_v44 = vld [vmem:[%s6474_s15 + $0xf0] sm:$0xff] (%p5651_p5)  ;;  %v4956_v45 = vld [vmem:[%s6474_s15 + $0xf8] sm:$0xff] (%p5651_p5) }
 0x209   : > { %4870 = vst [vmem:[%s6474_s15 + $0x2b0] sm:$0x33] %v5534_v51  ;;  %4935 = vst [vmem:[%s6912_s29 + $0xa0] sm:$0xff] (%p5651_p5), %v4934_v35  ;;  %v4958_v46 = vld [vmem:[%s6474_s15 + $0x100] sm:$0xff] (%p5651_p5)  ;;  %v4960_v47 = vld [vmem:[%s6474_s15 + $0x108] sm:$0xff] (%p5651_p5) }
 0x20a   : > { %4871 = vst [vmem:[%s6474_s15 + $0x2b8] sm:$0x33] %v5535_v7  ;;  %4937 = vst [vmem:[%s6912_s29 + $0xa8] sm:$0xff] (%p5651_p5), %v4936_v36  ;;  %v4962_v48 = vld [vmem:[%s6474_s15 + $0x110] sm:$0xff] (%p5651_p5)  ;;  %v4964_v50 = vld [vmem:[%s6474_s15 + $0x118] sm:$0xff] (%p5651_p5) }
 0x20b   : > { %4939 = vst [vmem:[%s6912_s29 + $0xb0] sm:$0xff] %v4938_v37  ;;  %4941 = vst [vmem:[%s6912_s29 + $0xb8] sm:$0xff] %v4940_v38  ;;  %v4966_v52 = vld [vmem:[%s6474_s15 + $0x120] sm:$0xff]  ;;  %v4968_v53 = vld [vmem:[%s6474_s15 + $0x128] sm:$0xff] }
 0x20c   : > { %4943 = vst [vmem:[%s6912_s29 + $0xc0] sm:$0xff] %v4942_v39  ;;  %4945 = vst [vmem:[%s6912_s29 + $0xc8] sm:$0xff] %v4944_v22  ;;  %v4970_v54 = vld [vmem:[%s6474_s15 + $0x130] sm:$0xff]  ;;  %v4972_v55 = vld [vmem:[%s6474_s15 + $0x138] sm:$0xff] }
 0x20d   : > { %4947 = vst [vmem:[%s6912_s29 + $0xd0] sm:$0xff] %v4946_v40  ;;  %4949 = vst [vmem:[%s6912_s29 + $0xd8] sm:$0xff] %v4948_v41  ;;  %v4974_v56 = vld [vmem:[%s6474_s15 + $0x140] sm:$0xff]  ;;  %v4976_v57 = vld [vmem:[%s6474_s15 + $0x148] sm:$0xff] }
 0x20e   : > { %4951 = vst [vmem:[%s6912_s29 + $0xe0] sm:$0xff] %v4950_v42  ;;  %4953 = vst [vmem:[%s6912_s29 + $0xe8] sm:$0xff] %v4952_v43  ;;  %v4978_v58 = vld [vmem:[%s6474_s15 + $0x150] sm:$0xff]  ;;  %v4982_v60 = vld [vmem:[%s6474_s15 + $0x160] sm:$0xff] }
 0x20f   : > { %4955 = vst [vmem:[%s6912_s29 + $0xf0] sm:$0xff] %v4954_v44  ;;  %4957 = vst [vmem:[%s6912_s29 + $0xf8] sm:$0xff] %v4956_v45  ;;  %v4980_v59 = vld [vmem:[%s6474_s15 + $0x158] sm:$0xff]  ;;  %v4984_v61 = vld [vmem:[%s6474_s15 + $0x168] sm:$0xff] }
 0x210   : > { %4959 = vst [vmem:[%s6912_s29 + $0x100] sm:$0xff] %v4958_v46  ;;  %4961 = vst [vmem:[%s6912_s29 + $0x108] sm:$0xff] %v4960_v47  ;;  %v4986_v63 = vld [vmem:[%s6474_s15 + $0x170] sm:$0xff]  ;;  %v4988_v0 = vld [vmem:[%s6474_s15 + $0x178] sm:$0xff] }
 0x211   : > { %4963 = vst [vmem:[%s6912_s29 + $0x110] sm:$0xff] %v4962_v48  ;;  %4965 = vst [vmem:[%s6912_s29 + $0x118] sm:$0xff] %v4964_v50  ;;  %v4990_v5 = vld [vmem:[%s6474_s15 + $0x180] sm:$0xff]  ;;  %v4992_v1 = vld [vmem:[%s6474_s15 + $0x188] sm:$0xff] }
 0x212   : > { %4967 = vst [vmem:[%s6912_s29 + $0x120] sm:$0xff] %v4966_v52  ;;  %4969 = vst [vmem:[%s6912_s29 + $0x128] sm:$0xff] %v4968_v53  ;;  %v4994_v2 = vld [vmem:[%s6474_s15 + $0x190] sm:$0xff]  ;;  %v4996_v3 = vld [vmem:[%s6474_s15 + $0x198] sm:$0xff] }
 0x213   : > { %4971 = vst [vmem:[%s6912_s29 + $0x130] sm:$0xff] %v4970_v54  ;;  %4973 = vst [vmem:[%s6912_s29 + $0x138] sm:$0xff] %v4972_v55  ;;  %v4998_v4 = vld [vmem:[%s6474_s15 + $0x1a0] sm:$0xff]  ;;  %v5000_v62 = vld [vmem:[%s6474_s15 + $0x1a8] sm:$0xff] }
 0x214   : > { %4975 = vst [vmem:[%s6912_s29 + $0x140] sm:$0xff] %v4974_v56  ;;  %4977 = vst [vmem:[%s6912_s29 + $0x148] sm:$0xff] %v4976_v57  ;;  %v5002_v49 = vld [vmem:[%s6474_s15 + $0x1b0] sm:$0xff]  ;;  %v5004_v9 = vld [vmem:[%s6474_s15 + $0x1b8] sm:$0xff] }
 0x215   : > { %4979 = vst [vmem:[%s6912_s29 + $0x150] sm:$0xff] %v4978_v58  ;;  %4981 = vst [vmem:[%s6912_s29 + $0x158] sm:$0xff] %v4980_v59  ;;  %v5006_v10 = vld [vmem:[%s6474_s15 + $0x1c0] sm:$0xff]  ;;  %v5008_v11 = vld [vmem:[%s6474_s15 + $0x1c8] sm:$0xff] }
 0x216   : > { %4983 = vst [vmem:[%s6912_s29 + $0x580] sm:$0xff] %v4982_v60  ;;  %4985 = vst [vmem:[%s6912_s29 + $0x588] sm:$0xff] %v4984_v61  ;;  %v5010_v12 = vld [vmem:[%s6474_s15 + $0x1d0] sm:$0xff]  ;;  %v5012_v6 = vld [vmem:[%s6474_s15 + $0x1d8] sm:$0xff] }
 0x217   : > { %4987 = vst [vmem:[%s6912_s29 + $0x590] sm:$0xff] %v4986_v63  ;;  %4989 = vst [vmem:[%s6912_s29 + $0x598] sm:$0xff] %v4988_v0  ;;  %v5014_v13 = vld [vmem:[%s6474_s15 + $0x1e0] sm:$0xff]  ;;  %v5016_v14 = vld [vmem:[%s6474_s15 + $0x1e8] sm:$0xff] }
 0x218   : > { %4991 = vst [vmem:[%s6912_s29 + $0x5a0] sm:$0xff] %v4990_v5  ;;  %4993 = vst [vmem:[%s6912_s29 + $0x5a8] sm:$0xff] %v4992_v1  ;;  %v5018_v51 = vld [vmem:[%s6474_s15 + $0x1f0] sm:$0xff]  ;;  %v5020_v7 = vld [vmem:[%s6474_s15 + $0x1f8] sm:$0xff] }
 0x219   : > { %4995 = vst [vmem:[%s6912_s29 + $0x5b0] sm:$0xff] %v4994_v2  ;;  %4997 = vst [vmem:[%s6912_s29 + $0x5b8] sm:$0xff] %v4996_v3  ;;  %v5022_v8 = vld [vmem:[%s6474_s15 + $0x200] sm:$0xff]  ;;  %v5024_v15 = vld [vmem:[%s6474_s15 + $0x208] sm:$0xff] }
 0x21a   : > { %4999 = vst [vmem:[%s6912_s29 + $0x5c0] sm:$0xff] %v4998_v4  ;;  %5001 = vst [vmem:[%s6912_s29 + $0x5c8] sm:$0xff] %v5000_v62  ;;  %v5026_v16 = vld [vmem:[%s6474_s15 + $0x210] sm:$0xff]  ;;  %v5028_v17 = vld [vmem:[%s6474_s15 + $0x218] sm:$0xff] }
 0x21b   : > { %5003 = vst [vmem:[%s6912_s29 + $0x5d0] sm:$0xff] %v5002_v49  ;;  %5005 = vst [vmem:[%s6912_s29 + $0x5d8] sm:$0xff] %v5004_v9  ;;  %v5030_v18 = vld [vmem:[%s6474_s15 + $0x220] sm:$0xff]  ;;  %v5032_v19 = vld [vmem:[%s6474_s15 + $0x228] sm:$0xff] }
 0x21c   : > { %5007 = vst [vmem:[%s6912_s29 + $0x5e0] sm:$0xff] %v5006_v10  ;;  %5009 = vst [vmem:[%s6912_s29 + $0x5e8] sm:$0xff] %v5008_v11  ;;  %v5034_v20 = vld [vmem:[%s6474_s15 + $0x230] sm:$0xff]  ;;  %v5036_v21 = vld [vmem:[%s6474_s15 + $0x238] sm:$0xff] }
 0x21d   : > { %5011 = vst [vmem:[%s6912_s29 + $0x5f0] sm:$0xff] %v5010_v12  ;;  %5013 = vst [vmem:[%s6912_s29 + $0x5f8] sm:$0xff] %v5012_v6  ;;  %v5038_v23 = vld [vmem:[%s6474_s15 + $0x240] sm:$0xff]  ;;  %v5040_v24 = vld [vmem:[%s6474_s15 + $0x248] sm:$0xff] }
 0x21e   : > { %5015 = vst [vmem:[%s6912_s29 + $0x600] sm:$0xff] %v5014_v13  ;;  %5017 = vst [vmem:[%s6912_s29 + $0x608] sm:$0xff] %v5016_v14  ;;  %v5042_v25 = vld [vmem:[%s6474_s15 + $0x250] sm:$0xff]  ;;  %v5044_v26 = vld [vmem:[%s6474_s15 + $0x258] sm:$0xff] }
 0x21f   : > { %5019 = vst [vmem:[%s6912_s29 + $0x610] sm:$0xff] %v5018_v51  ;;  %5021 = vst [vmem:[%s6912_s29 + $0x618] sm:$0xff] %v5020_v7  ;;  %v5046_v27 = vld [vmem:[%s6474_s15 + $0x260] sm:$0xff]  ;;  %v5048_v28 = vld [vmem:[%s6474_s15 + $0x268] sm:$0xff] }
 0x220   : > { %5023 = vst [vmem:[%s6912_s29 + $0x620] sm:$0xff] %v5022_v8  ;;  %5025 = vst [vmem:[%s6912_s29 + $0x628] sm:$0xff] %v5024_v15  ;;  %v5050_v29 = vld [vmem:[%s6474_s15 + $0x270] sm:$0xff]  ;;  %v5052_v30 = vld [vmem:[%s6474_s15 + $0x278] sm:$0xff] }
 0x221   : > { %5027 = vst [vmem:[%s6912_s29 + $0x630] sm:$0xff] %v5026_v16  ;;  %5029 = vst [vmem:[%s6912_s29 + $0x638] sm:$0xff] %v5028_v17  ;;  %v5054_v31 = vld [vmem:[%s6474_s15 + $0x280] sm:$0xff]  ;;  %v5056_v32 = vld [vmem:[%s6474_s15 + $0x288] sm:$0xff] }
 0x222   : > { %5031 = vst [vmem:[%s6912_s29 + $0x640] sm:$0xff] %v5030_v18  ;;  %5033 = vst [vmem:[%s6912_s29 + $0x648] sm:$0xff] %v5032_v19  ;;  %v5058_v33 = vld [vmem:[%s6474_s15 + $0x290] sm:$0xff]  ;;  %v5060_v34 = vld [vmem:[%s6474_s15 + $0x298] sm:$0xff] }
 0x223   : > { %5035 = vst [vmem:[%s6912_s29 + $0x650] sm:$0xff] %v5034_v20  ;;  %5037 = vst [vmem:[%s6912_s29 + $0x658] sm:$0xff] %v5036_v21  ;;  %v5062_v35 = vld [vmem:[%s6474_s15 + $0x2a0] sm:$0xff]  ;;  %v5064_v36 = vld [vmem:[%s6474_s15 + $0x2a8] sm:$0xff] }
 0x224   : > { %5039 = vst [vmem:[%s6912_s29 + $0x660] sm:$0xff] %v5038_v23  ;;  %5041 = vst [vmem:[%s6912_s29 + $0x668] sm:$0xff] %v5040_v24  ;;  %v5066_v37 = vld [vmem:[%s6474_s15 + $0x2b0] sm:$0xff]  ;;  %v5068_v38 = vld [vmem:[%s6474_s15 + $0x2b8] sm:$0xff] }
 0x225   : > { %5043 = vst [vmem:[%s6912_s29 + $0x670] sm:$0xff] %v5042_v25  ;;  %5045 = vst [vmem:[%s6912_s29 + $0x678] sm:$0xff] %v5044_v26 }
 0x226   : > { %5047 = vst [vmem:[%s6912_s29 + $0x680] sm:$0xff] %v5046_v27  ;;  %5049 = vst [vmem:[%s6912_s29 + $0x688] sm:$0xff] %v5048_v28 }
 0x227   : > { %5051 = vst [vmem:[%s6912_s29 + $0x690] sm:$0xff] %v5050_v29  ;;  %5053 = vst [vmem:[%s6912_s29 + $0x698] sm:$0xff] %v5052_v30 }
 0x228   : > { %5055 = vst [vmem:[%s6912_s29 + $0x6a0] sm:$0xff] %v5054_v31  ;;  %5057 = vst [vmem:[%s6912_s29 + $0x6a8] sm:$0xff] %v5056_v32 }
 0x229   : > { %5059 = vst [vmem:[%s6912_s29 + $0x6b0] sm:$0xff] %v5058_v33  ;;  %5061 = vst [vmem:[%s6912_s29 + $0x6b8] sm:$0xff] %v5060_v34 }
 0x22a   : > { %5063 = vst [vmem:[%s6912_s29 + $0x6c0] sm:$0xff] %v5062_v35  ;;  %5065 = vst [vmem:[%s6912_s29 + $0x6c8] sm:$0xff] %v5064_v36 }
 0x22b   : > { %5067 = vst [vmem:[%s6912_s29 + $0x6d0] sm:$0xff] %v5066_v37  ;;  %5069 = vst [vmem:[%s6912_s29 + $0x6d8] sm:$0xff] %v5068_v38 }
 0x22c PF: > { %p11_p10 = scmp.ge.s32.totalorder %s5638_s19, 6   ;;  %s7100_s15 = smov %s5588_s16 }
 0x22d   : > { %s7101_s16 = smov %s5649_s22  ;;  %s7102_s17 = smov %s5638_s19 }
 0x22e   :  { %13 = sbr.rel (!%p11_p10) target bundleno = 2 (0x2), region = 117 }

// kernel: convnet_forward.6
= control target key start
LH: loop header
LB: loop body
LE: loop exit
PB: predicated region body
PF: predicated region fallthrough
CT: control target
= control target key end

     0   :  { %vm676_vm0 = vcmask 1043456   ;;  %vm677_vm1 = vcmask 932868   ;;  %vm723_vm3 = vcmask 1041408   ;;  %vm724_vm4 = vcmask 930820   ;;  %s2086_s0 = inlined_call_operand.vmem [shape: bf16[12,11250], index: 0, kind: input, shape index: {}]   ;;  %s2087_s1 = inlined_call_operand.vmem [shape: bf16[12,11250], index: 1, kind: input, shape index: {}]   ;;  %s2088_s2 = inlined_call_operand.vmem [shape: bf16[12,11250], index: 2, kind: input, shape index: {}]   ;;  %s2089_s3 = inlined_call_operand.vmem [shape: bf16[12,11250], index: 3, kind: input, shape index: {}]   ;;  %s2090_s4 = inlined_call_operand.vmem [shape: bf16[12,11250], index: 4, kind: output, shape index: {}]  }
   0x1   :  { %v17_v0 = vld [vmem:[%s2086_s0] sm:$0xff]  ;;  %v18_v5 = vld [vmem:[%s2086_s0 + $0x8] sm:$0xff]  ;;  %v19_v11 = vld [vmem:[%s2086_s0 + $0x10] sm:$0xff] }
   0x2   :  { %v105_v1 = vld [vmem:[%s2087_s1] sm:$0xff]  ;;  %v106_v6 = vld [vmem:[%s2087_s1 + $0x8] sm:$0xff]  ;;  %v107_v13 = vld [vmem:[%s2087_s1 + $0x10] sm:$0xff] }
   0x3   :  { %v281_v2 = vld [vmem:[%s2088_s2] sm:$0xff]  ;;  %v193_v3 = vmax.bf16 %v105_v1, %v17_v0  ;;  %v194_v8 = vmax.bf16 %v106_v6, %v18_v5  ;;  %v282_v9 = vld [vmem:[%s2088_s2 + $0x8] sm:$0xff]  ;;  %v283_v14 = vld [vmem:[%s2088_s2 + $0x10] sm:$0xff]  ;;  %v195_v17 = vmax.bf16 %v107_v13, %v19_v11 }
   0x4   :  { %v369_v4 = vld [vmem:[%s2089_s3] sm:$0xff]  ;;  %v370_v10 = vld [vmem:[%s2089_s3 + $0x8] sm:$0xff]  ;;  %v371_v15 = vld [vmem:[%s2089_s3 + $0x10] sm:$0xff] }
   0x5   :  { %v457_v7 = vmax.bf16 %v369_v4, %v281_v2  ;;  %v458_v12 = vmax.bf16 %v370_v10, %v282_v9  ;;  %v459_v18 = vmax.bf16 %v371_v15, %v283_v14  ;;  %v20_v19 = vld [vmem:[%s2086_s0 + $0x18] sm:$0xff]  ;;  %v21_v25 = vld [vmem:[%s2086_s0 + $0x20] sm:$0xff]  ;;  %v22_v32 = vld [vmem:[%s2086_s0 + $0x28] sm:$0xff] }
   0x6   :  { %v108_v20 = vld [vmem:[%s2087_s1 + $0x18] sm:$0xff]  ;;  %v109_v26 = vld [vmem:[%s2087_s1 + $0x20] sm:$0xff]  ;;  %v110_v34 = vld [vmem:[%s2087_s1 + $0x28] sm:$0xff] }
   0x7   :  { %v545_v16 = vmax.bf16 %v457_v7, %v193_v3  ;;  %v284_v21 = vld [vmem:[%s2088_s2 + $0x18] sm:$0xff]  ;;  %v546_v22 = vmax.bf16 %v458_v12, %v194_v8  ;;  %v196_v23 = vmax.bf16 %v108_v20, %v20_v19  ;;  %v547_v27 = vmax.bf16 %v459_v18, %v195_v17  ;;  %v285_v30 = vld [vmem:[%s2088_s2 + $0x20] sm:$0xff]  ;;  %v286_v35 = vld [vmem:[%s2088_s2 + $0x28] sm:$0xff] }
   0x8   :  { %v372_v24 = vld [vmem:[%s2089_s3 + $0x18] sm:$0xff]  ;;  %v197_v29 = vmax.bf16 %v109_v26, %v21_v25  ;;  %v373_v31 = vld [vmem:[%s2089_s3 + $0x20] sm:$0xff]  ;;  %v374_v36 = vld [vmem:[%s2089_s3 + $0x28] sm:$0xff]  ;;  %v198_v38 = vmax.bf16 %v110_v34, %v22_v32 }
   0x9   :  { %633 = vst [vmem:[%s2090_s4] sm:$0xff] %v545_v16  ;;  %v460_v28 = vmax.bf16 %v372_v24, %v284_v21  ;;  %634 = vst [vmem:[%s2090_s4 + $0x8] sm:$0xff] %v546_v22  ;;  %v461_v33 = vmax.bf16 %v373_v31, %v285_v30  ;;  %v462_v39 = vmax.bf16 %v374_v36, %v286_v35  ;;  %v23_v40 = vld [vmem:[%s2086_s0 + $0x30] sm:$0xff]  ;;  %v24_v46 = vld [vmem:[%s2086_s0 + $0x38] sm:$0xff] }
   0xa   :  { %635 = vst [vmem:[%s2090_s4 + $0x10] sm:$0xff] %v547_v27  ;;  %v111_v41 = vld [vmem:[%s2087_s1 + $0x30] sm:$0xff]  ;;  %v112_v47 = vld [vmem:[%s2087_s1 + $0x38] sm:$0xff]  ;;  %v25_v53 = vld [vmem:[%s2086_s0 + $0x40] sm:$0xff] }
   0xb   :  { %v548_v37 = vmax.bf16 %v460_v28, %v196_v23  ;;  %v287_v42 = vld [vmem:[%s2088_s2 + $0x30] sm:$0xff]  ;;  %v549_v43 = vmax.bf16 %v461_v33, %v197_v29  ;;  %v199_v44 = vmax.bf16 %v111_v41, %v23_v40  ;;  %v550_v48 = vmax.bf16 %v462_v39, %v198_v38  ;;  %v288_v51 = vld [vmem:[%s2088_s2 + $0x38] sm:$0xff]  ;;  %v113_v55 = vld [vmem:[%s2087_s1 + $0x40] sm:$0xff] }
   0xc   :  { %v375_v45 = vld [vmem:[%s2089_s3 + $0x30] sm:$0xff]  ;;  %v200_v50 = vmax.bf16 %v112_v47, %v24_v46  ;;  %v376_v52 = vld [vmem:[%s2089_s3 + $0x38] sm:$0xff]  ;;  %v289_v56 = vld [vmem:[%s2088_s2 + $0x40] sm:$0xff]  ;;  %v201_v59 = vmax.bf16 %v113_v55, %v25_v53 }
   0xd   :  { %636 = vst [vmem:[%s2090_s4 + $0x18] sm:$0xff] %v548_v37  ;;  %v463_v49 = vmax.bf16 %v375_v45, %v287_v42  ;;  %637 = vst [vmem:[%s2090_s4 + $0x20] sm:$0xff] %v549_v43  ;;  %v464_v54 = vmax.bf16 %v376_v52, %v288_v51  ;;  %v377_v57 = vld [vmem:[%s2089_s3 + $0x40] sm:$0xff]  ;;  %v26_v61 = vld [vmem:[%s2086_s0 + $0x48] sm:$0xff] }
   0xe   :  { %638 = vst [vmem:[%s2090_s4 + $0x28] sm:$0xff] %v550_v48  ;;  %v465_v60 = vmax.bf16 %v377_v57, %v289_v56  ;;  %v114_v62 = vld [vmem:[%s2087_s1 + $0x48] sm:$0xff]  ;;  %v27_v3 = vld [vmem:[%s2086_s0 + $0x50] sm:$0xff]  ;;  %v28_v10 = vld [vmem:[%s2086_s0 + $0x58] sm:$0xff] }
   0xf   :  { %v551_v58 = vmax.bf16 %v463_v49, %v199_v44  ;;  %v290_v63 = vld [vmem:[%s2088_s2 + $0x48] sm:$0xff]  ;;  %v552_v0 = vmax.bf16 %v464_v54, %v200_v50  ;;  %v202_v1 = vmax.bf16 %v114_v62, %v26_v61  ;;  %v115_v4 = vld [vmem:[%s2087_s1 + $0x50] sm:$0xff]  ;;  %v116_v12 = vld [vmem:[%s2087_s1 + $0x58] sm:$0xff] }
  0x10   :  { %v378_v2 = vld [vmem:[%s2089_s3 + $0x48] sm:$0xff]  ;;  %v553_v5 = vmax.bf16 %v465_v60, %v201_v59  ;;  %v203_v7 = vmax.bf16 %v115_v4, %v27_v3  ;;  %v291_v8 = vld [vmem:[%s2088_s2 + $0x50] sm:$0xff]  ;;  %v292_v13 = vld [vmem:[%s2088_s2 + $0x58] sm:$0xff]  ;;  %v204_v16 = vmax.bf16 %v116_v12, %v28_v10 }
  0x11   :  { %639 = vst [vmem:[%s2090_s4 + $0x30] sm:$0xff] %v551_v58  ;;  %v466_v6 = vmax.bf16 %v378_v2, %v290_v63  ;;  %v379_v9 = vld [vmem:[%s2089_s3 + $0x50] sm:$0xff]  ;;  %640 = vst [vmem:[%s2090_s4 + $0x38] sm:$0xff] %v552_v0  ;;  %v380_v14 = vld [vmem:[%s2089_s3 + $0x58] sm:$0xff] }
  0x12   :  { %v467_v11 = vmax.bf16 %v379_v9, %v291_v8  ;;  %641 = vst [vmem:[%s2090_s4 + $0x40] sm:$0xff] %v553_v5  ;;  %v468_v17 = vmax.bf16 %v380_v14, %v292_v13  ;;  %v29_v18 = vld [vmem:[%s2086_s0 + $0x60] sm:$0xff]  ;;  %v30_v24 = vld [vmem:[%s2086_s0 + $0x68] sm:$0xff]  ;;  %v31_v31 = vld [vmem:[%s2086_s0 + $0x70] sm:$0xff] }
  0x13   :  { %v554_v15 = vmax.bf16 %v466_v6, %v202_v1  ;;  %v117_v19 = vld [vmem:[%s2087_s1 + $0x60] sm:$0xff]  ;;  %v118_v25 = vld [vmem:[%s2087_s1 + $0x68] sm:$0xff]  ;;  %v119_v33 = vld [vmem:[%s2087_s1 + $0x70] sm:$0xff] }
  0x14   :  { %v293_v20 = vld [vmem:[%s2088_s2 + $0x60] sm:$0xff]  ;;  %v555_v21 = vmax.bf16 %v467_v11, %v203_v7  ;;  %v205_v22 = vmax.bf16 %v117_v19, %v29_v18  ;;  %v556_v26 = vmax.bf16 %v468_v17, %v204_v16  ;;  %v206_v28 = vmax.bf16 %v118_v25, %v30_v24  ;;  %v294_v29 = vld [vmem:[%s2088_s2 + $0x68] sm:$0xff]  ;;  %v295_v34 = vld [vmem:[%s2088_s2 + $0x70] sm:$0xff] }
  0x15   :  { %v381_v23 = vld [vmem:[%s2089_s3 + $0x60] sm:$0xff]  ;;  %642 = vst [vmem:[%s2090_s4 + $0x48] sm:$0xff] %v554_v15  ;;  %v382_v30 = vld [vmem:[%s2089_s3 + $0x68] sm:$0xff]  ;;  %v383_v35 = vld [vmem:[%s2089_s3 + $0x70] sm:$0xff]  ;;  %v207_v37 = vmax.bf16 %v119_v33, %v31_v31 }
  0x16   :  { %v469_v27 = vmax.bf16 %v381_v23, %v293_v20  ;;  %643 = vst [vmem:[%s2090_s4 + $0x50] sm:$0xff] %v555_v21  ;;  %v470_v32 = vmax.bf16 %v382_v30, %v294_v29  ;;  %644 = vst [vmem:[%s2090_s4 + $0x58] sm:$0xff] %v556_v26  ;;  %v471_v38 = vmax.bf16 %v383_v35, %v295_v34  ;;  %v32_v39 = vld [vmem:[%s2086_s0 + $0x78] sm:$0xff]  ;;  %v33_v45 = vld [vmem:[%s2086_s0 + $0x80] sm:$0xff] }
  0x17   :  { %v120_v40 = vld [vmem:[%s2087_s1 + $0x78] sm:$0xff]  ;;  %v121_v46 = vld [vmem:[%s2087_s1 + $0x80] sm:$0xff]  ;;  %v34_v52 = vld [vmem:[%s2086_s0 + $0x88] sm:$0xff] }
  0x18   :  { %v557_v36 = vmax.bf16 %v469_v27, %v205_v22  ;;  %v296_v41 = vld [vmem:[%s2088_s2 + $0x78] sm:$0xff]  ;;  %v558_v42 = vmax.bf16 %v470_v32, %v206_v28  ;;  %v208_v43 = vmax.bf16 %v120_v40, %v32_v39  ;;  %v559_v47 = vmax.bf16 %v471_v38, %v207_v37  ;;  %v297_v50 = vld [vmem:[%s2088_s2 + $0x80] sm:$0xff]  ;;  %v122_v54 = vld [vmem:[%s2087_s1 + $0x88] sm:$0xff] }
  0x19   :  { %v384_v44 = vld [vmem:[%s2089_s3 + $0x78] sm:$0xff]  ;;  %v209_v49 = vmax.bf16 %v121_v46, %v33_v45  ;;  %v385_v51 = vld [vmem:[%s2089_s3 + $0x80] sm:$0xff]  ;;  %v298_v55 = vld [vmem:[%s2088_s2 + $0x88] sm:$0xff]  ;;  %v210_v58 = vmax.bf16 %v122_v54, %v34_v52 }
  0x1a   :  { %645 = vst [vmem:[%s2090_s4 + $0x60] sm:$0xff] %v557_v36  ;;  %v472_v48 = vmax.bf16 %v384_v44, %v296_v41  ;;  %646 = vst [vmem:[%s2090_s4 + $0x68] sm:$0xff] %v558_v42  ;;  %v473_v53 = vmax.bf16 %v385_v51, %v297_v50  ;;  %v386_v56 = vld [vmem:[%s2089_s3 + $0x88] sm:$0xff]  ;;  %v35_v60 = vld [vmem:[%s2086_s0 + $0x90] sm:$0xff] }
  0x1b   :  { %647 = vst [vmem:[%s2090_s4 + $0x70] sm:$0xff] %v559_v47  ;;  %v474_v59 = vmax.bf16 %v386_v56, %v298_v55  ;;  %v123_v61 = vld [vmem:[%s2087_s1 + $0x90] sm:$0xff]  ;;  %v36_v2 = vld [vmem:[%s2086_s0 + $0x98] sm:$0xff]  ;;  %v37_v9 = vld [vmem:[%s2086_s0 + $0xa0] sm:$0xff] }
  0x1c   :  { %v560_v57 = vmax.bf16 %v472_v48, %v208_v43  ;;  %v299_v62 = vld [vmem:[%s2088_s2 + $0x90] sm:$0xff]  ;;  %v561_v63 = vmax.bf16 %v473_v53, %v209_v49  ;;  %v211_v0 = vmax.bf16 %v123_v61, %v35_v60  ;;  %v124_v3 = vld [vmem:[%s2087_s1 + $0x98] sm:$0xff]  ;;  %v125_v11 = vld [vmem:[%s2087_s1 + $0xa0] sm:$0xff] }
  0x1d   :  { %v387_v1 = vld [vmem:[%s2089_s3 + $0x90] sm:$0xff]  ;;  %v562_v4 = vmax.bf16 %v474_v59, %v210_v58  ;;  %v212_v6 = vmax.bf16 %v124_v3, %v36_v2  ;;  %v300_v7 = vld [vmem:[%s2088_s2 + $0x98] sm:$0xff]  ;;  %v301_v12 = vld [vmem:[%s2088_s2 + $0xa0] sm:$0xff]  ;;  %v213_v15 = vmax.bf16 %v125_v11, %v37_v9 }
  0x1e   :  { %648 = vst [vmem:[%s2090_s4 + $0x78] sm:$0xff] %v560_v57  ;;  %v475_v5 = vmax.bf16 %v387_v1, %v299_v62  ;;  %v388_v8 = vld [vmem:[%s2089_s3 + $0x98] sm:$0xff]  ;;  %649 = vst [vmem:[%s2090_s4 + $0x80] sm:$0xff] %v561_v63  ;;  %v389_v13 = vld [vmem:[%s2089_s3 + $0xa0] sm:$0xff] }
  0x1f   :  { %v476_v10 = vmax.bf16 %v388_v8, %v300_v7  ;;  %650 = vst [vmem:[%s2090_s4 + $0x88] sm:$0xff] %v562_v4  ;;  %v477_v16 = vmax.bf16 %v389_v13, %v301_v12  ;;  %v38_v17 = vld [vmem:[%s2086_s0 + $0xa8] sm:$0xff]  ;;  %v39_v23 = vld [vmem:[%s2086_s0 + $0xb0] sm:$0xff]  ;;  %v40_v30 = vld [vmem:[%s2086_s0 + $0xb8] sm:$0xff] }
  0x20   :  { %v563_v14 = vmax.bf16 %v475_v5, %v211_v0  ;;  %v126_v18 = vld [vmem:[%s2087_s1 + $0xa8] sm:$0xff]  ;;  %v127_v24 = vld [vmem:[%s2087_s1 + $0xb0] sm:$0xff]  ;;  %v128_v32 = vld [vmem:[%s2087_s1 + $0xb8] sm:$0xff] }
  0x21   :  { %v302_v19 = vld [vmem:[%s2088_s2 + $0xa8] sm:$0xff]  ;;  %v564_v20 = vmax.bf16 %v476_v10, %v212_v6  ;;  %v214_v21 = vmax.bf16 %v126_v18, %v38_v17  ;;  %v565_v25 = vmax.bf16 %v477_v16, %v213_v15  ;;  %v215_v27 = vmax.bf16 %v127_v24, %v39_v23  ;;  %v303_v28 = vld [vmem:[%s2088_s2 + $0xb0] sm:$0xff]  ;;  %v304_v33 = vld [vmem:[%s2088_s2 + $0xb8] sm:$0xff] }
  0x22   :  { %v390_v22 = vld [vmem:[%s2089_s3 + $0xa8] sm:$0xff]  ;;  %651 = vst [vmem:[%s2090_s4 + $0x90] sm:$0xff] %v563_v14  ;;  %v391_v29 = vld [vmem:[%s2089_s3 + $0xb0] sm:$0xff]  ;;  %v392_v34 = vld [vmem:[%s2089_s3 + $0xb8] sm:$0xff]  ;;  %v216_v36 = vmax.bf16 %v128_v32, %v40_v30 }
  0x23   :  { %v478_v26 = vmax.bf16 %v390_v22, %v302_v19  ;;  %652 = vst [vmem:[%s2090_s4 + $0x98] sm:$0xff] %v564_v20  ;;  %v479_v31 = vmax.bf16 %v391_v29, %v303_v28  ;;  %653 = vst [vmem:[%s2090_s4 + $0xa0] sm:$0xff] %v565_v25  ;;  %v480_v37 = vmax.bf16 %v392_v34, %v304_v33  ;;  %v41_v38 = vld [vmem:[%s2086_s0 + $0xc0] sm:$0xff]  ;;  %v42_v44 = vld [vmem:[%s2086_s0 + $0xc8] sm:$0xff] }
  0x24   :  { %v129_v39 = vld [vmem:[%s2087_s1 + $0xc0] sm:$0xff]  ;;  %v130_v45 = vld [vmem:[%s2087_s1 + $0xc8] sm:$0xff]  ;;  %v43_v51 = vld [vmem:[%s2086_s0 + $0xd0] sm:$0xff] }
  0x25   :  { %v566_v35 = vmax.bf16 %v478_v26, %v214_v21  ;;  %v305_v40 = vld [vmem:[%s2088_s2 + $0xc0] sm:$0xff]  ;;  %v567_v41 = vmax.bf16 %v479_v31, %v215_v27  ;;  %v217_v42 = vmax.bf16 %v129_v39, %v41_v38  ;;  %v568_v46 = vmax.bf16 %v480_v37, %v216_v36  ;;  %v306_v49 = vld [vmem:[%s2088_s2 + $0xc8] sm:$0xff]  ;;  %v131_v53 = vld [vmem:[%s2087_s1 + $0xd0] sm:$0xff] }
  0x26   :  { %v393_v43 = vld [vmem:[%s2089_s3 + $0xc0] sm:$0xff]  ;;  %v218_v48 = vmax.bf16 %v130_v45, %v42_v44  ;;  %v394_v50 = vld [vmem:[%s2089_s3 + $0xc8] sm:$0xff]  ;;  %v307_v54 = vld [vmem:[%s2088_s2 + $0xd0] sm:$0xff]  ;;  %v219_v57 = vmax.bf16 %v131_v53, %v43_v51 }
  0x27   :  { %654 = vst [vmem:[%s2090_s4 + $0xa8] sm:$0xff] %v566_v35  ;;  %v481_v47 = vmax.bf16 %v393_v43, %v305_v40  ;;  %655 = vst [vmem:[%s2090_s4 + $0xb0] sm:$0xff] %v567_v41  ;;  %v482_v52 = vmax.bf16 %v394_v50, %v306_v49  ;;  %v395_v55 = vld [vmem:[%s2089_s3 + $0xd0] sm:$0xff]  ;;  %v44_v59 = vld [vmem:[%s2086_s0 + $0xd8] sm:$0xff] }
  0x28   :  { %656 = vst [vmem:[%s2090_s4 + $0xb8] sm:$0xff] %v568_v46  ;;  %v483_v58 = vmax.bf16 %v395_v55, %v307_v54  ;;  %v132_v60 = vld [vmem:[%s2087_s1 + $0xd8] sm:$0xff]  ;;  %v45_v1 = vld [vmem:[%s2086_s0 + $0xe0] sm:$0xff]  ;;  %v46_v8 = vld [vmem:[%s2086_s0 + $0xe8] sm:$0xff] }
  0x29   :  { %v569_v56 = vmax.bf16 %v481_v47, %v217_v42  ;;  %v308_v61 = vld [vmem:[%s2088_s2 + $0xd8] sm:$0xff]  ;;  %v570_v62 = vmax.bf16 %v482_v52, %v218_v48  ;;  %v220_v63 = vmax.bf16 %v132_v60, %v44_v59  ;;  %v133_v2 = vld [vmem:[%s2087_s1 + $0xe0] sm:$0xff]  ;;  %v134_v10 = vld [vmem:[%s2087_s1 + $0xe8] sm:$0xff] }
  0x2a   :  { %v396_v0 = vld [vmem:[%s2089_s3 + $0xd8] sm:$0xff]  ;;  %v571_v3 = vmax.bf16 %v483_v58, %v219_v57  ;;  %v221_v5 = vmax.bf16 %v133_v2, %v45_v1  ;;  %v309_v6 = vld [vmem:[%s2088_s2 + $0xe0] sm:$0xff]  ;;  %v310_v11 = vld [vmem:[%s2088_s2 + $0xe8] sm:$0xff]  ;;  %v222_v14 = vmax.bf16 %v134_v10, %v46_v8 }
  0x2b   :  { %657 = vst [vmem:[%s2090_s4 + $0xc0] sm:$0xff] %v569_v56  ;;  %v484_v4 = vmax.bf16 %v396_v0, %v308_v61  ;;  %v397_v7 = vld [vmem:[%s2089_s3 + $0xe0] sm:$0xff]  ;;  %658 = vst [vmem:[%s2090_s4 + $0xc8] sm:$0xff] %v570_v62  ;;  %v398_v12 = vld [vmem:[%s2089_s3 + $0xe8] sm:$0xff] }
  0x2c   :  { %v485_v9 = vmax.bf16 %v397_v7, %v309_v6  ;;  %659 = vst [vmem:[%s2090_s4 + $0xd0] sm:$0xff] %v571_v3  ;;  %v486_v15 = vmax.bf16 %v398_v12, %v310_v11  ;;  %v47_v16 = vld [vmem:[%s2086_s0 + $0xf0] sm:$0xff]  ;;  %v48_v22 = vld [vmem:[%s2086_s0 + $0xf8] sm:$0xff]  ;;  %v49_v29 = vld [vmem:[%s2086_s0 + $0x100] sm:$0xff] }
  0x2d   :  { %v572_v13 = vmax.bf16 %v484_v4, %v220_v63  ;;  %v135_v17 = vld [vmem:[%s2087_s1 + $0xf0] sm:$0xff]  ;;  %v136_v23 = vld [vmem:[%s2087_s1 + $0xf8] sm:$0xff]  ;;  %v137_v31 = vld [vmem:[%s2087_s1 + $0x100] sm:$0xff] }
  0x2e   :  { %v311_v18 = vld [vmem:[%s2088_s2 + $0xf0] sm:$0xff]  ;;  %v573_v19 = vmax.bf16 %v485_v9, %v221_v5  ;;  %v223_v20 = vmax.bf16 %v135_v17, %v47_v16  ;;  %v574_v24 = vmax.bf16 %v486_v15, %v222_v14  ;;  %v224_v26 = vmax.bf16 %v136_v23, %v48_v22  ;;  %v312_v27 = vld [vmem:[%s2088_s2 + $0xf8] sm:$0xff]  ;;  %v313_v32 = vld [vmem:[%s2088_s2 + $0x100] sm:$0xff] }
  0x2f   :  { %v399_v21 = vld [vmem:[%s2089_s3 + $0xf0] sm:$0xff]  ;;  %660 = vst [vmem:[%s2090_s4 + $0xd8] sm:$0xff] %v572_v13  ;;  %v400_v28 = vld [vmem:[%s2089_s3 + $0xf8] sm:$0xff]  ;;  %v401_v33 = vld [vmem:[%s2089_s3 + $0x100] sm:$0xff]  ;;  %v225_v35 = vmax.bf16 %v137_v31, %v49_v29 }
  0x30   :  { %v487_v25 = vmax.bf16 %v399_v21, %v311_v18  ;;  %661 = vst [vmem:[%s2090_s4 + $0xe0] sm:$0xff] %v573_v19  ;;  %v488_v30 = vmax.bf16 %v400_v28, %v312_v27  ;;  %662 = vst [vmem:[%s2090_s4 + $0xe8] sm:$0xff] %v574_v24  ;;  %v489_v36 = vmax.bf16 %v401_v33, %v313_v32  ;;  %v50_v37 = vld [vmem:[%s2086_s0 + $0x108] sm:$0xff]  ;;  %v51_v43 = vld [vmem:[%s2086_s0 + $0x110] sm:$0xff] }
  0x31   :  { %v138_v38 = vld [vmem:[%s2087_s1 + $0x108] sm:$0xff]  ;;  %v139_v44 = vld [vmem:[%s2087_s1 + $0x110] sm:$0xff]  ;;  %v52_v50 = vld [vmem:[%s2086_s0 + $0x118] sm:$0xff] }
  0x32   :  { %v575_v34 = vmax.bf16 %v487_v25, %v223_v20  ;;  %v314_v39 = vld [vmem:[%s2088_s2 + $0x108] sm:$0xff]  ;;  %v576_v40 = vmax.bf16 %v488_v30, %v224_v26  ;;  %v226_v41 = vmax.bf16 %v138_v38, %v50_v37  ;;  %v577_v45 = vmax.bf16 %v489_v36, %v225_v35  ;;  %v315_v48 = vld [vmem:[%s2088_s2 + $0x110] sm:$0xff]  ;;  %v140_v52 = vld [vmem:[%s2087_s1 + $0x118] sm:$0xff] }
  0x33   :  { %v402_v42 = vld [vmem:[%s2089_s3 + $0x108] sm:$0xff]  ;;  %v227_v47 = vmax.bf16 %v139_v44, %v51_v43  ;;  %v403_v49 = vld [vmem:[%s2089_s3 + $0x110] sm:$0xff]  ;;  %v316_v53 = vld [vmem:[%s2088_s2 + $0x118] sm:$0xff]  ;;  %v228_v56 = vmax.bf16 %v140_v52, %v52_v50 }
  0x34   :  { %663 = vst [vmem:[%s2090_s4 + $0xf0] sm:$0xff] %v575_v34  ;;  %v490_v46 = vmax.bf16 %v402_v42, %v314_v39  ;;  %664 = vst [vmem:[%s2090_s4 + $0xf8] sm:$0xff] %v576_v40  ;;  %v491_v51 = vmax.bf16 %v403_v49, %v315_v48  ;;  %v404_v54 = vld [vmem:[%s2089_s3 + $0x118] sm:$0xff]  ;;  %v53_v58 = vld [vmem:[%s2086_s0 + $0x120] sm:$0xff] }
  0x35   :  { %665 = vst [vmem:[%s2090_s4 + $0x100] sm:$0xff] %v577_v45  ;;  %v492_v57 = vmax.bf16 %v404_v54, %v316_v53  ;;  %v141_v59 = vld [vmem:[%s2087_s1 + $0x120] sm:$0xff]  ;;  %v54_v0 = vld [vmem:[%s2086_s0 + $0x128] sm:$0xff]  ;;  %v55_v7 = vld [vmem:[%s2086_s0 + $0x130] sm:$0xff] }
  0x36   :  { %v578_v55 = vmax.bf16 %v490_v46, %v226_v41  ;;  %v317_v60 = vld [vmem:[%s2088_s2 + $0x120] sm:$0xff]  ;;  %v579_v61 = vmax.bf16 %v491_v51, %v227_v47  ;;  %v229_v62 = vmax.bf16 %v141_v59, %v53_v58  ;;  %v142_v1 = vld [vmem:[%s2087_s1 + $0x128] sm:$0xff]  ;;  %v143_v9 = vld [vmem:[%s2087_s1 + $0x130] sm:$0xff] }
  0x37   :  { %v405_v63 = vld [vmem:[%s2089_s3 + $0x120] sm:$0xff]  ;;  %v580_v2 = vmax.bf16 %v492_v57, %v228_v56  ;;  %v230_v4 = vmax.bf16 %v142_v1, %v54_v0  ;;  %v318_v5 = vld [vmem:[%s2088_s2 + $0x128] sm:$0xff]  ;;  %v319_v10 = vld [vmem:[%s2088_s2 + $0x130] sm:$0xff]  ;;  %v231_v13 = vmax.bf16 %v143_v9, %v55_v7 }
  0x38   :  { %666 = vst [vmem:[%s2090_s4 + $0x108] sm:$0xff] %v578_v55  ;;  %v493_v3 = vmax.bf16 %v405_v63, %v317_v60  ;;  %v406_v6 = vld [vmem:[%s2089_s3 + $0x128] sm:$0xff]  ;;  %667 = vst [vmem:[%s2090_s4 + $0x110] sm:$0xff] %v579_v61  ;;  %v407_v11 = vld [vmem:[%s2089_s3 + $0x130] sm:$0xff] }
  0x39   :  { %v494_v8 = vmax.bf16 %v406_v6, %v318_v5  ;;  %668 = vst [vmem:[%s2090_s4 + $0x118] sm:$0xff] %v580_v2  ;;  %v495_v14 = vmax.bf16 %v407_v11, %v319_v10  ;;  %v56_v15 = vld [vmem:[%s2086_s0 + $0x138] sm:$0xff]  ;;  %v57_v21 = vld [vmem:[%s2086_s0 + $0x140] sm:$0xff]  ;;  %v58_v28 = vld [vmem:[%s2086_s0 + $0x148] sm:$0xff] }
  0x3a   :  { %v581_v12 = vmax.bf16 %v493_v3, %v229_v62  ;;  %v144_v16 = vld [vmem:[%s2087_s1 + $0x138] sm:$0xff]  ;;  %v145_v22 = vld [vmem:[%s2087_s1 + $0x140] sm:$0xff]  ;;  %v146_v30 = vld [vmem:[%s2087_s1 + $0x148] sm:$0xff] }
  0x3b   :  { %v320_v17 = vld [vmem:[%s2088_s2 + $0x138] sm:$0xff]  ;;  %v582_v18 = vmax.bf16 %v494_v8, %v230_v4  ;;  %v232_v19 = vmax.bf16 %v144_v16, %v56_v15  ;;  %v583_v23 = vmax.bf16 %v495_v14, %v231_v13  ;;  %v233_v25 = vmax.bf16 %v145_v22, %v57_v21  ;;  %v321_v26 = vld [vmem:[%s2088_s2 + $0x140] sm:$0xff]  ;;  %v322_v31 = vld [vmem:[%s2088_s2 + $0x148] sm:$0xff] }
  0x3c   :  { %v408_v20 = vld [vmem:[%s2089_s3 + $0x138] sm:$0xff]  ;;  %669 = vst [vmem:[%s2090_s4 + $0x120] sm:$0xff] %v581_v12  ;;  %v409_v27 = vld [vmem:[%s2089_s3 + $0x140] sm:$0xff]  ;;  %v410_v32 = vld [vmem:[%s2089_s3 + $0x148] sm:$0xff]  ;;  %v234_v34 = vmax.bf16 %v146_v30, %v58_v28 }
  0x3d   :  { %v496_v24 = vmax.bf16 %v408_v20, %v320_v17  ;;  %670 = vst [vmem:[%s2090_s4 + $0x128] sm:$0xff] %v582_v18  ;;  %v497_v29 = vmax.bf16 %v409_v27, %v321_v26  ;;  %671 = vst [vmem:[%s2090_s4 + $0x130] sm:$0xff] %v583_v23  ;;  %v498_v35 = vmax.bf16 %v410_v32, %v322_v31  ;;  %v59_v36 = vld [vmem:[%s2086_s0 + $0x150] sm:$0xff]  ;;  %v60_v42 = vld [vmem:[%s2086_s0 + $0x158] sm:$0xff] }
  0x3e   :  { %v147_v37 = vld [vmem:[%s2087_s1 + $0x150] sm:$0xff]  ;;  %v148_v43 = vld [vmem:[%s2087_s1 + $0x158] sm:$0xff]  ;;  %vm1406_vm2 = vmor %vm677_vm1, %vm676_vm0 }
  0x3f   :  { %v584_v33 = vmax.bf16 %v496_v24, %v232_v19  ;;  %v323_v38 = vld [vmem:[%s2088_s2 + $0x150] sm:$0xff]  ;;  %v585_v39 = vmax.bf16 %v497_v29, %v233_v25  ;;  %v235_v40 = vmax.bf16 %v147_v37, %v59_v36  ;;  %v586_v44 = vmax.bf16 %v498_v35, %v234_v34  ;;  %v324_v47 = vld [vmem:[%s2088_s2 + $0x158] sm:$0xff]  ;;  %v61_v51 = vld [vmem:[%s2086_s0 + $0x160] sm:$0x33] }
  0x40   :  { %v411_v41 = vld [vmem:[%s2089_s3 + $0x150] sm:$0xff]  ;;  %v236_v46 = vmax.bf16 %v148_v43, %v60_v42  ;;  %v412_v48 = vld [vmem:[%s2089_s3 + $0x158] sm:$0xff]  ;;  %v149_v52 = vld [vmem:[%s2087_s1 + $0x160] sm:$0x33] }
  0x41   :  { %672 = vst [vmem:[%s2090_s4 + $0x138] sm:$0xff] %v584_v33  ;;  %v499_v45 = vmax.bf16 %v411_v41, %v323_v38  ;;  %673 = vst [vmem:[%s2090_s4 + $0x140] sm:$0xff] %v585_v39  ;;  %v500_v50 = vmax.bf16 %v412_v48, %v324_v47  ;;  %v325_v53 = vld [vmem:[%s2088_s2 + $0x160] sm:$0x33]  ;;  %v237_v55 = vmax.bf16 %v149_v52, %v61_v51  ;;  %v62_v57 = vld [vmem:[%s2086_s0 + $0x168] sm:$0x33] }
  0x42   :  { %674 = vst [vmem:[%s2090_s4 + $0x148] sm:$0xff] %v586_v44  ;;  %v413_v56 = vld [vmem:[%s2089_s3 + $0x160] sm:$0x33]  ;;  %v150_v58 = vld [vmem:[%s2087_s1 + $0x168] sm:$0x33]  ;;  %vm725_vm5 = vmor %vm724_vm4, %vm723_vm3 }
  0x43   :  { %v587_v54 = vmax.bf16 %v499_v45, %v235_v40  ;;  %v588_v59 = vmax.bf16 %v500_v50, %v236_v46  ;;  %v501_v60 = vmax.bf16 %v413_v56, %v325_v53  ;;  %v238_v61 = vmax.bf16 %v150_v58, %v62_v57  ;;  %v326_v62 = vld [vmem:[%s2088_s2 + $0x168] sm:$0x33]  ;;  %v63_v0 = vld [vmem:[%s2086_s0 + $0x170] sm:$0x33]  ;;  %v64_v8 = vld [vmem:[%s2086_s0 + $0x178] sm:$0x33] }
  0x44   :  { %v414_v63 = vld [vmem:[%s2089_s3 + $0x168] sm:$0x33]  ;;  %v151_v2 = vld [vmem:[%s2087_s1 + $0x170] sm:$0x33]  ;;  %v152_v9 = vld [vmem:[%s2087_s1 + $0x178] sm:$0x33] }
  0x45   :  { %675 = vst [vmem:[%s2090_s4 + $0x150] sm:$0xff] %v587_v54  ;;  %v502_v1 = vmax.bf16 %v414_v63, %v326_v62  ;;  %v327_v3 = vld [vmem:[%s2088_s2 + $0x170] sm:$0x33]  ;;  %679 = vst.msk [vmem:[%s2090_s4 + $0x158] sm:$0xff] %vm1406_vm2, %v588_v59  ;;  %v589_v5 = vmax.bf16 %v501_v60, %v237_v55  ;;  %v239_v6 = vmax.bf16 %v151_v2, %v63_v0  ;;  %v328_v10 = vld [vmem:[%s2088_s2 + $0x178] sm:$0x33] }
  0x46   :  { %v415_v4 = vld [vmem:[%s2089_s3 + $0x170] sm:$0x33]  ;;  %v240_v12 = vmax.bf16 %v152_v9, %v64_v8  ;;  %v416_v13 = vld [vmem:[%s2089_s3 + $0x178] sm:$0x33]  ;;  %v65_v14 = vld [vmem:[%s2086_s0 + $0x180] sm:$0x33] }
  0x47   :  { %v503_v7 = vmax.bf16 %v415_v4, %v327_v3  ;;  %v590_v11 = vmax.bf16 %v502_v1, %v238_v61  ;;  %v153_v15 = vld [vmem:[%s2087_s1 + $0x180] sm:$0x33]  ;;  %680 = vst [vmem:[%s2090_s4 + $0x160] sm:$0x33] %v589_v5  ;;  %v504_v17 = vmax.bf16 %v416_v13, %v328_v10  ;;  %v66_v21 = vld [vmem:[%s2086_s0 + $0x188] sm:$0x33] }
  0x48   :  { %v241_v18 = vmax.bf16 %v153_v15, %v65_v14  ;;  %v329_v19 = vld [vmem:[%s2088_s2 + $0x180] sm:$0x33]  ;;  %v154_v23 = vld [vmem:[%s2087_s1 + $0x188] sm:$0x33]  ;;  %v67_v29 = vld [vmem:[%s2086_s0 + $0x190] sm:$0x33] }
  0x49   :  { %v591_v16 = vmax.bf16 %v503_v7, %v239_v6  ;;  %v417_v20 = vld [vmem:[%s2089_s3 + $0x180] sm:$0x33]  ;;  %681 = vst [vmem:[%s2090_s4 + $0x168] sm:$0x33] %v590_v11  ;;  %v330_v24 = vld [vmem:[%s2088_s2 + $0x188] sm:$0x33]  ;;  %v592_v26 = vmax.bf16 %v504_v17, %v240_v12  ;;  %v242_v27 = vmax.bf16 %v154_v23, %v66_v21 }
  0x4a   :  { %v505_v22 = vmax.bf16 %v417_v20, %v329_v19  ;;  %v418_v25 = vld [vmem:[%s2089_s3 + $0x188] sm:$0x33]  ;;  %v155_v30 = vld [vmem:[%s2087_s1 + $0x190] sm:$0x33]  ;;  %v68_v35 = vld [vmem:[%s2086_s0 + $0x198] sm:$0x33] }
  0x4b   :  { %682 = vst [vmem:[%s2090_s4 + $0x170] sm:$0x33] %v591_v16  ;;  %v506_v28 = vmax.bf16 %v418_v25, %v330_v24  ;;  %v331_v31 = vld [vmem:[%s2088_s2 + $0x190] sm:$0x33]  ;;  %v243_v33 = vmax.bf16 %v155_v30, %v67_v29  ;;  %v156_v36 = vld [vmem:[%s2087_s1 + $0x198] sm:$0x33] }
  0x4c   :  { %v593_v32 = vmax.bf16 %v505_v22, %v241_v18  ;;  %v419_v34 = vld [vmem:[%s2089_s3 + $0x190] sm:$0x33]  ;;  %683 = vst [vmem:[%s2090_s4 + $0x178] sm:$0x33] %v592_v26  ;;  %v244_v39 = vmax.bf16 %v156_v36, %v68_v35  ;;  %v332_v40 = vld [vmem:[%s2088_s2 + $0x198] sm:$0x33] }
  0x4d   :  { %v594_v37 = vmax.bf16 %v506_v28, %v242_v27  ;;  %v507_v38 = vmax.bf16 %v419_v34, %v331_v31  ;;  %v420_v41 = vld [vmem:[%s2089_s3 + $0x198] sm:$0x33]  ;;  %v69_v42 = vld [vmem:[%s2086_s0 + $0x1a0] sm:$0x33]  ;;  %v70_v50 = vld [vmem:[%s2086_s0 + $0x1a8] sm:$0x33] }
  0x4e   :  { %684 = vst [vmem:[%s2090_s4 + $0x180] sm:$0x33] %v593_v32  ;;  %v508_v43 = vmax.bf16 %v420_v41, %v332_v40  ;;  %v157_v44 = vld [vmem:[%s2087_s1 + $0x1a0] sm:$0x33]  ;;  %v158_v51 = vld [vmem:[%s2087_s1 + $0x1a8] sm:$0x33] }
  0x4f   :  { %v333_v45 = vld [vmem:[%s2088_s2 + $0x1a0] sm:$0x33]  ;;  %685 = vst [vmem:[%s2090_s4 + $0x188] sm:$0x33] %v594_v37  ;;  %v595_v47 = vmax.bf16 %v507_v38, %v243_v33  ;;  %v245_v48 = vmax.bf16 %v157_v44, %v69_v42  ;;  %v334_v52 = vld [vmem:[%s2088_s2 + $0x1a8] sm:$0x33]  ;;  %v246_v54 = vmax.bf16 %v158_v51, %v70_v50 }
  0x50   :  { %v421_v46 = vld [vmem:[%s2089_s3 + $0x1a0] sm:$0x33]  ;;  %v596_v53 = vmax.bf16 %v508_v43, %v244_v39  ;;  %v422_v55 = vld [vmem:[%s2089_s3 + $0x1a8] sm:$0x33]  ;;  %v71_v56 = vld [vmem:[%s2086_s0 + $0x1b0] sm:$0x33] }
  0x51   :  { %v509_v49 = vmax.bf16 %v421_v46, %v333_v45  ;;  %v159_v57 = vld [vmem:[%s2087_s1 + $0x1b0] sm:$0x33]  ;;  %686 = vst [vmem:[%s2090_s4 + $0x190] sm:$0x33] %v595_v47  ;;  %v510_v59 = vmax.bf16 %v422_v55, %v334_v52  ;;  %v72_v63 = vld [vmem:[%s2086_s0 + $0x1b8] sm:$0x33] }
  0x52   :  { %v247_v60 = vmax.bf16 %v159_v57, %v71_v56  ;;  %v335_v61 = vld [vmem:[%s2088_s2 + $0x1b0] sm:$0x33]  ;;  %687 = vst [vmem:[%s2090_s4 + $0x198] sm:$0x33] %v596_v53  ;;  %v160_v1 = vld [vmem:[%s2087_s1 + $0x1b8] sm:$0x33] }
  0x53   :  { %v597_v58 = vmax.bf16 %v509_v49, %v245_v48  ;;  %v423_v62 = vld [vmem:[%s2089_s3 + $0x1b0] sm:$0x33]  ;;  %v336_v2 = vld [vmem:[%s2088_s2 + $0x1b8] sm:$0x33]  ;;  %v598_v4 = vmax.bf16 %v510_v59, %v246_v54  ;;  %v248_v5 = vmax.bf16 %v160_v1, %v72_v63  ;;  %v73_v7 = vld [vmem:[%s2086_s0 + $0x1c0] sm:$0x33] }
  0x54   :  { %v511_v0 = vmax.bf16 %v423_v62, %v335_v61  ;;  %v424_v3 = vld [vmem:[%s2089_s3 + $0x1b8] sm:$0x33]  ;;  %v161_v8 = vld [vmem:[%s2087_s1 + $0x1c0] sm:$0x33]  ;;  %v74_v13 = vld [vmem:[%s2086_s0 + $0x1c8] sm:$0x33] }
  0x55   :  { %688 = vst [vmem:[%s2090_s4 + $0x1a0] sm:$0x33] %v597_v58  ;;  %v512_v6 = vmax.bf16 %v424_v3, %v336_v2  ;;  %v337_v9 = vld [vmem:[%s2088_s2 + $0x1c0] sm:$0x33]  ;;  %v249_v11 = vmax.bf16 %v161_v8, %v73_v7  ;;  %v162_v14 = vld [vmem:[%s2087_s1 + $0x1c8] sm:$0x33] }
  0x56   :  { %v599_v10 = vmax.bf16 %v511_v0, %v247_v60  ;;  %v425_v12 = vld [vmem:[%s2089_s3 + $0x1c0] sm:$0x33]  ;;  %689 = vst [vmem:[%s2090_s4 + $0x1a8] sm:$0x33] %v598_v4  ;;  %v250_v17 = vmax.bf16 %v162_v14, %v74_v13  ;;  %v338_v18 = vld [vmem:[%s2088_s2 + $0x1c8] sm:$0x33] }
  0x57   :  { %v600_v15 = vmax.bf16 %v512_v6, %v248_v5  ;;  %v513_v16 = vmax.bf16 %v425_v12, %v337_v9  ;;  %v426_v19 = vld [vmem:[%s2089_s3 + $0x1c8] sm:$0x33]  ;;  %v75_v20 = vld [vmem:[%s2086_s0 + $0x1d0] sm:$0x33]  ;;  %v76_v28 = vld [vmem:[%s2086_s0 + $0x1d8] sm:$0x33] }
  0x58   :  { %690 = vst [vmem:[%s2090_s4 + $0x1b0] sm:$0x33] %v599_v10  ;;  %v514_v21 = vmax.bf16 %v426_v19, %v338_v18  ;;  %v163_v22 = vld [vmem:[%s2087_s1 + $0x1d0] sm:$0x33]  ;;  %v164_v29 = vld [vmem:[%s2087_s1 + $0x1d8] sm:$0x33] }
  0x59   :  { %v339_v23 = vld [vmem:[%s2088_s2 + $0x1d0] sm:$0x33]  ;;  %691 = vst [vmem:[%s2090_s4 + $0x1b8] sm:$0x33] %v600_v15  ;;  %v601_v25 = vmax.bf16 %v513_v16, %v249_v11  ;;  %v251_v26 = vmax.bf16 %v163_v22, %v75_v20  ;;  %v340_v30 = vld [vmem:[%s2088_s2 + $0x1d8] sm:$0x33]  ;;  %v252_v32 = vmax.bf16 %v164_v29, %v76_v28 }
  0x5a   :  { %v427_v24 = vld [vmem:[%s2089_s3 + $0x1d0] sm:$0x33]  ;;  %v602_v31 = vmax.bf16 %v514_v21, %v250_v17  ;;  %v428_v33 = vld [vmem:[%s2089_s3 + $0x1d8] sm:$0x33]  ;;  %v77_v34 = vld [vmem:[%s2086_s0 + $0x1e0] sm:$0x33] }
  0x5b   :  { %v515_v27 = vmax.bf16 %v427_v24, %v339_v23  ;;  %v165_v35 = vld [vmem:[%s2087_s1 + $0x1e0] sm:$0x33]  ;;  %692 = vst [vmem:[%s2090_s4 + $0x1c0] sm:$0x33] %v601_v25  ;;  %v516_v37 = vmax.bf16 %v428_v33, %v340_v30  ;;  %v78_v41 = vld [vmem:[%s2086_s0 + $0x1e8] sm:$0x33] }
  0x5c   :  { %v253_v38 = vmax.bf16 %v165_v35, %v77_v34  ;;  %v341_v39 = vld [vmem:[%s2088_s2 + $0x1e0] sm:$0x33]  ;;  %693 = vst [vmem:[%s2090_s4 + $0x1c8] sm:$0x33] %v602_v31  ;;  %v166_v43 = vld [vmem:[%s2087_s1 + $0x1e8] sm:$0x33] }
  0x5d   :  { %v603_v36 = vmax.bf16 %v515_v27, %v251_v26  ;;  %v429_v40 = vld [vmem:[%s2089_s3 + $0x1e0] sm:$0x33]  ;;  %v342_v44 = vld [vmem:[%s2088_s2 + $0x1e8] sm:$0x33]  ;;  %v604_v46 = vmax.bf16 %v516_v37, %v252_v32  ;;  %v254_v47 = vmax.bf16 %v166_v43, %v78_v41  ;;  %v79_v49 = vld [vmem:[%s2086_s0 + $0x1f0] sm:$0x33] }
  0x5e   :  { %v517_v42 = vmax.bf16 %v429_v40, %v341_v39  ;;  %v430_v45 = vld [vmem:[%s2089_s3 + $0x1e8] sm:$0x33]  ;;  %v167_v50 = vld [vmem:[%s2087_s1 + $0x1f0] sm:$0x33]  ;;  %v80_v55 = vld [vmem:[%s2086_s0 + $0x1f8] sm:$0x33] }
  0x5f   :  { %694 = vst [vmem:[%s2090_s4 + $0x1d0] sm:$0x33] %v603_v36  ;;  %v518_v48 = vmax.bf16 %v430_v45, %v342_v44  ;;  %v343_v51 = vld [vmem:[%s2088_s2 + $0x1f0] sm:$0x33]  ;;  %v255_v53 = vmax.bf16 %v167_v50, %v79_v49  ;;  %v168_v56 = vld [vmem:[%s2087_s1 + $0x1f8] sm:$0x33] }
  0x60   :  { %v605_v52 = vmax.bf16 %v517_v42, %v253_v38  ;;  %v431_v54 = vld [vmem:[%s2089_s3 + $0x1f0] sm:$0x33]  ;;  %695 = vst [vmem:[%s2090_s4 + $0x1d8] sm:$0x33] %v604_v46  ;;  %v256_v59 = vmax.bf16 %v168_v56, %v80_v55  ;;  %v344_v60 = vld [vmem:[%s2088_s2 + $0x1f8] sm:$0x33] }
  0x61   :  { %v606_v57 = vmax.bf16 %v518_v48, %v254_v47  ;;  %v519_v58 = vmax.bf16 %v431_v54, %v343_v51  ;;  %v432_v61 = vld [vmem:[%s2089_s3 + $0x1f8] sm:$0x33]  ;;  %v81_v62 = vld [vmem:[%s2086_s0 + $0x200] sm:$0x33]  ;;  %v82_v6 = vld [vmem:[%s2086_s0 + $0x208] sm:$0x33] }
  0x62   :  { %696 = vst [vmem:[%s2090_s4 + $0x1e0] sm:$0x33] %v605_v52  ;;  %v520_v63 = vmax.bf16 %v432_v61, %v344_v60  ;;  %v169_v0 = vld [vmem:[%s2087_s1 + $0x200] sm:$0x33]  ;;  %v170_v7 = vld [vmem:[%s2087_s1 + $0x208] sm:$0x33] }
  0x63   :  { %v345_v1 = vld [vmem:[%s2088_s2 + $0x200] sm:$0x33]  ;;  %697 = vst [vmem:[%s2090_s4 + $0x1e8] sm:$0x33] %v606_v57  ;;  %v607_v3 = vmax.bf16 %v519_v58, %v255_v53  ;;  %v257_v4 = vmax.bf16 %v169_v0, %v81_v62  ;;  %v346_v8 = vld [vmem:[%s2088_s2 + $0x208] sm:$0x33]  ;;  %v258_v10 = vmax.bf16 %v170_v7, %v82_v6 }
  0x64   :  { %v433_v2 = vld [vmem:[%s2089_s3 + $0x200] sm:$0x33]  ;;  %v608_v9 = vmax.bf16 %v520_v63, %v256_v59  ;;  %v434_v11 = vld [vmem:[%s2089_s3 + $0x208] sm:$0x33]  ;;  %v83_v12 = vld [vmem:[%s2086_s0 + $0x210] sm:$0x33] }
  0x65   :  { %v521_v5 = vmax.bf16 %v433_v2, %v345_v1  ;;  %v171_v13 = vld [vmem:[%s2087_s1 + $0x210] sm:$0x33]  ;;  %698 = vst [vmem:[%s2090_s4 + $0x1f0] sm:$0x33] %v607_v3  ;;  %v522_v15 = vmax.bf16 %v434_v11, %v346_v8  ;;  %v84_v19 = vld [vmem:[%s2086_s0 + $0x218] sm:$0x33] }
  0x66   :  { %v259_v16 = vmax.bf16 %v171_v13, %v83_v12  ;;  %v347_v17 = vld [vmem:[%s2088_s2 + $0x210] sm:$0x33]  ;;  %699 = vst [vmem:[%s2090_s4 + $0x1f8] sm:$0x33] %v608_v9  ;;  %v172_v21 = vld [vmem:[%s2087_s1 + $0x218] sm:$0x33] }
  0x67   :  { %v609_v14 = vmax.bf16 %v521_v5, %v257_v4  ;;  %v435_v18 = vld [vmem:[%s2089_s3 + $0x210] sm:$0x33]  ;;  %v348_v22 = vld [vmem:[%s2088_s2 + $0x218] sm:$0x33]  ;;  %v610_v24 = vmax.bf16 %v522_v15, %v258_v10  ;;  %v260_v25 = vmax.bf16 %v172_v21, %v84_v19  ;;  %v85_v27 = vld [vmem:[%s2086_s0 + $0x220] sm:$0x33] }
  0x68   :  { %v523_v20 = vmax.bf16 %v435_v18, %v347_v17  ;;  %v436_v23 = vld [vmem:[%s2089_s3 + $0x218] sm:$0x33]  ;;  %v173_v28 = vld [vmem:[%s2087_s1 + $0x220] sm:$0x33]  ;;  %v86_v33 = vld [vmem:[%s2086_s0 + $0x228] sm:$0x33] }
  0x69   :  { %700 = vst [vmem:[%s2090_s4 + $0x200] sm:$0x33] %v609_v14  ;;  %v524_v26 = vmax.bf16 %v436_v23, %v348_v22  ;;  %v349_v29 = vld [vmem:[%s2088_s2 + $0x220] sm:$0x33]  ;;  %v261_v31 = vmax.bf16 %v173_v28, %v85_v27  ;;  %v174_v34 = vld [vmem:[%s2087_s1 + $0x228] sm:$0x33] }
  0x6a   :  { %v611_v30 = vmax.bf16 %v523_v20, %v259_v16  ;;  %v437_v32 = vld [vmem:[%s2089_s3 + $0x220] sm:$0x33]  ;;  %701 = vst [vmem:[%s2090_s4 + $0x208] sm:$0x33] %v610_v24  ;;  %v262_v37 = vmax.bf16 %v174_v34, %v86_v33  ;;  %v350_v38 = vld [vmem:[%s2088_s2 + $0x228] sm:$0x33] }
  0x6b   :  { %v612_v35 = vmax.bf16 %v524_v26, %v260_v25  ;;  %v525_v36 = vmax.bf16 %v437_v32, %v349_v29  ;;  %v438_v39 = vld [vmem:[%s2089_s3 + $0x228] sm:$0x33]  ;;  %v87_v40 = vld [vmem:[%s2086_s0 + $0x230] sm:$0x33]  ;;  %v88_v48 = vld [vmem:[%s2086_s0 + $0x238] sm:$0x33] }
  0x6c   :  { %702 = vst [vmem:[%s2090_s4 + $0x210] sm:$0x33] %v611_v30  ;;  %v526_v41 = vmax.bf16 %v438_v39, %v350_v38  ;;  %v175_v42 = vld [vmem:[%s2087_s1 + $0x230] sm:$0x33]  ;;  %v176_v49 = vld [vmem:[%s2087_s1 + $0x238] sm:$0x33] }
  0x6d   :  { %v351_v43 = vld [vmem:[%s2088_s2 + $0x230] sm:$0x33]  ;;  %703 = vst [vmem:[%s2090_s4 + $0x218] sm:$0x33] %v612_v35  ;;  %v613_v45 = vmax.bf16 %v525_v36, %v261_v31  ;;  %v263_v46 = vmax.bf16 %v175_v42, %v87_v40  ;;  %v352_v50 = vld [vmem:[%s2088_s2 + $0x238] sm:$0x33]  ;;  %v264_v52 = vmax.bf16 %v176_v49, %v88_v48 }
  0x6e   :  { %v439_v44 = vld [vmem:[%s2089_s3 + $0x230] sm:$0x33]  ;;  %v614_v51 = vmax.bf16 %v526_v41, %v262_v37  ;;  %v440_v53 = vld [vmem:[%s2089_s3 + $0x238] sm:$0x33]  ;;  %v89_v54 = vld [vmem:[%s2086_s0 + $0x240] sm:$0x33] }
  0x6f   :  { %v527_v47 = vmax.bf16 %v439_v44, %v351_v43  ;;  %v177_v55 = vld [vmem:[%s2087_s1 + $0x240] sm:$0x33]  ;;  %704 = vst [vmem:[%s2090_s4 + $0x220] sm:$0x33] %v613_v45  ;;  %v528_v57 = vmax.bf16 %v440_v53, %v352_v50  ;;  %v90_v61 = vld [vmem:[%s2086_s0 + $0x248] sm:$0x33] }
  0x70   :  { %v265_v58 = vmax.bf16 %v177_v55, %v89_v54  ;;  %v353_v59 = vld [vmem:[%s2088_s2 + $0x240] sm:$0x33]  ;;  %705 = vst [vmem:[%s2090_s4 + $0x228] sm:$0x33] %v614_v51  ;;  %v178_v63 = vld [vmem:[%s2087_s1 + $0x248] sm:$0x33] }
  0x71   :  { %v615_v56 = vmax.bf16 %v527_v47, %v263_v46  ;;  %v441_v60 = vld [vmem:[%s2089_s3 + $0x240] sm:$0x33]  ;;  %v354_v0 = vld [vmem:[%s2088_s2 + $0x248] sm:$0x33]  ;;  %v616_v2 = vmax.bf16 %v528_v57, %v264_v52  ;;  %v266_v3 = vmax.bf16 %v178_v63, %v90_v61  ;;  %v91_v5 = vld [vmem:[%s2086_s0 + $0x250] sm:$0x33] }
  0x72   :  { %v529_v62 = vmax.bf16 %v441_v60, %v353_v59  ;;  %v442_v1 = vld [vmem:[%s2089_s3 + $0x248] sm:$0x33]  ;;  %v179_v6 = vld [vmem:[%s2087_s1 + $0x250] sm:$0x33]  ;;  %v92_v11 = vld [vmem:[%s2086_s0 + $0x258] sm:$0x33] }
  0x73   :  { %706 = vst [vmem:[%s2090_s4 + $0x230] sm:$0x33] %v615_v56  ;;  %v530_v4 = vmax.bf16 %v442_v1, %v354_v0  ;;  %v355_v7 = vld [vmem:[%s2088_s2 + $0x250] sm:$0x33]  ;;  %v267_v9 = vmax.bf16 %v179_v6, %v91_v5  ;;  %v180_v12 = vld [vmem:[%s2087_s1 + $0x258] sm:$0x33] }
  0x74   :  { %v617_v8 = vmax.bf16 %v529_v62, %v265_v58  ;;  %v443_v10 = vld [vmem:[%s2089_s3 + $0x250] sm:$0x33]  ;;  %707 = vst [vmem:[%s2090_s4 + $0x238] sm:$0x33] %v616_v2  ;;  %v268_v15 = vmax.bf16 %v180_v12, %v92_v11  ;;  %v356_v16 = vld [vmem:[%s2088_s2 + $0x258] sm:$0x33] }
  0x75   :  { %v618_v13 = vmax.bf16 %v530_v4, %v266_v3  ;;  %v531_v14 = vmax.bf16 %v443_v10, %v355_v7  ;;  %v444_v17 = vld [vmem:[%s2089_s3 + $0x258] sm:$0x33]  ;;  %v93_v18 = vld [vmem:[%s2086_s0 + $0x260] sm:$0x33]  ;;  %v94_v26 = vld [vmem:[%s2086_s0 + $0x268] sm:$0x33] }
  0x76   :  { %708 = vst [vmem:[%s2090_s4 + $0x240] sm:$0x33] %v617_v8  ;;  %v532_v19 = vmax.bf16 %v444_v17, %v356_v16  ;;  %v181_v20 = vld [vmem:[%s2087_s1 + $0x260] sm:$0x33]  ;;  %v182_v27 = vld [vmem:[%s2087_s1 + $0x268] sm:$0x33] }
  0x77   :  { %v357_v21 = vld [vmem:[%s2088_s2 + $0x260] sm:$0x33]  ;;  %709 = vst [vmem:[%s2090_s4 + $0x248] sm:$0x33] %v618_v13  ;;  %v619_v23 = vmax.bf16 %v531_v14, %v267_v9  ;;  %v269_v24 = vmax.bf16 %v181_v20, %v93_v18  ;;  %v358_v28 = vld [vmem:[%s2088_s2 + $0x268] sm:$0x33]  ;;  %v270_v30 = vmax.bf16 %v182_v27, %v94_v26 }
  0x78   :  { %v445_v22 = vld [vmem:[%s2089_s3 + $0x260] sm:$0x33]  ;;  %v620_v29 = vmax.bf16 %v532_v19, %v268_v15  ;;  %v446_v31 = vld [vmem:[%s2089_s3 + $0x268] sm:$0x33]  ;;  %v95_v32 = vld [vmem:[%s2086_s0 + $0x270] sm:$0x33] }
  0x79   :  { %v533_v25 = vmax.bf16 %v445_v22, %v357_v21  ;;  %v183_v33 = vld [vmem:[%s2087_s1 + $0x270] sm:$0x33]  ;;  %710 = vst [vmem:[%s2090_s4 + $0x250] sm:$0x33] %v619_v23  ;;  %v534_v35 = vmax.bf16 %v446_v31, %v358_v28  ;;  %v96_v39 = vld [vmem:[%s2086_s0 + $0x278] sm:$0x33] }
  0x7a   :  { %v271_v36 = vmax.bf16 %v183_v33, %v95_v32  ;;  %v359_v37 = vld [vmem:[%s2088_s2 + $0x270] sm:$0x33]  ;;  %711 = vst [vmem:[%s2090_s4 + $0x258] sm:$0x33] %v620_v29  ;;  %v184_v41 = vld [vmem:[%s2087_s1 + $0x278] sm:$0x33] }
  0x7b   :  { %v621_v34 = vmax.bf16 %v533_v25, %v269_v24  ;;  %v447_v38 = vld [vmem:[%s2089_s3 + $0x270] sm:$0x33]  ;;  %v360_v42 = vld [vmem:[%s2088_s2 + $0x278] sm:$0x33]  ;;  %v622_v44 = vmax.bf16 %v534_v35, %v270_v30  ;;  %v272_v45 = vmax.bf16 %v184_v41, %v96_v39  ;;  %v97_v47 = vld [vmem:[%s2086_s0 + $0x280] sm:$0x33] }
  0x7c   :  { %v535_v40 = vmax.bf16 %v447_v38, %v359_v37  ;;  %v448_v43 = vld [vmem:[%s2089_s3 + $0x278] sm:$0x33]  ;;  %v185_v48 = vld [vmem:[%s2087_s1 + $0x280] sm:$0x33]  ;;  %v98_v53 = vld [vmem:[%s2086_s0 + $0x288] sm:$0x33] }
  0x7d   :  { %712 = vst [vmem:[%s2090_s4 + $0x260] sm:$0x33] %v621_v34  ;;  %v536_v46 = vmax.bf16 %v448_v43, %v360_v42  ;;  %v361_v49 = vld [vmem:[%s2088_s2 + $0x280] sm:$0x33]  ;;  %v273_v51 = vmax.bf16 %v185_v48, %v97_v47  ;;  %v186_v54 = vld [vmem:[%s2087_s1 + $0x288] sm:$0x33] }
  0x7e   :  { %v623_v50 = vmax.bf16 %v535_v40, %v271_v36  ;;  %v449_v52 = vld [vmem:[%s2089_s3 + $0x280] sm:$0x33]  ;;  %713 = vst [vmem:[%s2090_s4 + $0x268] sm:$0x33] %v622_v44  ;;  %v274_v57 = vmax.bf16 %v186_v54, %v98_v53  ;;  %v362_v58 = vld [vmem:[%s2088_s2 + $0x288] sm:$0x33] }
  0x7f   :  { %v624_v55 = vmax.bf16 %v536_v46, %v272_v45  ;;  %v537_v56 = vmax.bf16 %v449_v52, %v361_v49  ;;  %v450_v59 = vld [vmem:[%s2089_s3 + $0x288] sm:$0x33]  ;;  %v99_v60 = vld [vmem:[%s2086_s0 + $0x290] sm:$0x33]  ;;  %v100_v4 = vld [vmem:[%s2086_s0 + $0x298] sm:$0x33] }
  0x80   :  { %714 = vst [vmem:[%s2090_s4 + $0x270] sm:$0x33] %v623_v50  ;;  %v538_v61 = vmax.bf16 %v450_v59, %v362_v58  ;;  %v187_v62 = vld [vmem:[%s2087_s1 + $0x290] sm:$0x33]  ;;  %v188_v5 = vld [vmem:[%s2087_s1 + $0x298] sm:$0x33] }
  0x81   :  { %v363_v63 = vld [vmem:[%s2088_s2 + $0x290] sm:$0x33]  ;;  %715 = vst [vmem:[%s2090_s4 + $0x278] sm:$0x33] %v624_v55  ;;  %v625_v1 = vmax.bf16 %v537_v56, %v273_v51  ;;  %v275_v2 = vmax.bf16 %v187_v62, %v99_v60  ;;  %v364_v6 = vld [vmem:[%s2088_s2 + $0x298] sm:$0x33]  ;;  %v276_v8 = vmax.bf16 %v188_v5, %v100_v4 }
  0x82   :  { %v451_v0 = vld [vmem:[%s2089_s3 + $0x290] sm:$0x33]  ;;  %v626_v7 = vmax.bf16 %v538_v61, %v274_v57  ;;  %v452_v9 = vld [vmem:[%s2089_s3 + $0x298] sm:$0x33]  ;;  %v101_v10 = vld [vmem:[%s2086_s0 + $0x2a0] sm:$0x33] }
  0x83   :  { %v539_v3 = vmax.bf16 %v451_v0, %v363_v63  ;;  %v189_v11 = vld [vmem:[%s2087_s1 + $0x2a0] sm:$0x33]  ;;  %716 = vst [vmem:[%s2090_s4 + $0x280] sm:$0x33] %v625_v1  ;;  %v540_v13 = vmax.bf16 %v452_v9, %v364_v6  ;;  %v102_v17 = vld [vmem:[%s2086_s0 + $0x2a8] sm:$0x33] }
  0x84   :  { %v277_v14 = vmax.bf16 %v189_v11, %v101_v10  ;;  %v365_v15 = vld [vmem:[%s2088_s2 + $0x2a0] sm:$0x33]  ;;  %717 = vst [vmem:[%s2090_s4 + $0x288] sm:$0x33] %v626_v7  ;;  %v190_v19 = vld [vmem:[%s2087_s1 + $0x2a8] sm:$0x33] }
  0x85   :  { %v627_v12 = vmax.bf16 %v539_v3, %v275_v2  ;;  %v453_v16 = vld [vmem:[%s2089_s3 + $0x2a0] sm:$0x33]  ;;  %v366_v20 = vld [vmem:[%s2088_s2 + $0x2a8] sm:$0x33]  ;;  %v628_v22 = vmax.bf16 %v540_v13, %v276_v8  ;;  %v278_v23 = vmax.bf16 %v190_v19, %v102_v17  ;;  %v103_v25 = vld [vmem:[%s2086_s0 + $0x2b0] sm:$0x33] }
  0x86   :  { %v541_v18 = vmax.bf16 %v453_v16, %v365_v15  ;;  %v454_v21 = vld [vmem:[%s2089_s3 + $0x2a8] sm:$0x33]  ;;  %v191_v26 = vld [vmem:[%s2087_s1 + $0x2b0] sm:$0x33]  ;;  %v104_v31 = vld [vmem:[%s2086_s0 + $0x2b8] sm:$0x33] }
  0x87   :  { %718 = vst [vmem:[%s2090_s4 + $0x290] sm:$0x33] %v627_v12  ;;  %v542_v24 = vmax.bf16 %v454_v21, %v366_v20  ;;  %v367_v27 = vld [vmem:[%s2088_s2 + $0x2b0] sm:$0x33]  ;;  %v279_v29 = vmax.bf16 %v191_v26, %v103_v25  ;;  %v192_v32 = vld [vmem:[%s2087_s1 + $0x2b8] sm:$0x33] }
  0x88   :  { %v629_v28 = vmax.bf16 %v541_v18, %v277_v14  ;;  %v455_v30 = vld [vmem:[%s2089_s3 + $0x2b0] sm:$0x33]  ;;  %719 = vst [vmem:[%s2090_s4 + $0x298] sm:$0x33] %v628_v22  ;;  %v280_v35 = vmax.bf16 %v192_v32, %v104_v31  ;;  %v368_v36 = vld [vmem:[%s2088_s2 + $0x2b8] sm:$0x33] }
  0x89   :  { %v630_v33 = vmax.bf16 %v542_v24, %v278_v23  ;;  %v543_v34 = vmax.bf16 %v455_v30, %v367_v27  ;;  %v456_v37 = vld [vmem:[%s2089_s3 + $0x2b8] sm:$0x33] }
  0x8a   :  { %720 = vst [vmem:[%s2090_s4 + $0x2a0] sm:$0x33] %v629_v28  ;;  %v544_v38 = vmax.bf16 %v456_v37, %v368_v36 }
  0x8b   :  { %721 = vst [vmem:[%s2090_s4 + $0x2a8] sm:$0x33] %v630_v33  ;;  %v631_v39 = vmax.bf16 %v543_v34, %v279_v29 }
  0x8c   :  { %v632_v40 = vmax.bf16 %v544_v38, %v280_v35 }
  0x8d   :  { %722 = vst [vmem:[%s2090_s4 + $0x2b0] sm:$0x33] %v631_v39 }
  0x8e   :  { %726 = vst.msk [vmem:[%s2090_s4 + $0x2b8] sm:$0x33] %vm725_vm5, %v632_v40 }

// kernel: convnet_forward.7
= control target key start
LH: loop header
LB: loop body
LE: loop exit
PB: predicated region body
PF: predicated region fallthrough
CT: control target
= control target key end

     0   :  { %s3296_s15 = smov 0   ;;  %s3298_s16 = smov 0   ;;  %s4194_s0 = inlined_call_operand.vmem [shape: bf16[20,108], index: 0, kind: input, shape index: {}]   ;;  %s4195_s1 = inlined_call_operand.vmem [shape: f32[20,1], index: 1, kind: input, shape index: {}]   ;;  %s4196_s2 = inlined_call_operand.vmem [shape: f32[20,1], index: 2, kind: input, shape index: {}]   ;;  %s4197_s3 = inlined_call_operand.vmem [shape: bf16[108,11250], index: 3, kind: input, shape index: {}]   ;;  %s4198_s4 = inlined_call_operand.vmem [shape: bf16[20,11250], index: 4, kind: output, shape index: {}]  }
   0x1   :  { %s3300_s17 = smov 0  }
   0x2 LB: > { %s2703_s18 = sadd.s32 4294967295, %s3268_s17   ;;  %s3313_s19 = sadd.s32 1, %s3268_s17   ;;  %s3268_s17 = sphi %s3300_s17, %s4202_s17   ;;  %s3264_s16 = sphi %s3298_s16, %s4201_s16   ;;  %s3260_s15 = sphi %s3296_s15, %s4200_s15  }
   0x3   : > { %s81_s20 = ssub.s32 %s3268_s17, %s3313_s19  ;;  %s84_s21 = sadd.s32 1, %s3264_s16 }
   0x4   : > { %p82_p0 = scmp.eq.s32.totalorder %s81_s20, 0  ;;  %p91_p1 = scmp.ne.s32.totalorder %s3264_s16, %s3260_s15 }
   0x5   : > { %p92_p2 = scmp.eq.s32.totalorder %s3268_s17, 0  ;;  %p121_p3 = scmp.eq.s32.totalorder %s2703_s18, 3 }
   0x6   : > { %s3324_s22 = scalar_select %p82_p0, %s3264_s16, %s84_s21  }
   0x7   : > { %p93_p4 = por %p92_p2, %p91_p1  ;;  %p3326_p5 = por %p121_p3, %p91_p1 }
   0x8   : > { %p2706_p6 = scmp.ge.s32.totalorder %s3268_s17, 4 }
   0xa   : > { %152 = sbr.rel (%p2706_p6) target bundleno = 99 (0x63), region = 28 }
  0x11   : > { %155 = sbr.rel (!%p93_p4) target bundleno = 99 (0x63), region = 32  ;;  %s157_s24 = sand.u32 (%p93_p4), 1, %s3264_s16  }
  0x12   : > { %s2934_s25 = smul.u32 (%p93_p4), 88, %s3268_s17 }
  0x13   : > { %s2983_s26 = smul.u32 (%p93_p4), 1232, %s157_s24 }
  0x14   : > { %s3336_s29 = scalar_lea.vmem (%p93_p4), %s4197_s3, %s2934_s25 }
  0x15   : > { %v175_v0 = vld [vmem:[%s3336_s29] sm:$0xff] (%p93_p4)  ;;  %v177_v1 = vld [vmem:[%s3336_s29 + $0x8] sm:$0xff] (%p93_p4)  ;;  %v179_v2 = vld [vmem:[%s3336_s29 + $0x10] sm:$0xff] (%p93_p4)  ;;  %s3341_s30 = scalar_lea.vmem (%p93_p4), [#allocation2], %s2983_s26 }
  0x16   : > { %176 = vst [vmem:[%s3341_s30] sm:$0xff] (%p93_p4), %v175_v0  ;;  %178 = vst [vmem:[%s3341_s30 + $0x8] sm:$0xff] (%p93_p4), %v177_v1  ;;  %v181_v3 = vld [vmem:[%s3336_s29 + $0x18] sm:$0xff] (%p93_p4)  ;;  %v183_v4 = vld [vmem:[%s3336_s29 + $0x20] sm:$0xff] (%p93_p4) }
  0x17   : > { %180 = vst [vmem:[%s3341_s30 + $0x10] sm:$0xff] (%p93_p4), %v179_v2  ;;  %v185_v5 = vld [vmem:[%s3336_s29 + $0x28] sm:$0xff] (%p93_p4)  ;;  %182 = vst [vmem:[%s3341_s30 + $0x18] sm:$0xff] (%p93_p4), %v181_v3  ;;  %v187_v6 = vld [vmem:[%s3336_s29 + $0x30] sm:$0xff] (%p93_p4) }
  0x18   : > { %184 = vst [vmem:[%s3341_s30 + $0x20] sm:$0xff] %v183_v4  ;;  %186 = vst [vmem:[%s3341_s30 + $0x28] sm:$0xff] %v185_v5  ;;  %v189_v7 = vld [vmem:[%s3336_s29 + $0x38] sm:$0xff]  ;;  %v191_v8 = vld [vmem:[%s3336_s29 + $0x40] sm:$0xff] }
  0x19   : > { %188 = vst [vmem:[%s3341_s30 + $0x30] sm:$0xff] %v187_v6  ;;  %190 = vst [vmem:[%s3341_s30 + $0x38] sm:$0xff] %v189_v7  ;;  %v193_v9 = vld [vmem:[%s3336_s29 + $0x48] sm:$0xff]  ;;  %v195_v10 = vld [vmem:[%s3336_s29 + $0x50] sm:$0xff] }
  0x1a   : > { %192 = vst [vmem:[%s3341_s30 + $0x40] sm:$0xff] %v191_v8  ;;  %v197_v11 = vld [vmem:[%s3336_s29 + $0x160] sm:$0xff]  ;;  %194 = vst [vmem:[%s3341_s30 + $0x48] sm:$0xff] %v193_v9  ;;  %v199_v12 = vld [vmem:[%s3336_s29 + $0x168] sm:$0xff] }
  0x1b   : > { %196 = vst [vmem:[%s3341_s30 + $0x50] sm:$0xff] %v195_v10  ;;  %198 = vst [vmem:[%s3341_s30 + $0x58] sm:$0xff] %v197_v11  ;;  %v201_v13 = vld [vmem:[%s3336_s29 + $0x170] sm:$0xff]  ;;  %v203_v14 = vld [vmem:[%s3336_s29 + $0x178] sm:$0xff] }
  0x1c   : > { %200 = vst [vmem:[%s3341_s30 + $0x60] sm:$0xff] %v199_v12  ;;  %202 = vst [vmem:[%s3341_s30 + $0x68] sm:$0xff] %v201_v13  ;;  %v205_v15 = vld [vmem:[%s3336_s29 + $0x180] sm:$0xff]  ;;  %v207_v16 = vld [vmem:[%s3336_s29 + $0x188] sm:$0xff] }
  0x1d   : > { %204 = vst [vmem:[%s3341_s30 + $0x70] sm:$0xff] %v203_v14  ;;  %v209_v17 = vld [vmem:[%s3336_s29 + $0x190] sm:$0xff]  ;;  %206 = vst [vmem:[%s3341_s30 + $0x78] sm:$0xff] %v205_v15  ;;  %v211_v18 = vld [vmem:[%s3336_s29 + $0x198] sm:$0xff] }
  0x1e   : > { %208 = vst [vmem:[%s3341_s30 + $0x80] sm:$0xff] %v207_v16  ;;  %210 = vst [vmem:[%s3341_s30 + $0x88] sm:$0xff] %v209_v17  ;;  %v213_v19 = vld [vmem:[%s3336_s29 + $0x1a0] sm:$0xff]  ;;  %v215_v20 = vld [vmem:[%s3336_s29 + $0x1a8] sm:$0xff] }
  0x1f   : > { %212 = vst [vmem:[%s3341_s30 + $0x90] sm:$0xff] %v211_v18  ;;  %214 = vst [vmem:[%s3341_s30 + $0x98] sm:$0xff] %v213_v19  ;;  %v217_v21 = vld [vmem:[%s3336_s29 + $0x1b0] sm:$0xff]  ;;  %v219_v22 = vld [vmem:[%s3336_s29 + $0x2c0] sm:$0xff] }
  0x20   : > { %216 = vst [vmem:[%s3341_s30 + $0xa0] sm:$0xff] %v215_v20  ;;  %v221_v23 = vld [vmem:[%s3336_s29 + $0x2c8] sm:$0xff]  ;;  %218 = vst [vmem:[%s3341_s30 + $0xa8] sm:$0xff] %v217_v21  ;;  %v223_v24 = vld [vmem:[%s3336_s29 + $0x2d0] sm:$0xff] }
  0x21   : > { %220 = vst [vmem:[%s3341_s30 + $0xb0] sm:$0xff] %v219_v22  ;;  %222 = vst [vmem:[%s3341_s30 + $0xb8] sm:$0xff] %v221_v23  ;;  %v225_v25 = vld [vmem:[%s3336_s29 + $0x2d8] sm:$0xff]  ;;  %v227_v26 = vld [vmem:[%s3336_s29 + $0x2e0] sm:$0xff] }
  0x22   : > { %224 = vst [vmem:[%s3341_s30 + $0xc0] sm:$0xff] %v223_v24  ;;  %226 = vst [vmem:[%s3341_s30 + $0xc8] sm:$0xff] %v225_v25  ;;  %v229_v27 = vld [vmem:[%s3336_s29 + $0x2e8] sm:$0xff]  ;;  %v231_v28 = vld [vmem:[%s3336_s29 + $0x2f0] sm:$0xff] }
  0x23   : > { %228 = vst [vmem:[%s3341_s30 + $0xd0] sm:$0xff] %v227_v26  ;;  %v233_v29 = vld [vmem:[%s3336_s29 + $0x2f8] sm:$0xff]  ;;  %230 = vst [vmem:[%s3341_s30 + $0xd8] sm:$0xff] %v229_v27  ;;  %v235_v30 = vld [vmem:[%s3336_s29 + $0x300] sm:$0xff] }
  0x24   : > { %232 = vst [vmem:[%s3341_s30 + $0xe0] sm:$0xff] %v231_v28  ;;  %234 = vst [vmem:[%s3341_s30 + $0xe8] sm:$0xff] %v233_v29  ;;  %v237_v31 = vld [vmem:[%s3336_s29 + $0x308] sm:$0xff]  ;;  %v239_v32 = vld [vmem:[%s3336_s29 + $0x310] sm:$0xff] }
  0x25   : > { %236 = vst [vmem:[%s3341_s30 + $0xf0] sm:$0xff] %v235_v30  ;;  %238 = vst [vmem:[%s3341_s30 + $0xf8] sm:$0xff] %v237_v31  ;;  %v241_v33 = vld [vmem:[%s3336_s29 + $0x420] sm:$0xff]  ;;  %v243_v34 = vld [vmem:[%s3336_s29 + $0x428] sm:$0xff] }
  0x26   : > { %240 = vst [vmem:[%s3341_s30 + $0x100] sm:$0xff] %v239_v32  ;;  %v245_v35 = vld [vmem:[%s3336_s29 + $0x430] sm:$0xff]  ;;  %242 = vst [vmem:[%s3341_s30 + $0x108] sm:$0xff] %v241_v33  ;;  %v247_v36 = vld [vmem:[%s3336_s29 + $0x438] sm:$0xff] }
  0x27   : > { %244 = vst [vmem:[%s3341_s30 + $0x110] sm:$0xff] %v243_v34  ;;  %246 = vst [vmem:[%s3341_s30 + $0x118] sm:$0xff] %v245_v35  ;;  %v249_v37 = vld [vmem:[%s3336_s29 + $0x440] sm:$0xff]  ;;  %v251_v38 = vld [vmem:[%s3336_s29 + $0x448] sm:$0xff] }
  0x28   : > { %248 = vst [vmem:[%s3341_s30 + $0x120] sm:$0xff] %v247_v36  ;;  %250 = vst [vmem:[%s3341_s30 + $0x128] sm:$0xff] %v249_v37  ;;  %v253_v39 = vld [vmem:[%s3336_s29 + $0x450] sm:$0xff]  ;;  %v255_v40 = vld [vmem:[%s3336_s29 + $0x458] sm:$0xff] }
  0x29   : > { %252 = vst [vmem:[%s3341_s30 + $0x130] sm:$0xff] %v251_v38  ;;  %v257_v41 = vld [vmem:[%s3336_s29 + $0x460] sm:$0xff]  ;;  %254 = vst [vmem:[%s3341_s30 + $0x138] sm:$0xff] %v253_v39  ;;  %v259_v42 = vld [vmem:[%s3336_s29 + $0x468] sm:$0xff] }
  0x2a   : > { %256 = vst [vmem:[%s3341_s30 + $0x140] sm:$0xff] %v255_v40  ;;  %258 = vst [vmem:[%s3341_s30 + $0x148] sm:$0xff] %v257_v41  ;;  %v261_v43 = vld [vmem:[%s3336_s29 + $0x470] sm:$0xff]  ;;  %v263_v44 = vld [vmem:[%s3336_s29 + $0x580] sm:$0xff] }
  0x2b   : > { %260 = vst [vmem:[%s3341_s30 + $0x150] sm:$0xff] %v259_v42  ;;  %262 = vst [vmem:[%s3341_s30 + $0x158] sm:$0xff] %v261_v43  ;;  %v265_v45 = vld [vmem:[%s3336_s29 + $0x588] sm:$0xff]  ;;  %v267_v46 = vld [vmem:[%s3336_s29 + $0x590] sm:$0xff] }
  0x2c   : > { %264 = vst [vmem:[%s3341_s30 + $0x160] sm:$0xff] %v263_v44  ;;  %v269_v47 = vld [vmem:[%s3336_s29 + $0x598] sm:$0xff]  ;;  %266 = vst [vmem:[%s3341_s30 + $0x168] sm:$0xff] %v265_v45  ;;  %v271_v48 = vld [vmem:[%s3336_s29 + $0x5a0] sm:$0xff] }
  0x2d   : > { %268 = vst [vmem:[%s3341_s30 + $0x170] sm:$0xff] %v267_v46  ;;  %270 = vst [vmem:[%s3341_s30 + $0x178] sm:$0xff] %v269_v47  ;;  %v273_v49 = vld [vmem:[%s3336_s29 + $0x5a8] sm:$0xff]  ;;  %v275_v50 = vld [vmem:[%s3336_s29 + $0x5b0] sm:$0xff] }
  0x2e   : > { %272 = vst [vmem:[%s3341_s30 + $0x180] sm:$0xff] %v271_v48  ;;  %274 = vst [vmem:[%s3341_s30 + $0x188] sm:$0xff] %v273_v49  ;;  %v277_v51 = vld [vmem:[%s3336_s29 + $0x5b8] sm:$0xff]  ;;  %v279_v52 = vld [vmem:[%s3336_s29 + $0x5c0] sm:$0xff] }
  0x2f   : > { %276 = vst [vmem:[%s3341_s30 + $0x190] sm:$0xff] %v275_v50  ;;  %v281_v53 = vld [vmem:[%s3336_s29 + $0x5c8] sm:$0xff]  ;;  %278 = vst [vmem:[%s3341_s30 + $0x198] sm:$0xff] %v277_v51  ;;  %v283_v54 = vld [vmem:[%s3336_s29 + $0x5d0] sm:$0xff] }
  0x30   : > { %280 = vst [vmem:[%s3341_s30 + $0x1a0] sm:$0xff] %v279_v52  ;;  %282 = vst [vmem:[%s3341_s30 + $0x1a8] sm:$0xff] %v281_v53  ;;  %v285_v55 = vld [vmem:[%s3336_s29 + $0x6e0] sm:$0xff]  ;;  %v287_v56 = vld [vmem:[%s3336_s29 + $0x6e8] sm:$0xff] }
  0x31   : > { %284 = vst [vmem:[%s3341_s30 + $0x1b0] sm:$0xff] %v283_v54  ;;  %286 = vst [vmem:[%s3341_s30 + $0x1b8] sm:$0xff] %v285_v55  ;;  %v289_v57 = vld [vmem:[%s3336_s29 + $0x6f0] sm:$0xff]  ;;  %v291_v58 = vld [vmem:[%s3336_s29 + $0x6f8] sm:$0xff] }
  0x32   : > { %288 = vst [vmem:[%s3341_s30 + $0x1c0] sm:$0xff] %v287_v56  ;;  %v293_v59 = vld [vmem:[%s3336_s29 + $0x700] sm:$0xff]  ;;  %290 = vst [vmem:[%s3341_s30 + $0x1c8] sm:$0xff] %v289_v57  ;;  %v295_v60 = vld [vmem:[%s3336_s29 + $0x708] sm:$0xff] }
  0x33   : > { %292 = vst [vmem:[%s3341_s30 + $0x1d0] sm:$0xff] %v291_v58  ;;  %294 = vst [vmem:[%s3341_s30 + $0x1d8] sm:$0xff] %v293_v59  ;;  %v297_v61 = vld [vmem:[%s3336_s29 + $0x710] sm:$0xff]  ;;  %v299_v62 = vld [vmem:[%s3336_s29 + $0x718] sm:$0xff] }
  0x34   : > { %296 = vst [vmem:[%s3341_s30 + $0x1e0] sm:$0xff] %v295_v60  ;;  %298 = vst [vmem:[%s3341_s30 + $0x1e8] sm:$0xff] %v297_v61  ;;  %v301_v63 = vld [vmem:[%s3336_s29 + $0x720] sm:$0xff]  ;;  %v303_v0 = vld [vmem:[%s3336_s29 + $0x728] sm:$0xff] }
  0x35   : > { %300 = vst [vmem:[%s3341_s30 + $0x1f0] sm:$0xff] %v299_v62  ;;  %v305_v1 = vld [vmem:[%s3336_s29 + $0x730] sm:$0xff]  ;;  %302 = vst [vmem:[%s3341_s30 + $0x1f8] sm:$0xff] %v301_v63  ;;  %v307_v2 = vld [vmem:[%s3336_s29 + $0x840] sm:$0xff] }
  0x36   : > { %304 = vst [vmem:[%s3341_s30 + $0x200] sm:$0xff] %v303_v0  ;;  %306 = vst [vmem:[%s3341_s30 + $0x208] sm:$0xff] %v305_v1  ;;  %v309_v3 = vld [vmem:[%s3336_s29 + $0x848] sm:$0xff]  ;;  %v311_v4 = vld [vmem:[%s3336_s29 + $0x850] sm:$0xff] }
  0x37   : > { %308 = vst [vmem:[%s3341_s30 + $0x210] sm:$0xff] %v307_v2  ;;  %310 = vst [vmem:[%s3341_s30 + $0x218] sm:$0xff] %v309_v3  ;;  %v313_v5 = vld [vmem:[%s3336_s29 + $0x858] sm:$0xff]  ;;  %v315_v6 = vld [vmem:[%s3336_s29 + $0x860] sm:$0xff] }
  0x38   : > { %312 = vst [vmem:[%s3341_s30 + $0x220] sm:$0xff] %v311_v4  ;;  %v317_v7 = vld [vmem:[%s3336_s29 + $0x868] sm:$0xff]  ;;  %314 = vst [vmem:[%s3341_s30 + $0x228] sm:$0xff] %v313_v5  ;;  %v319_v8 = vld [vmem:[%s3336_s29 + $0x870] sm:$0xff] }
  0x39   : > { %316 = vst [vmem:[%s3341_s30 + $0x230] sm:$0xff] %v315_v6  ;;  %318 = vst [vmem:[%s3341_s30 + $0x238] sm:$0xff] %v317_v7  ;;  %v321_v9 = vld [vmem:[%s3336_s29 + $0x878] sm:$0xff]  ;;  %v323_v10 = vld [vmem:[%s3336_s29 + $0x880] sm:$0xff] }
  0x3a   : > { %320 = vst [vmem:[%s3341_s30 + $0x240] sm:$0xff] %v319_v8  ;;  %322 = vst [vmem:[%s3341_s30 + $0x248] sm:$0xff] %v321_v9  ;;  %v325_v11 = vld [vmem:[%s3336_s29 + $0x888] sm:$0xff]  ;;  %v327_v12 = vld [vmem:[%s3336_s29 + $0x890] sm:$0xff] }
  0x3b   : > { %324 = vst [vmem:[%s3341_s30 + $0x250] sm:$0xff] %v323_v10  ;;  %v329_v13 = vld [vmem:[%s3336_s29 + $0x9a0] sm:$0xff]  ;;  %326 = vst [vmem:[%s3341_s30 + $0x258] sm:$0xff] %v325_v11  ;;  %v331_v14 = vld [vmem:[%s3336_s29 + $0x9a8] sm:$0xff] }
  0x3c   : > { %328 = vst [vmem:[%s3341_s30 + $0x260] sm:$0xff] %v327_v12  ;;  %330 = vst [vmem:[%s3341_s30 + $0x268] sm:$0xff] %v329_v13  ;;  %v333_v15 = vld [vmem:[%s3336_s29 + $0x9b0] sm:$0xff]  ;;  %v335_v16 = vld [vmem:[%s3336_s29 + $0x9b8] sm:$0xff] }
  0x3d   : > { %332 = vst [vmem:[%s3341_s30 + $0x270] sm:$0xff] %v331_v14  ;;  %334 = vst [vmem:[%s3341_s30 + $0x278] sm:$0xff] %v333_v15  ;;  %v337_v17 = vld [vmem:[%s3336_s29 + $0x9c0] sm:$0xff]  ;;  %v339_v18 = vld [vmem:[%s3336_s29 + $0x9c8] sm:$0xff] }
  0x3e   : > { %336 = vst [vmem:[%s3341_s30 + $0x280] sm:$0xff] %v335_v16  ;;  %v341_v19 = vld [vmem:[%s3336_s29 + $0x9d0] sm:$0xff]  ;;  %338 = vst [vmem:[%s3341_s30 + $0x288] sm:$0xff] %v337_v17  ;;  %v343_v20 = vld [vmem:[%s3336_s29 + $0x9d8] sm:$0xff] }
  0x3f   : > { %340 = vst [vmem:[%s3341_s30 + $0x290] sm:$0xff] %v339_v18  ;;  %342 = vst [vmem:[%s3341_s30 + $0x298] sm:$0xff] %v341_v19  ;;  %v345_v21 = vld [vmem:[%s3336_s29 + $0x9e0] sm:$0xff]  ;;  %v347_v22 = vld [vmem:[%s3336_s29 + $0x9e8] sm:$0xff] }
  0x40   : > { %344 = vst [vmem:[%s3341_s30 + $0x2a0] sm:$0xff] %v343_v20  ;;  %346 = vst [vmem:[%s3341_s30 + $0x2a8] sm:$0xff] %v345_v21  ;;  %v349_v23 = vld [vmem:[%s3336_s29 + $0x9f0] sm:$0xff]  ;;  %v351_v24 = vld [vmem:[%s3336_s29 + $0xb00] sm:$0xff] }
  0x41   : > { %348 = vst [vmem:[%s3341_s30 + $0x2b0] sm:$0xff] %v347_v22  ;;  %v353_v25 = vld [vmem:[%s3336_s29 + $0xb08] sm:$0xff]  ;;  %350 = vst [vmem:[%s3341_s30 + $0x2b8] sm:$0xff] %v349_v23  ;;  %v355_v26 = vld [vmem:[%s3336_s29 + $0xb10] sm:$0xff] }
  0x42   : > { %352 = vst [vmem:[%s3341_s30 + $0x2c0] sm:$0xff] %v351_v24  ;;  %354 = vst [vmem:[%s3341_s30 + $0x2c8] sm:$0xff] %v353_v25  ;;  %v357_v27 = vld [vmem:[%s3336_s29 + $0xb18] sm:$0xff]  ;;  %v359_v28 = vld [vmem:[%s3336_s29 + $0xb20] sm:$0xff] }
  0x43   : > { %356 = vst [vmem:[%s3341_s30 + $0x2d0] sm:$0xff] %v355_v26  ;;  %358 = vst [vmem:[%s3341_s30 + $0x2d8] sm:$0xff] %v357_v27  ;;  %v361_v29 = vld [vmem:[%s3336_s29 + $0xb28] sm:$0xff]  ;;  %v363_v30 = vld [vmem:[%s3336_s29 + $0xb30] sm:$0xff] }
  0x44   : > { %360 = vst [vmem:[%s3341_s30 + $0x2e0] sm:$0xff] %v359_v28  ;;  %v365_v31 = vld [vmem:[%s3336_s29 + $0xb38] sm:$0xff]  ;;  %362 = vst [vmem:[%s3341_s30 + $0x2e8] sm:$0xff] %v361_v29  ;;  %v367_v32 = vld [vmem:[%s3336_s29 + $0xb40] sm:$0xff] }
  0x45   : > { %364 = vst [vmem:[%s3341_s30 + $0x2f0] sm:$0xff] %v363_v30  ;;  %366 = vst [vmem:[%s3341_s30 + $0x2f8] sm:$0xff] %v365_v31  ;;  %v369_v33 = vld [vmem:[%s3336_s29 + $0xb48] sm:$0xff]  ;;  %v371_v34 = vld [vmem:[%s3336_s29 + $0xb50] sm:$0xff] }
  0x46   : > { %368 = vst [vmem:[%s3341_s30 + $0x300] sm:$0xff] %v367_v32  ;;  %370 = vst [vmem:[%s3341_s30 + $0x308] sm:$0xff] %v369_v33  ;;  %v373_v35 = vld [vmem:[%s3336_s29 + $0xc60] sm:$0xff]  ;;  %v375_v36 = vld [vmem:[%s3336_s29 + $0xc68] sm:$0xff] }
  0x47   : > { %372 = vst [vmem:[%s3341_s30 + $0x310] sm:$0xff] %v371_v34  ;;  %v377_v37 = vld [vmem:[%s3336_s29 + $0xc70] sm:$0xff]  ;;  %374 = vst [vmem:[%s3341_s30 + $0x318] sm:$0xff] %v373_v35  ;;  %v379_v38 = vld [vmem:[%s3336_s29 + $0xc78] sm:$0xff] }
  0x48   : > { %376 = vst [vmem:[%s3341_s30 + $0x320] sm:$0xff] %v375_v36  ;;  %378 = vst [vmem:[%s3341_s30 + $0x328] sm:$0xff] %v377_v37  ;;  %v381_v39 = vld [vmem:[%s3336_s29 + $0xc80] sm:$0xff]  ;;  %v383_v40 = vld [vmem:[%s3336_s29 + $0xc88] sm:$0xff] }
  0x49   : > { %380 = vst [vmem:[%s3341_s30 + $0x330] sm:$0xff] %v379_v38  ;;  %382 = vst [vmem:[%s3341_s30 + $0x338] sm:$0xff] %v381_v39  ;;  %v385_v41 = vld [vmem:[%s3336_s29 + $0xc90] sm:$0xff]  ;;  %v387_v42 = vld [vmem:[%s3336_s29 + $0xc98] sm:$0xff] }
  0x4a   : > { %384 = vst [vmem:[%s3341_s30 + $0x340] sm:$0xff] %v383_v40  ;;  %v389_v43 = vld [vmem:[%s3336_s29 + $0xca0] sm:$0xff]  ;;  %386 = vst [vmem:[%s3341_s30 + $0x348] sm:$0xff] %v385_v41  ;;  %v391_v44 = vld [vmem:[%s3336_s29 + $0xca8] sm:$0xff] }
  0x4b   : > { %388 = vst [vmem:[%s3341_s30 + $0x350] sm:$0xff] %v387_v42  ;;  %390 = vst [vmem:[%s3341_s30 + $0x358] sm:$0xff] %v389_v43  ;;  %v393_v45 = vld [vmem:[%s3336_s29 + $0xcb0] sm:$0xff]  ;;  %v395_v46 = vld [vmem:[%s3336_s29 + $0xdc0] sm:$0xff] }
  0x4c   : > { %392 = vst [vmem:[%s3341_s30 + $0x360] sm:$0xff] %v391_v44  ;;  %394 = vst [vmem:[%s3341_s30 + $0x368] sm:$0xff] %v393_v45  ;;  %v397_v47 = vld [vmem:[%s3336_s29 + $0xdc8] sm:$0xff]  ;;  %v399_v48 = vld [vmem:[%s3336_s29 + $0xdd0] sm:$0xff] }
  0x4d   : > { %396 = vst [vmem:[%s3341_s30 + $0x370] sm:$0xff] %v395_v46  ;;  %v401_v49 = vld [vmem:[%s3336_s29 + $0xdd8] sm:$0xff]  ;;  %398 = vst [vmem:[%s3341_s30 + $0x378] sm:$0xff] %v397_v47  ;;  %v403_v50 = vld [vmem:[%s3336_s29 + $0xde0] sm:$0xff] }
  0x4e   : > { %400 = vst [vmem:[%s3341_s30 + $0x380] sm:$0xff] %v399_v48  ;;  %402 = vst [vmem:[%s3341_s30 + $0x388] sm:$0xff] %v401_v49  ;;  %v405_v51 = vld [vmem:[%s3336_s29 + $0xde8] sm:$0xff]  ;;  %v407_v52 = vld [vmem:[%s3336_s29 + $0xdf0] sm:$0xff] }
  0x4f   : > { %404 = vst [vmem:[%s3341_s30 + $0x390] sm:$0xff] %v403_v50  ;;  %406 = vst [vmem:[%s3341_s30 + $0x398] sm:$0xff] %v405_v51  ;;  %v409_v53 = vld [vmem:[%s3336_s29 + $0xdf8] sm:$0xff]  ;;  %v411_v54 = vld [vmem:[%s3336_s29 + $0xe00] sm:$0xff] }
  0x50   : > { %408 = vst [vmem:[%s3341_s30 + $0x3a0] sm:$0xff] %v407_v52  ;;  %v413_v55 = vld [vmem:[%s3336_s29 + $0xe08] sm:$0xff]  ;;  %410 = vst [vmem:[%s3341_s30 + $0x3a8] sm:$0xff] %v409_v53  ;;  %v415_v56 = vld [vmem:[%s3336_s29 + $0xe10] sm:$0xff] }
  0x51   : > { %412 = vst [vmem:[%s3341_s30 + $0x3b0] sm:$0xff] %v411_v54  ;;  %414 = vst [vmem:[%s3341_s30 + $0x3b8] sm:$0xff] %v413_v55  ;;  %v417_v57 = vld [vmem:[%s3336_s29 + $0xf20] sm:$0xff]  ;;  %v419_v58 = vld [vmem:[%s3336_s29 + $0xf28] sm:$0xff] }
  0x52   : > { %416 = vst [vmem:[%s3341_s30 + $0x3c0] sm:$0xff] %v415_v56  ;;  %418 = vst [vmem:[%s3341_s30 + $0x3c8] sm:$0xff] %v417_v57  ;;  %v421_v59 = vld [vmem:[%s3336_s29 + $0xf30] sm:$0xff]  ;;  %v423_v60 = vld [vmem:[%s3336_s29 + $0xf38] sm:$0xff] }
  0x53   : > { %420 = vst [vmem:[%s3341_s30 + $0x3d0] sm:$0xff] %v419_v58  ;;  %v425_v61 = vld [vmem:[%s3336_s29 + $0xf40] sm:$0xff]  ;;  %422 = vst [vmem:[%s3341_s30 + $0x3d8] sm:$0xff] %v421_v59  ;;  %v427_v62 = vld [vmem:[%s3336_s29 + $0xf48] sm:$0xff] }
  0x54   : > { %424 = vst [vmem:[%s3341_s30 + $0x3e0] sm:$0xff] %v423_v60  ;;  %426 = vst [vmem:[%s3341_s30 + $0x3e8] sm:$0xff] %v425_v61  ;;  %v429_v63 = vld [vmem:[%s3336_s29 + $0xf50] sm:$0xff]  ;;  %v431_v0 = vld [vmem:[%s3336_s29 + $0xf58] sm:$0xff] }
  0x55   : > { %428 = vst [vmem:[%s3341_s30 + $0x3f0] sm:$0xff] %v427_v62  ;;  %430 = vst [vmem:[%s3341_s30 + $0x3f8] sm:$0xff] %v429_v63  ;;  %v433_v1 = vld [vmem:[%s3336_s29 + $0xf60] sm:$0xff]  ;;  %v435_v2 = vld [vmem:[%s3336_s29 + $0xf68] sm:$0xff] }
  0x56   : > { %432 = vst [vmem:[%s3341_s30 + $0x400] sm:$0xff] %v431_v0  ;;  %v437_v3 = vld [vmem:[%s3336_s29 + $0xf70] sm:$0xff]  ;;  %434 = vst [vmem:[%s3341_s30 + $0x408] sm:$0xff] %v433_v1  ;;  %v439_v4 = vld [vmem:[%s3336_s29 + $0x1080] sm:$0xff] }
  0x57   : > { %436 = vst [vmem:[%s3341_s30 + $0x410] sm:$0xff] %v435_v2  ;;  %438 = vst [vmem:[%s3341_s30 + $0x418] sm:$0xff] %v437_v3  ;;  %v441_v5 = vld [vmem:[%s3336_s29 + $0x1088] sm:$0xff]  ;;  %v443_v6 = vld [vmem:[%s3336_s29 + $0x1090] sm:$0xff] }
  0x58   : > { %440 = vst [vmem:[%s3341_s30 + $0x420] sm:$0xff] %v439_v4  ;;  %442 = vst [vmem:[%s3341_s30 + $0x428] sm:$0xff] %v441_v5  ;;  %v445_v7 = vld [vmem:[%s3336_s29 + $0x1098] sm:$0xff]  ;;  %v447_v8 = vld [vmem:[%s3336_s29 + $0x10a0] sm:$0xff] }
  0x59   : > { %444 = vst [vmem:[%s3341_s30 + $0x430] sm:$0xff] %v443_v6  ;;  %v449_v9 = vld [vmem:[%s3336_s29 + $0x10a8] sm:$0xff]  ;;  %446 = vst [vmem:[%s3341_s30 + $0x438] sm:$0xff] %v445_v7  ;;  %v451_v10 = vld [vmem:[%s3336_s29 + $0x10b0] sm:$0xff] }
  0x5a   : > { %448 = vst [vmem:[%s3341_s30 + $0x440] sm:$0xff] %v447_v8  ;;  %450 = vst [vmem:[%s3341_s30 + $0x448] sm:$0xff] %v449_v9  ;;  %v453_v11 = vld [vmem:[%s3336_s29 + $0x10b8] sm:$0xff]  ;;  %v455_v12 = vld [vmem:[%s3336_s29 + $0x10c0] sm:$0xff] }
  0x5b   : > { %452 = vst [vmem:[%s3341_s30 + $0x450] sm:$0xff] %v451_v10  ;;  %454 = vst [vmem:[%s3341_s30 + $0x458] sm:$0xff] %v453_v11  ;;  %v457_v13 = vld [vmem:[%s3336_s29 + $0x10c8] sm:$0xff]  ;;  %v459_v14 = vld [vmem:[%s3336_s29 + $0x10d0] sm:$0xff] }
  0x5c   : > { %456 = vst [vmem:[%s3341_s30 + $0x460] sm:$0xff] %v455_v12  ;;  %v461_v15 = vld [vmem:[%s3336_s29 + $0x11e0] sm:$0xff]  ;;  %458 = vst [vmem:[%s3341_s30 + $0x468] sm:$0xff] %v457_v13  ;;  %v463_v16 = vld [vmem:[%s3336_s29 + $0x11e8] sm:$0xff] }
  0x5d   : > { %460 = vst [vmem:[%s3341_s30 + $0x470] sm:$0xff] %v459_v14  ;;  %462 = vst [vmem:[%s3341_s30 + $0x478] sm:$0xff] %v461_v15  ;;  %v465_v17 = vld [vmem:[%s3336_s29 + $0x11f0] sm:$0xff]  ;;  %v467_v18 = vld [vmem:[%s3336_s29 + $0x11f8] sm:$0xff] }
  0x5e   : > { %464 = vst [vmem:[%s3341_s30 + $0x480] sm:$0xff] %v463_v16  ;;  %466 = vst [vmem:[%s3341_s30 + $0x488] sm:$0xff] %v465_v17  ;;  %v469_v19 = vld [vmem:[%s3336_s29 + $0x1200] sm:$0xff]  ;;  %v471_v20 = vld [vmem:[%s3336_s29 + $0x1208] sm:$0xff] }
  0x5f   : > { %468 = vst [vmem:[%s3341_s30 + $0x490] sm:$0xff] %v467_v18  ;;  %v473_v21 = vld [vmem:[%s3336_s29 + $0x1210] sm:$0xff]  ;;  %470 = vst [vmem:[%s3341_s30 + $0x498] sm:$0xff] %v469_v19  ;;  %v475_v22 = vld [vmem:[%s3336_s29 + $0x1218] sm:$0xff] }
  0x60   : > { %472 = vst [vmem:[%s3341_s30 + $0x4a0] sm:$0xff] %v471_v20  ;;  %474 = vst [vmem:[%s3341_s30 + $0x4a8] sm:$0xff] %v473_v21  ;;  %v477_v23 = vld [vmem:[%s3336_s29 + $0x1220] sm:$0xff]  ;;  %v479_v24 = vld [vmem:[%s3336_s29 + $0x1228] sm:$0xff] }
  0x61   : > { %476 = vst [vmem:[%s3341_s30 + $0x4b0] sm:$0xff] %v475_v22  ;;  %478 = vst [vmem:[%s3341_s30 + $0x4b8] sm:$0xff] %v477_v23  ;;  %v481_v25 = vld [vmem:[%s3336_s29 + $0x1230] sm:$0xff] }
  0x62   : > { %480 = vst [vmem:[%s3341_s30 + $0x4c0] sm:$0xff] %v479_v24  ;;  %482 = vst [vmem:[%s3341_s30 + $0x4c8] sm:$0xff] %v481_v25 }
  0x63 PF: > { %p2708_p7 = scmp.ge.s32.totalorder %s3268_s17, 1  ;;  %p487_p8 = scmp.lt.s32.totalorder %s3268_s17, 5 }
  0x65   : > { %p488_p9 = pnand %p2708_p7, %p487_p8 }
  0x66   : > { %s494_s5 = sand.u32 (!%p488_p9), 1, %s3260_s15   ;;  %v3270_v26 = vmov (!%p488_p9), 0   ;;  %v2069_v27 = vld [vmem:[%s4195_s1] sm:$0xff] (!%p488_p9)  ;;  %v2071_v28 = vld [vmem:[%s4195_s1 + $0x10] sm:$0xf] (!%p488_p9)  ;;  %v2070_v29 = vld [vmem:[%s4195_s1 + $0x8] sm:$0xff] (!%p488_p9) }
  0x67   : > { %491 = sbr.rel (%p488_p9) target bundleno = 509 (0x1fd), region = 55  ;;  %1540 = vmatprep.mubr.bf16.mxu0 (!%p488_p9), %v3270_v26  ;;  %1591 = vmatprep.mubr.bf16.mxu1 (!%p488_p9), %v3270_v26  ;;  %v2153_v31 = vld [vmem:[%s4196_s2] sm:$0xff] (!%p488_p9)  ;;  %v2154_v35 = vld [vmem:[%s4196_s2 + $0x8] sm:$0xff] (!%p488_p9)  ;;  %vm1441_vm0 = vcmask (!%p488_p9), 1045504   ;;  %vm1434_vm1 = vcmask (!%p488_p9), 883712  }
  0x68   : > { %s2984_s6 = smul.u32 (!%p488_p9), 1232, %s494_s5  ;;  %3011 = vset.pattern.permute.xlu0 (!%p488_p9), %v3270_v26  ;;  %3012 = vset.pattern.permute.xlu1 (!%p488_p9), %v3270_v26  ;;  %v3711_v0 = vld [vmem:[%s4194_s0] sm:$0xff] (!%p488_p9)   ;;  %v3729_v9 = vld [vmem:[%s4194_s0 + $0x8] ss:$0 sps:$4 sm:$0x33] (!%p488_p9)  }
  0x69   : > { %2074 = vperm.xlu0 (!%p488_p9), %3011, %v2069_v27   ;;  %2084 = vperm.xlu1 (!%p488_p9), %3012, %v2071_v28  }
  0x6a   : > { %s3666_s13 = scalar_lea.vmem (!%p488_p9), [#allocation2], %s2984_s6  ;;  %s2985_s6 = smul.u32 (!%p488_p9), 264, %s494_s5 }
  0x6b   : > { %v3013_v30 = vld [vmem:[%s3666_s13 + $0x4] ss:$88 sps:$4 sm:$0xff] (!%p488_p9)   ;;  %v3017_v33 = vld [vmem:[%s3666_s13] ss:$88 sps:$4 sm:$0xff] (!%p488_p9)   ;;  %v3019_v36 = vld [vmem:[%s3666_s13 + $0xb4] ss:$88 sps:$4 sm:$0xff] (!%p488_p9)  }
  0x6c   : > { %v3015_v32 = vld [vmem:[%s3666_s13 + $0xc] ss:$88 sps:$4 sm:$0xff] (!%p488_p9)   ;;  %1508 = vmatprep.subr.bf16.mxu0 (!%p488_p9), %v3013_v30  ;;  %v3018_v34 = vld [vmem:[%s3666_s13 + $0x8] ss:$88 sps:$4 sm:$0xff] (!%p488_p9)   ;;  %v3021_v37 = vld [vmem:[%s3666_s13 + $0xbc] ss:$88 sps:$4 sm:$0xff] (!%p488_p9)  }
  0x6d   : > { %1559 = vmatprep.subr.bf16.mxu1 (!%p488_p9), %v3015_v32  ;;  %2079 = vperm.xlu0 (!%p488_p9), %3011, %v2070_v29   ;;  %v3023_v38 = vld [vmem:[%s3666_s13 + $0xb0] ss:$88 sps:$4 sm:$0xff] (!%p488_p9)   ;;  %v3025_v40 = vld [vmem:[%s3666_s13 + $0x164] ss:$88 sps:$4 sm:$0xff] (!%p488_p9)   ;;  %v3029_v42 = vld [vmem:[%s3666_s13 + $0x160] ss:$88 sps:$4 sm:$0xff] (!%p488_p9)  }
  0x6e   : > { %1509 = vmatpush1.bf16.msra.mxu0 %v3017_v33  ;;  %1560 = vmatpush1.bf16.msra.mxu1 %v3018_v34  ;;  %v3024_v39 = vld [vmem:[%s3666_s13 + $0xb8] ss:$88 sps:$4 sm:$0xff]   ;;  %v3027_v41 = vld [vmem:[%s3666_s13 + $0x16c] ss:$88 sps:$4 sm:$0xff]   ;;  %v3030_v43 = vld [vmem:[%s3666_s13 + $0x168] ss:$88 sps:$4 sm:$0xff]  }
  0x6f   : > { %1510 = vmatprep.subr.bf16.mxu0 %v3019_v36  ;;  %2158 = vperm.xlu1 %3012, %v2153_v31   ;;  %v3031_v44 = vld [vmem:[%s3666_s13 + $0x214] ss:$88 sps:$4 sm:$0xff]   ;;  %v3035_v46 = vld [vmem:[%s3666_s13 + $0x210] ss:$88 sps:$4 sm:$0xff]   ;;  %v3037_v48 = vld [vmem:[%s3666_s13 + $0x2c4] ss:$88 sps:$4 sm:$0xff]  }
  0x70   : > { %1561 = vmatprep.subr.bf16.mxu1 %v3021_v37  ;;  %v3033_v45 = vld [vmem:[%s3666_s13 + $0x21c] ss:$88 sps:$4 sm:$0xff]   ;;  %v3036_v47 = vld [vmem:[%s3666_s13 + $0x218] ss:$88 sps:$4 sm:$0xff]   ;;  %v3039_v49 = vld [vmem:[%s3666_s13 + $0x2cc] ss:$88 sps:$4 sm:$0xff]  }
  0x71   : > { %2163 = vperm.xlu0 %3011, %v2154_v35   ;;  %v3041_v50 = vld [vmem:[%s3666_s13 + $0x2c0] ss:$88 sps:$4 sm:$0xff]   ;;  %v3043_v52 = vld [vmem:[%s3666_s13 + $0x374] ss:$88 sps:$4 sm:$0xff]   ;;  %v3047_v54 = vld [vmem:[%s3666_s13 + $0x370] ss:$88 sps:$4 sm:$0xff]  }
  0x72   : > { %1511 = vmatpush1.bf16.msra.mxu0 %v3023_v38  ;;  %1562 = vmatpush1.bf16.msra.mxu1 %v3024_v39  ;;  %v3042_v51 = vld [vmem:[%s3666_s13 + $0x2c8] ss:$88 sps:$4 sm:$0xff]   ;;  %v3045_v53 = vld [vmem:[%s3666_s13 + $0x37c] ss:$88 sps:$4 sm:$0xff]   ;;  %v3048_v55 = vld [vmem:[%s3666_s13 + $0x378] ss:$88 sps:$4 sm:$0xff]  }
  0x73   : > { %1512 = vmatprep.subr.bf16.mxu0 %v3025_v40  ;;  %1563 = vmatprep.subr.bf16.mxu1 %v3027_v41  ;;  %v3049_v56 = vld [vmem:[%s3666_s13 + $0x424] ss:$88 sps:$4 sm:$0x3f]   ;;  %v3053_v58 = vld [vmem:[%s3666_s13 + $0x420] ss:$88 sps:$4 sm:$0x3f]  }
  0x74   : > { %v3051_v57 = vld [vmem:[%s3666_s13 + $0x42c] ss:$88 sps:$4 sm:$0x3f]   ;;  %v3054_v59 = vld [vmem:[%s3666_s13 + $0x428] ss:$88 sps:$4 sm:$0x3f]  }
  0x75   : > { %v1443_v60 = vsel %vm1441_vm0, %v3053_v58, 0  ;;  %v1449_v61 = vsel %vm1441_vm0, %v3054_v59, 0  ;;  %v3058_v62 = vld [vmem:[%s3666_s13 + $0x14] ss:$88 sps:$4 sm:$0xff]   ;;  %v3056_v1 = vld [vmem:[%s3666_s13 + $0x10] ss:$88 sps:$4 sm:$0xff]  }
  0x76   : > { %1513 = vmatpush1.bf16.msra.mxu0 %v3029_v42  ;;  %1564 = vmatpush1.bf16.msra.mxu1 %v3030_v43  ;;  %v3061_v63 = vld [vmem:[%s3666_s13 + $0x1c] ss:$88 sps:$4 sm:$0xff]   ;;  %v3059_v2 = vld [vmem:[%s3666_s13 + $0x18] ss:$88 sps:$4 sm:$0xff]   ;;  %v3067_v4 = vld [vmem:[%s3666_s13 + $0xcc] ss:$88 sps:$4 sm:$0xff]  }
  0x77   : > { %1514 = vmatprep.subr.bf16.mxu0 %v3031_v44  ;;  %1565 = vmatprep.subr.bf16.mxu1 %v3033_v45  ;;  %v3064_v3 = vld [vmem:[%s3666_s13 + $0xc4] ss:$88 sps:$4 sm:$0xff]   ;;  %v3062_v5 = vld [vmem:[%s3666_s13 + $0xc0] ss:$88 sps:$4 sm:$0xff]   ;;  %v3070_v7 = vld [vmem:[%s3666_s13 + $0x174] ss:$88 sps:$4 sm:$0xff]  }
  0x78   : > { %v3065_v6 = vld [vmem:[%s3666_s13 + $0xc8] ss:$88 sps:$4 sm:$0xff]   ;;  %v3073_v8 = vld [vmem:[%s3666_s13 + $0x17c] ss:$88 sps:$4 sm:$0xff]   ;;  %v3071_v11 = vld [vmem:[%s3666_s13 + $0x178] ss:$88 sps:$4 sm:$0xff]  }
  0x79   : > { %v3068_v10 = vld [vmem:[%s3666_s13 + $0x170] ss:$88 sps:$4 sm:$0xff]   ;;  %v3076_v12 = vld [vmem:[%s3666_s13 + $0x224] ss:$88 sps:$4 sm:$0xff]   ;;  %v3074_v14 = vld [vmem:[%s3666_s13 + $0x220] ss:$88 sps:$4 sm:$0xff]  }
  0x7a   : > { %1515 = vmatpush1.bf16.msra.mxu0 %v3035_v46  ;;  %1566 = vmatpush1.bf16.msra.mxu1 %v3036_v47  ;;  %v3079_v13 = vld [vmem:[%s3666_s13 + $0x22c] ss:$88 sps:$4 sm:$0xff]   ;;  %v3077_v15 = vld [vmem:[%s3666_s13 + $0x228] ss:$88 sps:$4 sm:$0xff]   ;;  %v3085_v17 = vld [vmem:[%s3666_s13 + $0x2dc] ss:$88 sps:$4 sm:$0xff]  }
  0x7b   : > { %1516 = vmatprep.subr.bf16.mxu0 %v3037_v48  ;;  %1567 = vmatprep.subr.bf16.mxu1 %v3039_v49  ;;  %v3082_v16 = vld [vmem:[%s3666_s13 + $0x2d4] ss:$88 sps:$4 sm:$0xff]   ;;  %v3080_v18 = vld [vmem:[%s3666_s13 + $0x2d0] ss:$88 sps:$4 sm:$0xff]   ;;  %v3089_v20 = vld [vmem:[%s3666_s13 + $0x384] ss:$88 sps:$4 sm:$0xff]  }
  0x7c   : > { %v3083_v19 = vld [vmem:[%s3666_s13 + $0x2d8] ss:$88 sps:$4 sm:$0xff]   ;;  %v3092_v21 = vld [vmem:[%s3666_s13 + $0x38c] ss:$88 sps:$4 sm:$0xff]   ;;  %v3090_v25 = vld [vmem:[%s3666_s13 + $0x388] ss:$88 sps:$4 sm:$0xff]  }
  0x7d   : > { %v3087_v22 = vld [vmem:[%s3666_s13 + $0x380] ss:$88 sps:$4 sm:$0xff]   ;;  %v3093_v23 = vld [vmem:[%s3666_s13 + $0x434] ss:$88 sps:$4 sm:$0x3f]   ;;  %s3960_s15 = scalar_lea.vmem [#allocation3], %s2985_s6 }
  0x7e   : > { %1517 = vmatpush1.bf16.msra.mxu0 %v3041_v50  ;;  %1568 = vmatpush1.bf16.msra.mxu1 %v3042_v51  ;;  %v3095_v24 = vld [vmem:[%s3666_s13 + $0x43c] ss:$88 sps:$4 sm:$0x3f]   ;;  %v3097_v27 = vld [vmem:[%s3666_s13 + $0x430] ss:$88 sps:$4 sm:$0x3f]  }
  0x7f   : > { %1518 = vmatprep.subr.bf16.mxu0 %v3043_v52  ;;  %1569 = vmatprep.subr.bf16.mxu1 %v3045_v53  ;;  %v3098_v28 = vld [vmem:[%s3666_s13 + $0x438] ss:$88 sps:$4 sm:$0x3f]   ;;  %v1455_v29 = vsel %vm1441_vm0, %v3097_v27, 0  ;;  %v3101_v31 = vld [vmem:[%s3666_s13 + $0x24] ss:$88 sps:$4 sm:$0xff]  }
  0x80   : > { %v1461_v30 = vsel %vm1441_vm0, %v3098_v28, 0  ;;  %v3104_v32 = vld [vmem:[%s3666_s13 + $0x2c] ss:$88 sps:$4 sm:$0xff]   ;;  %v3099_v33 = vld [vmem:[%s3666_s13 + $0x20] ss:$88 sps:$4 sm:$0xff]   ;;  %s2968_s5 = smul.u32 (%p3326_p5), 88, %s2703_s18 }
  0x81   : > { %v3102_v34 = vld [vmem:[%s3666_s13 + $0x28] ss:$88 sps:$4 sm:$0xff]   ;;  %v3107_v35 = vld [vmem:[%s3666_s13 + $0xd4] ss:$88 sps:$4 sm:$0xff]   ;;  %v3108_v38 = vld [vmem:[%s3666_s13 + $0xd8] ss:$88 sps:$4 sm:$0xff]  }
  0x82   : > { %1519 = vmatpush1.bf16.msra.mxu0 %v3047_v54  ;;  %1570 = vmatpush1.bf16.msra.mxu1 %v3048_v55  ;;  %v3110_v36 = vld [vmem:[%s3666_s13 + $0xdc] ss:$88 sps:$4 sm:$0xff]   ;;  %v3105_v37 = vld [vmem:[%s3666_s13 + $0xd0] ss:$88 sps:$4 sm:$0xff]   ;;  %v3116_v40 = vld [vmem:[%s3666_s13 + $0x18c] ss:$88 sps:$4 sm:$0xff]   ;;  %s4122_s7 = scalar_lea.vmem (%p3326_p5), %s4198_s4, %s2968_s5 }
  0x83   : > { %2865 = vmatprep.subr.msk.bf16.mxu0 %vm1441_vm0, %v3049_v56  ;;  %2868 = vmatprep.subr.msk.bf16.mxu1 %vm1441_vm0, %v3051_v57  ;;  %v3113_v39 = vld [vmem:[%s3666_s13 + $0x184] ss:$88 sps:$4 sm:$0xff]   ;;  %v3111_v41 = vld [vmem:[%s3666_s13 + $0x180] ss:$88 sps:$4 sm:$0xff]   ;;  %v3119_v43 = vld [vmem:[%s3666_s13 + $0x234] ss:$88 sps:$4 sm:$0xff]  }
  0x84   : > { %v3114_v42 = vld [vmem:[%s3666_s13 + $0x188] ss:$88 sps:$4 sm:$0xff]   ;;  %v3122_v44 = vld [vmem:[%s3666_s13 + $0x23c] ss:$88 sps:$4 sm:$0xff]   ;;  %v3120_v46 = vld [vmem:[%s3666_s13 + $0x238] ss:$88 sps:$4 sm:$0xff]  }
  0x85   : > { %v3117_v45 = vld [vmem:[%s3666_s13 + $0x230] ss:$88 sps:$4 sm:$0xff]   ;;  %v3125_v47 = vld [vmem:[%s3666_s13 + $0x2e4] ss:$88 sps:$4 sm:$0xff]   ;;  %v3123_v49 = vld [vmem:[%s3666_s13 + $0x2e0] ss:$88 sps:$4 sm:$0xff]  }
  0x86   : > { %1521 = vmatpush1.bf16.msra.mxu0 %v1443_v60  ;;  %1572 = vmatpush1.bf16.msra.mxu1 %v1449_v61  ;;  %v3128_v48 = vld [vmem:[%s3666_s13 + $0x2ec] ss:$88 sps:$4 sm:$0xff]   ;;  %v3126_v50 = vld [vmem:[%s3666_s13 + $0x2e8] ss:$88 sps:$4 sm:$0xff]   ;;  %v3134_v52 = vld [vmem:[%s3666_s13 + $0x39c] ss:$88 sps:$4 sm:$0xff]  }
  0x87   : > { %1610 = vmatprep.subr.bf16.mxu0 %v3058_v62  ;;  %1661 = vmatprep.subr.bf16.mxu1 %v3061_v63  ;;  %v3131_v51 = vld [vmem:[%s3666_s13 + $0x394] ss:$88 sps:$4 sm:$0xff]   ;;  %v3129_v53 = vld [vmem:[%s3666_s13 + $0x390] ss:$88 sps:$4 sm:$0xff]  }
  0x88   : > { %v3132_v54 = vld [vmem:[%s3666_s13 + $0x398] ss:$88 sps:$4 sm:$0xff]   ;;  %v3135_v55 = vld [vmem:[%s3666_s13 + $0x444] ss:$88 sps:$4 sm:$0x3f]  }
  0x89   : > { %2866 = vmatmul.mubr.msk.bf16.vlgmr.msra.gmra.mrb[0].mxu0 %vm1434_vm1, %v3711_v0  ;;  %2869 = vmatmul.mubr.msk.bf16.vlgmr.msra.gmra.mrb[0].mxu1 %vm1434_vm1, %v3711_v0  ;;  %v3137_v56 = vld [vmem:[%s3666_s13 + $0x44c] ss:$88 sps:$4 sm:$0x3f]   ;;  %v3139_v57 = vld [vmem:[%s3666_s13 + $0x440] ss:$88 sps:$4 sm:$0x3f]  }
  0x8a   : > { %1611 = vmatpush1.bf16.msra.mxu0 %v3056_v1  ;;  %1662 = vmatpush1.bf16.msra.mxu1 %v3059_v2  ;;  %v3140_v58 = vld [vmem:[%s3666_s13 + $0x448] ss:$88 sps:$4 sm:$0x3f]   ;;  %v3143_v59 = vld [vmem:[%s3666_s13 + $0x34] ss:$88 sps:$4 sm:$0xff]   ;;  %v1467_v60 = vsel %vm1441_vm0, %v3139_v57, 0 }
  0x8b   : > { %1612 = vmatprep.subr.bf16.mxu0 %v3064_v3  ;;  %1663 = vmatprep.subr.bf16.mxu1 %v3067_v4  ;;  %v1473_v61 = vsel %vm1441_vm0, %v3140_v58, 0  ;;  %v3146_v62 = vld [vmem:[%s3666_s13 + $0x3c] ss:$88 sps:$4 sm:$0xff]   ;;  %v3141_v63 = vld [vmem:[%s3666_s13 + $0x30] ss:$88 sps:$4 sm:$0xff]  }
  0x8c   : > { %1550 = vmatprep.mubr.bf16.mxu0 %v3270_v26  ;;  %1601 = vmatprep.mubr.bf16.mxu1 %v3270_v26  ;;  %v3144_v1 = vld [vmem:[%s3666_s13 + $0x38] ss:$88 sps:$4 sm:$0xff]   ;;  %v3149_v2 = vld [vmem:[%s3666_s13 + $0xe4] ss:$88 sps:$4 sm:$0xff]  }
  0x8d   : > { %v3152_v3 = vld [vmem:[%s3666_s13 + $0xec] ss:$88 sps:$4 sm:$0xff]   ;;  %v3147_v4 = vld [vmem:[%s3666_s13 + $0xe0] ss:$88 sps:$4 sm:$0xff]  }
  0x8e   : > { %1613 = vmatpush1.bf16.msra.mxu0 %v3062_v5  ;;  %1664 = vmatpush1.bf16.msra.mxu1 %v3065_v6  ;;  %v3150_v5 = vld [vmem:[%s3666_s13 + $0xe8] ss:$88 sps:$4 sm:$0xff]   ;;  %v3155_v6 = vld [vmem:[%s3666_s13 + $0x194] ss:$88 sps:$4 sm:$0xff]  }
  0x8f   : > { %1614 = vmatprep.subr.bf16.mxu0 %v3070_v7  ;;  %1665 = vmatprep.subr.bf16.mxu1 %v3073_v8  ;;  %v3158_v7 = vld [vmem:[%s3666_s13 + $0x19c] ss:$88 sps:$4 sm:$0xff]   ;;  %v3153_v8 = vld [vmem:[%s3666_s13 + $0x190] ss:$88 sps:$4 sm:$0xff]  }
  0x90   : > { %v3181_v27 = vld [vmem:[%s3666_s13 + $0x450] ss:$88 sps:$4 sm:$0x3f]   ;;  %v3223_v57 = vld [vmem:[%s3666_s13 + $0x460] ss:$88 sps:$4 sm:$0x3f]  }
  0x91   : > { %2867 = vmatmul.mubr.msk.bf16.gmra.mrb[4].mxu0 %vm1434_vm1, %v3729_v9  ;;  %2870 = vmatmul.mubr.msk.bf16.gmra.mrb[4].mxu1 %vm1434_vm1, %v3729_v9  ;;  %v3182_v28 = vld [vmem:[%s3666_s13 + $0x458] ss:$88 sps:$4 sm:$0x3f]   ;;  %v3224_v58 = vld [vmem:[%s3666_s13 + $0x468] ss:$88 sps:$4 sm:$0x3f]  }
  0x92   : > { %1615 = vmatpush1.bf16.msra.mxu0 %v3068_v10  ;;  %1666 = vmatpush1.bf16.msra.mxu1 %v3071_v11  ;;  %v3156_v10 = vld [vmem:[%s3666_s13 + $0x198] ss:$88 sps:$4 sm:$0xff]   ;;  %v3161_v11 = vld [vmem:[%s3666_s13 + $0x244] ss:$88 sps:$4 sm:$0xff]  }
  0x93   : > { %1616 = vmatprep.subr.bf16.mxu0 %v3076_v12  ;;  %1667 = vmatprep.subr.bf16.mxu1 %v3079_v13  ;;  %v2155_v12 = vld [vmem:[%s4196_s2 + $0x10] sm:$0xf]  ;;  %v3164_v13 = vld [vmem:[%s3666_s13 + $0x24c] ss:$88 sps:$4 sm:$0xff]  }
  0x94   : > { %1642 = vmatprep.mubr.bf16.mxu0 %v3270_v26  ;;  %1693 = vmatprep.mubr.bf16.mxu1 %v3270_v26 }
  0x95   : > { %2168 = vperm.xlu1 %3012, %v2155_v12   ;;  %v3245_v12 = vld [vmem:[%s3666_s13 + $0x470] ss:$88 sps:$4 sm:$0x3f]  }
  0x96   : > { %1617 = vmatpush1.bf16.msra.mxu0 %v3074_v14  ;;  %1668 = vmatpush1.bf16.msra.mxu1 %v3077_v15  ;;  %v3159_v14 = vld [vmem:[%s3666_s13 + $0x240] ss:$88 sps:$4 sm:$0xff]  }
  0x97   : > { %1618 = vmatprep.subr.bf16.mxu0 %v3082_v16  ;;  %1669 = vmatprep.subr.bf16.mxu1 %v3085_v17  ;;  %v3162_v15 = vld [vmem:[%s3666_s13 + $0x248] ss:$88 sps:$4 sm:$0xff]   ;;  %v3167_v16 = vld [vmem:[%s3666_s13 + $0x2f4] ss:$88 sps:$4 sm:$0xff]  }
  0x98   : > { %v3170_v17 = vld [vmem:[%s3666_s13 + $0x2fc] ss:$88 sps:$4 sm:$0xff]  }
  0x9a   : > { %1619 = vmatpush1.bf16.msra.mxu0 %v3080_v18  ;;  %1670 = vmatpush1.bf16.msra.mxu1 %v3083_v19  ;;  %v3165_v18 = vld [vmem:[%s3666_s13 + $0x2f0] ss:$88 sps:$4 sm:$0xff]  }
  0x9b   : > { %1620 = vmatprep.subr.bf16.mxu0 %v3089_v20  ;;  %1671 = vmatprep.subr.bf16.mxu1 %v3092_v21  ;;  %v3168_v19 = vld [vmem:[%s3666_s13 + $0x2f8] ss:$88 sps:$4 sm:$0xff]   ;;  %v3173_v20 = vld [vmem:[%s3666_s13 + $0x3a4] ss:$88 sps:$4 sm:$0xff]  }
  0x9c   : > { %v3176_v21 = vld [vmem:[%s3666_s13 + $0x3ac] ss:$88 sps:$4 sm:$0xff]  }
  0x9e   : > { %1621 = vmatpush1.bf16.msra.mxu0 %v3087_v22  ;;  %1672 = vmatpush1.bf16.msra.mxu1 %v3090_v25  ;;  %v3171_v22 = vld [vmem:[%s3666_s13 + $0x3a0] ss:$88 sps:$4 sm:$0xff]   ;;  %v3179_v25 = vld [vmem:[%s3666_s13 + $0x45c] ss:$88 sps:$4 sm:$0x3f]  }
  0x9f   : > { %2871 = vmatprep.subr.msk.bf16.mxu0 %vm1441_vm0, %v3093_v23  ;;  %2874 = vmatprep.subr.msk.bf16.mxu1 %vm1441_vm0, %v3095_v24  ;;  %v3174_v23 = vld [vmem:[%s3666_s13 + $0x3a8] ss:$88 sps:$4 sm:$0xff]   ;;  %v3177_v24 = vld [vmem:[%s3666_s13 + $0x454] ss:$88 sps:$4 sm:$0x3f]  }
  0xa2   : > { %1623 = vmatpush1.bf16.msra.mxu0 %v1455_v29  ;;  %1674 = vmatpush1.bf16.msra.mxu1 %v1461_v30  ;;  %v1479_v29 = vsel %vm1441_vm0, %v3181_v27, 0  ;;  %v1485_v30 = vsel %vm1441_vm0, %v3182_v28, 0 }
  0xa3   : > { %1712 = vmatprep.subr.bf16.mxu0 %v3101_v31  ;;  %1763 = vmatprep.subr.bf16.mxu1 %v3104_v32  ;;  %v3185_v31 = vld [vmem:[%s3666_s13 + $0x44] ss:$88 sps:$4 sm:$0xff]  }
  0xa4   : > { %v3188_v32 = vld [vmem:[%s3666_s13 + $0x4c] ss:$88 sps:$4 sm:$0xff]  }
  0xa5   : > { %2872 = vmatmul.mubr.msk.bf16.vlgmr.msra.gmra.mrb[8].mxu0 %vm1434_vm1, %v3711_v0  ;;  %2875 = vmatmul.mubr.msk.bf16.vlgmr.msra.gmra.mrb[8].mxu1 %vm1434_vm1, %v3711_v0 }
  0xa6   : > { %1713 = vmatpush1.bf16.msra.mxu0 %v3099_v33  ;;  %1764 = vmatpush1.bf16.msra.mxu1 %v3102_v34  ;;  %v3183_v33 = vld [vmem:[%s3666_s13 + $0x40] ss:$88 sps:$4 sm:$0xff]  }
  0xa7   : > { %1714 = vmatprep.subr.bf16.mxu0 %v3107_v35  ;;  %1765 = vmatprep.subr.bf16.mxu1 %v3110_v36  ;;  %v3186_v34 = vld [vmem:[%s3666_s13 + $0x48] ss:$88 sps:$4 sm:$0xff]   ;;  %v3191_v35 = vld [vmem:[%s3666_s13 + $0xf4] ss:$88 sps:$4 sm:$0xff]  }
  0xa8   : > { %1652 = vmatprep.mubr.bf16.mxu0 %v3270_v26  ;;  %1703 = vmatprep.mubr.bf16.mxu1 %v3270_v26  ;;  %v3194_v36 = vld [vmem:[%s3666_s13 + $0xfc] ss:$88 sps:$4 sm:$0xff]  }
  0xaa   : > { %1715 = vmatpush1.bf16.msra.mxu0 %v3105_v37  ;;  %1766 = vmatpush1.bf16.msra.mxu1 %v3108_v38  ;;  %v3189_v37 = vld [vmem:[%s3666_s13 + $0xf0] ss:$88 sps:$4 sm:$0xff]  }
  0xab   : > { %1716 = vmatprep.subr.bf16.mxu0 %v3113_v39  ;;  %1767 = vmatprep.subr.bf16.mxu1 %v3116_v40  ;;  %v3192_v38 = vld [vmem:[%s3666_s13 + $0xf8] ss:$88 sps:$4 sm:$0xff]   ;;  %v3197_v39 = vld [vmem:[%s3666_s13 + $0x1a4] ss:$88 sps:$4 sm:$0xff]  }
  0xac   : > { %v3200_v40 = vld [vmem:[%s3666_s13 + $0x1ac] ss:$88 sps:$4 sm:$0xff]  }
  0xad   : > { %2873 = vmatmul.mubr.msk.bf16.gmra.mrb[12].mxu0 %vm1434_vm1, %v3729_v9  ;;  %2876 = vmatmul.mubr.msk.bf16.gmra.mrb[12].mxu1 %vm1434_vm1, %v3729_v9 }
  0xae   : > { %1717 = vmatpush1.bf16.msra.mxu0 %v3111_v41  ;;  %1768 = vmatpush1.bf16.msra.mxu1 %v3114_v42  ;;  %v3195_v41 = vld [vmem:[%s3666_s13 + $0x1a0] ss:$88 sps:$4 sm:$0xff]  }
  0xaf   : > { %1718 = vmatprep.subr.bf16.mxu0 %v3119_v43  ;;  %1769 = vmatprep.subr.bf16.mxu1 %v3122_v44  ;;  %v3198_v42 = vld [vmem:[%s3666_s13 + $0x1a8] ss:$88 sps:$4 sm:$0xff]   ;;  %v3203_v43 = vld [vmem:[%s3666_s13 + $0x254] ss:$88 sps:$4 sm:$0xff]  }
  0xb0   : > { %1744 = vmatprep.mubr.bf16.mxu0 %v3270_v26  ;;  %1795 = vmatprep.mubr.bf16.mxu1 %v3270_v26  ;;  %v3206_v44 = vld [vmem:[%s3666_s13 + $0x25c] ss:$88 sps:$4 sm:$0xff]  }
  0xb2   : > { %1719 = vmatpush1.bf16.msra.mxu0 %v3117_v45  ;;  %1770 = vmatpush1.bf16.msra.mxu1 %v3120_v46  ;;  %v3201_v45 = vld [vmem:[%s3666_s13 + $0x250] ss:$88 sps:$4 sm:$0xff]  }
  0xb3   : > { %1720 = vmatprep.subr.bf16.mxu0 %v3125_v47  ;;  %1771 = vmatprep.subr.bf16.mxu1 %v3128_v48  ;;  %v3204_v46 = vld [vmem:[%s3666_s13 + $0x258] ss:$88 sps:$4 sm:$0xff]   ;;  %v3209_v47 = vld [vmem:[%s3666_s13 + $0x304] ss:$88 sps:$4 sm:$0xff]  }
  0xb4   : > { %v3212_v48 = vld [vmem:[%s3666_s13 + $0x30c] ss:$88 sps:$4 sm:$0xff]  }
  0xb6   : > { %1721 = vmatpush1.bf16.msra.mxu0 %v3123_v49  ;;  %1772 = vmatpush1.bf16.msra.mxu1 %v3126_v50  ;;  %v3207_v49 = vld [vmem:[%s3666_s13 + $0x300] ss:$88 sps:$4 sm:$0xff]  }
  0xb7   : > { %1722 = vmatprep.subr.bf16.mxu0 %v3131_v51  ;;  %1773 = vmatprep.subr.bf16.mxu1 %v3134_v52  ;;  %v3210_v50 = vld [vmem:[%s3666_s13 + $0x308] ss:$88 sps:$4 sm:$0xff]   ;;  %v3215_v51 = vld [vmem:[%s3666_s13 + $0x3b4] ss:$88 sps:$4 sm:$0xff]  }
  0xb8   : > { %v3218_v52 = vld [vmem:[%s3666_s13 + $0x3bc] ss:$88 sps:$4 sm:$0xff]  }
  0xba   : > { %1723 = vmatpush1.bf16.msra.mxu0 %v3129_v53  ;;  %1774 = vmatpush1.bf16.msra.mxu1 %v3132_v54  ;;  %v3213_v53 = vld [vmem:[%s3666_s13 + $0x3b0] ss:$88 sps:$4 sm:$0xff]  }
  0xbb   : > { %2877 = vmatprep.subr.msk.bf16.mxu0 %vm1441_vm0, %v3135_v55  ;;  %2880 = vmatprep.subr.msk.bf16.mxu1 %vm1441_vm0, %v3137_v56  ;;  %v3216_v54 = vld [vmem:[%s3666_s13 + $0x3b8] ss:$88 sps:$4 sm:$0xff]   ;;  %v3219_v55 = vld [vmem:[%s3666_s13 + $0x464] ss:$88 sps:$4 sm:$0x3f]  }
  0xbc   : > { %v3221_v56 = vld [vmem:[%s3666_s13 + $0x46c] ss:$88 sps:$4 sm:$0x3f]  }
  0xbe   : > { %1725 = vmatpush1.bf16.msra.mxu0 %v1467_v60  ;;  %1776 = vmatpush1.bf16.msra.mxu1 %v1473_v61  ;;  %v1497_v60 = vsel %vm1441_vm0, %v3224_v58, 0  ;;  %v3227_v61 = vld [vmem:[%s3666_s13 + $0x54] ss:$88 sps:$4 sm:$0xff]  }
  0xbf   : > { %1814 = vmatprep.subr.bf16.mxu0 %v3143_v59  ;;  %1865 = vmatprep.subr.bf16.mxu1 %v3146_v62  ;;  %v1491_v59 = vsel %vm1441_vm0, %v3223_v57, 0  ;;  %v3225_v62 = vld [vmem:[%s3666_s13 + $0x50] ss:$88 sps:$4 sm:$0xff]  }
  0xc1   : > { %2878 = vmatmul.mubr.msk.bf16.vlgmr.msra.gmra.mrb[16].mxu0 %vm1434_vm1, %v3711_v0  ;;  %2881 = vmatmul.mubr.msk.bf16.vlgmr.msra.gmra.mrb[16].mxu1 %vm1434_vm1, %v3711_v0 }
  0xc2   : > { %1815 = vmatpush1.bf16.msra.mxu0 %v3141_v63  ;;  %1866 = vmatpush1.bf16.msra.mxu1 %v3144_v1  ;;  %v3230_v63 = vld [vmem:[%s3666_s13 + $0x104] ss:$88 sps:$4 sm:$0xff]   ;;  %v3228_v1 = vld [vmem:[%s3666_s13 + $0x100] ss:$88 sps:$4 sm:$0xff]  }
  0xc3   : > { %1816 = vmatprep.subr.bf16.mxu0 %v3149_v2  ;;  %1867 = vmatprep.subr.bf16.mxu1 %v3152_v3  ;;  %v3233_v2 = vld [vmem:[%s3666_s13 + $0x1b4] ss:$88 sps:$4 sm:$0xff]   ;;  %v3231_v3 = vld [vmem:[%s3666_s13 + $0x1b0] ss:$88 sps:$4 sm:$0xff]  }
  0xc4   : > { %1754 = vmatprep.mubr.bf16.mxu0 %v3270_v26  ;;  %1805 = vmatprep.mubr.bf16.mxu1 %v3270_v26 }
  0xc6   : > { %1817 = vmatpush1.bf16.msra.mxu0 %v3147_v4  ;;  %1868 = vmatpush1.bf16.msra.mxu1 %v3150_v5  ;;  %v3236_v4 = vld [vmem:[%s3666_s13 + $0x264] ss:$88 sps:$4 sm:$0xff]   ;;  %v3234_v5 = vld [vmem:[%s3666_s13 + $0x260] ss:$88 sps:$4 sm:$0xff]  }
  0xc7   : > { %1818 = vmatprep.subr.bf16.mxu0 %v3155_v6  ;;  %1869 = vmatprep.subr.bf16.mxu1 %v3158_v7  ;;  %v3239_v6 = vld [vmem:[%s3666_s13 + $0x314] ss:$88 sps:$4 sm:$0xff]   ;;  %v3237_v7 = vld [vmem:[%s3666_s13 + $0x310] ss:$88 sps:$4 sm:$0xff]  }
  0xc9   : > { %2879 = vmatmul.mubr.msk.bf16.gmra.mrb[20].mxu0 %vm1434_vm1, %v3729_v9  ;;  %2882 = vmatmul.mubr.msk.bf16.gmra.mrb[20].mxu1 %vm1434_vm1, %v3729_v9 }
  0xca   : > { %1819 = vmatpush1.bf16.msra.mxu0 %v3153_v8  ;;  %1870 = vmatpush1.bf16.msra.mxu1 %v3156_v10  ;;  %v3242_v8 = vld [vmem:[%s3666_s13 + $0x3c4] ss:$88 sps:$4 sm:$0xff]   ;;  %v3240_v10 = vld [vmem:[%s3666_s13 + $0x3c0] ss:$88 sps:$4 sm:$0xff]  }
  0xcb   : > { %1820 = vmatprep.subr.bf16.mxu0 %v3161_v11  ;;  %1871 = vmatprep.subr.bf16.mxu1 %v3164_v13  ;;  %v3243_v11 = vld [vmem:[%s3666_s13 + $0x474] ss:$88 sps:$4 sm:$0x3f]  }
  0xcc   : > { %1846 = vmatprep.mubr.bf16.mxu0 %v3270_v26  ;;  %1897 = vmatprep.mubr.bf16.mxu1 %v3270_v26 }
  0xce   : > { %1821 = vmatpush1.bf16.msra.mxu0 %v3159_v14  ;;  %1872 = vmatpush1.bf16.msra.mxu1 %v3162_v15 }
  0xcf   : > { %1822 = vmatprep.subr.bf16.mxu0 %v3167_v16  ;;  %1873 = vmatprep.subr.bf16.mxu1 %v3170_v17 }
  0xd2   : > { %1823 = vmatpush1.bf16.msra.mxu0 %v3165_v18  ;;  %1874 = vmatpush1.bf16.msra.mxu1 %v3168_v19 }
  0xd3   : > { %1824 = vmatprep.subr.bf16.mxu0 %v3173_v20  ;;  %1875 = vmatprep.subr.bf16.mxu1 %v3176_v21 }
  0xd6   : > { %1825 = vmatpush1.bf16.msra.mxu0 %v3171_v22  ;;  %1876 = vmatpush1.bf16.msra.mxu1 %v3174_v23 }
  0xd7   : > { %2883 = vmatprep.subr.msk.bf16.mxu0 %vm1441_vm0, %v3177_v24  ;;  %2886 = vmatprep.subr.msk.bf16.mxu1 %vm1441_vm0, %v3179_v25 }
  0xda   : > { %1827 = vmatpush1.bf16.msra.mxu0 %v1479_v29  ;;  %1878 = vmatpush1.bf16.msra.mxu1 %v1485_v30 }
  0xdb   : > { %1916 = vmatprep.subr.bf16.mxu0 %v3185_v31  ;;  %1967 = vmatprep.subr.bf16.mxu1 %v3188_v32 }
  0xdd   : > { %2884 = vmatmul.mubr.msk.bf16.vlgmr.msra.gmra.mrb[24].mxu0 %vm1434_vm1, %v3711_v0  ;;  %2887 = vmatmul.mubr.msk.bf16.vlgmr.msra.gmra.mrb[24].mxu1 %vm1434_vm1, %v3711_v0 }
  0xde   : > { %1917 = vmatpush1.bf16.msra.mxu0 %v3183_v33  ;;  %1968 = vmatpush1.bf16.msra.mxu1 %v3186_v34 }
  0xdf   : > { %1918 = vmatprep.subr.bf16.mxu0 %v3191_v35  ;;  %1969 = vmatprep.subr.bf16.mxu1 %v3194_v36 }
  0xe0   : > { %1856 = vmatprep.mubr.bf16.mxu0 %v3270_v26  ;;  %1907 = vmatprep.mubr.bf16.mxu1 %v3270_v26 }
  0xe2   : > { %1919 = vmatpush1.bf16.msra.mxu0 %v3189_v37  ;;  %1970 = vmatpush1.bf16.msra.mxu1 %v3192_v38 }
  0xe3   : > { %1920 = vmatprep.subr.bf16.mxu0 %v3197_v39  ;;  %1971 = vmatprep.subr.bf16.mxu1 %v3200_v40 }
  0xe5   : > { %2885 = vmatmul.mubr.msk.bf16.gmra.mrb[28].mxu0 %vm1434_vm1, %v3729_v9  ;;  %2888 = vmatmul.mubr.msk.bf16.gmra.mrb[28].mxu1 %vm1434_vm1, %v3729_v9 }
  0xe6   : > { %1921 = vmatpush1.bf16.msra.mxu0 %v3195_v41  ;;  %1972 = vmatpush1.bf16.msra.mxu1 %v3198_v42 }
  0xe7   : > { %1922 = vmatprep.subr.bf16.mxu0 %v3203_v43  ;;  %1973 = vmatprep.subr.bf16.mxu1 %v3206_v44 }
  0xe8   : > { %1948 = vmatprep.mubr.bf16.mxu0 %v3270_v26  ;;  %1999 = vmatprep.mubr.bf16.mxu1 %v3270_v26  ;;  %v3928_v13 = vpop.permute.xlu0 %2074  ;;  %v3930_v14 = vpop.permute.xlu1 %2084 }
  0xea   : > { %1923 = vmatpush1.bf16.msra.mxu0 %v3201_v45  ;;  %1974 = vmatpush1.bf16.msra.mxu1 %v3204_v46 }
  0xeb   : > { %1924 = vmatprep.subr.bf16.mxu0 %v3209_v47  ;;  %1975 = vmatprep.subr.bf16.mxu1 %v3212_v48 }
  0xec   : > { %v3932_v15 = vpop.permute.xlu0 %2079 }
  0xee   : > { %1925 = vmatpush1.bf16.msra.mxu0 %v3207_v49  ;;  %1976 = vmatpush1.bf16.msra.mxu1 %v3210_v50  ;;  %v3934_v16 = vpop.permute.xlu1 %2158 }
  0xef   : > { %1926 = vmatprep.subr.bf16.mxu0 %v3215_v51  ;;  %1977 = vmatprep.subr.bf16.mxu1 %v3218_v52 }
  0xf0   : > { %v3936_v17 = vpop.permute.xlu0 %2163 }
  0xf2   : > { %1927 = vmatpush1.bf16.msra.mxu0 %v3213_v53  ;;  %1978 = vmatpush1.bf16.msra.mxu1 %v3216_v54 }
  0xf3   : > { %2889 = vmatprep.subr.msk.bf16.mxu0 %vm1441_vm0, %v3219_v55  ;;  %2892 = vmatprep.subr.msk.bf16.mxu1 %vm1441_vm0, %v3221_v56 }
  0xf6   : > { %1929 = vmatpush1.bf16.msra.mxu0 %v1491_v59  ;;  %1980 = vmatpush1.bf16.msra.mxu1 %v1497_v60 }
  0xf7   : > { %2018 = vmatprep.subr.bf16.mxu0 %v3227_v61  ;;  %2969 = vmatprep.subr.bf16.mxu1 %v3227_v61 }
  0xf9   : > { %2890 = vmatmul.mubr.msk.bf16.vlgmr.msra.gmra.mrb[32].mxu0 %vm1434_vm1, %v3711_v0  ;;  %2893 = vmatmul.mubr.msk.bf16.vlgmr.msra.gmra.mrb[32].mxu1 %vm1434_vm1, %v3711_v0 }
  0xfa   : > { %2019 = vmatpush1.bf16.msra.mxu0 %v3225_v62  ;;  %2976 = vmatpush1.bf16.msra.mxu1 %v3225_v62 }
  0xfb   : > { %2020 = vmatprep.subr.bf16.mxu0 %v3230_v63  ;;  %2970 = vmatprep.subr.bf16.mxu1 %v3230_v63 }
  0xfc   : > { %1958 = vmatprep.mubr.bf16.mxu0 %v3270_v26  ;;  %2009 = vmatprep.mubr.bf16.mxu1 %v3270_v26 }
  0xfe   : > { %2021 = vmatpush1.bf16.msra.mxu0 %v3228_v1  ;;  %2977 = vmatpush1.bf16.msra.mxu1 %v3228_v1 }
  0xff   : > { %2022 = vmatprep.subr.bf16.mxu0 %v3233_v2  ;;  %2971 = vmatprep.subr.bf16.mxu1 %v3233_v2 }
 0x101   : > { %2891 = vmatmul.mubr.msk.bf16.gmra.mrb[36].mxu0 %vm1434_vm1, %v3729_v9  ;;  %2894 = vmatmul.mubr.msk.bf16.gmra.mrb[36].mxu1 %vm1434_vm1, %v3729_v9 }
 0x102   : > { %2023 = vmatpush1.bf16.msra.mxu0 %v3231_v3  ;;  %2978 = vmatpush1.bf16.msra.mxu1 %v3231_v3 }
 0x103   : > { %2024 = vmatprep.subr.bf16.mxu0 %v3236_v4  ;;  %2972 = vmatprep.subr.bf16.mxu1 %v3236_v4 }
 0x104   : > { %2050 = vmatprep.mubr.bf16.mxu0 %v3270_v26  ;;  %2060 = vmatprep.mubr.bf16.mxu1 %v3270_v26  ;;  %v1503_v26 = vsel %vm1441_vm0, %v3245_v12, 0 }
 0x106   : > { %2025 = vmatpush1.bf16.msra.mxu0 %v3234_v5  ;;  %2979 = vmatpush1.bf16.msra.mxu1 %v3234_v5 }
 0x107   : > { %2026 = vmatprep.subr.bf16.mxu0 %v3239_v6  ;;  %2973 = vmatprep.subr.bf16.mxu1 %v3239_v6 }
 0x10a   : > { %2027 = vmatpush1.bf16.msra.mxu0 %v3237_v7  ;;  %2980 = vmatpush1.bf16.msra.mxu1 %v3237_v7 }
 0x10b   : > { %2028 = vmatprep.subr.bf16.mxu0 %v3242_v8  ;;  %2974 = vmatprep.subr.bf16.mxu1 %v3242_v8 }
 0x10e   : > { %2029 = vmatpush1.bf16.msra.mxu0 %v3240_v10  ;;  %2981 = vmatpush1.bf16.msra.mxu1 %v3240_v10 }
 0x10f   : > { %2895 = vmatprep.subr.msk.bf16.mxu0 %vm1441_vm0, %v3243_v11  ;;  %2975 = vmatprep.subr.msk.bf16.mxu1 %vm1441_vm0, %v3243_v11 }
 0x112   : > { %2031 = vmatpush1.bf16.msra.mxu0 %v1503_v26  ;;  %2982 = vmatpush1.bf16.msra.mxu1 %v1503_v26 }
 0x114   : > { %v3956_v47 = vpop.permute.xlu1 %2168 }
 0x115   : > { %2896 = vmatmul.mubr.msk.bf16.vlgmr.msra.gmra.mrb[40].mxu0 %vm1434_vm1, %v3711_v0  ;;  %2897 = vmatmul.mubr.msk.bf16.vlgmr.msra.gmra.mrb[40].mxu1 %vm1434_vm1, %v3729_v9 }
 0x15c   : > { %v1542_v18 = vpop.f32.mrb[0].mxu0  ;;  %v1593_v19 = vpop.f32.mrb[0].mxu1 }
 0x15d   : > { %v2087_v20 = vmul.f32 %v3928_v13, %v1542_v18  ;;  %v2089_v0 = vmul.f32 %v3928_v13, %v1593_v19  ;;  %v1544_v21 = vpop.f32.mrb[1].mxu0  ;;  %v1595_v22 = vpop.f32.mrb[1].mxu1 }
 0x15e   : > { %v2088_v9 = vmul.f32 %v3928_v13, %v1544_v21  ;;  %v2090_v23 = vmul.f32 %v3928_v13, %v1595_v22  ;;  %v1546_v24 = vpop.f32.mrb[2].mxu0  ;;  %v1597_v25 = vpop.f32.mrb[2].mxu1 }
 0x15f   : > { %v2109_v27 = vmul.f32 %v3932_v15, %v1546_v24  ;;  %v2111_v28 = vmul.f32 %v3932_v15, %v1597_v25  ;;  %v2171_v29 = vadd.f32 %v3934_v16, %v2087_v20  ;;  %v2173_v30 = vadd.f32 %v3934_v16, %v2089_v0  ;;  %v1548_v31 = vpop.f32.mrb[3].mxu0  ;;  %v1599_v32 = vpop.f32.mrb[3].mxu1 }
 0x160   : > { %v2172_v33 = vadd.f32 %v3934_v16, %v2088_v9  ;;  %v2174_v34 = vadd.f32 %v3934_v16, %v2090_v23  ;;  %v2110_v35 = vmul.f32 %v3932_v15, %v1548_v31  ;;  %v2112_v36 = vmul.f32 %v3932_v15, %v1599_v32 }
 0x161   : > { %v2237_v37 = vmax.f32 %v2171_v29, 0.0  ;;  %v2239_v38 = vmax.f32 %v2173_v30, 0.0  ;;  %v2193_v39 = vadd.f32 %v3936_v17, %v2109_v27  ;;  %v2195_v40 = vadd.f32 %v3936_v17, %v2111_v28 }
 0x162   : > { %v2238_v41 = vmax.f32 %v2172_v33, 0.0  ;;  %v2240_v42 = vmax.f32 %v2174_v34, 0.0  ;;  %v2194_v43 = vadd.f32 %v3936_v17, %v2110_v35  ;;  %v2196_v44 = vadd.f32 %v3936_v17, %v2112_v36 }
 0x163   : > { %v2259_v45 = vmax.f32 %v2193_v39, 0.0  ;;  %v2261_v46 = vmax.f32 %v2195_v40, 0.0 }
 0x164   : > { %v2935_v48 = vpack.c.bf16 %v2238_v41, %v2237_v37  ;;  %v2936_v49 = vpack.c.bf16 %v2240_v42, %v2239_v38  ;;  %v2260_v50 = vmax.f32 %v2194_v43, 0.0  ;;  %v2262_v51 = vmax.f32 %v2196_v44, 0.0  ;;  %v1552_v52 = vpop.f32.mrb[4].mxu0  ;;  %v1603_v53 = vpop.f32.mrb[4].mxu1 }
 0x165   : > { %v2131_v54 = vmul.f32 %v3930_v14, %v1552_v52  ;;  %v1554_v55 = vpop.f32.mrb[5].mxu0  ;;  %v2133_v56 = vmul.f32 %v3930_v14, %v1603_v53  ;;  %v1605_v57 = vpop.f32.mrb[5].mxu1 }
 0x166   : > { %2523 = vst [vmem:[%s3960_s15] sm:$0xff] %v2935_v48  ;;  %2524 = vst [vmem:[%s3960_s15 + $0x8] sm:$0xff] %v2936_v49  ;;  %v2946_v58 = vpack.c.bf16 %v2260_v50, %v2259_v45  ;;  %v2947_v59 = vpack.c.bf16 %v2262_v51, %v2261_v46  ;;  %v2132_v60 = vmul.f32 %v3930_v14, %v1554_v55  ;;  %v1556_v61 = vpop.f32.mrb[6].mxu0  ;;  %v1607_v63 = vpop.f32.mrb[6].mxu1 }
 0x167   : > { %v2134_v62 = vmul.f32 %v3930_v14, %v1605_v57  ;;  %v1557_v1 = vpop.f32.mrb[7].mxu0  ;;  %v2215_v2 = vadd.f32 %v3956_v47, %v2131_v54  ;;  %v2217_v3 = vadd.f32 %v3956_v47, %v2133_v56  ;;  %v1608_v4 = vpop.f32.mrb[7].mxu1 }
 0x168   : > { %2534 = vst [vmem:[%s3960_s15 + $0x58] sm:$0xff] %v2946_v58  ;;  %2535 = vst [vmem:[%s3960_s15 + $0x60] sm:$0xff] %v2947_v59  ;;  %v2216_v5 = vadd.f32 %v3956_v47, %v2132_v60 }
 0x169   : > { %v2218_v6 = vadd.f32 %v3956_v47, %v2134_v62  ;;  %v2281_v7 = vmax.f32 %v2215_v2, 0.0  ;;  %v2283_v8 = vmax.f32 %v2217_v3, 0.0 }
 0x16a   : > { %v2282_v10 = vmax.f32 %v2216_v5, 0.0 }
 0x16b   : > { %v2284_v11 = vmax.f32 %v2218_v6, 0.0 }
 0x16c   : > { %v2957_v12 = vpack.c.bf16 %v2282_v10, %v2281_v7 }
 0x16d   : > { %v2958_v26 = vpack.c.bf16 %v2284_v11, %v2283_v8 }
 0x16e   : > { %2545 = vst [vmem:[%s3960_s15 + $0xb0] sm:$0x33] %v2957_v12 }
 0x16f   : > { %2546 = vst [vmem:[%s3960_s15 + $0xb8] sm:$0x33] %v2958_v26 }
 0x178   : > { %v1644_v18 = vpop.f32.mrb[8].mxu0  ;;  %v1695_v19 = vpop.f32.mrb[8].mxu1 }
 0x179   : > { %v2091_v20 = vmul.f32 %v3928_v13, %v1644_v18  ;;  %v2093_v0 = vmul.f32 %v3928_v13, %v1695_v19  ;;  %v1646_v21 = vpop.f32.mrb[9].mxu0  ;;  %v1697_v22 = vpop.f32.mrb[9].mxu1 }
 0x17a   : > { %v2092_v9 = vmul.f32 %v3928_v13, %v1646_v21  ;;  %v2094_v23 = vmul.f32 %v3928_v13, %v1697_v22  ;;  %v1648_v24 = vpop.f32.mrb[10].mxu0  ;;  %v1699_v25 = vpop.f32.mrb[10].mxu1 }
 0x17b   : > { %v2175_v27 = vadd.f32 %v3934_v16, %v2091_v20  ;;  %v2177_v28 = vadd.f32 %v3934_v16, %v2093_v0  ;;  %v2113_v29 = vmul.f32 %v3932_v15, %v1648_v24  ;;  %v2115_v30 = vmul.f32 %v3932_v15, %v1699_v25  ;;  %v1650_v31 = vpop.f32.mrb[11].mxu0  ;;  %v1701_v32 = vpop.f32.mrb[11].mxu1 }
 0x17c   : > { %v2176_v33 = vadd.f32 %v3934_v16, %v2092_v9  ;;  %v2178_v34 = vadd.f32 %v3934_v16, %v2094_v23  ;;  %v2114_v35 = vmul.f32 %v3932_v15, %v1650_v31  ;;  %v2116_v36 = vmul.f32 %v3932_v15, %v1701_v32 }
 0x17d   : > { %v2241_v37 = vmax.f32 %v2175_v27, 0.0  ;;  %v2243_v38 = vmax.f32 %v2177_v28, 0.0  ;;  %v2197_v39 = vadd.f32 %v3936_v17, %v2113_v29  ;;  %v2199_v40 = vadd.f32 %v3936_v17, %v2115_v30 }
 0x17e   : > { %v2242_v41 = vmax.f32 %v2176_v33, 0.0  ;;  %v2244_v42 = vmax.f32 %v2178_v34, 0.0  ;;  %v2198_v43 = vadd.f32 %v3936_v17, %v2114_v35  ;;  %v2200_v44 = vadd.f32 %v3936_v17, %v2116_v36 }
 0x17f   : > { %v2263_v45 = vmax.f32 %v2197_v39, 0.0  ;;  %v2265_v46 = vmax.f32 %v2199_v40, 0.0 }
 0x180   : > { %v2937_v48 = vpack.c.bf16 %v2242_v41, %v2241_v37  ;;  %v2938_v49 = vpack.c.bf16 %v2244_v42, %v2243_v38  ;;  %v2264_v50 = vmax.f32 %v2198_v43, 0.0  ;;  %v2266_v51 = vmax.f32 %v2200_v44, 0.0  ;;  %v1654_v52 = vpop.f32.mrb[12].mxu0  ;;  %v1705_v53 = vpop.f32.mrb[12].mxu1 }
 0x181   : > { %v2135_v54 = vmul.f32 %v3930_v14, %v1654_v52  ;;  %v1656_v55 = vpop.f32.mrb[13].mxu0  ;;  %v2137_v56 = vmul.f32 %v3930_v14, %v1705_v53  ;;  %v1707_v57 = vpop.f32.mrb[13].mxu1 }
 0x182   : > { %2525 = vst [vmem:[%s3960_s15 + $0x10] sm:$0xff] %v2937_v48  ;;  %2526 = vst [vmem:[%s3960_s15 + $0x18] sm:$0xff] %v2938_v49  ;;  %v2948_v58 = vpack.c.bf16 %v2264_v50, %v2263_v45  ;;  %v2949_v59 = vpack.c.bf16 %v2266_v51, %v2265_v46  ;;  %v2136_v60 = vmul.f32 %v3930_v14, %v1656_v55  ;;  %v1658_v61 = vpop.f32.mrb[14].mxu0  ;;  %v1709_v63 = vpop.f32.mrb[14].mxu1 }
 0x183   : > { %v2138_v62 = vmul.f32 %v3930_v14, %v1707_v57  ;;  %v2219_v1 = vadd.f32 %v3956_v47, %v2135_v54  ;;  %v2221_v2 = vadd.f32 %v3956_v47, %v2137_v56  ;;  %v1659_v3 = vpop.f32.mrb[15].mxu0  ;;  %v1710_v4 = vpop.f32.mrb[15].mxu1 }
 0x184   : > { %2536 = vst [vmem:[%s3960_s15 + $0x68] sm:$0xff] %v2948_v58  ;;  %2537 = vst [vmem:[%s3960_s15 + $0x70] sm:$0xff] %v2949_v59  ;;  %v2220_v5 = vadd.f32 %v3956_v47, %v2136_v60 }
 0x185   : > { %v2222_v6 = vadd.f32 %v3956_v47, %v2138_v62  ;;  %v2285_v7 = vmax.f32 %v2219_v1, 0.0  ;;  %v2287_v8 = vmax.f32 %v2221_v2, 0.0 }
 0x186   : > { %v2286_v10 = vmax.f32 %v2220_v5, 0.0 }
 0x187   : > { %v2288_v11 = vmax.f32 %v2222_v6, 0.0 }
 0x188   : > { %v2959_v12 = vpack.c.bf16 %v2286_v10, %v2285_v7 }
 0x189   : > { %v2960_v26 = vpack.c.bf16 %v2288_v11, %v2287_v8 }
 0x18a   : > { %2547 = vst [vmem:[%s3960_s15 + $0xc0] sm:$0x33] %v2959_v12 }
 0x18b   : > { %2548 = vst [vmem:[%s3960_s15 + $0xc8] sm:$0x33] %v2960_v26 }
 0x194   : > { %v1746_v18 = vpop.f32.mrb[16].mxu0  ;;  %v1797_v19 = vpop.f32.mrb[16].mxu1 }
 0x195   : > { %v2095_v20 = vmul.f32 %v3928_v13, %v1746_v18  ;;  %v2097_v0 = vmul.f32 %v3928_v13, %v1797_v19  ;;  %v1748_v21 = vpop.f32.mrb[17].mxu0  ;;  %v1799_v22 = vpop.f32.mrb[17].mxu1 }
 0x196   : > { %v2096_v9 = vmul.f32 %v3928_v13, %v1748_v21  ;;  %v2098_v23 = vmul.f32 %v3928_v13, %v1799_v22  ;;  %v1750_v24 = vpop.f32.mrb[18].mxu0  ;;  %v1801_v25 = vpop.f32.mrb[18].mxu1 }
 0x197   : > { %v2179_v27 = vadd.f32 %v3934_v16, %v2095_v20  ;;  %v2181_v28 = vadd.f32 %v3934_v16, %v2097_v0  ;;  %v2117_v29 = vmul.f32 %v3932_v15, %v1750_v24  ;;  %v2119_v30 = vmul.f32 %v3932_v15, %v1801_v25  ;;  %v1752_v31 = vpop.f32.mrb[19].mxu0  ;;  %v1803_v32 = vpop.f32.mrb[19].mxu1 }
 0x198   : > { %v2180_v33 = vadd.f32 %v3934_v16, %v2096_v9  ;;  %v2182_v34 = vadd.f32 %v3934_v16, %v2098_v23  ;;  %v2118_v35 = vmul.f32 %v3932_v15, %v1752_v31  ;;  %v2120_v36 = vmul.f32 %v3932_v15, %v1803_v32 }
 0x199   : > { %v2245_v37 = vmax.f32 %v2179_v27, 0.0  ;;  %v2247_v38 = vmax.f32 %v2181_v28, 0.0  ;;  %v2201_v39 = vadd.f32 %v3936_v17, %v2117_v29  ;;  %v2203_v40 = vadd.f32 %v3936_v17, %v2119_v30 }
 0x19a   : > { %v2246_v41 = vmax.f32 %v2180_v33, 0.0  ;;  %v2248_v42 = vmax.f32 %v2182_v34, 0.0  ;;  %v2202_v43 = vadd.f32 %v3936_v17, %v2118_v35  ;;  %v2204_v44 = vadd.f32 %v3936_v17, %v2120_v36 }
 0x19b   : > { %v2267_v45 = vmax.f32 %v2201_v39, 0.0  ;;  %v2269_v46 = vmax.f32 %v2203_v40, 0.0 }
 0x19c   : > { %v2939_v48 = vpack.c.bf16 %v2246_v41, %v2245_v37  ;;  %v2940_v49 = vpack.c.bf16 %v2248_v42, %v2247_v38  ;;  %v2268_v50 = vmax.f32 %v2202_v43, 0.0  ;;  %v2270_v51 = vmax.f32 %v2204_v44, 0.0  ;;  %v1756_v52 = vpop.f32.mrb[20].mxu0  ;;  %v1807_v53 = vpop.f32.mrb[20].mxu1 }
 0x19d   : > { %v2139_v54 = vmul.f32 %v3930_v14, %v1756_v52  ;;  %v1758_v55 = vpop.f32.mrb[21].mxu0  ;;  %v2141_v56 = vmul.f32 %v3930_v14, %v1807_v53  ;;  %v1809_v57 = vpop.f32.mrb[21].mxu1 }
 0x19e   : > { %2527 = vst [vmem:[%s3960_s15 + $0x20] sm:$0xff] %v2939_v48  ;;  %2528 = vst [vmem:[%s3960_s15 + $0x28] sm:$0xff] %v2940_v49  ;;  %v2950_v58 = vpack.c.bf16 %v2268_v50, %v2267_v45  ;;  %v2951_v59 = vpack.c.bf16 %v2270_v51, %v2269_v46  ;;  %v2140_v60 = vmul.f32 %v3930_v14, %v1758_v55  ;;  %v1760_v61 = vpop.f32.mrb[22].mxu0  ;;  %v1811_v63 = vpop.f32.mrb[22].mxu1 }
 0x19f   : > { %v2142_v62 = vmul.f32 %v3930_v14, %v1809_v57  ;;  %v2223_v1 = vadd.f32 %v3956_v47, %v2139_v54  ;;  %v2225_v2 = vadd.f32 %v3956_v47, %v2141_v56  ;;  %v1761_v3 = vpop.f32.mrb[23].mxu0  ;;  %v1812_v4 = vpop.f32.mrb[23].mxu1 }
 0x1a0   : > { %2538 = vst [vmem:[%s3960_s15 + $0x78] sm:$0xff] %v2950_v58  ;;  %2539 = vst [vmem:[%s3960_s15 + $0x80] sm:$0xff] %v2951_v59  ;;  %v2224_v5 = vadd.f32 %v3956_v47, %v2140_v60 }
 0x1a1   : > { %v2226_v6 = vadd.f32 %v3956_v47, %v2142_v62  ;;  %v2289_v7 = vmax.f32 %v2223_v1, 0.0  ;;  %v2291_v8 = vmax.f32 %v2225_v2, 0.0 }
 0x1a2   : > { %v2290_v10 = vmax.f32 %v2224_v5, 0.0 }
 0x1a3   : > { %v2292_v11 = vmax.f32 %v2226_v6, 0.0 }
 0x1a4   : > { %v2961_v12 = vpack.c.bf16 %v2290_v10, %v2289_v7 }
 0x1a5   : > { %v2962_v26 = vpack.c.bf16 %v2292_v11, %v2291_v8 }
 0x1a6   : > { %2549 = vst [vmem:[%s3960_s15 + $0xd0] sm:$0x33] %v2961_v12 }
 0x1a7   : > { %2550 = vst [vmem:[%s3960_s15 + $0xd8] sm:$0x33] %v2962_v26 }
 0x1b0   : > { %v1848_v18 = vpop.f32.mrb[24].mxu0  ;;  %v1899_v19 = vpop.f32.mrb[24].mxu1 }
 0x1b1   : > { %v2099_v20 = vmul.f32 %v3928_v13, %v1848_v18  ;;  %v2101_v0 = vmul.f32 %v3928_v13, %v1899_v19  ;;  %v1850_v21 = vpop.f32.mrb[25].mxu0  ;;  %v1901_v22 = vpop.f32.mrb[25].mxu1 }
 0x1b2   : > { %v2100_v9 = vmul.f32 %v3928_v13, %v1850_v21  ;;  %v2102_v23 = vmul.f32 %v3928_v13, %v1901_v22  ;;  %v1852_v24 = vpop.f32.mrb[26].mxu0  ;;  %v1903_v25 = vpop.f32.mrb[26].mxu1 }
 0x1b3   : > { %v2183_v27 = vadd.f32 %v3934_v16, %v2099_v20  ;;  %v2185_v28 = vadd.f32 %v3934_v16, %v2101_v0  ;;  %v2121_v29 = vmul.f32 %v3932_v15, %v1852_v24  ;;  %v2123_v30 = vmul.f32 %v3932_v15, %v1903_v25  ;;  %v1854_v31 = vpop.f32.mrb[27].mxu0  ;;  %v1905_v32 = vpop.f32.mrb[27].mxu1 }
 0x1b4   : > { %v2184_v33 = vadd.f32 %v3934_v16, %v2100_v9  ;;  %v2186_v34 = vadd.f32 %v3934_v16, %v2102_v23  ;;  %v2122_v35 = vmul.f32 %v3932_v15, %v1854_v31  ;;  %v2124_v36 = vmul.f32 %v3932_v15, %v1905_v32 }
 0x1b5   : > { %v2249_v37 = vmax.f32 %v2183_v27, 0.0  ;;  %v2251_v38 = vmax.f32 %v2185_v28, 0.0  ;;  %v2205_v39 = vadd.f32 %v3936_v17, %v2121_v29  ;;  %v2207_v40 = vadd.f32 %v3936_v17, %v2123_v30 }
 0x1b6   : > { %v2250_v41 = vmax.f32 %v2184_v33, 0.0  ;;  %v2252_v42 = vmax.f32 %v2186_v34, 0.0  ;;  %v2206_v43 = vadd.f32 %v3936_v17, %v2122_v35  ;;  %v2208_v44 = vadd.f32 %v3936_v17, %v2124_v36 }
 0x1b7   : > { %v2271_v45 = vmax.f32 %v2205_v39, 0.0  ;;  %v2273_v46 = vmax.f32 %v2207_v40, 0.0 }
 0x1b8   : > { %v2941_v48 = vpack.c.bf16 %v2250_v41, %v2249_v37  ;;  %v2942_v49 = vpack.c.bf16 %v2252_v42, %v2251_v38  ;;  %v2272_v50 = vmax.f32 %v2206_v43, 0.0  ;;  %v2274_v51 = vmax.f32 %v2208_v44, 0.0  ;;  %v1858_v52 = vpop.f32.mrb[28].mxu0  ;;  %v1909_v53 = vpop.f32.mrb[28].mxu1 }
 0x1b9   : > { %v2143_v54 = vmul.f32 %v3930_v14, %v1858_v52  ;;  %v1860_v55 = vpop.f32.mrb[29].mxu0  ;;  %v2145_v56 = vmul.f32 %v3930_v14, %v1909_v53  ;;  %v1911_v57 = vpop.f32.mrb[29].mxu1 }
 0x1ba   : > { %2529 = vst [vmem:[%s3960_s15 + $0x30] sm:$0xff] %v2941_v48  ;;  %2530 = vst [vmem:[%s3960_s15 + $0x38] sm:$0xff] %v2942_v49  ;;  %v2952_v58 = vpack.c.bf16 %v2272_v50, %v2271_v45  ;;  %v2953_v59 = vpack.c.bf16 %v2274_v51, %v2273_v46  ;;  %v2144_v60 = vmul.f32 %v3930_v14, %v1860_v55  ;;  %v1862_v61 = vpop.f32.mrb[30].mxu0  ;;  %v1913_v63 = vpop.f32.mrb[30].mxu1 }
 0x1bb   : > { %v2146_v62 = vmul.f32 %v3930_v14, %v1911_v57  ;;  %v2227_v1 = vadd.f32 %v3956_v47, %v2143_v54  ;;  %v2229_v2 = vadd.f32 %v3956_v47, %v2145_v56  ;;  %v1863_v3 = vpop.f32.mrb[31].mxu0  ;;  %v1914_v4 = vpop.f32.mrb[31].mxu1 }
 0x1bc   : > { %2540 = vst [vmem:[%s3960_s15 + $0x88] sm:$0xff] %v2952_v58  ;;  %2541 = vst [vmem:[%s3960_s15 + $0x90] sm:$0xff] %v2953_v59  ;;  %v2228_v5 = vadd.f32 %v3956_v47, %v2144_v60 }
 0x1bd   : > { %v2230_v6 = vadd.f32 %v3956_v47, %v2146_v62  ;;  %v2293_v7 = vmax.f32 %v2227_v1, 0.0  ;;  %v2295_v8 = vmax.f32 %v2229_v2, 0.0 }
 0x1be   : > { %v2294_v10 = vmax.f32 %v2228_v5, 0.0 }
 0x1bf   : > { %v2296_v11 = vmax.f32 %v2230_v6, 0.0 }
 0x1c0   : > { %v2963_v12 = vpack.c.bf16 %v2294_v10, %v2293_v7 }
 0x1c1   : > { %v2964_v26 = vpack.c.bf16 %v2296_v11, %v2295_v8 }
 0x1c2   : > { %2551 = vst [vmem:[%s3960_s15 + $0xe0] sm:$0x33] %v2963_v12 }
 0x1c3   : > { %2552 = vst [vmem:[%s3960_s15 + $0xe8] sm:$0x33] %v2964_v26 }
 0x1cc   : > { %v1950_v18 = vpop.f32.mrb[32].mxu0  ;;  %v2001_v19 = vpop.f32.mrb[32].mxu1 }
 0x1cd   : > { %v2103_v20 = vmul.f32 %v3928_v13, %v1950_v18  ;;  %v2105_v0 = vmul.f32 %v3928_v13, %v2001_v19  ;;  %v1952_v21 = vpop.f32.mrb[33].mxu0  ;;  %v2003_v22 = vpop.f32.mrb[33].mxu1 }
 0x1ce   : > { %v2104_v9 = vmul.f32 %v3928_v13, %v1952_v21  ;;  %v2106_v23 = vmul.f32 %v3928_v13, %v2003_v22  ;;  %v1954_v24 = vpop.f32.mrb[34].mxu0  ;;  %v2005_v25 = vpop.f32.mrb[34].mxu1 }
 0x1cf   : > { %v2187_v27 = vadd.f32 %v3934_v16, %v2103_v20  ;;  %v2189_v28 = vadd.f32 %v3934_v16, %v2105_v0  ;;  %v2125_v29 = vmul.f32 %v3932_v15, %v1954_v24  ;;  %v2127_v30 = vmul.f32 %v3932_v15, %v2005_v25  ;;  %v1956_v31 = vpop.f32.mrb[35].mxu0  ;;  %v2007_v32 = vpop.f32.mrb[35].mxu1 }
 0x1d0   : > { %v2188_v33 = vadd.f32 %v3934_v16, %v2104_v9  ;;  %v2190_v34 = vadd.f32 %v3934_v16, %v2106_v23  ;;  %v2126_v35 = vmul.f32 %v3932_v15, %v1956_v31  ;;  %v2128_v36 = vmul.f32 %v3932_v15, %v2007_v32 }
 0x1d1   : > { %v2253_v37 = vmax.f32 %v2187_v27, 0.0  ;;  %v2255_v38 = vmax.f32 %v2189_v28, 0.0  ;;  %v2209_v39 = vadd.f32 %v3936_v17, %v2125_v29  ;;  %v2211_v40 = vadd.f32 %v3936_v17, %v2127_v30 }
 0x1d2   : > { %v2254_v41 = vmax.f32 %v2188_v33, 0.0  ;;  %v2256_v42 = vmax.f32 %v2190_v34, 0.0  ;;  %v2210_v43 = vadd.f32 %v3936_v17, %v2126_v35  ;;  %v2212_v44 = vadd.f32 %v3936_v17, %v2128_v36 }
 0x1d3   : > { %v2275_v45 = vmax.f32 %v2209_v39, 0.0  ;;  %v2277_v46 = vmax.f32 %v2211_v40, 0.0 }
 0x1d4   : > { %v2943_v48 = vpack.c.bf16 %v2254_v41, %v2253_v37  ;;  %v2944_v49 = vpack.c.bf16 %v2256_v42, %v2255_v38  ;;  %v2276_v50 = vmax.f32 %v2210_v43, 0.0  ;;  %v2278_v51 = vmax.f32 %v2212_v44, 0.0  ;;  %v1960_v52 = vpop.f32.mrb[36].mxu0  ;;  %v2011_v53 = vpop.f32.mrb[36].mxu1  ;;  %v2584_v43 = vld [vmem:[%s3960_s15 + $0x18] sm:$0xff] (%p3326_p5)  ;;  %v2586_v44 = vld [vmem:[%s3960_s15 + $0x20] sm:$0xff] (%p3326_p5) }
 0x1d5   : > { %v2147_v54 = vmul.f32 %v3930_v14, %v1960_v52  ;;  %v1962_v55 = vpop.f32.mrb[37].mxu0  ;;  %v2149_v56 = vmul.f32 %v3930_v14, %v2011_v53  ;;  %v2013_v57 = vpop.f32.mrb[37].mxu1  ;;  %2585 = vst [vmem:[%s4122_s7 + $0x18] sm:$0xff] (%p3326_p5), %v2584_v43  ;;  %2587 = vst [vmem:[%s4122_s7 + $0x20] sm:$0xff] (%p3326_p5), %v2586_v44  ;;  %v2600_v52 = vld [vmem:[%s3960_s15 + $0x58] sm:$0xff] (%p3326_p5)  ;;  %v2602_v53 = vld [vmem:[%s3960_s15 + $0x60] sm:$0xff] (%p3326_p5) }
 0x1d6   : > { %2531 = vst [vmem:[%s3960_s15 + $0x40] sm:$0xff] %v2943_v48  ;;  %2532 = vst [vmem:[%s3960_s15 + $0x48] sm:$0xff] %v2944_v49  ;;  %v2954_v58 = vpack.c.bf16 %v2276_v50, %v2275_v45  ;;  %v2955_v59 = vpack.c.bf16 %v2278_v51, %v2277_v46  ;;  %v2148_v60 = vmul.f32 %v3930_v14, %v1962_v55  ;;  %v1964_v61 = vpop.f32.mrb[38].mxu0  ;;  %v2015_v63 = vpop.f32.mrb[38].mxu1  ;;  %v2588_v45 = vld [vmem:[%s3960_s15 + $0x28] sm:$0xff] (%p3326_p5)  ;;  %v2590_v46 = vld [vmem:[%s3960_s15 + $0x30] sm:$0xff] (%p3326_p5) }
 0x1d7   : > { %v2150_v62 = vmul.f32 %v3930_v14, %v2013_v57  ;;  %v2231_v1 = vadd.f32 %v3956_v47, %v2147_v54  ;;  %v2233_v2 = vadd.f32 %v3956_v47, %v2149_v56  ;;  %v1965_v3 = vpop.f32.mrb[39].mxu0  ;;  %v2016_v4 = vpop.f32.mrb[39].mxu1  ;;  %v2592_v48 = vld [vmem:[%s3960_s15 + $0x38] sm:$0xff] (%p3326_p5)  ;;  %2589 = vst [vmem:[%s4122_s7 + $0x28] sm:$0xff] (%p3326_p5), %v2588_v45  ;;  %2591 = vst [vmem:[%s4122_s7 + $0x30] sm:$0xff] (%p3326_p5), %v2590_v46  ;;  %v2604_v54 = vld [vmem:[%s3960_s15 + $0x68] sm:$0xff] (%p3326_p5) }
 0x1d8   : > { %2542 = vst [vmem:[%s3960_s15 + $0x98] sm:$0xff] %v2954_v58  ;;  %2543 = vst [vmem:[%s3960_s15 + $0xa0] sm:$0xff] %v2955_v59  ;;  %v2232_v5 = vadd.f32 %v3956_v47, %v2148_v60  ;;  %v2606_v55 = vld [vmem:[%s3960_s15 + $0x70] sm:$0xff] (%p3326_p5)  ;;  %v2608_v56 = vld [vmem:[%s3960_s15 + $0x78] sm:$0xff] (%p3326_p5) }
 0x1d9   : > { %v2234_v6 = vadd.f32 %v3956_v47, %v2150_v62  ;;  %v2297_v7 = vmax.f32 %v2231_v1, 0.0  ;;  %v2299_v8 = vmax.f32 %v2233_v2, 0.0  ;;  %2593 = vst [vmem:[%s4122_s7 + $0x38] sm:$0xff] (%p3326_p5), %v2592_v48  ;;  %2601 = vst [vmem:[%s4122_s7 + $0x160] sm:$0xff] (%p3326_p5), %v2600_v52  ;;  %v2610_v57 = vld [vmem:[%s3960_s15 + $0x80] sm:$0xff] (%p3326_p5)  ;;  %v2612_v58 = vld [vmem:[%s3960_s15 + $0x88] sm:$0xff] (%p3326_p5) }
 0x1da   : > { %v2298_v10 = vmax.f32 %v2232_v5, 0.0  ;;  %2603 = vst [vmem:[%s4122_s7 + $0x168] sm:$0xff] (%p3326_p5), %v2602_v53  ;;  %2605 = vst [vmem:[%s4122_s7 + $0x170] sm:$0xff] (%p3326_p5), %v2604_v54  ;;  %v2614_v59 = vld [vmem:[%s3960_s15 + $0x90] sm:$0xff] (%p3326_p5)  ;;  %v2624_v1 = vld [vmem:[%s3960_s15 + $0xb8] sm:$0xff] (%p3326_p5) }
 0x1db   : > { %v2300_v11 = vmax.f32 %v2234_v6, 0.0  ;;  %2607 = vst [vmem:[%s4122_s7 + $0x178] sm:$0xff] (%p3326_p5), %v2606_v55  ;;  %2609 = vst [vmem:[%s4122_s7 + $0x180] sm:$0xff] (%p3326_p5), %v2608_v56  ;;  %v2622_v63 = vld [vmem:[%s3960_s15 + $0xb0] sm:$0xff] (%p3326_p5)  ;;  %v2626_v2 = vld [vmem:[%s3960_s15 + $0xc0] sm:$0xff] (%p3326_p5) }
 0x1dc   : > { %v2965_v12 = vpack.c.bf16 %v2298_v10, %v2297_v7  ;;  %2611 = vst [vmem:[%s4122_s7 + $0x188] sm:$0xff] (%p3326_p5), %v2610_v57  ;;  %2613 = vst [vmem:[%s4122_s7 + $0x190] sm:$0xff] (%p3326_p5), %v2612_v58  ;;  %v2628_v3 = vld [vmem:[%s3960_s15 + $0xc8] sm:$0xff] (%p3326_p5)  ;;  %v2630_v4 = vld [vmem:[%s3960_s15 + $0xd0] sm:$0xff] (%p3326_p5) }
 0x1dd   : > { %v2966_v26 = vpack.c.bf16 %v2300_v11, %v2299_v8  ;;  %v2594_v49 = vld [vmem:[%s3960_s15 + $0x40] sm:$0xff] (%p3326_p5)  ;;  %v2596_v50 = vld [vmem:[%s3960_s15 + $0x48] sm:$0xff] (%p3326_p5)  ;;  %2615 = vst [vmem:[%s4122_s7 + $0x198] sm:$0xff] (%p3326_p5), %v2614_v59  ;;  %2623 = vst [vmem:[%s4122_s7 + $0x2c0] sm:$0xff] (%p3326_p5), %v2622_v63 }
 0x1de   : > { %2553 = vst [vmem:[%s3960_s15 + $0xf0] sm:$0x33] %v2965_v12  ;;  %2595 = vst [vmem:[%s4122_s7 + $0x40] sm:$0xff] (%p3326_p5), %v2594_v49  ;;  %v2632_v5 = vld [vmem:[%s3960_s15 + $0xd8] sm:$0xff] (%p3326_p5)  ;;  %v2634_v6 = vld [vmem:[%s3960_s15 + $0xe0] sm:$0xff] (%p3326_p5) }
 0x1df   : > { %2554 = vst [vmem:[%s3960_s15 + $0xf8] sm:$0x33] %v2966_v26  ;;  %2597 = vst [vmem:[%s4122_s7 + $0x48] sm:$0xff] (%p3326_p5), %v2596_v50  ;;  %v2616_v60 = vld [vmem:[%s3960_s15 + $0x98] sm:$0xff] (%p3326_p5)  ;;  %v2618_v61 = vld [vmem:[%s3960_s15 + $0xa0] sm:$0xff] (%p3326_p5) }
 0x1e0   : > { %2617 = vst [vmem:[%s4122_s7 + $0x1a0] sm:$0xff] (%p3326_p5), %v2616_v60  ;;  %2619 = vst [vmem:[%s4122_s7 + $0x1a8] sm:$0xff] (%p3326_p5), %v2618_v61  ;;  %v2636_v7 = vld [vmem:[%s3960_s15 + $0xe8] sm:$0xff] (%p3326_p5) }
 0x1e1   : > { %2625 = vst [vmem:[%s4122_s7 + $0x2c8] sm:$0xff] (%p3326_p5), %v2624_v1  ;;  %2627 = vst [vmem:[%s4122_s7 + $0x2d0] sm:$0xff] (%p3326_p5), %v2626_v2 }
 0x1e2   : > { %2629 = vst [vmem:[%s4122_s7 + $0x2d8] sm:$0xff] (%p3326_p5), %v2628_v3  ;;  %2631 = vst [vmem:[%s4122_s7 + $0x2e0] sm:$0xff] (%p3326_p5), %v2630_v4 }
 0x1e3   : > { %2633 = vst [vmem:[%s4122_s7 + $0x2e8] sm:$0xff] (%p3326_p5), %v2632_v5  ;;  %2635 = vst [vmem:[%s4122_s7 + $0x2f0] sm:$0xff] (%p3326_p5), %v2634_v6 }
 0x1e4   : > { %2637 = vst [vmem:[%s4122_s7 + $0x2f8] sm:$0xff] (%p3326_p5), %v2636_v7 }
 0x1e5   : > { %v2638_v8 = vld [vmem:[%s3960_s15 + $0xf0] sm:$0xff] (%p3326_p5) }
 0x1e6   : > { %v2640_v10 = vld [vmem:[%s3960_s15 + $0xf8] sm:$0xff] (%p3326_p5)  ;;  %2639 = vst [vmem:[%s4122_s7 + $0x300] sm:$0xff] (%p3326_p5), %v2638_v8 }
 0x1e7   : > { %2641 = vst [vmem:[%s4122_s7 + $0x308] sm:$0xff] (%p3326_p5), %v2640_v10 }
 0x1e8   : > { %v2052_v18 = vpop.f32.mrb[40].mxu0  ;;  %v2062_v19 = vpop.f32.mrb[40].mxu1 }
 0x1e9   : > { %v2107_v20 = vmul.f32 %v3928_v13, %v2052_v18  ;;  %v2151_v0 = vmul.f32 %v3930_v14, %v2062_v19  ;;  %v2054_v21 = vpop.f32.mrb[41].mxu0  ;;  %v2064_v22 = vpop.f32.mrb[41].mxu1 }
 0x1ea   : > { %v2108_v9 = vmul.f32 %v3928_v13, %v2054_v21  ;;  %v2152_v23 = vmul.f32 %v3930_v14, %v2064_v22  ;;  %v2056_v24 = vpop.f32.mrb[42].mxu0  ;;  %v2066_v25 = vpop.f32.mrb[42].mxu1 }
 0x1eb   : > { %v2191_v27 = vadd.f32 %v3934_v16, %v2107_v20  ;;  %v2235_v28 = vadd.f32 %v3956_v47, %v2151_v0  ;;  %v2129_v29 = vmul.f32 %v3932_v15, %v2056_v24  ;;  %v2058_v30 = vpop.f32.mrb[43].mxu0  ;;  %v2067_v31 = vpop.f32.mrb[43].mxu1 }
 0x1ec   : > { %v2192_v32 = vadd.f32 %v3934_v16, %v2108_v9  ;;  %v2236_v33 = vadd.f32 %v3956_v47, %v2152_v23  ;;  %v2130_v13 = vmul.f32 %v3932_v15, %v2058_v30  ;;  %v2578_v15 = vld [vmem:[%s3960_s15] sm:$0xff] (%p3326_p5)  ;;  %v2582_v47 = vld [vmem:[%s3960_s15 + $0x10] sm:$0xff] (%p3326_p5) }
 0x1ed   : > { %v2257_v14 = vmax.f32 %v2191_v27, 0.0  ;;  %v2301_v34 = vmax.f32 %v2235_v28, 0.0  ;;  %v2213_v35 = vadd.f32 %v3936_v17, %v2129_v29  ;;  %2579 = vst [vmem:[%s4122_s7] sm:$0xff] (%p3326_p5), %v2578_v15  ;;  %2583 = vst [vmem:[%s4122_s7 + $0x10] sm:$0xff] (%p3326_p5), %v2582_v47 }
 0x1ee   : > { %v2258_v36 = vmax.f32 %v2192_v32, 0.0  ;;  %v2302_v37 = vmax.f32 %v2236_v33, 0.0  ;;  %v2214_v38 = vadd.f32 %v3936_v17, %v2130_v13  ;;  %2562 = sbr.rel (!%p3326_p5) target bundleno = 509 (0x1fd), region = 63  ;;  %v2580_v17 = vld [vmem:[%s3960_s15 + $0x8] sm:$0xff] (%p3326_p5) }
 0x1ef   : > { %v2279_v39 = vmax.f32 %v2213_v35, 0.0  ;;  %2581 = vst [vmem:[%s4122_s7 + $0x8] sm:$0xff] (%p3326_p5), %v2580_v17 }
 0x1f0   : > { %v2945_v40 = vpack.c.bf16 %v2258_v36, %v2257_v14  ;;  %v2967_v41 = vpack.c.bf16 %v2302_v37, %v2301_v34  ;;  %v2280_v42 = vmax.f32 %v2214_v38, 0.0 }
 0x1f2   : > { %2533 = vst [vmem:[%s3960_s15 + $0x50] sm:$0xff] %v2945_v40  ;;  %2555 = vst [vmem:[%s3960_s15 + $0x100] sm:$0x33] %v2967_v41  ;;  %v2956_v16 = vpack.c.bf16 %v2280_v42, %v2279_v39 }
 0x1f4   : > { %2544 = vst [vmem:[%s3960_s15 + $0xa8] sm:$0xff] %v2956_v16 }
 0x1f9   : > { %v2598_v51 = vld [vmem:[%s3960_s15 + $0x50] sm:$0xff]  ;;  %v2642_v11 = vld [vmem:[%s3960_s15 + $0x100] sm:$0xff] }
 0x1fa   : > { %2599 = vst [vmem:[%s4122_s7 + $0x50] sm:$0xff] %v2598_v51  ;;  %2643 = vst [vmem:[%s4122_s7 + $0x310] sm:$0xff] %v2642_v11 }
 0x1fb   : > { %v2620_v62 = vld [vmem:[%s3960_s15 + $0xa8] sm:$0xff] }
 0x1fc   : > { %2621 = vst [vmem:[%s4122_s7 + $0x1b0] sm:$0xff] %v2620_v62 }
 0x1fd PF: > { %p11_p10 = scmp.ge.s32.totalorder %s3313_s19, 6   ;;  %s4200_s15 = smov %s3264_s16 }
 0x1fe   : > { %s4201_s16 = smov %s3324_s22  ;;  %s4202_s17 = smov %s3313_s19 }
 0x1ff   :  { %13 = sbr.rel (!%p11_p10) target bundleno = 2 (0x2), region = 117 }

// kernel: convnet_forward.8
= control target key start
LH: loop header
LB: loop body
LE: loop exit
PB: predicated region body
PF: predicated region fallthrough
CT: control target
= control target key end

     0   :  { %s4604_s15 = smov 0   ;;  %s4606_s16 = smov 0   ;;  %s5917_s0 = inlined_call_operand.vmem [shape: bf16[32,180], index: 0, kind: input, shape index: {}]   ;;  %s5918_s1 = inlined_call_operand.vmem [shape: f32[32,1], index: 1, kind: input, shape index: {}]   ;;  %s5919_s2 = inlined_call_operand.vmem [shape: f32[32,1], index: 2, kind: input, shape index: {}]   ;;  %s5920_s3 = inlined_call_operand.vmem [shape: bf16[180,11250], index: 3, kind: input, shape index: {}]   ;;  %s5921_s4 = inlined_call_operand.vmem [shape: bf16[32,11250], index: 4, kind: output, shape index: {}]  }
   0x1   :  { %s4608_s17 = smov 0  }
   0x2 LB: > { %s3705_s18 = sadd.s32 4294967295, %s4576_s17   ;;  %s4621_s19 = sadd.s32 1, %s4576_s17   ;;  %s4576_s17 = sphi %s4608_s17, %s5925_s17   ;;  %s4572_s16 = sphi %s4606_s16, %s5924_s16   ;;  %s4568_s15 = sphi %s4604_s15, %s5923_s15  }
   0x3   : > { %s81_s20 = ssub.s32 %s4576_s17, %s4621_s19  ;;  %s84_s21 = sadd.s32 1, %s4572_s16 }
   0x4   : > { %p82_p0 = scmp.eq.s32.totalorder %s81_s20, 0  ;;  %p91_p1 = scmp.ne.s32.totalorder %s4572_s16, %s4568_s15 }
   0x5   : > { %p92_p2 = scmp.eq.s32.totalorder %s4576_s17, 0  ;;  %p121_p3 = scmp.eq.s32.totalorder %s3705_s18, 3 }
   0x6   : > { %s4632_s22 = scalar_select %p82_p0, %s4572_s16, %s84_s21  }
   0x7   : > { %p93_p4 = por %p92_p2, %p91_p1  ;;  %p4634_p5 = por %p121_p3, %p91_p1 }
   0x8   : > { %p3708_p6 = scmp.ge.s32.totalorder %s4576_s17, 4 }
   0xa   : > { %152 = sbr.rel (%p3708_p6) target bundleno = 149 (0x95), region = 28 }
  0x11   : > { %155 = sbr.rel (!%p93_p4) target bundleno = 149 (0x95), region = 32  ;;  %s157_s24 = sand.u32 (%p93_p4), 1, %s4572_s16  }
  0x12   : > { %s4059_s25 = smul.u32 (%p93_p4), 88, %s4576_s17 }
  0x13   : > { %s4129_s26 = smul.u32 (%p93_p4), 2024, %s157_s24 }
  0x14   : > { %s4644_s29 = scalar_lea.vmem (%p93_p4), %s5920_s3, %s4059_s25 }
  0x15   : > { %v175_v0 = vld [vmem:[%s4644_s29] sm:$0xff] (%p93_p4)  ;;  %v177_v1 = vld [vmem:[%s4644_s29 + $0x8] sm:$0xff] (%p93_p4)  ;;  %v179_v2 = vld [vmem:[%s4644_s29 + $0x10] sm:$0xff] (%p93_p4)  ;;  %s4649_s30 = scalar_lea.vmem (%p93_p4), [#allocation2], %s4129_s26 }
  0x16   : > { %176 = vst [vmem:[%s4649_s30] sm:$0xff] (%p93_p4), %v175_v0  ;;  %178 = vst [vmem:[%s4649_s30 + $0x8] sm:$0xff] (%p93_p4), %v177_v1  ;;  %v181_v3 = vld [vmem:[%s4644_s29 + $0x18] sm:$0xff] (%p93_p4)  ;;  %v183_v4 = vld [vmem:[%s4644_s29 + $0x20] sm:$0xff] (%p93_p4) }
  0x17   : > { %180 = vst [vmem:[%s4649_s30 + $0x10] sm:$0xff] (%p93_p4), %v179_v2  ;;  %v185_v5 = vld [vmem:[%s4644_s29 + $0x28] sm:$0xff] (%p93_p4)  ;;  %182 = vst [vmem:[%s4649_s30 + $0x18] sm:$0xff] (%p93_p4), %v181_v3  ;;  %v187_v6 = vld [vmem:[%s4644_s29 + $0x30] sm:$0xff] (%p93_p4) }
  0x18   : > { %184 = vst [vmem:[%s4649_s30 + $0x20] sm:$0xff] %v183_v4  ;;  %186 = vst [vmem:[%s4649_s30 + $0x28] sm:$0xff] %v185_v5  ;;  %v189_v7 = vld [vmem:[%s4644_s29 + $0x38] sm:$0xff]  ;;  %v191_v8 = vld [vmem:[%s4644_s29 + $0x40] sm:$0xff] }
  0x19   : > { %188 = vst [vmem:[%s4649_s30 + $0x30] sm:$0xff] %v187_v6  ;;  %190 = vst [vmem:[%s4649_s30 + $0x38] sm:$0xff] %v189_v7  ;;  %v193_v9 = vld [vmem:[%s4644_s29 + $0x48] sm:$0xff]  ;;  %v195_v10 = vld [vmem:[%s4644_s29 + $0x50] sm:$0xff] }
  0x1a   : > { %192 = vst [vmem:[%s4649_s30 + $0x40] sm:$0xff] %v191_v8  ;;  %v197_v11 = vld [vmem:[%s4644_s29 + $0x160] sm:$0xff]  ;;  %194 = vst [vmem:[%s4649_s30 + $0x48] sm:$0xff] %v193_v9  ;;  %v199_v12 = vld [vmem:[%s4644_s29 + $0x168] sm:$0xff] }
  0x1b   : > { %196 = vst [vmem:[%s4649_s30 + $0x50] sm:$0xff] %v195_v10  ;;  %198 = vst [vmem:[%s4649_s30 + $0x58] sm:$0xff] %v197_v11  ;;  %v201_v13 = vld [vmem:[%s4644_s29 + $0x170] sm:$0xff]  ;;  %v203_v14 = vld [vmem:[%s4644_s29 + $0x178] sm:$0xff] }
  0x1c   : > { %200 = vst [vmem:[%s4649_s30 + $0x60] sm:$0xff] %v199_v12  ;;  %202 = vst [vmem:[%s4649_s30 + $0x68] sm:$0xff] %v201_v13  ;;  %v205_v15 = vld [vmem:[%s4644_s29 + $0x180] sm:$0xff]  ;;  %v207_v16 = vld [vmem:[%s4644_s29 + $0x188] sm:$0xff] }
  0x1d   : > { %204 = vst [vmem:[%s4649_s30 + $0x70] sm:$0xff] %v203_v14  ;;  %v209_v17 = vld [vmem:[%s4644_s29 + $0x190] sm:$0xff]  ;;  %206 = vst [vmem:[%s4649_s30 + $0x78] sm:$0xff] %v205_v15  ;;  %v211_v18 = vld [vmem:[%s4644_s29 + $0x198] sm:$0xff] }
  0x1e   : > { %208 = vst [vmem:[%s4649_s30 + $0x80] sm:$0xff] %v207_v16  ;;  %210 = vst [vmem:[%s4649_s30 + $0x88] sm:$0xff] %v209_v17  ;;  %v213_v19 = vld [vmem:[%s4644_s29 + $0x1a0] sm:$0xff]  ;;  %v215_v20 = vld [vmem:[%s4644_s29 + $0x1a8] sm:$0xff] }
  0x1f   : > { %212 = vst [vmem:[%s4649_s30 + $0x90] sm:$0xff] %v211_v18  ;;  %214 = vst [vmem:[%s4649_s30 + $0x98] sm:$0xff] %v213_v19  ;;  %v217_v21 = vld [vmem:[%s4644_s29 + $0x1b0] sm:$0xff]  ;;  %v219_v22 = vld [vmem:[%s4644_s29 + $0x2c0] sm:$0xff] }
  0x20   : > { %216 = vst [vmem:[%s4649_s30 + $0xa0] sm:$0xff] %v215_v20  ;;  %v221_v23 = vld [vmem:[%s4644_s29 + $0x2c8] sm:$0xff]  ;;  %218 = vst [vmem:[%s4649_s30 + $0xa8] sm:$0xff] %v217_v21  ;;  %v223_v24 = vld [vmem:[%s4644_s29 + $0x2d0] sm:$0xff] }
  0x21   : > { %220 = vst [vmem:[%s4649_s30 + $0xb0] sm:$0xff] %v219_v22  ;;  %222 = vst [vmem:[%s4649_s30 + $0xb8] sm:$0xff] %v221_v23  ;;  %v225_v25 = vld [vmem:[%s4644_s29 + $0x2d8] sm:$0xff]  ;;  %v227_v26 = vld [vmem:[%s4644_s29 + $0x2e0] sm:$0xff] }
  0x22   : > { %224 = vst [vmem:[%s4649_s30 + $0xc0] sm:$0xff] %v223_v24  ;;  %226 = vst [vmem:[%s4649_s30 + $0xc8] sm:$0xff] %v225_v25  ;;  %v229_v27 = vld [vmem:[%s4644_s29 + $0x2e8] sm:$0xff]  ;;  %v231_v28 = vld [vmem:[%s4644_s29 + $0x2f0] sm:$0xff] }
  0x23   : > { %228 = vst [vmem:[%s4649_s30 + $0xd0] sm:$0xff] %v227_v26  ;;  %v233_v29 = vld [vmem:[%s4644_s29 + $0x2f8] sm:$0xff]  ;;  %230 = vst [vmem:[%s4649_s30 + $0xd8] sm:$0xff] %v229_v27  ;;  %v235_v30 = vld [vmem:[%s4644_s29 + $0x300] sm:$0xff] }
  0x24   : > { %232 = vst [vmem:[%s4649_s30 + $0xe0] sm:$0xff] %v231_v28  ;;  %234 = vst [vmem:[%s4649_s30 + $0xe8] sm:$0xff] %v233_v29  ;;  %v237_v31 = vld [vmem:[%s4644_s29 + $0x308] sm:$0xff]  ;;  %v239_v32 = vld [vmem:[%s4644_s29 + $0x310] sm:$0xff] }
  0x25   : > { %236 = vst [vmem:[%s4649_s30 + $0xf0] sm:$0xff] %v235_v30  ;;  %238 = vst [vmem:[%s4649_s30 + $0xf8] sm:$0xff] %v237_v31  ;;  %v241_v33 = vld [vmem:[%s4644_s29 + $0x420] sm:$0xff]  ;;  %v243_v34 = vld [vmem:[%s4644_s29 + $0x428] sm:$0xff] }
  0x26   : > { %240 = vst [vmem:[%s4649_s30 + $0x100] sm:$0xff] %v239_v32  ;;  %v245_v35 = vld [vmem:[%s4644_s29 + $0x430] sm:$0xff]  ;;  %242 = vst [vmem:[%s4649_s30 + $0x108] sm:$0xff] %v241_v33  ;;  %v247_v36 = vld [vmem:[%s4644_s29 + $0x438] sm:$0xff] }
  0x27   : > { %244 = vst [vmem:[%s4649_s30 + $0x110] sm:$0xff] %v243_v34  ;;  %246 = vst [vmem:[%s4649_s30 + $0x118] sm:$0xff] %v245_v35  ;;  %v249_v37 = vld [vmem:[%s4644_s29 + $0x440] sm:$0xff]  ;;  %v251_v38 = vld [vmem:[%s4644_s29 + $0x448] sm:$0xff] }
  0x28   : > { %248 = vst [vmem:[%s4649_s30 + $0x120] sm:$0xff] %v247_v36  ;;  %250 = vst [vmem:[%s4649_s30 + $0x128] sm:$0xff] %v249_v37  ;;  %v253_v39 = vld [vmem:[%s4644_s29 + $0x450] sm:$0xff]  ;;  %v255_v40 = vld [vmem:[%s4644_s29 + $0x458] sm:$0xff] }
  0x29   : > { %252 = vst [vmem:[%s4649_s30 + $0x130] sm:$0xff] %v251_v38  ;;  %v257_v41 = vld [vmem:[%s4644_s29 + $0x460] sm:$0xff]  ;;  %254 = vst [vmem:[%s4649_s30 + $0x138] sm:$0xff] %v253_v39  ;;  %v259_v42 = vld [vmem:[%s4644_s29 + $0x468] sm:$0xff] }
  0x2a   : > { %256 = vst [vmem:[%s4649_s30 + $0x140] sm:$0xff] %v255_v40  ;;  %258 = vst [vmem:[%s4649_s30 + $0x148] sm:$0xff] %v257_v41  ;;  %v261_v43 = vld [vmem:[%s4644_s29 + $0x470] sm:$0xff]  ;;  %v263_v44 = vld [vmem:[%s4644_s29 + $0x580] sm:$0xff] }
  0x2b   : > { %260 = vst [vmem:[%s4649_s30 + $0x150] sm:$0xff] %v259_v42  ;;  %262 = vst [vmem:[%s4649_s30 + $0x158] sm:$0xff] %v261_v43  ;;  %v265_v45 = vld [vmem:[%s4644_s29 + $0x588] sm:$0xff]  ;;  %v267_v46 = vld [vmem:[%s4644_s29 + $0x590] sm:$0xff] }
  0x2c   : > { %264 = vst [vmem:[%s4649_s30 + $0x160] sm:$0xff] %v263_v44  ;;  %v269_v47 = vld [vmem:[%s4644_s29 + $0x598] sm:$0xff]  ;;  %266 = vst [vmem:[%s4649_s30 + $0x168] sm:$0xff] %v265_v45  ;;  %v271_v48 = vld [vmem:[%s4644_s29 + $0x5a0] sm:$0xff] }
  0x2d   : > { %268 = vst [vmem:[%s4649_s30 + $0x170] sm:$0xff] %v267_v46  ;;  %270 = vst [vmem:[%s4649_s30 + $0x178] sm:$0xff] %v269_v47  ;;  %v273_v49 = vld [vmem:[%s4644_s29 + $0x5a8] sm:$0xff]  ;;  %v275_v50 = vld [vmem:[%s4644_s29 + $0x5b0] sm:$0xff] }
  0x2e   : > { %272 = vst [vmem:[%s4649_s30 + $0x180] sm:$0xff] %v271_v48  ;;  %274 = vst [vmem:[%s4649_s30 + $0x188] sm:$0xff] %v273_v49  ;;  %v277_v51 = vld [vmem:[%s4644_s29 + $0x5b8] sm:$0xff]  ;;  %v279_v52 = vld [vmem:[%s4644_s29 + $0x5c0] sm:$0xff] }
  0x2f   : > { %276 = vst [vmem:[%s4649_s30 + $0x190] sm:$0xff] %v275_v50  ;;  %v281_v53 = vld [vmem:[%s4644_s29 + $0x5c8] sm:$0xff]  ;;  %278 = vst [vmem:[%s4649_s30 + $0x198] sm:$0xff] %v277_v51  ;;  %v283_v54 = vld [vmem:[%s4644_s29 + $0x5d0] sm:$0xff] }
  0x30   : > { %280 = vst [vmem:[%s4649_s30 + $0x1a0] sm:$0xff] %v279_v52  ;;  %282 = vst [vmem:[%s4649_s30 + $0x1a8] sm:$0xff] %v281_v53  ;;  %v285_v55 = vld [vmem:[%s4644_s29 + $0x6e0] sm:$0xff]  ;;  %v287_v56 = vld [vmem:[%s4644_s29 + $0x6e8] sm:$0xff] }
  0x31   : > { %284 = vst [vmem:[%s4649_s30 + $0x1b0] sm:$0xff] %v283_v54  ;;  %286 = vst [vmem:[%s4649_s30 + $0x1b8] sm:$0xff] %v285_v55  ;;  %v289_v57 = vld [vmem:[%s4644_s29 + $0x6f0] sm:$0xff]  ;;  %v291_v58 = vld [vmem:[%s4644_s29 + $0x6f8] sm:$0xff] }
  0x32   : > { %288 = vst [vmem:[%s4649_s30 + $0x1c0] sm:$0xff] %v287_v56  ;;  %v293_v59 = vld [vmem:[%s4644_s29 + $0x700] sm:$0xff]  ;;  %290 = vst [vmem:[%s4649_s30 + $0x1c8] sm:$0xff] %v289_v57  ;;  %v295_v60 = vld [vmem:[%s4644_s29 + $0x708] sm:$0xff] }
  0x33   : > { %292 = vst [vmem:[%s4649_s30 + $0x1d0] sm:$0xff] %v291_v58  ;;  %294 = vst [vmem:[%s4649_s30 + $0x1d8] sm:$0xff] %v293_v59  ;;  %v297_v61 = vld [vmem:[%s4644_s29 + $0x710] sm:$0xff]  ;;  %v299_v62 = vld [vmem:[%s4644_s29 + $0x718] sm:$0xff] }
  0x34   : > { %296 = vst [vmem:[%s4649_s30 + $0x1e0] sm:$0xff] %v295_v60  ;;  %298 = vst [vmem:[%s4649_s30 + $0x1e8] sm:$0xff] %v297_v61  ;;  %v301_v63 = vld [vmem:[%s4644_s29 + $0x720] sm:$0xff]  ;;  %v303_v0 = vld [vmem:[%s4644_s29 + $0x728] sm:$0xff] }
  0x35   : > { %300 = vst [vmem:[%s4649_s30 + $0x1f0] sm:$0xff] %v299_v62  ;;  %v305_v1 = vld [vmem:[%s4644_s29 + $0x730] sm:$0xff]  ;;  %302 = vst [vmem:[%s4649_s30 + $0x1f8] sm:$0xff] %v301_v63  ;;  %v307_v2 = vld [vmem:[%s4644_s29 + $0x840] sm:$0xff] }
  0x36   : > { %304 = vst [vmem:[%s4649_s30 + $0x200] sm:$0xff] %v303_v0  ;;  %306 = vst [vmem:[%s4649_s30 + $0x208] sm:$0xff] %v305_v1  ;;  %v309_v3 = vld [vmem:[%s4644_s29 + $0x848] sm:$0xff]  ;;  %v311_v4 = vld [vmem:[%s4644_s29 + $0x850] sm:$0xff] }
  0x37   : > { %308 = vst [vmem:[%s4649_s30 + $0x210] sm:$0xff] %v307_v2  ;;  %310 = vst [vmem:[%s4649_s30 + $0x218] sm:$0xff] %v309_v3  ;;  %v313_v5 = vld [vmem:[%s4644_s29 + $0x858] sm:$0xff]  ;;  %v315_v6 = vld [vmem:[%s4644_s29 + $0x860] sm:$0xff] }
  0x38   : > { %312 = vst [vmem:[%s4649_s30 + $0x220] sm:$0xff] %v311_v4  ;;  %v317_v7 = vld [vmem:[%s4644_s29 + $0x868] sm:$0xff]  ;;  %314 = vst [vmem:[%s4649_s30 + $0x228] sm:$0xff] %v313_v5  ;;  %v319_v8 = vld [vmem:[%s4644_s29 + $0x870] sm:$0xff] }
  0x39   : > { %316 = vst [vmem:[%s4649_s30 + $0x230] sm:$0xff] %v315_v6  ;;  %318 = vst [vmem:[%s4649_s30 + $0x238] sm:$0xff] %v317_v7  ;;  %v321_v9 = vld [vmem:[%s4644_s29 + $0x878] sm:$0xff]  ;;  %v323_v10 = vld [vmem:[%s4644_s29 + $0x880] sm:$0xff] }
  0x3a   : > { %320 = vst [vmem:[%s4649_s30 + $0x240] sm:$0xff] %v319_v8  ;;  %322 = vst [vmem:[%s4649_s30 + $0x248] sm:$0xff] %v321_v9  ;;  %v325_v11 = vld [vmem:[%s4644_s29 + $0x888] sm:$0xff]  ;;  %v327_v12 = vld [vmem:[%s4644_s29 + $0x890] sm:$0xff] }
  0x3b   : > { %324 = vst [vmem:[%s4649_s30 + $0x250] sm:$0xff] %v323_v10  ;;  %v329_v13 = vld [vmem:[%s4644_s29 + $0x9a0] sm:$0xff]  ;;  %326 = vst [vmem:[%s4649_s30 + $0x258] sm:$0xff] %v325_v11  ;;  %v331_v14 = vld [vmem:[%s4644_s29 + $0x9a8] sm:$0xff] }
  0x3c   : > { %328 = vst [vmem:[%s4649_s30 + $0x260] sm:$0xff] %v327_v12  ;;  %330 = vst [vmem:[%s4649_s30 + $0x268] sm:$0xff] %v329_v13  ;;  %v333_v15 = vld [vmem:[%s4644_s29 + $0x9b0] sm:$0xff]  ;;  %v335_v16 = vld [vmem:[%s4644_s29 + $0x9b8] sm:$0xff] }
  0x3d   : > { %332 = vst [vmem:[%s4649_s30 + $0x270] sm:$0xff] %v331_v14  ;;  %334 = vst [vmem:[%s4649_s30 + $0x278] sm:$0xff] %v333_v15  ;;  %v337_v17 = vld [vmem:[%s4644_s29 + $0x9c0] sm:$0xff]  ;;  %v339_v18 = vld [vmem:[%s4644_s29 + $0x9c8] sm:$0xff] }
  0x3e   : > { %336 = vst [vmem:[%s4649_s30 + $0x280] sm:$0xff] %v335_v16  ;;  %v341_v19 = vld [vmem:[%s4644_s29 + $0x9d0] sm:$0xff]  ;;  %338 = vst [vmem:[%s4649_s30 + $0x288] sm:$0xff] %v337_v17  ;;  %v343_v20 = vld [vmem:[%s4644_s29 + $0x9d8] sm:$0xff] }
  0x3f   : > { %340 = vst [vmem:[%s4649_s30 + $0x290] sm:$0xff] %v339_v18  ;;  %342 = vst [vmem:[%s4649_s30 + $0x298] sm:$0xff] %v341_v19  ;;  %v345_v21 = vld [vmem:[%s4644_s29 + $0x9e0] sm:$0xff]  ;;  %v347_v22 = vld [vmem:[%s4644_s29 + $0x9e8] sm:$0xff] }
  0x40   : > { %344 = vst [vmem:[%s4649_s30 + $0x2a0] sm:$0xff] %v343_v20  ;;  %346 = vst [vmem:[%s4649_s30 + $0x2a8] sm:$0xff] %v345_v21  ;;  %v349_v23 = vld [vmem:[%s4644_s29 + $0x9f0] sm:$0xff]  ;;  %v351_v24 = vld [vmem:[%s4644_s29 + $0xb00] sm:$0xff] }
  0x41   : > { %348 = vst [vmem:[%s4649_s30 + $0x2b0] sm:$0xff] %v347_v22  ;;  %v353_v25 = vld [vmem:[%s4644_s29 + $0xb08] sm:$0xff]  ;;  %350 = vst [vmem:[%s4649_s30 + $0x2b8] sm:$0xff] %v349_v23  ;;  %v355_v26 = vld [vmem:[%s4644_s29 + $0xb10] sm:$0xff] }
  0x42   : > { %352 = vst [vmem:[%s4649_s30 + $0x2c0] sm:$0xff] %v351_v24  ;;  %354 = vst [vmem:[%s4649_s30 + $0x2c8] sm:$0xff] %v353_v25  ;;  %v357_v27 = vld [vmem:[%s4644_s29 + $0xb18] sm:$0xff]  ;;  %v359_v28 = vld [vmem:[%s4644_s29 + $0xb20] sm:$0xff] }
  0x43   : > { %356 = vst [vmem:[%s4649_s30 + $0x2d0] sm:$0xff] %v355_v26  ;;  %358 = vst [vmem:[%s4649_s30 + $0x2d8] sm:$0xff] %v357_v27  ;;  %v361_v29 = vld [vmem:[%s4644_s29 + $0xb28] sm:$0xff]  ;;  %v363_v30 = vld [vmem:[%s4644_s29 + $0xb30] sm:$0xff] }
  0x44   : > { %360 = vst [vmem:[%s4649_s30 + $0x2e0] sm:$0xff] %v359_v28  ;;  %v365_v31 = vld [vmem:[%s4644_s29 + $0xb38] sm:$0xff]  ;;  %362 = vst [vmem:[%s4649_s30 + $0x2e8] sm:$0xff] %v361_v29  ;;  %v367_v32 = vld [vmem:[%s4644_s29 + $0xb40] sm:$0xff] }
  0x45   : > { %364 = vst [vmem:[%s4649_s30 + $0x2f0] sm:$0xff] %v363_v30  ;;  %366 = vst [vmem:[%s4649_s30 + $0x2f8] sm:$0xff] %v365_v31  ;;  %v369_v33 = vld [vmem:[%s4644_s29 + $0xb48] sm:$0xff]  ;;  %v371_v34 = vld [vmem:[%s4644_s29 + $0xb50] sm:$0xff] }
  0x46   : > { %368 = vst [vmem:[%s4649_s30 + $0x300] sm:$0xff] %v367_v32  ;;  %370 = vst [vmem:[%s4649_s30 + $0x308] sm:$0xff] %v369_v33  ;;  %v373_v35 = vld [vmem:[%s4644_s29 + $0xc60] sm:$0xff]  ;;  %v375_v36 = vld [vmem:[%s4644_s29 + $0xc68] sm:$0xff] }
  0x47   : > { %372 = vst [vmem:[%s4649_s30 + $0x310] sm:$0xff] %v371_v34  ;;  %v377_v37 = vld [vmem:[%s4644_s29 + $0xc70] sm:$0xff]  ;;  %374 = vst [vmem:[%s4649_s30 + $0x318] sm:$0xff] %v373_v35  ;;  %v379_v38 = vld [vmem:[%s4644_s29 + $0xc78] sm:$0xff] }
  0x48   : > { %376 = vst [vmem:[%s4649_s30 + $0x320] sm:$0xff] %v375_v36  ;;  %378 = vst [vmem:[%s4649_s30 + $0x328] sm:$0xff] %v377_v37  ;;  %v381_v39 = vld [vmem:[%s4644_s29 + $0xc80] sm:$0xff]  ;;  %v383_v40 = vld [vmem:[%s4644_s29 + $0xc88] sm:$0xff] }
  0x49   : > { %380 = vst [vmem:[%s4649_s30 + $0x330] sm:$0xff] %v379_v38  ;;  %382 = vst [vmem:[%s4649_s30 + $0x338] sm:$0xff] %v381_v39  ;;  %v385_v41 = vld [vmem:[%s4644_s29 + $0xc90] sm:$0xff]  ;;  %v387_v42 = vld [vmem:[%s4644_s29 + $0xc98] sm:$0xff] }
  0x4a   : > { %384 = vst [vmem:[%s4649_s30 + $0x340] sm:$0xff] %v383_v40  ;;  %v389_v43 = vld [vmem:[%s4644_s29 + $0xca0] sm:$0xff]  ;;  %386 = vst [vmem:[%s4649_s30 + $0x348] sm:$0xff] %v385_v41  ;;  %v391_v44 = vld [vmem:[%s4644_s29 + $0xca8] sm:$0xff] }
  0x4b   : > { %388 = vst [vmem:[%s4649_s30 + $0x350] sm:$0xff] %v387_v42  ;;  %390 = vst [vmem:[%s4649_s30 + $0x358] sm:$0xff] %v389_v43  ;;  %v393_v45 = vld [vmem:[%s4644_s29 + $0xcb0] sm:$0xff]  ;;  %v395_v46 = vld [vmem:[%s4644_s29 + $0xdc0] sm:$0xff] }
  0x4c   : > { %392 = vst [vmem:[%s4649_s30 + $0x360] sm:$0xff] %v391_v44  ;;  %394 = vst [vmem:[%s4649_s30 + $0x368] sm:$0xff] %v393_v45  ;;  %v397_v47 = vld [vmem:[%s4644_s29 + $0xdc8] sm:$0xff]  ;;  %v399_v48 = vld [vmem:[%s4644_s29 + $0xdd0] sm:$0xff] }
  0x4d   : > { %396 = vst [vmem:[%s4649_s30 + $0x370] sm:$0xff] %v395_v46  ;;  %v401_v49 = vld [vmem:[%s4644_s29 + $0xdd8] sm:$0xff]  ;;  %398 = vst [vmem:[%s4649_s30 + $0x378] sm:$0xff] %v397_v47  ;;  %v403_v50 = vld [vmem:[%s4644_s29 + $0xde0] sm:$0xff] }
  0x4e   : > { %400 = vst [vmem:[%s4649_s30 + $0x380] sm:$0xff] %v399_v48  ;;  %402 = vst [vmem:[%s4649_s30 + $0x388] sm:$0xff] %v401_v49  ;;  %v405_v51 = vld [vmem:[%s4644_s29 + $0xde8] sm:$0xff]  ;;  %v407_v52 = vld [vmem:[%s4644_s29 + $0xdf0] sm:$0xff] }
  0x4f   : > { %404 = vst [vmem:[%s4649_s30 + $0x390] sm:$0xff] %v403_v50  ;;  %406 = vst [vmem:[%s4649_s30 + $0x398] sm:$0xff] %v405_v51  ;;  %v409_v53 = vld [vmem:[%s4644_s29 + $0xdf8] sm:$0xff]  ;;  %v411_v54 = vld [vmem:[%s4644_s29 + $0xe00] sm:$0xff] }
  0x50   : > { %408 = vst [vmem:[%s4649_s30 + $0x3a0] sm:$0xff] %v407_v52  ;;  %v413_v55 = vld [vmem:[%s4644_s29 + $0xe08] sm:$0xff]  ;;  %410 = vst [vmem:[%s4649_s30 + $0x3a8] sm:$0xff] %v409_v53  ;;  %v415_v56 = vld [vmem:[%s4644_s29 + $0xe10] sm:$0xff] }
  0x51   : > { %412 = vst [vmem:[%s4649_s30 + $0x3b0] sm:$0xff] %v411_v54  ;;  %414 = vst [vmem:[%s4649_s30 + $0x3b8] sm:$0xff] %v413_v55  ;;  %v417_v57 = vld [vmem:[%s4644_s29 + $0xf20] sm:$0xff]  ;;  %v419_v58 = vld [vmem:[%s4644_s29 + $0xf28] sm:$0xff] }
  0x52   : > { %416 = vst [vmem:[%s4649_s30 + $0x3c0] sm:$0xff] %v415_v56  ;;  %418 = vst [vmem:[%s4649_s30 + $0x3c8] sm:$0xff] %v417_v57  ;;  %v421_v59 = vld [vmem:[%s4644_s29 + $0xf30] sm:$0xff]  ;;  %v423_v60 = vld [vmem:[%s4644_s29 + $0xf38] sm:$0xff] }
  0x53   : > { %420 = vst [vmem:[%s4649_s30 + $0x3d0] sm:$0xff] %v419_v58  ;;  %v425_v61 = vld [vmem:[%s4644_s29 + $0xf40] sm:$0xff]  ;;  %422 = vst [vmem:[%s4649_s30 + $0x3d8] sm:$0xff] %v421_v59  ;;  %v427_v62 = vld [vmem:[%s4644_s29 + $0xf48] sm:$0xff] }
  0x54   : > { %424 = vst [vmem:[%s4649_s30 + $0x3e0] sm:$0xff] %v423_v60  ;;  %426 = vst [vmem:[%s4649_s30 + $0x3e8] sm:$0xff] %v425_v61  ;;  %v429_v63 = vld [vmem:[%s4644_s29 + $0xf50] sm:$0xff]  ;;  %v431_v0 = vld [vmem:[%s4644_s29 + $0xf58] sm:$0xff] }
  0x55   : > { %428 = vst [vmem:[%s4649_s30 + $0x3f0] sm:$0xff] %v427_v62  ;;  %430 = vst [vmem:[%s4649_s30 + $0x3f8] sm:$0xff] %v429_v63  ;;  %v433_v1 = vld [vmem:[%s4644_s29 + $0xf60] sm:$0xff]  ;;  %v435_v2 = vld [vmem:[%s4644_s29 + $0xf68] sm:$0xff] }
  0x56   : > { %432 = vst [vmem:[%s4649_s30 + $0x400] sm:$0xff] %v431_v0  ;;  %v437_v3 = vld [vmem:[%s4644_s29 + $0xf70] sm:$0xff]  ;;  %434 = vst [vmem:[%s4649_s30 + $0x408] sm:$0xff] %v433_v1  ;;  %v439_v4 = vld [vmem:[%s4644_s29 + $0x1080] sm:$0xff] }
  0x57   : > { %436 = vst [vmem:[%s4649_s30 + $0x410] sm:$0xff] %v435_v2  ;;  %438 = vst [vmem:[%s4649_s30 + $0x418] sm:$0xff] %v437_v3  ;;  %v441_v5 = vld [vmem:[%s4644_s29 + $0x1088] sm:$0xff]  ;;  %v443_v6 = vld [vmem:[%s4644_s29 + $0x1090] sm:$0xff] }
  0x58   : > { %440 = vst [vmem:[%s4649_s30 + $0x420] sm:$0xff] %v439_v4  ;;  %442 = vst [vmem:[%s4649_s30 + $0x428] sm:$0xff] %v441_v5  ;;  %v445_v7 = vld [vmem:[%s4644_s29 + $0x1098] sm:$0xff]  ;;  %v447_v8 = vld [vmem:[%s4644_s29 + $0x10a0] sm:$0xff] }
  0x59   : > { %444 = vst [vmem:[%s4649_s30 + $0x430] sm:$0xff] %v443_v6  ;;  %v449_v9 = vld [vmem:[%s4644_s29 + $0x10a8] sm:$0xff]  ;;  %446 = vst [vmem:[%s4649_s30 + $0x438] sm:$0xff] %v445_v7  ;;  %v451_v10 = vld [vmem:[%s4644_s29 + $0x10b0] sm:$0xff] }
  0x5a   : > { %448 = vst [vmem:[%s4649_s30 + $0x440] sm:$0xff] %v447_v8  ;;  %450 = vst [vmem:[%s4649_s30 + $0x448] sm:$0xff] %v449_v9  ;;  %v453_v11 = vld [vmem:[%s4644_s29 + $0x10b8] sm:$0xff]  ;;  %v455_v12 = vld [vmem:[%s4644_s29 + $0x10c0] sm:$0xff] }
  0x5b   : > { %452 = vst [vmem:[%s4649_s30 + $0x450] sm:$0xff] %v451_v10  ;;  %454 = vst [vmem:[%s4649_s30 + $0x458] sm:$0xff] %v453_v11  ;;  %v457_v13 = vld [vmem:[%s4644_s29 + $0x10c8] sm:$0xff]  ;;  %v459_v14 = vld [vmem:[%s4644_s29 + $0x10d0] sm:$0xff] }
  0x5c   : > { %456 = vst [vmem:[%s4649_s30 + $0x460] sm:$0xff] %v455_v12  ;;  %v461_v15 = vld [vmem:[%s4644_s29 + $0x11e0] sm:$0xff]  ;;  %458 = vst [vmem:[%s4649_s30 + $0x468] sm:$0xff] %v457_v13  ;;  %v463_v16 = vld [vmem:[%s4644_s29 + $0x11e8] sm:$0xff] }
  0x5d   : > { %460 = vst [vmem:[%s4649_s30 + $0x470] sm:$0xff] %v459_v14  ;;  %462 = vst [vmem:[%s4649_s30 + $0x478] sm:$0xff] %v461_v15  ;;  %v465_v17 = vld [vmem:[%s4644_s29 + $0x11f0] sm:$0xff]  ;;  %v467_v18 = vld [vmem:[%s4644_s29 + $0x11f8] sm:$0xff] }
  0x5e   : > { %464 = vst [vmem:[%s4649_s30 + $0x480] sm:$0xff] %v463_v16  ;;  %466 = vst [vmem:[%s4649_s30 + $0x488] sm:$0xff] %v465_v17  ;;  %v469_v19 = vld [vmem:[%s4644_s29 + $0x1200] sm:$0xff]  ;;  %v471_v20 = vld [vmem:[%s4644_s29 + $0x1208] sm:$0xff] }
  0x5f   : > { %468 = vst [vmem:[%s4649_s30 + $0x490] sm:$0xff] %v467_v18  ;;  %v473_v21 = vld [vmem:[%s4644_s29 + $0x1210] sm:$0xff]  ;;  %470 = vst [vmem:[%s4649_s30 + $0x498] sm:$0xff] %v469_v19  ;;  %v475_v22 = vld [vmem:[%s4644_s29 + $0x1218] sm:$0xff] }
  0x60   : > { %472 = vst [vmem:[%s4649_s30 + $0x4a0] sm:$0xff] %v471_v20  ;;  %474 = vst [vmem:[%s4649_s30 + $0x4a8] sm:$0xff] %v473_v21  ;;  %v477_v23 = vld [vmem:[%s4644_s29 + $0x1220] sm:$0xff]  ;;  %v479_v24 = vld [vmem:[%s4644_s29 + $0x1228] sm:$0xff] }
  0x61   : > { %476 = vst [vmem:[%s4649_s30 + $0x4b0] sm:$0xff] %v475_v22  ;;  %478 = vst [vmem:[%s4649_s30 + $0x4b8] sm:$0xff] %v477_v23  ;;  %v481_v25 = vld [vmem:[%s4644_s29 + $0x1230] sm:$0xff]  ;;  %v483_v26 = vld [vmem:[%s4644_s29 + $0x1340] sm:$0xff] }
  0x62   : > { %480 = vst [vmem:[%s4649_s30 + $0x4c0] sm:$0xff] %v479_v24  ;;  %v485_v27 = vld [vmem:[%s4644_s29 + $0x1348] sm:$0xff]  ;;  %482 = vst [vmem:[%s4649_s30 + $0x4c8] sm:$0xff] %v481_v25  ;;  %v487_v28 = vld [vmem:[%s4644_s29 + $0x1350] sm:$0xff] }
  0x63   : > { %484 = vst [vmem:[%s4649_s30 + $0x4d0] sm:$0xff] %v483_v26  ;;  %486 = vst [vmem:[%s4649_s30 + $0x4d8] sm:$0xff] %v485_v27  ;;  %v489_v29 = vld [vmem:[%s4644_s29 + $0x1358] sm:$0xff]  ;;  %v491_v30 = vld [vmem:[%s4644_s29 + $0x1360] sm:$0xff] }
  0x64   : > { %488 = vst [vmem:[%s4649_s30 + $0x4e0] sm:$0xff] %v487_v28  ;;  %490 = vst [vmem:[%s4649_s30 + $0x4e8] sm:$0xff] %v489_v29  ;;  %v493_v31 = vld [vmem:[%s4644_s29 + $0x1368] sm:$0xff]  ;;  %v495_v32 = vld [vmem:[%s4644_s29 + $0x1370] sm:$0xff] }
  0x65   : > { %492 = vst [vmem:[%s4649_s30 + $0x4f0] sm:$0xff] %v491_v30  ;;  %v497_v33 = vld [vmem:[%s4644_s29 + $0x1378] sm:$0xff]  ;;  %494 = vst [vmem:[%s4649_s30 + $0x4f8] sm:$0xff] %v493_v31  ;;  %v499_v34 = vld [vmem:[%s4644_s29 + $0x1380] sm:$0xff] }
  0x66   : > { %496 = vst [vmem:[%s4649_s30 + $0x500] sm:$0xff] %v495_v32  ;;  %498 = vst [vmem:[%s4649_s30 + $0x508] sm:$0xff] %v497_v33  ;;  %v501_v35 = vld [vmem:[%s4644_s29 + $0x1388] sm:$0xff]  ;;  %v503_v36 = vld [vmem:[%s4644_s29 + $0x1390] sm:$0xff] }
  0x67   : > { %500 = vst [vmem:[%s4649_s30 + $0x510] sm:$0xff] %v499_v34  ;;  %502 = vst [vmem:[%s4649_s30 + $0x518] sm:$0xff] %v501_v35  ;;  %v505_v37 = vld [vmem:[%s4644_s29 + $0x14a0] sm:$0xff]  ;;  %v507_v38 = vld [vmem:[%s4644_s29 + $0x14a8] sm:$0xff] }
  0x68   : > { %504 = vst [vmem:[%s4649_s30 + $0x520] sm:$0xff] %v503_v36  ;;  %v509_v39 = vld [vmem:[%s4644_s29 + $0x14b0] sm:$0xff]  ;;  %506 = vst [vmem:[%s4649_s30 + $0x528] sm:$0xff] %v505_v37  ;;  %v511_v40 = vld [vmem:[%s4644_s29 + $0x14b8] sm:$0xff] }
  0x69   : > { %508 = vst [vmem:[%s4649_s30 + $0x530] sm:$0xff] %v507_v38  ;;  %510 = vst [vmem:[%s4649_s30 + $0x538] sm:$0xff] %v509_v39  ;;  %v513_v41 = vld [vmem:[%s4644_s29 + $0x14c0] sm:$0xff]  ;;  %v515_v42 = vld [vmem:[%s4644_s29 + $0x14c8] sm:$0xff] }
  0x6a   : > { %512 = vst [vmem:[%s4649_s30 + $0x540] sm:$0xff] %v511_v40  ;;  %514 = vst [vmem:[%s4649_s30 + $0x548] sm:$0xff] %v513_v41  ;;  %v517_v43 = vld [vmem:[%s4644_s29 + $0x14d0] sm:$0xff]  ;;  %v519_v44 = vld [vmem:[%s4644_s29 + $0x14d8] sm:$0xff] }
  0x6b   : > { %516 = vst [vmem:[%s4649_s30 + $0x550] sm:$0xff] %v515_v42  ;;  %v521_v45 = vld [vmem:[%s4644_s29 + $0x14e0] sm:$0xff]  ;;  %518 = vst [vmem:[%s4649_s30 + $0x558] sm:$0xff] %v517_v43  ;;  %v523_v46 = vld [vmem:[%s4644_s29 + $0x14e8] sm:$0xff] }
  0x6c   : > { %520 = vst [vmem:[%s4649_s30 + $0x560] sm:$0xff] %v519_v44  ;;  %522 = vst [vmem:[%s4649_s30 + $0x568] sm:$0xff] %v521_v45  ;;  %v525_v47 = vld [vmem:[%s4644_s29 + $0x14f0] sm:$0xff]  ;;  %v527_v48 = vld [vmem:[%s4644_s29 + $0x1600] sm:$0xff] }
  0x6d   : > { %524 = vst [vmem:[%s4649_s30 + $0x570] sm:$0xff] %v523_v46  ;;  %526 = vst [vmem:[%s4649_s30 + $0x578] sm:$0xff] %v525_v47  ;;  %v529_v49 = vld [vmem:[%s4644_s29 + $0x1608] sm:$0xff]  ;;  %v531_v50 = vld [vmem:[%s4644_s29 + $0x1610] sm:$0xff] }
  0x6e   : > { %528 = vst [vmem:[%s4649_s30 + $0x580] sm:$0xff] %v527_v48  ;;  %v533_v51 = vld [vmem:[%s4644_s29 + $0x1618] sm:$0xff]  ;;  %530 = vst [vmem:[%s4649_s30 + $0x588] sm:$0xff] %v529_v49  ;;  %v535_v52 = vld [vmem:[%s4644_s29 + $0x1620] sm:$0xff] }
  0x6f   : > { %532 = vst [vmem:[%s4649_s30 + $0x590] sm:$0xff] %v531_v50  ;;  %534 = vst [vmem:[%s4649_s30 + $0x598] sm:$0xff] %v533_v51  ;;  %v537_v53 = vld [vmem:[%s4644_s29 + $0x1628] sm:$0xff]  ;;  %v539_v54 = vld [vmem:[%s4644_s29 + $0x1630] sm:$0xff] }
  0x70   : > { %536 = vst [vmem:[%s4649_s30 + $0x5a0] sm:$0xff] %v535_v52  ;;  %538 = vst [vmem:[%s4649_s30 + $0x5a8] sm:$0xff] %v537_v53  ;;  %v541_v55 = vld [vmem:[%s4644_s29 + $0x1638] sm:$0xff]  ;;  %v543_v56 = vld [vmem:[%s4644_s29 + $0x1640] sm:$0xff] }
  0x71   : > { %540 = vst [vmem:[%s4649_s30 + $0x5b0] sm:$0xff] %v539_v54  ;;  %v545_v57 = vld [vmem:[%s4644_s29 + $0x1648] sm:$0xff]  ;;  %542 = vst [vmem:[%s4649_s30 + $0x5b8] sm:$0xff] %v541_v55  ;;  %v547_v58 = vld [vmem:[%s4644_s29 + $0x1650] sm:$0xff] }
  0x72   : > { %544 = vst [vmem:[%s4649_s30 + $0x5c0] sm:$0xff] %v543_v56  ;;  %546 = vst [vmem:[%s4649_s30 + $0x5c8] sm:$0xff] %v545_v57  ;;  %v549_v59 = vld [vmem:[%s4644_s29 + $0x1760] sm:$0xff]  ;;  %v551_v60 = vld [vmem:[%s4644_s29 + $0x1768] sm:$0xff] }
  0x73   : > { %548 = vst [vmem:[%s4649_s30 + $0x5d0] sm:$0xff] %v547_v58  ;;  %550 = vst [vmem:[%s4649_s30 + $0x5d8] sm:$0xff] %v549_v59  ;;  %v553_v61 = vld [vmem:[%s4644_s29 + $0x1770] sm:$0xff]  ;;  %v555_v62 = vld [vmem:[%s4644_s29 + $0x1778] sm:$0xff] }
  0x74   : > { %552 = vst [vmem:[%s4649_s30 + $0x5e0] sm:$0xff] %v551_v60  ;;  %v557_v63 = vld [vmem:[%s4644_s29 + $0x1780] sm:$0xff]  ;;  %554 = vst [vmem:[%s4649_s30 + $0x5e8] sm:$0xff] %v553_v61  ;;  %v559_v0 = vld [vmem:[%s4644_s29 + $0x1788] sm:$0xff] }
  0x75   : > { %556 = vst [vmem:[%s4649_s30 + $0x5f0] sm:$0xff] %v555_v62  ;;  %558 = vst [vmem:[%s4649_s30 + $0x5f8] sm:$0xff] %v557_v63  ;;  %v561_v1 = vld [vmem:[%s4644_s29 + $0x1790] sm:$0xff]  ;;  %v563_v2 = vld [vmem:[%s4644_s29 + $0x1798] sm:$0xff] }
  0x76   : > { %560 = vst [vmem:[%s4649_s30 + $0x600] sm:$0xff] %v559_v0  ;;  %562 = vst [vmem:[%s4649_s30 + $0x608] sm:$0xff] %v561_v1  ;;  %v565_v3 = vld [vmem:[%s4644_s29 + $0x17a0] sm:$0xff]  ;;  %v567_v4 = vld [vmem:[%s4644_s29 + $0x17a8] sm:$0xff] }
  0x77   : > { %564 = vst [vmem:[%s4649_s30 + $0x610] sm:$0xff] %v563_v2  ;;  %v569_v5 = vld [vmem:[%s4644_s29 + $0x17b0] sm:$0xff]  ;;  %566 = vst [vmem:[%s4649_s30 + $0x618] sm:$0xff] %v565_v3  ;;  %v571_v6 = vld [vmem:[%s4644_s29 + $0x18c0] sm:$0xff] }
  0x78   : > { %568 = vst [vmem:[%s4649_s30 + $0x620] sm:$0xff] %v567_v4  ;;  %570 = vst [vmem:[%s4649_s30 + $0x628] sm:$0xff] %v569_v5  ;;  %v573_v7 = vld [vmem:[%s4644_s29 + $0x18c8] sm:$0xff]  ;;  %v575_v8 = vld [vmem:[%s4644_s29 + $0x18d0] sm:$0xff] }
  0x79   : > { %572 = vst [vmem:[%s4649_s30 + $0x630] sm:$0xff] %v571_v6  ;;  %574 = vst [vmem:[%s4649_s30 + $0x638] sm:$0xff] %v573_v7  ;;  %v577_v9 = vld [vmem:[%s4644_s29 + $0x18d8] sm:$0xff]  ;;  %v579_v10 = vld [vmem:[%s4644_s29 + $0x18e0] sm:$0xff] }
  0x7a   : > { %576 = vst [vmem:[%s4649_s30 + $0x640] sm:$0xff] %v575_v8  ;;  %v581_v11 = vld [vmem:[%s4644_s29 + $0x18e8] sm:$0xff]  ;;  %578 = vst [vmem:[%s4649_s30 + $0x648] sm:$0xff] %v577_v9  ;;  %v583_v12 = vld [vmem:[%s4644_s29 + $0x18f0] sm:$0xff] }
  0x7b   : > { %580 = vst [vmem:[%s4649_s30 + $0x650] sm:$0xff] %v579_v10  ;;  %582 = vst [vmem:[%s4649_s30 + $0x658] sm:$0xff] %v581_v11  ;;  %v585_v13 = vld [vmem:[%s4644_s29 + $0x18f8] sm:$0xff]  ;;  %v587_v14 = vld [vmem:[%s4644_s29 + $0x1900] sm:$0xff] }
  0x7c   : > { %584 = vst [vmem:[%s4649_s30 + $0x660] sm:$0xff] %v583_v12  ;;  %586 = vst [vmem:[%s4649_s30 + $0x668] sm:$0xff] %v585_v13  ;;  %v589_v15 = vld [vmem:[%s4644_s29 + $0x1908] sm:$0xff]  ;;  %v591_v16 = vld [vmem:[%s4644_s29 + $0x1910] sm:$0xff] }
  0x7d   : > { %588 = vst [vmem:[%s4649_s30 + $0x670] sm:$0xff] %v587_v14  ;;  %v593_v17 = vld [vmem:[%s4644_s29 + $0x1a20] sm:$0xff]  ;;  %590 = vst [vmem:[%s4649_s30 + $0x678] sm:$0xff] %v589_v15  ;;  %v595_v18 = vld [vmem:[%s4644_s29 + $0x1a28] sm:$0xff] }
  0x7e   : > { %592 = vst [vmem:[%s4649_s30 + $0x680] sm:$0xff] %v591_v16  ;;  %594 = vst [vmem:[%s4649_s30 + $0x688] sm:$0xff] %v593_v17  ;;  %v597_v19 = vld [vmem:[%s4644_s29 + $0x1a30] sm:$0xff]  ;;  %v599_v20 = vld [vmem:[%s4644_s29 + $0x1a38] sm:$0xff] }
  0x7f   : > { %596 = vst [vmem:[%s4649_s30 + $0x690] sm:$0xff] %v595_v18  ;;  %598 = vst [vmem:[%s4649_s30 + $0x698] sm:$0xff] %v597_v19  ;;  %v601_v21 = vld [vmem:[%s4644_s29 + $0x1a40] sm:$0xff]  ;;  %v603_v22 = vld [vmem:[%s4644_s29 + $0x1a48] sm:$0xff] }
  0x80   : > { %600 = vst [vmem:[%s4649_s30 + $0x6a0] sm:$0xff] %v599_v20  ;;  %v605_v23 = vld [vmem:[%s4644_s29 + $0x1a50] sm:$0xff]  ;;  %602 = vst [vmem:[%s4649_s30 + $0x6a8] sm:$0xff] %v601_v21  ;;  %v607_v24 = vld [vmem:[%s4644_s29 + $0x1a58] sm:$0xff] }
  0x81   : > { %604 = vst [vmem:[%s4649_s30 + $0x6b0] sm:$0xff] %v603_v22  ;;  %606 = vst [vmem:[%s4649_s30 + $0x6b8] sm:$0xff] %v605_v23  ;;  %v609_v25 = vld [vmem:[%s4644_s29 + $0x1a60] sm:$0xff]  ;;  %v611_v26 = vld [vmem:[%s4644_s29 + $0x1a68] sm:$0xff] }
  0x82   : > { %608 = vst [vmem:[%s4649_s30 + $0x6c0] sm:$0xff] %v607_v24  ;;  %610 = vst [vmem:[%s4649_s30 + $0x6c8] sm:$0xff] %v609_v25  ;;  %v613_v27 = vld [vmem:[%s4644_s29 + $0x1a70] sm:$0xff]  ;;  %v615_v28 = vld [vmem:[%s4644_s29 + $0x1b80] sm:$0xff] }
  0x83   : > { %612 = vst [vmem:[%s4649_s30 + $0x6d0] sm:$0xff] %v611_v26  ;;  %v617_v29 = vld [vmem:[%s4644_s29 + $0x1b88] sm:$0xff]  ;;  %614 = vst [vmem:[%s4649_s30 + $0x6d8] sm:$0xff] %v613_v27  ;;  %v619_v30 = vld [vmem:[%s4644_s29 + $0x1b90] sm:$0xff] }
  0x84   : > { %616 = vst [vmem:[%s4649_s30 + $0x6e0] sm:$0xff] %v615_v28  ;;  %618 = vst [vmem:[%s4649_s30 + $0x6e8] sm:$0xff] %v617_v29  ;;  %v621_v31 = vld [vmem:[%s4644_s29 + $0x1b98] sm:$0xff]  ;;  %v623_v32 = vld [vmem:[%s4644_s29 + $0x1ba0] sm:$0xff] }
  0x85   : > { %620 = vst [vmem:[%s4649_s30 + $0x6f0] sm:$0xff] %v619_v30  ;;  %622 = vst [vmem:[%s4649_s30 + $0x6f8] sm:$0xff] %v621_v31  ;;  %v625_v33 = vld [vmem:[%s4644_s29 + $0x1ba8] sm:$0xff]  ;;  %v627_v34 = vld [vmem:[%s4644_s29 + $0x1bb0] sm:$0xff] }
  0x86   : > { %624 = vst [vmem:[%s4649_s30 + $0x700] sm:$0xff] %v623_v32  ;;  %v629_v35 = vld [vmem:[%s4644_s29 + $0x1bb8] sm:$0xff]  ;;  %626 = vst [vmem:[%s4649_s30 + $0x708] sm:$0xff] %v625_v33  ;;  %v631_v36 = vld [vmem:[%s4644_s29 + $0x1bc0] sm:$0xff] }
  0x87   : > { %628 = vst [vmem:[%s4649_s30 + $0x710] sm:$0xff] %v627_v34  ;;  %630 = vst [vmem:[%s4649_s30 + $0x718] sm:$0xff] %v629_v35  ;;  %v633_v37 = vld [vmem:[%s4644_s29 + $0x1bc8] sm:$0xff]  ;;  %v635_v38 = vld [vmem:[%s4644_s29 + $0x1bd0] sm:$0xff] }
  0x88   : > { %632 = vst [vmem:[%s4649_s30 + $0x720] sm:$0xff] %v631_v36  ;;  %634 = vst [vmem:[%s4649_s30 + $0x728] sm:$0xff] %v633_v37  ;;  %v637_v39 = vld [vmem:[%s4644_s29 + $0x1ce0] sm:$0xff]  ;;  %v639_v40 = vld [vmem:[%s4644_s29 + $0x1ce8] sm:$0xff] }
  0x89   : > { %636 = vst [vmem:[%s4649_s30 + $0x730] sm:$0xff] %v635_v38  ;;  %v641_v41 = vld [vmem:[%s4644_s29 + $0x1cf0] sm:$0xff]  ;;  %638 = vst [vmem:[%s4649_s30 + $0x738] sm:$0xff] %v637_v39  ;;  %v643_v42 = vld [vmem:[%s4644_s29 + $0x1cf8] sm:$0xff] }
  0x8a   : > { %640 = vst [vmem:[%s4649_s30 + $0x740] sm:$0xff] %v639_v40  ;;  %642 = vst [vmem:[%s4649_s30 + $0x748] sm:$0xff] %v641_v41  ;;  %v645_v43 = vld [vmem:[%s4644_s29 + $0x1d00] sm:$0xff]  ;;  %v647_v44 = vld [vmem:[%s4644_s29 + $0x1d08] sm:$0xff] }
  0x8b   : > { %644 = vst [vmem:[%s4649_s30 + $0x750] sm:$0xff] %v643_v42  ;;  %646 = vst [vmem:[%s4649_s30 + $0x758] sm:$0xff] %v645_v43  ;;  %v649_v45 = vld [vmem:[%s4644_s29 + $0x1d10] sm:$0xff]  ;;  %v651_v46 = vld [vmem:[%s4644_s29 + $0x1d18] sm:$0xff] }
  0x8c   : > { %648 = vst [vmem:[%s4649_s30 + $0x760] sm:$0xff] %v647_v44  ;;  %v653_v47 = vld [vmem:[%s4644_s29 + $0x1d20] sm:$0xff]  ;;  %650 = vst [vmem:[%s4649_s30 + $0x768] sm:$0xff] %v649_v45  ;;  %v655_v48 = vld [vmem:[%s4644_s29 + $0x1d28] sm:$0xff] }
  0x8d   : > { %652 = vst [vmem:[%s4649_s30 + $0x770] sm:$0xff] %v651_v46  ;;  %654 = vst [vmem:[%s4649_s30 + $0x778] sm:$0xff] %v653_v47  ;;  %v657_v49 = vld [vmem:[%s4644_s29 + $0x1d30] sm:$0xff]  ;;  %v659_v50 = vld [vmem:[%s4644_s29 + $0x1e40] sm:$0xff] }
  0x8e   : > { %656 = vst [vmem:[%s4649_s30 + $0x780] sm:$0xff] %v655_v48  ;;  %658 = vst [vmem:[%s4649_s30 + $0x788] sm:$0xff] %v657_v49  ;;  %v661_v51 = vld [vmem:[%s4644_s29 + $0x1e48] sm:$0xff]  ;;  %v663_v52 = vld [vmem:[%s4644_s29 + $0x1e50] sm:$0xff] }
  0x8f   : > { %660 = vst [vmem:[%s4649_s30 + $0x790] sm:$0xff] %v659_v50  ;;  %v665_v53 = vld [vmem:[%s4644_s29 + $0x1e58] sm:$0xff]  ;;  %662 = vst [vmem:[%s4649_s30 + $0x798] sm:$0xff] %v661_v51  ;;  %v667_v54 = vld [vmem:[%s4644_s29 + $0x1e60] sm:$0xff] }
  0x90   : > { %664 = vst [vmem:[%s4649_s30 + $0x7a0] sm:$0xff] %v663_v52  ;;  %666 = vst [vmem:[%s4649_s30 + $0x7a8] sm:$0xff] %v665_v53  ;;  %v669_v55 = vld [vmem:[%s4644_s29 + $0x1e68] sm:$0xff]  ;;  %v671_v56 = vld [vmem:[%s4644_s29 + $0x1e70] sm:$0xff] }
  0x91   : > { %668 = vst [vmem:[%s4649_s30 + $0x7b0] sm:$0xff] %v667_v54  ;;  %670 = vst [vmem:[%s4649_s30 + $0x7b8] sm:$0xff] %v669_v55  ;;  %v673_v57 = vld [vmem:[%s4644_s29 + $0x1e78] sm:$0xff]  ;;  %v675_v58 = vld [vmem:[%s4644_s29 + $0x1e80] sm:$0xff] }
  0x92   : > { %672 = vst [vmem:[%s4649_s30 + $0x7c0] sm:$0xff] %v671_v56  ;;  %v677_v59 = vld [vmem:[%s4644_s29 + $0x1e88] sm:$0xff]  ;;  %674 = vst [vmem:[%s4649_s30 + $0x7c8] sm:$0xff] %v673_v57  ;;  %v679_v60 = vld [vmem:[%s4644_s29 + $0x1e90] sm:$0xff] }
  0x93   : > { %676 = vst [vmem:[%s4649_s30 + $0x7d0] sm:$0xff] %v675_v58  ;;  %678 = vst [vmem:[%s4649_s30 + $0x7d8] sm:$0xff] %v677_v59 }
  0x94   : > { %680 = vst [vmem:[%s4649_s30 + $0x7e0] sm:$0xff] %v679_v60 }
  0x95 PF: > { %p3710_p7 = scmp.ge.s32.totalorder %s4576_s17, 1  ;;  %p685_p8 = scmp.lt.s32.totalorder %s4576_s17, 5 }
  0x97   : > { %p686_p9 = pnand %p3710_p7, %p685_p8 }
  0x98   : > { %s692_s5 = sand.u32 (!%p686_p9), 1, %s4568_s15   ;;  %v5160_v61 = vld [vmem:[%s5917_s0 + $0x4] ss:$8 sps:$4 sm:$0xff] (!%p686_p9)   ;;  %vm2259_vm0 = vcmask (!%p686_p9), 424960   ;;  %v4578_v0 = vmov (!%p686_p9), 0   ;;  %vm2266_vm1 = vcmask (!%p686_p9), 1041408  }
  0x99   : > { %689 = sbr.rel (%p686_p9) target bundleno = 679 (0x2a7), region = 55  ;;  %3980 = vmatprep.mubr.msk.bf16.mxu0 (!%p686_p9), %vm2259_vm0, %v5160_v61  ;;  %3983 = vmatprep.mubr.msk.bf16.mxu1 (!%p686_p9), %vm2259_vm0, %v5160_v61  ;;  %v5225_v53 = vld [vmem:[%s5917_s0] ss:$8 sps:$4 sm:$0xff] (!%p686_p9)   ;;  %v5234_v58 = vld [vmem:[%s5917_s0 + $0x14] ss:$8 sps:$4 sm:$0xff] (!%p686_p9)  }
  0x9a   : > { %s4130_s8 = smul.u32 (!%p686_p9), 2024, %s692_s5  ;;  %4157 = vset.pattern.permute.xlu0 (!%p686_p9), %v4578_v0  ;;  %4158 = vset.pattern.permute.xlu1 (!%p686_p9), %v4578_v0 }
  0x9b   : > { %s5573_s30 = smul.u32 (!%p686_p9), 352, %s692_s5 }
  0x9c   : > { %s5168_s9 = scalar_lea.vmem (!%p686_p9), [#allocation2], %s4130_s8 }
  0x9d   : > { %v4159_v62 = vld [vmem:[%s5168_s9 + $0x4] ss:$88 sps:$4 sm:$0xff] (!%p686_p9)   ;;  %v4163_v1 = vld [vmem:[%s5168_s9] ss:$88 sps:$4 sm:$0xff] (!%p686_p9)   ;;  %v4165_v3 = vld [vmem:[%s5168_s9 + $0xb4] ss:$88 sps:$4 sm:$0xff] (!%p686_p9)  }
  0x9e   : > { %v4161_v63 = vld [vmem:[%s5168_s9 + $0xc] ss:$88 sps:$4 sm:$0xff] (!%p686_p9)   ;;  %2333 = vmatprep.subr.bf16.mxu0 (!%p686_p9), %v4159_v62  ;;  %v4164_v2 = vld [vmem:[%s5168_s9 + $0x8] ss:$88 sps:$4 sm:$0xff] (!%p686_p9)   ;;  %v4167_v4 = vld [vmem:[%s5168_s9 + $0xbc] ss:$88 sps:$4 sm:$0xff] (!%p686_p9)  }
  0x9f   : > { %2386 = vmatprep.subr.bf16.mxu1 (!%p686_p9), %v4161_v63  ;;  %2334 = vmatpush1.bf16.msra.mxu0 (!%p686_p9), %v4163_v1  ;;  %v4169_v5 = vld [vmem:[%s5168_s9 + $0xb0] ss:$88 sps:$4 sm:$0xff] (!%p686_p9)   ;;  %v4171_v7 = vld [vmem:[%s5168_s9 + $0x164] ss:$88 sps:$4 sm:$0xff] (!%p686_p9)   ;;  %v4175_v9 = vld [vmem:[%s5168_s9 + $0x160] ss:$88 sps:$4 sm:$0xff] (!%p686_p9)  }
  0xa0   : > { %2387 = vmatpush1.bf16.msra.mxu1 %v4164_v2  ;;  %2335 = vmatprep.subr.bf16.mxu0 %v4165_v3  ;;  %v4170_v6 = vld [vmem:[%s5168_s9 + $0xb8] ss:$88 sps:$4 sm:$0xff]   ;;  %v4173_v8 = vld [vmem:[%s5168_s9 + $0x16c] ss:$88 sps:$4 sm:$0xff]   ;;  %v4176_v10 = vld [vmem:[%s5168_s9 + $0x168] ss:$88 sps:$4 sm:$0xff]  }
  0xa1   : > { %2388 = vmatprep.subr.bf16.mxu1 %v4167_v4  ;;  %v4177_v11 = vld [vmem:[%s5168_s9 + $0x214] ss:$88 sps:$4 sm:$0xff]   ;;  %v4181_v13 = vld [vmem:[%s5168_s9 + $0x210] ss:$88 sps:$4 sm:$0xff]   ;;  %v4183_v15 = vld [vmem:[%s5168_s9 + $0x2c4] ss:$88 sps:$4 sm:$0xff]  }
  0xa2   : > { %v4179_v12 = vld [vmem:[%s5168_s9 + $0x21c] ss:$88 sps:$4 sm:$0xff]   ;;  %v4182_v14 = vld [vmem:[%s5168_s9 + $0x218] ss:$88 sps:$4 sm:$0xff]   ;;  %v4185_v16 = vld [vmem:[%s5168_s9 + $0x2cc] ss:$88 sps:$4 sm:$0xff]  }
  0xa3   : > { %2336 = vmatpush1.bf16.msra.mxu0 %v4169_v5  ;;  %v4187_v17 = vld [vmem:[%s5168_s9 + $0x2c0] ss:$88 sps:$4 sm:$0xff]   ;;  %v4189_v19 = vld [vmem:[%s5168_s9 + $0x374] ss:$88 sps:$4 sm:$0xff]   ;;  %v4193_v21 = vld [vmem:[%s5168_s9 + $0x370] ss:$88 sps:$4 sm:$0xff]  }
  0xa4   : > { %2389 = vmatpush1.bf16.msra.mxu1 %v4170_v6  ;;  %2337 = vmatprep.subr.bf16.mxu0 %v4171_v7  ;;  %v4188_v18 = vld [vmem:[%s5168_s9 + $0x2c8] ss:$88 sps:$4 sm:$0xff]   ;;  %v4191_v20 = vld [vmem:[%s5168_s9 + $0x37c] ss:$88 sps:$4 sm:$0xff]   ;;  %v4194_v22 = vld [vmem:[%s5168_s9 + $0x378] ss:$88 sps:$4 sm:$0xff]  }
  0xa5   : > { %2390 = vmatprep.subr.bf16.mxu1 %v4173_v8  ;;  %v4195_v23 = vld [vmem:[%s5168_s9 + $0x424] ss:$88 sps:$4 sm:$0xff]   ;;  %v4199_v25 = vld [vmem:[%s5168_s9 + $0x420] ss:$88 sps:$4 sm:$0xff]   ;;  %v4201_v27 = vld [vmem:[%s5168_s9 + $0x4d4] ss:$88 sps:$4 sm:$0xff]  }
  0xa6   : > { %v4197_v24 = vld [vmem:[%s5168_s9 + $0x42c] ss:$88 sps:$4 sm:$0xff]   ;;  %v4200_v26 = vld [vmem:[%s5168_s9 + $0x428] ss:$88 sps:$4 sm:$0xff]   ;;  %v4203_v28 = vld [vmem:[%s5168_s9 + $0x4dc] ss:$88 sps:$4 sm:$0xff]  }
  0xa7   : > { %2338 = vmatpush1.bf16.msra.mxu0 %v4175_v9  ;;  %v4205_v29 = vld [vmem:[%s5168_s9 + $0x4d0] ss:$88 sps:$4 sm:$0xff]   ;;  %v4207_v31 = vld [vmem:[%s5168_s9 + $0x584] ss:$88 sps:$4 sm:$0xff]   ;;  %v4211_v33 = vld [vmem:[%s5168_s9 + $0x580] ss:$88 sps:$4 sm:$0xff]  }
  0xa8   : > { %2391 = vmatpush1.bf16.msra.mxu1 %v4176_v10  ;;  %2339 = vmatprep.subr.bf16.mxu0 %v4177_v11  ;;  %v4206_v30 = vld [vmem:[%s5168_s9 + $0x4d8] ss:$88 sps:$4 sm:$0xff]   ;;  %v4209_v32 = vld [vmem:[%s5168_s9 + $0x58c] ss:$88 sps:$4 sm:$0xff]   ;;  %v4212_v34 = vld [vmem:[%s5168_s9 + $0x588] ss:$88 sps:$4 sm:$0xff]  }
  0xa9   : > { %2392 = vmatprep.subr.bf16.mxu1 %v4179_v12  ;;  %v4213_v35 = vld [vmem:[%s5168_s9 + $0x634] ss:$88 sps:$4 sm:$0xff]   ;;  %v4217_v37 = vld [vmem:[%s5168_s9 + $0x630] ss:$88 sps:$4 sm:$0xff]   ;;  %v4219_v39 = vld [vmem:[%s5168_s9 + $0x6e4] ss:$88 sps:$4 sm:$0xff]  }
  0xaa   : > { %v4215_v36 = vld [vmem:[%s5168_s9 + $0x63c] ss:$88 sps:$4 sm:$0xff]   ;;  %v4218_v38 = vld [vmem:[%s5168_s9 + $0x638] ss:$88 sps:$4 sm:$0xff]   ;;  %v4221_v40 = vld [vmem:[%s5168_s9 + $0x6ec] ss:$88 sps:$4 sm:$0xff]  }
  0xab   : > { %2340 = vmatpush1.bf16.msra.mxu0 %v4181_v13  ;;  %v965_v41 = vld [vmem:[%s5168_s9 + $0x790] sm:$0x33]  ;;  %v966_v42 = vld [vmem:[%s5168_s9 + $0x798] sm:$0x33]  ;;  %v4224_v44 = vld [vmem:[%s5168_s9 + $0x6e8] ss:$88 sps:$4 sm:$0xff]  }
  0xac   : > { %2393 = vmatpush1.bf16.msra.mxu1 %v4182_v14  ;;  %2341 = vmatprep.subr.bf16.mxu0 %v4183_v15  ;;  %v4223_v43 = vld [vmem:[%s5168_s9 + $0x6e0] ss:$88 sps:$4 sm:$0xff]   ;;  %v3958_v45 = vcombine.high %v965_v41, %v965_v41  ;;  %v3960_v46 = vcombine.high %v966_v42, %v966_v42  ;;  %v3957_v47 = vcombine.low %v965_v41, %v965_v41  ;;  %v4234_v49 = vld [vmem:[%s5168_s9 + $0x14] ss:$88 sps:$4 sm:$0xff]   ;;  %v4232_v54 = vld [vmem:[%s5168_s9 + $0x10] ss:$88 sps:$4 sm:$0xff]  }
  0xad   : > { %2394 = vmatprep.subr.bf16.mxu1 %v4185_v16  ;;  %v3959_v48 = vcombine.low %v966_v42, %v966_v42  ;;  %v4237_v52 = vld [vmem:[%s5168_s9 + $0x1c] ss:$88 sps:$4 sm:$0xff]   ;;  %v4235_v55 = vld [vmem:[%s5168_s9 + $0x18] ss:$88 sps:$4 sm:$0xff]   ;;  %v4243_v57 = vld [vmem:[%s5168_s9 + $0xcc] ss:$88 sps:$4 sm:$0xff]  }
  0xae   : > { %v2268_v50 = vsel %vm2266_vm1, %v3957_v47, 0  ;;  %v4240_v56 = vld [vmem:[%s5168_s9 + $0xc4] ss:$88 sps:$4 sm:$0xff]   ;;  %v4238_v59 = vld [vmem:[%s5168_s9 + $0xc0] ss:$88 sps:$4 sm:$0xff]   ;;  %s5595_s15 = scalar_lea.vmem [#allocation3], %s5573_s30 }
  0xaf   : > { %2342 = vmatpush1.bf16.msra.mxu0 %v4187_v17  ;;  %v2274_v51 = vsel %vm2266_vm1, %v3959_v48, 0  ;;  %v4241_v60 = vld [vmem:[%s5168_s9 + $0xc8] ss:$88 sps:$4 sm:$0xff]   ;;  %v4246_v62 = vld [vmem:[%s5168_s9 + $0x174] ss:$88 sps:$4 sm:$0xff]   ;;  %s4104_s5 = smul.u32 (%p4634_p5), 88, %s3705_s18 }
  0xb0   : > { %2395 = vmatpush1.bf16.msra.mxu1 %v4188_v18  ;;  %2343 = vmatprep.subr.bf16.mxu0 %v4189_v19  ;;  %v4249_v63 = vld [vmem:[%s5168_s9 + $0x17c] ss:$88 sps:$4 sm:$0xff]   ;;  %v4244_v0 = vld [vmem:[%s5168_s9 + $0x170] ss:$88 sps:$4 sm:$0xff]   ;;  %v4255_v4 = vld [vmem:[%s5168_s9 + $0x22c] ss:$88 sps:$4 sm:$0xff]  }
  0xb1   : > { %2396 = vmatprep.subr.bf16.mxu1 %v4191_v20  ;;  %v5250_v1 = vld [vmem:[%s5917_s0 + $0x10] ss:$8 sps:$4 sm:$0xff]   ;;  %v4252_v3 = vld [vmem:[%s5168_s9 + $0x224] ss:$88 sps:$4 sm:$0xff]   ;;  %v4258_v7 = vld [vmem:[%s5168_s9 + $0x2d4] ss:$88 sps:$4 sm:$0xff]  }
  0xb2   : > { %v4247_v2 = vld [vmem:[%s5168_s9 + $0x178] ss:$88 sps:$4 sm:$0xff]   ;;  %v4253_v6 = vld [vmem:[%s5168_s9 + $0x228] ss:$88 sps:$4 sm:$0xff]   ;;  %v4261_v8 = vld [vmem:[%s5168_s9 + $0x2dc] ss:$88 sps:$4 sm:$0xff]  }
  0xb3   : > { %2344 = vmatpush1.bf16.msra.mxu0 %v4193_v21  ;;  %v4250_v5 = vld [vmem:[%s5168_s9 + $0x220] ss:$88 sps:$4 sm:$0xff]   ;;  %v4256_v9 = vld [vmem:[%s5168_s9 + $0x2d0] ss:$88 sps:$4 sm:$0xff]   ;;  %v4264_v11 = vld [vmem:[%s5168_s9 + $0x384] ss:$88 sps:$4 sm:$0xff]  }
  0xb4   : > { %2397 = vmatpush1.bf16.msra.mxu1 %v4194_v22  ;;  %2345 = vmatprep.subr.bf16.mxu0 %v4195_v23  ;;  %v4259_v10 = vld [vmem:[%s5168_s9 + $0x2d8] ss:$88 sps:$4 sm:$0xff]   ;;  %v4267_v12 = vld [vmem:[%s5168_s9 + $0x38c] ss:$88 sps:$4 sm:$0xff]   ;;  %v4265_v14 = vld [vmem:[%s5168_s9 + $0x388] ss:$88 sps:$4 sm:$0xff]  }
  0xb5   : > { %2398 = vmatprep.subr.bf16.mxu1 %v4197_v24  ;;  %v4262_v13 = vld [vmem:[%s5168_s9 + $0x380] ss:$88 sps:$4 sm:$0xff]   ;;  %v4270_v15 = vld [vmem:[%s5168_s9 + $0x434] ss:$88 sps:$4 sm:$0xff]   ;;  %v4268_v17 = vld [vmem:[%s5168_s9 + $0x430] ss:$88 sps:$4 sm:$0xff]  }
  0xb6   : > { %v4273_v16 = vld [vmem:[%s5168_s9 + $0x43c] ss:$88 sps:$4 sm:$0xff]   ;;  %v4271_v18 = vld [vmem:[%s5168_s9 + $0x438] ss:$88 sps:$4 sm:$0xff]   ;;  %v4279_v20 = vld [vmem:[%s5168_s9 + $0x4ec] ss:$88 sps:$4 sm:$0xff]  }
  0xb7   : > { %2346 = vmatpush1.bf16.msra.mxu0 %v4199_v25  ;;  %v4276_v19 = vld [vmem:[%s5168_s9 + $0x4e4] ss:$88 sps:$4 sm:$0xff]   ;;  %v4274_v21 = vld [vmem:[%s5168_s9 + $0x4e0] ss:$88 sps:$4 sm:$0xff]   ;;  %v4282_v23 = vld [vmem:[%s5168_s9 + $0x594] ss:$88 sps:$4 sm:$0xff]  }
  0xb8   : > { %2399 = vmatpush1.bf16.msra.mxu1 %v4200_v26  ;;  %2347 = vmatprep.subr.bf16.mxu0 %v4201_v27  ;;  %v4277_v22 = vld [vmem:[%s5168_s9 + $0x4e8] ss:$88 sps:$4 sm:$0xff]   ;;  %v4285_v24 = vld [vmem:[%s5168_s9 + $0x59c] ss:$88 sps:$4 sm:$0xff]   ;;  %v4283_v26 = vld [vmem:[%s5168_s9 + $0x598] ss:$88 sps:$4 sm:$0xff]  }
  0xb9   : > { %2400 = vmatprep.subr.bf16.mxu1 %v4203_v28  ;;  %v4280_v25 = vld [vmem:[%s5168_s9 + $0x590] ss:$88 sps:$4 sm:$0xff]   ;;  %v4288_v27 = vld [vmem:[%s5168_s9 + $0x644] ss:$88 sps:$4 sm:$0xff]  }
  0xba   : > { %v4291_v28 = vld [vmem:[%s5168_s9 + $0x64c] ss:$88 sps:$4 sm:$0xff]  }
  0xbb   : > { %2348 = vmatpush1.bf16.msra.mxu0 %v4205_v29  ;;  %v2916_v29 = vld [vmem:[%s5918_s1] sm:$0xff] }
  0xbc   : > { %2401 = vmatpush1.bf16.msra.mxu1 %v4206_v30  ;;  %2349 = vmatprep.subr.bf16.mxu0 %v4207_v31  ;;  %v4286_v30 = vld [vmem:[%s5168_s9 + $0x640] ss:$88 sps:$4 sm:$0xff]   ;;  %v2918_v31 = vld [vmem:[%s5918_s1 + $0x10] sm:$0xff]  ;;  %v4307_v47 = vld [vmem:[%s5168_s9 + $0x24] ss:$88 sps:$4 sm:$0xff]  }
  0xbd   : > { %2402 = vmatprep.subr.bf16.mxu1 %v4209_v32  ;;  %2922 = vperm.xlu0 %4157, %v2916_v29   ;;  %v4289_v32 = vld [vmem:[%s5168_s9 + $0x648] ss:$88 sps:$4 sm:$0xff]   ;;  %v4362_v29 = vld [vmem:[%s5168_s9 + $0x658] ss:$88 sps:$4 sm:$0xff]  }
  0xbe   : > { %2932 = vperm.xlu1 %4158, %v2918_v31   ;;  %v3028_v42 = vld [vmem:[%s5919_s2] sm:$0xff] }
  0xbf   : > { %2350 = vmatpush1.bf16.msra.mxu0 %v4211_v33  ;;  %v4297_v33 = vld [vmem:[%s5168_s9 + $0x6f4] ss:$88 sps:$4 sm:$0xff]  }
  0xc0   : > { %2403 = vmatpush1.bf16.msra.mxu1 %v4212_v34  ;;  %2351 = vmatprep.subr.bf16.mxu0 %v4213_v35  ;;  %v4300_v34 = vld [vmem:[%s5168_s9 + $0x6fc] ss:$88 sps:$4 sm:$0xff]   ;;  %v967_v35 = vld [vmem:[%s5168_s9 + $0x7a0] sm:$0x33] }
  0xc1   : > { %2404 = vmatprep.subr.bf16.mxu1 %v4215_v36  ;;  %v2917_v36 = vld [vmem:[%s5918_s1 + $0x8] sm:$0xff]  ;;  %v3962_v41 = vcombine.high %v967_v35, %v967_v35 }
  0xc2   : > { %2927 = vperm.xlu0 %4157, %v2917_v36   ;;  %v4370_v31 = vld [vmem:[%s5168_s9 + $0x70c] ss:$88 sps:$4 sm:$0xff]  }
  0xc3   : > { %2352 = vmatpush1.bf16.msra.mxu0 %v4217_v37  ;;  %v2919_v37 = vld [vmem:[%s5918_s1 + $0x18] sm:$0xff] }
  0xc4   : > { %2405 = vmatpush1.bf16.msra.mxu1 %v4218_v38  ;;  %2353 = vmatprep.subr.bf16.mxu0 %v4219_v39  ;;  %v968_v38 = vld [vmem:[%s5168_s9 + $0x7a8] sm:$0x33] }
  0xc5   : > { %2406 = vmatprep.subr.bf16.mxu1 %v4221_v40  ;;  %v4295_v39 = vld [vmem:[%s5168_s9 + $0x6f0] ss:$88 sps:$4 sm:$0xff]   ;;  %2937 = vperm.xlu1 %4158, %v2919_v37  }
  0xc6   : > { %v4298_v40 = vld [vmem:[%s5168_s9 + $0x6f8] ss:$88 sps:$4 sm:$0xff]   ;;  %3034 = vperm.xlu0 %4157, %v3028_v42  }
  0xc7   : > { %2354 = vmatpush1.bf16.msra.mxu0 %v4223_v43  ;;  %v3029_v43 = vld [vmem:[%s5919_s2 + $0x8] sm:$0xff] }
  0xc8   : > { %2407 = vmatpush1.bf16.msra.mxu1 %v4224_v44  ;;  %3979 = vmatprep.subr.msk.bf16.mxu0 %vm2266_vm1, %v3958_v45  ;;  %v3964_v44 = vcombine.high %v968_v38, %v968_v38  ;;  %v3961_v45 = vcombine.low %v967_v35, %v967_v35  ;;  %v4368_v35 = vld [vmem:[%s5168_s9 + $0x708] ss:$88 sps:$4 sm:$0xff]  }
  0xc9   : > { %3982 = vmatprep.subr.msk.bf16.mxu1 %vm2266_vm1, %v3960_v46  ;;  %v3963_v46 = vcombine.low %v968_v38, %v968_v38  ;;  %3039 = vperm.xlu1 %4158, %v3029_v43   ;;  %v4380_v43 = vld [vmem:[%s5168_s9 + $0x3c] ss:$88 sps:$4 sm:$0xff]  }
  0xca   : > { %v2280_v48 = vsel %vm2266_vm1, %v3961_v45, 0  ;;  %v4378_v45 = vld [vmem:[%s5168_s9 + $0x38] ss:$88 sps:$4 sm:$0xff]  }
  0xcb   : > { %2356 = vmatpush1.bf16.msra.mxu0 %v2268_v50  ;;  %v4310_v50 = vld [vmem:[%s5168_s9 + $0x2c] ss:$88 sps:$4 sm:$0xff]  }
  0xcc   : > { %2409 = vmatpush1.bf16.msra.mxu1 %v2274_v51  ;;  %2439 = vmatprep.subr.bf16.mxu0 %v4234_v49  ;;  %v2286_v49 = vsel %vm2266_vm1, %v3963_v46, 0  ;;  %v4305_v51 = vld [vmem:[%s5168_s9 + $0x20] ss:$88 sps:$4 sm:$0xff]   ;;  %v4383_v46 = vld [vmem:[%s5168_s9 + $0xe4] ss:$88 sps:$4 sm:$0xff]  }
  0xcd   : > { %2492 = vmatprep.subr.bf16.mxu1 %v4237_v52  ;;  %v4308_v52 = vld [vmem:[%s5168_s9 + $0x28] ss:$88 sps:$4 sm:$0xff]  }
  0xce   : > { %2366 = vmatmul.mubr.bf16.vlgmr.msra.gmra.mrb[0].mxu0 %v5225_v53 }
  0xcf   : > { %2419 = vmatmul.mubr.bf16.vlgmr.msra.gmra.mrb[0].mxu1 %v5225_v53  ;;  %2440 = vmatpush1.bf16.msra.mxu0 %v4232_v54  ;;  %v4313_v54 = vld [vmem:[%s5168_s9 + $0xd4] ss:$88 sps:$4 sm:$0xff]  }
  0xd0   : > { %2493 = vmatpush1.bf16.msra.mxu1 %v4235_v55  ;;  %2441 = vmatprep.subr.bf16.mxu0 %v4240_v56  ;;  %v4316_v55 = vld [vmem:[%s5168_s9 + $0xdc] ss:$88 sps:$4 sm:$0xff]   ;;  %v4311_v56 = vld [vmem:[%s5168_s9 + $0xd0] ss:$88 sps:$4 sm:$0xff]  }
  0xd1   : > { %2494 = vmatprep.subr.bf16.mxu1 %v4243_v57  ;;  %3981 = vmatprep.mubr.msk.bf16.mxu0 %vm2259_vm0, %v5234_v58  ;;  %v4314_v57 = vld [vmem:[%s5168_s9 + $0xd8] ss:$88 sps:$4 sm:$0xff]  }
  0xd2   : > { %3984 = vmatprep.mubr.msk.bf16.mxu1 %vm2259_vm0, %v5234_v58 }
  0xd3   : > { %2442 = vmatpush1.bf16.msra.mxu0 %v4238_v59  ;;  %v4319_v59 = vld [vmem:[%s5168_s9 + $0x184] ss:$88 sps:$4 sm:$0xff]  }
  0xd4   : > { %2495 = vmatpush1.bf16.msra.mxu1 %v4241_v60  ;;  %2443 = vmatprep.subr.bf16.mxu0 %v4246_v62  ;;  %v4322_v60 = vld [vmem:[%s5168_s9 + $0x18c] ss:$88 sps:$4 sm:$0xff]   ;;  %v4317_v62 = vld [vmem:[%s5168_s9 + $0x180] ss:$88 sps:$4 sm:$0xff]  }
  0xd5   : > { %2496 = vmatprep.subr.bf16.mxu1 %v4249_v63  ;;  %v4320_v63 = vld [vmem:[%s5168_s9 + $0x188] ss:$88 sps:$4 sm:$0xff]  }
  0xd6   : > { %2376 = vmatmul.mubr.bf16.gmra.mrb[4].mxu0 %v5250_v1 }
  0xd7   : > { %2429 = vmatmul.mubr.bf16.gmra.mrb[4].mxu1 %v5250_v1  ;;  %2444 = vmatpush1.bf16.msra.mxu0 %v4244_v0  ;;  %v4325_v0 = vld [vmem:[%s5168_s9 + $0x234] ss:$88 sps:$4 sm:$0xff]  }
  0xd8   : > { %2497 = vmatpush1.bf16.msra.mxu1 %v4247_v2  ;;  %2445 = vmatprep.subr.bf16.mxu0 %v4252_v3  ;;  %v4328_v2 = vld [vmem:[%s5168_s9 + $0x23c] ss:$88 sps:$4 sm:$0xff]   ;;  %v4323_v3 = vld [vmem:[%s5168_s9 + $0x230] ss:$88 sps:$4 sm:$0xff]  }
  0xd9   : > { %2498 = vmatprep.subr.bf16.mxu1 %v4255_v4  ;;  %3986 = vmatprep.mubr.msk.bf16.mxu0 %vm2259_vm0, %v5160_v61  ;;  %v4326_v4 = vld [vmem:[%s5168_s9 + $0x238] ss:$88 sps:$4 sm:$0xff]  }
  0xda   : > { %3989 = vmatprep.mubr.msk.bf16.mxu1 %vm2259_vm0, %v5160_v61 }
  0xdb   : > { %2446 = vmatpush1.bf16.msra.mxu0 %v4250_v5  ;;  %v4331_v5 = vld [vmem:[%s5168_s9 + $0x2e4] ss:$88 sps:$4 sm:$0xff]  }
  0xdc   : > { %2499 = vmatpush1.bf16.msra.mxu1 %v4253_v6  ;;  %2447 = vmatprep.subr.bf16.mxu0 %v4258_v7  ;;  %v4334_v6 = vld [vmem:[%s5168_s9 + $0x2ec] ss:$88 sps:$4 sm:$0xff]   ;;  %v4329_v7 = vld [vmem:[%s5168_s9 + $0x2e0] ss:$88 sps:$4 sm:$0xff]  }
  0xdd   : > { %2500 = vmatprep.subr.bf16.mxu1 %v4261_v8  ;;  %v4332_v8 = vld [vmem:[%s5168_s9 + $0x2e8] ss:$88 sps:$4 sm:$0xff]  }
  0xdf   : > { %2448 = vmatpush1.bf16.msra.mxu0 %v4256_v9  ;;  %v4337_v9 = vld [vmem:[%s5168_s9 + $0x394] ss:$88 sps:$4 sm:$0xff]  }
  0xe0   : > { %2501 = vmatpush1.bf16.msra.mxu1 %v4259_v10  ;;  %2449 = vmatprep.subr.bf16.mxu0 %v4264_v11  ;;  %v4340_v10 = vld [vmem:[%s5168_s9 + $0x39c] ss:$88 sps:$4 sm:$0xff]  }
  0xe1   : > { %2502 = vmatprep.subr.bf16.mxu1 %v4267_v12  ;;  %v3031_v11 = vld [vmem:[%s5919_s2 + $0x18] sm:$0xff] }
  0xe2   : > { %3049 = vperm.xlu1 %4158, %v3031_v11   ;;  %v4335_v12 = vld [vmem:[%s5168_s9 + $0x390] ss:$88 sps:$4 sm:$0xff]   ;;  %v4417_v11 = vld [vmem:[%s5168_s9 + $0x500] ss:$88 sps:$4 sm:$0xff]  }
  0xe3   : > { %2450 = vmatpush1.bf16.msra.mxu0 %v4262_v13  ;;  %v4338_v13 = vld [vmem:[%s5168_s9 + $0x398] ss:$88 sps:$4 sm:$0xff]  }
  0xe4   : > { %2503 = vmatpush1.bf16.msra.mxu1 %v4265_v14  ;;  %2451 = vmatprep.subr.bf16.mxu0 %v4270_v15  ;;  %v4343_v14 = vld [vmem:[%s5168_s9 + $0x444] ss:$88 sps:$4 sm:$0xff]  }
  0xe5   : > { %2504 = vmatprep.subr.bf16.mxu1 %v4273_v16  ;;  %v4346_v15 = vld [vmem:[%s5168_s9 + $0x44c] ss:$88 sps:$4 sm:$0xff]   ;;  %v4341_v16 = vld [vmem:[%s5168_s9 + $0x440] ss:$88 sps:$4 sm:$0xff]  }
  0xe7   : > { %2452 = vmatpush1.bf16.msra.mxu0 %v4268_v17  ;;  %v4344_v17 = vld [vmem:[%s5168_s9 + $0x448] ss:$88 sps:$4 sm:$0xff]  }
  0xe8   : > { %2505 = vmatpush1.bf16.msra.mxu1 %v4271_v18  ;;  %2453 = vmatprep.subr.bf16.mxu0 %v4276_v19  ;;  %v4349_v18 = vld [vmem:[%s5168_s9 + $0x4f4] ss:$88 sps:$4 sm:$0xff]  }
  0xe9   : > { %2506 = vmatprep.subr.bf16.mxu1 %v4279_v20  ;;  %v4352_v19 = vld [vmem:[%s5168_s9 + $0x4fc] ss:$88 sps:$4 sm:$0xff]   ;;  %v4347_v20 = vld [vmem:[%s5168_s9 + $0x4f0] ss:$88 sps:$4 sm:$0xff]  }
  0xeb   : > { %2454 = vmatpush1.bf16.msra.mxu0 %v4274_v21  ;;  %v4350_v21 = vld [vmem:[%s5168_s9 + $0x4f8] ss:$88 sps:$4 sm:$0xff]  }
  0xec   : > { %2507 = vmatpush1.bf16.msra.mxu1 %v4277_v22  ;;  %2455 = vmatprep.subr.bf16.mxu0 %v4282_v23  ;;  %v4355_v22 = vld [vmem:[%s5168_s9 + $0x5a4] ss:$88 sps:$4 sm:$0xff]  }
  0xed   : > { %2508 = vmatprep.subr.bf16.mxu1 %v4285_v24  ;;  %v4358_v23 = vld [vmem:[%s5168_s9 + $0x5ac] ss:$88 sps:$4 sm:$0xff]   ;;  %v4353_v24 = vld [vmem:[%s5168_s9 + $0x5a0] ss:$88 sps:$4 sm:$0xff]  }
  0xef   : > { %2456 = vmatpush1.bf16.msra.mxu0 %v4280_v25  ;;  %v4356_v25 = vld [vmem:[%s5168_s9 + $0x5a8] ss:$88 sps:$4 sm:$0xff]  }
  0xf0   : > { %2509 = vmatpush1.bf16.msra.mxu1 %v4283_v26  ;;  %2457 = vmatprep.subr.bf16.mxu0 %v4288_v27  ;;  %v4361_v26 = vld [vmem:[%s5168_s9 + $0x654] ss:$88 sps:$4 sm:$0xff]  }
  0xf1   : > { %2510 = vmatprep.subr.bf16.mxu1 %v4291_v28  ;;  %v4364_v27 = vld [vmem:[%s5168_s9 + $0x65c] ss:$88 sps:$4 sm:$0xff]   ;;  %v4359_v28 = vld [vmem:[%s5168_s9 + $0x650] ss:$88 sps:$4 sm:$0xff]  }
  0xf3   : > { %2458 = vmatpush1.bf16.msra.mxu0 %v4286_v30  ;;  %v4367_v30 = vld [vmem:[%s5168_s9 + $0x704] ss:$88 sps:$4 sm:$0xff]  }
  0xf4   : > { %2511 = vmatpush1.bf16.msra.mxu1 %v4289_v32  ;;  %2459 = vmatprep.subr.bf16.mxu0 %v4297_v33  ;;  %v969_v32 = vld [vmem:[%s5168_s9 + $0x7b0] sm:$0x33]  ;;  %v970_v33 = vld [vmem:[%s5168_s9 + $0x7b8] sm:$0x33] }
  0xf5   : > { %2512 = vmatprep.subr.bf16.mxu1 %v4300_v34  ;;  %v4365_v34 = vld [vmem:[%s5168_s9 + $0x700] ss:$88 sps:$4 sm:$0xff]   ;;  %v3966_v36 = vcombine.high %v969_v32, %v969_v32  ;;  %v3968_v37 = vcombine.high %v970_v33, %v970_v33  ;;  %v3965_v38 = vcombine.low %v969_v32, %v969_v32  ;;  %v4447_v32 = vld [vmem:[%s5168_s9 + $0x44] ss:$88 sps:$4 sm:$0xff]  }
  0xf7   : > { %2460 = vmatpush1.bf16.msra.mxu0 %v4295_v39  ;;  %v3967_v39 = vcombine.low %v970_v33, %v970_v33  ;;  %v4450_v33 = vld [vmem:[%s5168_s9 + $0x4c] ss:$88 sps:$4 sm:$0xff]  }
  0xf8   : > { %2513 = vmatpush1.bf16.msra.mxu1 %v4298_v40  ;;  %3985 = vmatprep.subr.msk.bf16.mxu0 %vm2266_vm1, %v3962_v41  ;;  %v4377_v40 = vld [vmem:[%s5168_s9 + $0x34] ss:$88 sps:$4 sm:$0xff]   ;;  %v2292_v41 = vsel %vm2266_vm1, %v3965_v38, 0  ;;  %v5459_v38 = vld [vmem:[%s5917_s0] ss:$8 sps:$4 sm:$0xff]  }
  0xf9   : > { %3988 = vmatprep.subr.msk.bf16.mxu1 %vm2266_vm1, %v3964_v44  ;;  %v2298_v42 = vsel %vm2266_vm1, %v3967_v39, 0  ;;  %v4375_v44 = vld [vmem:[%s5168_s9 + $0x30] ss:$88 sps:$4 sm:$0xff]  }
  0xfa   : > { %v4451_v39 = vld [vmem:[%s5168_s9 + $0xf0] ss:$88 sps:$4 sm:$0xff]  }
  0xfb   : > { %2462 = vmatpush1.bf16.msra.mxu0 %v2280_v48  ;;  %v4381_v48 = vld [vmem:[%s5168_s9 + $0xe0] ss:$88 sps:$4 sm:$0xff]  }
  0xfc   : > { %2515 = vmatpush1.bf16.msra.mxu1 %v2286_v49  ;;  %2545 = vmatprep.subr.bf16.mxu0 %v4307_v47  ;;  %v4386_v47 = vld [vmem:[%s5168_s9 + $0xec] ss:$88 sps:$4 sm:$0xff]   ;;  %v4384_v49 = vld [vmem:[%s5168_s9 + $0xe8] ss:$88 sps:$4 sm:$0xff]  }
  0xfd   : > { %2598 = vmatprep.subr.bf16.mxu1 %v4310_v50  ;;  %v4389_v50 = vld [vmem:[%s5168_s9 + $0x194] ss:$88 sps:$4 sm:$0xff]  }
  0xfe   : > { %2472 = vmatmul.mubr.bf16.vlgmr.msra.gmra.mrb[8].mxu0 %v5225_v53 }
  0xff   : > { %2525 = vmatmul.mubr.bf16.vlgmr.msra.gmra.mrb[8].mxu1 %v5225_v53  ;;  %2546 = vmatpush1.bf16.msra.mxu0 %v4305_v51  ;;  %v4392_v51 = vld [vmem:[%s5168_s9 + $0x19c] ss:$88 sps:$4 sm:$0xff]  }
 0x100   : > { %2599 = vmatpush1.bf16.msra.mxu1 %v4308_v52  ;;  %2547 = vmatprep.subr.bf16.mxu0 %v4313_v54  ;;  %v4390_v52 = vld [vmem:[%s5168_s9 + $0x198] ss:$88 sps:$4 sm:$0xff]   ;;  %v4395_v54 = vld [vmem:[%s5168_s9 + $0x244] ss:$88 sps:$4 sm:$0xff]  }
 0x101   : > { %2600 = vmatprep.subr.bf16.mxu1 %v4316_v55  ;;  %3987 = vmatprep.mubr.msk.bf16.mxu0 %vm2259_vm0, %v5234_v58  ;;  %v4398_v55 = vld [vmem:[%s5168_s9 + $0x24c] ss:$88 sps:$4 sm:$0xff]  }
 0x102   : > { %3990 = vmatprep.mubr.msk.bf16.mxu1 %vm2259_vm0, %v5234_v58 }
 0x103   : > { %2548 = vmatpush1.bf16.msra.mxu0 %v4311_v56  ;;  %v4393_v56 = vld [vmem:[%s5168_s9 + $0x240] ss:$88 sps:$4 sm:$0xff]  }
 0x104   : > { %2601 = vmatpush1.bf16.msra.mxu1 %v4314_v57  ;;  %2549 = vmatprep.subr.bf16.mxu0 %v4319_v59  ;;  %v4396_v57 = vld [vmem:[%s5168_s9 + $0x248] ss:$88 sps:$4 sm:$0xff]   ;;  %v4404_v59 = vld [vmem:[%s5168_s9 + $0x2fc] ss:$88 sps:$4 sm:$0xff]  }
 0x105   : > { %2602 = vmatprep.subr.bf16.mxu1 %v4322_v60  ;;  %v5412_v60 = vld [vmem:[%s5917_s0 + $0x4] ss:$8 sps:$4 sm:$0xff]  }
 0x106   : > { %2482 = vmatmul.mubr.bf16.gmra.mrb[12].mxu0 %v5250_v1 }
 0x107   : > { %2535 = vmatmul.mubr.bf16.gmra.mrb[12].mxu1 %v5250_v1  ;;  %2550 = vmatpush1.bf16.msra.mxu0 %v4317_v62  ;;  %v4399_v62 = vld [vmem:[%s5168_s9 + $0x2f0] ss:$88 sps:$4 sm:$0xff]  }
 0x108   : > { %2603 = vmatpush1.bf16.msra.mxu1 %v4320_v63  ;;  %2551 = vmatprep.subr.bf16.mxu0 %v4325_v0  ;;  %v4402_v63 = vld [vmem:[%s5168_s9 + $0x2f8] ss:$88 sps:$4 sm:$0xff]   ;;  %v4407_v0 = vld [vmem:[%s5168_s9 + $0x3a4] ss:$88 sps:$4 sm:$0xff]  }
 0x109   : > { %2604 = vmatprep.subr.bf16.mxu1 %v4328_v2  ;;  %3992 = vmatprep.mubr.msk.bf16.mxu0 %vm2259_vm0, %v5160_v61  ;;  %v4410_v2 = vld [vmem:[%s5168_s9 + $0x3ac] ss:$88 sps:$4 sm:$0xff]  }
 0x10a   : > { %3995 = vmatprep.mubr.msk.bf16.mxu1 %vm2259_vm0, %v5160_v61  ;;  %v3030_v61 = vld [vmem:[%s5919_s2 + $0x10] sm:$0xff] }
 0x10b   : > { %2552 = vmatpush1.bf16.msra.mxu0 %v4323_v3  ;;  %3044 = vperm.xlu0 %4157, %v3030_v61   ;;  %v4405_v3 = vld [vmem:[%s5168_s9 + $0x3a0] ss:$88 sps:$4 sm:$0xff]  }
 0x10c   : > { %2605 = vmatpush1.bf16.msra.mxu1 %v4326_v4  ;;  %2553 = vmatprep.subr.bf16.mxu0 %v4331_v5  ;;  %v4408_v4 = vld [vmem:[%s5168_s9 + $0x3a8] ss:$88 sps:$4 sm:$0xff]   ;;  %v4413_v5 = vld [vmem:[%s5168_s9 + $0x454] ss:$88 sps:$4 sm:$0xff]  }
 0x10d   : > { %2606 = vmatprep.subr.bf16.mxu1 %v4334_v6  ;;  %v4416_v6 = vld [vmem:[%s5168_s9 + $0x45c] ss:$88 sps:$4 sm:$0xff]   ;;  %v4420_v61 = vld [vmem:[%s5168_s9 + $0x508] ss:$88 sps:$4 sm:$0xff]  }
 0x10f   : > { %2554 = vmatpush1.bf16.msra.mxu0 %v4329_v7  ;;  %v4411_v7 = vld [vmem:[%s5168_s9 + $0x450] ss:$88 sps:$4 sm:$0xff]  }
 0x110   : > { %2607 = vmatpush1.bf16.msra.mxu1 %v4332_v8  ;;  %2555 = vmatprep.subr.bf16.mxu0 %v4337_v9  ;;  %v4414_v8 = vld [vmem:[%s5168_s9 + $0x458] ss:$88 sps:$4 sm:$0xff]   ;;  %v4419_v9 = vld [vmem:[%s5168_s9 + $0x504] ss:$88 sps:$4 sm:$0xff]  }
 0x111   : > { %2608 = vmatprep.subr.bf16.mxu1 %v4340_v10  ;;  %v4422_v10 = vld [vmem:[%s5168_s9 + $0x50c] ss:$88 sps:$4 sm:$0xff]  }
 0x113   : > { %2556 = vmatpush1.bf16.msra.mxu0 %v4335_v12  ;;  %v4425_v12 = vld [vmem:[%s5168_s9 + $0x5b4] ss:$88 sps:$4 sm:$0xff]  }
 0x114   : > { %2609 = vmatpush1.bf16.msra.mxu1 %v4338_v13  ;;  %2557 = vmatprep.subr.bf16.mxu0 %v4343_v14  ;;  %v4428_v13 = vld [vmem:[%s5168_s9 + $0x5bc] ss:$88 sps:$4 sm:$0xff]   ;;  %v4423_v14 = vld [vmem:[%s5168_s9 + $0x5b0] ss:$88 sps:$4 sm:$0xff]  }
 0x115   : > { %2610 = vmatprep.subr.bf16.mxu1 %v4346_v15  ;;  %v4426_v15 = vld [vmem:[%s5168_s9 + $0x5b8] ss:$88 sps:$4 sm:$0xff]  }
 0x117   : > { %2558 = vmatpush1.bf16.msra.mxu0 %v4341_v16  ;;  %v4431_v16 = vld [vmem:[%s5168_s9 + $0x664] ss:$88 sps:$4 sm:$0xff]  }
 0x118   : > { %2611 = vmatpush1.bf16.msra.mxu1 %v4344_v17  ;;  %2559 = vmatprep.subr.bf16.mxu0 %v4349_v18  ;;  %v4434_v17 = vld [vmem:[%s5168_s9 + $0x66c] ss:$88 sps:$4 sm:$0xff]   ;;  %v4429_v18 = vld [vmem:[%s5168_s9 + $0x660] ss:$88 sps:$4 sm:$0xff]  }
 0x119   : > { %2612 = vmatprep.subr.bf16.mxu1 %v4352_v19  ;;  %v4432_v19 = vld [vmem:[%s5168_s9 + $0x668] ss:$88 sps:$4 sm:$0xff]  }
 0x11b   : > { %2560 = vmatpush1.bf16.msra.mxu0 %v4347_v20  ;;  %v4437_v20 = vld [vmem:[%s5168_s9 + $0x714] ss:$88 sps:$4 sm:$0xff]  }
 0x11c   : > { %2613 = vmatpush1.bf16.msra.mxu1 %v4350_v21  ;;  %2561 = vmatprep.subr.bf16.mxu0 %v4355_v22  ;;  %v4440_v21 = vld [vmem:[%s5168_s9 + $0x71c] ss:$88 sps:$4 sm:$0xff]   ;;  %v971_v22 = vld [vmem:[%s5168_s9 + $0x7c0] sm:$0x33] }
 0x11d   : > { %2614 = vmatprep.subr.bf16.mxu1 %v4358_v23  ;;  %v972_v23 = vld [vmem:[%s5168_s9 + $0x7c8] sm:$0x33] }
 0x11f   : > { %2562 = vmatpush1.bf16.msra.mxu0 %v4353_v24  ;;  %v4435_v24 = vld [vmem:[%s5168_s9 + $0x710] ss:$88 sps:$4 sm:$0xff]  }
 0x120   : > { %2615 = vmatpush1.bf16.msra.mxu1 %v4356_v25  ;;  %2563 = vmatprep.subr.bf16.mxu0 %v4361_v26  ;;  %v4438_v25 = vld [vmem:[%s5168_s9 + $0x718] ss:$88 sps:$4 sm:$0xff]   ;;  %v3970_v26 = vcombine.high %v971_v22, %v971_v22 }
 0x121   : > { %2616 = vmatprep.subr.bf16.mxu1 %v4364_v27  ;;  %v3972_v27 = vcombine.high %v972_v23, %v972_v23 }
 0x123   : > { %2564 = vmatpush1.bf16.msra.mxu0 %v4359_v28  ;;  %v3969_v28 = vcombine.low %v971_v22, %v971_v22 }
 0x124   : > { %2617 = vmatpush1.bf16.msra.mxu1 %v4362_v29  ;;  %2565 = vmatprep.subr.bf16.mxu0 %v4367_v30  ;;  %v3971_v29 = vcombine.low %v972_v23, %v972_v23  ;;  %v4517_v23 = vld [vmem:[%s5168_s9 + $0x54] ss:$88 sps:$4 sm:$0xff]  }
 0x125   : > { %2618 = vmatprep.subr.bf16.mxu1 %v4370_v31  ;;  %v2304_v30 = vsel %vm2266_vm1, %v3969_v28, 0  ;;  %v4521_v28 = vld [vmem:[%s5168_s9 + $0x1b0] ss:$88 sps:$4 sm:$0xff]  }
 0x126   : > { %v2310_v31 = vsel %vm2266_vm1, %v3971_v29, 0  ;;  %v4526_v29 = vld [vmem:[%s5168_s9 + $0x264] ss:$88 sps:$4 sm:$0xff]  }
 0x127   : > { %2566 = vmatpush1.bf16.msra.mxu0 %v4365_v34  ;;  %v4445_v34 = vld [vmem:[%s5168_s9 + $0x40] ss:$88 sps:$4 sm:$0xff]  }
 0x128   : > { %2619 = vmatpush1.bf16.msra.mxu1 %v4368_v35  ;;  %3991 = vmatprep.subr.msk.bf16.mxu0 %vm2266_vm1, %v3966_v36  ;;  %v4448_v35 = vld [vmem:[%s5168_s9 + $0x48] ss:$88 sps:$4 sm:$0xff]   ;;  %v4453_v36 = vld [vmem:[%s5168_s9 + $0xf4] ss:$88 sps:$4 sm:$0xff]  }
 0x129   : > { %3994 = vmatprep.subr.msk.bf16.mxu1 %vm2266_vm1, %v3968_v37  ;;  %v4456_v37 = vld [vmem:[%s5168_s9 + $0xfc] ss:$88 sps:$4 sm:$0xff]  }
 0x12b   : > { %2568 = vmatpush1.bf16.msra.mxu0 %v2292_v41  ;;  %v4459_v41 = vld [vmem:[%s5168_s9 + $0x1a4] ss:$88 sps:$4 sm:$0xff]  }
 0x12c   : > { %2621 = vmatpush1.bf16.msra.mxu1 %v2298_v42  ;;  %2651 = vmatprep.subr.bf16.mxu0 %v4377_v40  ;;  %v4454_v40 = vld [vmem:[%s5168_s9 + $0xf8] ss:$88 sps:$4 sm:$0xff]   ;;  %v4462_v42 = vld [vmem:[%s5168_s9 + $0x1ac] ss:$88 sps:$4 sm:$0xff]  }
 0x12d   : > { %2704 = vmatprep.subr.bf16.mxu1 %v4380_v43  ;;  %v5470_v43 = vld [vmem:[%s5917_s0 + $0x14] ss:$8 sps:$4 sm:$0xff]  }
 0x12e   : > { %2578 = vmatmul.mubr.bf16.vlgmr.msra.gmra.mrb[16].mxu0 %v5225_v53 }
 0x12f   : > { %2631 = vmatmul.mubr.bf16.vlgmr.msra.gmra.mrb[16].mxu1 %v5225_v53  ;;  %2652 = vmatpush1.bf16.msra.mxu0 %v4375_v44  ;;  %v4387_v53 = vld [vmem:[%s5168_s9 + $0x190] ss:$88 sps:$4 sm:$0xff]   ;;  %v4457_v44 = vld [vmem:[%s5168_s9 + $0x1a0] ss:$88 sps:$4 sm:$0xff]  }
 0x130   : > { %2705 = vmatpush1.bf16.msra.mxu1 %v4378_v45  ;;  %2653 = vmatprep.subr.bf16.mxu0 %v4383_v46  ;;  %v4460_v45 = vld [vmem:[%s5168_s9 + $0x1a8] ss:$88 sps:$4 sm:$0xff]   ;;  %v4465_v46 = vld [vmem:[%s5168_s9 + $0x254] ss:$88 sps:$4 sm:$0xff]  }
 0x131   : > { %2706 = vmatprep.subr.bf16.mxu1 %v4386_v47  ;;  %3993 = vmatprep.mubr.msk.bf16.mxu0 %vm2259_vm0, %v5234_v58  ;;  %v4468_v47 = vld [vmem:[%s5168_s9 + $0x25c] ss:$88 sps:$4 sm:$0xff]  }
 0x132   : > { %3996 = vmatprep.mubr.msk.bf16.mxu1 %vm2259_vm0, %v5234_v58  ;;  %v4401_v58 = vld [vmem:[%s5168_s9 + $0x2f4] ss:$88 sps:$4 sm:$0xff]  }
 0x133   : > { %2654 = vmatpush1.bf16.msra.mxu0 %v4381_v48  ;;  %v4463_v48 = vld [vmem:[%s5168_s9 + $0x250] ss:$88 sps:$4 sm:$0xff]  }
 0x134   : > { %2707 = vmatpush1.bf16.msra.mxu1 %v4384_v49  ;;  %2655 = vmatprep.subr.bf16.mxu0 %v4389_v50  ;;  %v4466_v49 = vld [vmem:[%s5168_s9 + $0x258] ss:$88 sps:$4 sm:$0xff]   ;;  %v4471_v50 = vld [vmem:[%s5168_s9 + $0x304] ss:$88 sps:$4 sm:$0xff]  }
 0x135   : > { %2708 = vmatprep.subr.bf16.mxu1 %v4392_v51  ;;  %v4474_v51 = vld [vmem:[%s5168_s9 + $0x30c] ss:$88 sps:$4 sm:$0xff]  }
 0x136   : > { %2588 = vmatmul.mubr.bf16.gmra.mrb[20].mxu0 %v5250_v1 }
 0x137   : > { %2641 = vmatmul.mubr.bf16.gmra.mrb[20].mxu1 %v5250_v1  ;;  %2656 = vmatpush1.bf16.msra.mxu0 %v4387_v53  ;;  %v4472_v53 = vld [vmem:[%s5168_s9 + $0x308] ss:$88 sps:$4 sm:$0xff]  }
 0x138   : > { %2709 = vmatpush1.bf16.msra.mxu1 %v4390_v52  ;;  %2657 = vmatprep.subr.bf16.mxu0 %v4395_v54  ;;  %v4477_v52 = vld [vmem:[%s5168_s9 + $0x3b4] ss:$88 sps:$4 sm:$0xff]  }
 0x139   : > { %2710 = vmatprep.subr.bf16.mxu1 %v4398_v55  ;;  %3998 = vmatprep.mubr.msk.bf16.mxu0 %vm2259_vm0, %v5412_v60  ;;  %v4480_v54 = vld [vmem:[%s5168_s9 + $0x3bc] ss:$88 sps:$4 sm:$0xff]   ;;  %v4475_v55 = vld [vmem:[%s5168_s9 + $0x3b0] ss:$88 sps:$4 sm:$0xff]  }
 0x13a   : > { %4001 = vmatprep.mubr.msk.bf16.mxu1 %vm2259_vm0, %v5412_v60 }
 0x13b   : > { %2658 = vmatpush1.bf16.msra.mxu0 %v4393_v56  ;;  %v4478_v56 = vld [vmem:[%s5168_s9 + $0x3b8] ss:$88 sps:$4 sm:$0xff]  }
 0x13c   : > { %2711 = vmatpush1.bf16.msra.mxu1 %v4396_v57  ;;  %2659 = vmatprep.subr.bf16.mxu0 %v4401_v58  ;;  %v4483_v57 = vld [vmem:[%s5168_s9 + $0x464] ss:$88 sps:$4 sm:$0xff]  }
 0x13d   : > { %2712 = vmatprep.subr.bf16.mxu1 %v4404_v59  ;;  %v4486_v58 = vld [vmem:[%s5168_s9 + $0x46c] ss:$88 sps:$4 sm:$0xff]   ;;  %v4481_v59 = vld [vmem:[%s5168_s9 + $0x460] ss:$88 sps:$4 sm:$0xff]  }
 0x13f   : > { %2660 = vmatpush1.bf16.msra.mxu0 %v4399_v62  ;;  %v4484_v62 = vld [vmem:[%s5168_s9 + $0x468] ss:$88 sps:$4 sm:$0xff]  }
 0x140   : > { %2713 = vmatpush1.bf16.msra.mxu1 %v4402_v63  ;;  %2661 = vmatprep.subr.bf16.mxu0 %v4407_v0  ;;  %v4489_v63 = vld [vmem:[%s5168_s9 + $0x514] ss:$88 sps:$4 sm:$0xff]  }
 0x141   : > { %2714 = vmatprep.subr.bf16.mxu1 %v4410_v2  ;;  %v4492_v0 = vld [vmem:[%s5168_s9 + $0x51c] ss:$88 sps:$4 sm:$0xff]   ;;  %v4487_v2 = vld [vmem:[%s5168_s9 + $0x510] ss:$88 sps:$4 sm:$0xff]  }
 0x143   : > { %2662 = vmatpush1.bf16.msra.mxu0 %v4405_v3  ;;  %v4490_v3 = vld [vmem:[%s5168_s9 + $0x518] ss:$88 sps:$4 sm:$0xff]  }
 0x144   : > { %2715 = vmatpush1.bf16.msra.mxu1 %v4408_v4  ;;  %2663 = vmatprep.subr.bf16.mxu0 %v4413_v5  ;;  %v4495_v4 = vld [vmem:[%s5168_s9 + $0x5c4] ss:$88 sps:$4 sm:$0xff]  }
 0x145   : > { %2716 = vmatprep.subr.bf16.mxu1 %v4416_v6  ;;  %v4498_v5 = vld [vmem:[%s5168_s9 + $0x5cc] ss:$88 sps:$4 sm:$0xff]   ;;  %v4493_v6 = vld [vmem:[%s5168_s9 + $0x5c0] ss:$88 sps:$4 sm:$0xff]  }
 0x147   : > { %2664 = vmatpush1.bf16.msra.mxu0 %v4411_v7  ;;  %v4496_v7 = vld [vmem:[%s5168_s9 + $0x5c8] ss:$88 sps:$4 sm:$0xff]  }
 0x148   : > { %2717 = vmatpush1.bf16.msra.mxu1 %v4414_v8  ;;  %2665 = vmatprep.subr.bf16.mxu0 %v4419_v9  ;;  %v4501_v8 = vld [vmem:[%s5168_s9 + $0x674] ss:$88 sps:$4 sm:$0xff]  }
 0x149   : > { %2718 = vmatprep.subr.bf16.mxu1 %v4422_v10  ;;  %v4504_v9 = vld [vmem:[%s5168_s9 + $0x67c] ss:$88 sps:$4 sm:$0xff]   ;;  %v4499_v10 = vld [vmem:[%s5168_s9 + $0x670] ss:$88 sps:$4 sm:$0xff]  }
 0x14b   : > { %2666 = vmatpush1.bf16.msra.mxu0 %v4417_v11  ;;  %v4502_v11 = vld [vmem:[%s5168_s9 + $0x678] ss:$88 sps:$4 sm:$0xff]  }
 0x14c   : > { %2719 = vmatpush1.bf16.msra.mxu1 %v4420_v61  ;;  %2667 = vmatprep.subr.bf16.mxu0 %v4425_v12  ;;  %v4507_v61 = vld [vmem:[%s5168_s9 + $0x724] ss:$88 sps:$4 sm:$0xff]  }
 0x14d   : > { %2720 = vmatprep.subr.bf16.mxu1 %v4428_v13  ;;  %v4510_v12 = vld [vmem:[%s5168_s9 + $0x72c] ss:$88 sps:$4 sm:$0xff]   ;;  %v973_v13 = vld [vmem:[%s5168_s9 + $0x7d0] sm:$0x33] }
 0x14f   : > { %2668 = vmatpush1.bf16.msra.mxu0 %v4423_v14  ;;  %v974_v14 = vld [vmem:[%s5168_s9 + $0x7d8] sm:$0x33] }
 0x150   : > { %2721 = vmatpush1.bf16.msra.mxu1 %v4426_v15  ;;  %2669 = vmatprep.subr.bf16.mxu0 %v4431_v16  ;;  %v4505_v15 = vld [vmem:[%s5168_s9 + $0x720] ss:$88 sps:$4 sm:$0xff]  }
 0x151   : > { %2722 = vmatprep.subr.bf16.mxu1 %v4434_v17  ;;  %v4508_v16 = vld [vmem:[%s5168_s9 + $0x728] ss:$88 sps:$4 sm:$0xff]   ;;  %v3974_v17 = vcombine.high %v973_v13, %v973_v13 }
 0x153   : > { %2670 = vmatpush1.bf16.msra.mxu0 %v4429_v18  ;;  %v3976_v18 = vcombine.high %v974_v14, %v974_v14 }
 0x154   : > { %2723 = vmatpush1.bf16.msra.mxu1 %v4432_v19  ;;  %2671 = vmatprep.subr.bf16.mxu0 %v4437_v20  ;;  %v3973_v19 = vcombine.low %v973_v13, %v973_v13  ;;  %v3975_v20 = vcombine.low %v974_v14, %v974_v14  ;;  %v4541_v13 = vld [vmem:[%s5168_s9 + $0x5d4] ss:$88 sps:$4 sm:$0xff]  }
 0x155   : > { %2724 = vmatprep.subr.bf16.mxu1 %v4440_v21 }
 0x156   : > { %v2316_v21 = vsel %vm2266_vm1, %v3973_v19, 0  ;;  %v2322_v22 = vsel %vm2266_vm1, %v3975_v20, 0 }
 0x157   : > { %2672 = vmatpush1.bf16.msra.mxu0 %v4435_v24  ;;  %v4515_v24 = vld [vmem:[%s5168_s9 + $0x50] ss:$88 sps:$4 sm:$0xff]  }
 0x158   : > { %2725 = vmatpush1.bf16.msra.mxu1 %v4438_v25  ;;  %3997 = vmatprep.subr.msk.bf16.mxu0 %vm2266_vm1, %v3970_v26  ;;  %v4520_v25 = vld [vmem:[%s5168_s9 + $0x104] ss:$88 sps:$4 sm:$0xff]   ;;  %v4518_v26 = vld [vmem:[%s5168_s9 + $0x100] ss:$88 sps:$4 sm:$0xff]  }
 0x159   : > { %4000 = vmatprep.subr.msk.bf16.mxu1 %vm2266_vm1, %v3972_v27  ;;  %v4523_v27 = vld [vmem:[%s5168_s9 + $0x1b4] ss:$88 sps:$4 sm:$0xff]  }
 0x15b   : > { %2674 = vmatpush1.bf16.msra.mxu0 %v2304_v30  ;;  %v5535_v30 = vpop.permute.xlu0 %2922 }
 0x15c   : > { %2727 = vmatpush1.bf16.msra.mxu1 %v2310_v31  ;;  %2757 = vmatprep.subr.bf16.mxu0 %v4447_v32  ;;  %v5537_v31 = vpop.permute.xlu1 %2932  ;;  %v5542_v32 = vld [vmem:[%s5917_s0 + $0x10] ss:$8 sps:$4 sm:$0xff]  }
 0x15d   : > { %2810 = vmatprep.subr.bf16.mxu1 %v4450_v33  ;;  %v4524_v33 = vld [vmem:[%s5168_s9 + $0x260] ss:$88 sps:$4 sm:$0xff]  }
 0x15e   : > { %2684 = vmatmul.mubr.bf16.vlgmr.msra.gmra.mrb[24].mxu0 %v5459_v38 }
 0x15f   : > { %2737 = vmatmul.mubr.bf16.vlgmr.msra.gmra.mrb[24].mxu1 %v5459_v38  ;;  %2758 = vmatpush1.bf16.msra.mxu0 %v4445_v34  ;;  %v4529_v34 = vld [vmem:[%s5168_s9 + $0x314] ss:$88 sps:$4 sm:$0xff]  }
 0x160   : > { %2811 = vmatpush1.bf16.msra.mxu1 %v4448_v35  ;;  %2759 = vmatprep.subr.bf16.mxu0 %v4453_v36  ;;  %v5552_v35 = vpop.permute.xlu0 %2927  ;;  %v5554_v36 = vpop.permute.xlu1 %2937 }
 0x161   : > { %2812 = vmatprep.subr.bf16.mxu1 %v4456_v37  ;;  %3999 = vmatprep.mubr.msk.bf16.mxu0 %vm2259_vm0, %v5470_v43  ;;  %v4527_v37 = vld [vmem:[%s5168_s9 + $0x310] ss:$88 sps:$4 sm:$0xff]  }
 0x162   : > { %4002 = vmatprep.mubr.msk.bf16.mxu1 %vm2259_vm0, %v5470_v43 }
 0x163   : > { %2760 = vmatpush1.bf16.msra.mxu0 %v4451_v39  ;;  %v4532_v39 = vld [vmem:[%s5168_s9 + $0x3c4] ss:$88 sps:$4 sm:$0xff]  }
 0x164   : > { %2813 = vmatpush1.bf16.msra.mxu1 %v4454_v40  ;;  %2761 = vmatprep.subr.bf16.mxu0 %v4459_v41  ;;  %v4530_v40 = vld [vmem:[%s5168_s9 + $0x3c0] ss:$88 sps:$4 sm:$0xff]   ;;  %v5561_v41 = vpop.permute.xlu1 %3039 }
 0x165   : > { %2814 = vmatprep.subr.bf16.mxu1 %v4462_v42  ;;  %v4535_v42 = vld [vmem:[%s5168_s9 + $0x474] ss:$88 sps:$4 sm:$0xff]  }
 0x166   : > { %2694 = vmatmul.mubr.bf16.gmra.mrb[28].mxu0 %v5250_v1 }
 0x167   : > { %2747 = vmatmul.mubr.bf16.gmra.mrb[28].mxu1 %v5250_v1  ;;  %2762 = vmatpush1.bf16.msra.mxu0 %v4457_v44  ;;  %v4469_v1 = vld [vmem:[%s5168_s9 + $0x300] ss:$88 sps:$4 sm:$0xff]  }
 0x168   : > { %2815 = vmatpush1.bf16.msra.mxu1 %v4460_v45  ;;  %2763 = vmatprep.subr.bf16.mxu0 %v4465_v46  ;;  %v5588_v14 = vpop.permute.xlu1 %3049 }
 0x169   : > { %2816 = vmatprep.subr.bf16.mxu1 %v4468_v47  ;;  %4004 = vmatprep.mubr.msk.bf16.mxu0 %vm2259_vm0, %v5412_v60 }
 0x16a   : > { %4007 = vmatprep.mubr.msk.bf16.mxu1 %vm2259_vm0, %v5412_v60 }
 0x16b   : > { %2764 = vmatpush1.bf16.msra.mxu0 %v4463_v48 }
 0x16c   : > { %2817 = vmatpush1.bf16.msra.mxu1 %v4466_v49  ;;  %2765 = vmatprep.subr.bf16.mxu0 %v4471_v50 }
 0x16d   : > { %2818 = vmatprep.subr.bf16.mxu1 %v4474_v51 }
 0x16f   : > { %2766 = vmatpush1.bf16.msra.mxu0 %v4469_v1 }
 0x170   : > { %2819 = vmatpush1.bf16.msra.mxu1 %v4472_v53  ;;  %2767 = vmatprep.subr.bf16.mxu0 %v4477_v52  ;;  %v4533_v53 = vld [vmem:[%s5168_s9 + $0x470] ss:$88 sps:$4 sm:$0xff]  }
 0x171   : > { %2820 = vmatprep.subr.bf16.mxu1 %v4480_v54 }
 0x173   : > { %2768 = vmatpush1.bf16.msra.mxu0 %v4475_v55 }
 0x174   : > { %2821 = vmatpush1.bf16.msra.mxu1 %v4478_v56  ;;  %2769 = vmatprep.subr.bf16.mxu0 %v4483_v57 }
 0x175   : > { %2822 = vmatprep.subr.bf16.mxu1 %v4486_v58 }
 0x177   : > { %2770 = vmatpush1.bf16.msra.mxu0 %v4481_v59  ;;  %v4538_v59 = vld [vmem:[%s5168_s9 + $0x524] ss:$88 sps:$4 sm:$0xff]  }
 0x178   : > { %2823 = vmatpush1.bf16.msra.mxu1 %v4484_v62  ;;  %2771 = vmatprep.subr.bf16.mxu0 %v4489_v63 }
 0x179   : > { %2824 = vmatprep.subr.bf16.mxu1 %v4492_v0 }
 0x17b   : > { %2772 = vmatpush1.bf16.msra.mxu0 %v4487_v2 }
 0x17c   : > { %2825 = vmatpush1.bf16.msra.mxu1 %v4490_v3  ;;  %2773 = vmatprep.subr.bf16.mxu0 %v4495_v4 }
 0x17d   : > { %2826 = vmatprep.subr.bf16.mxu1 %v4498_v5 }
 0x17f   : > { %2774 = vmatpush1.bf16.msra.mxu0 %v4493_v6 }
 0x180   : > { %2827 = vmatpush1.bf16.msra.mxu1 %v4496_v7  ;;  %2775 = vmatprep.subr.bf16.mxu0 %v4501_v8 }
 0x181   : > { %2828 = vmatprep.subr.bf16.mxu1 %v4504_v9 }
 0x183   : > { %2776 = vmatpush1.bf16.msra.mxu0 %v4499_v10 }
 0x184   : > { %2829 = vmatpush1.bf16.msra.mxu1 %v4502_v11  ;;  %2777 = vmatprep.subr.bf16.mxu0 %v4507_v61  ;;  %v4536_v11 = vld [vmem:[%s5168_s9 + $0x520] ss:$88 sps:$4 sm:$0xff]  }
 0x185   : > { %2830 = vmatprep.subr.bf16.mxu1 %v4510_v12 }
 0x187   : > { %2778 = vmatpush1.bf16.msra.mxu0 %v4505_v15 }
 0x188   : > { %2831 = vmatpush1.bf16.msra.mxu1 %v4508_v16  ;;  %4003 = vmatprep.subr.msk.bf16.mxu0 %vm2266_vm1, %v3974_v17 }
 0x189   : > { %4006 = vmatprep.subr.msk.bf16.mxu1 %vm2266_vm1, %v3976_v18 }
 0x18b   : > { %2780 = vmatpush1.bf16.msra.mxu0 %v2316_v21 }
 0x18c   : > { %2833 = vmatpush1.bf16.msra.mxu1 %v2322_v22  ;;  %2863 = vmatprep.subr.bf16.mxu0 %v4517_v23 }
 0x18d   : > { %4105 = vmatprep.subr.bf16.mxu1 %v4517_v23 }
 0x18e   : > { %2790 = vmatmul.mubr.bf16.vlgmr.msra.gmra.mrb[32].mxu0 %v5459_v38 }
 0x18f   : > { %2843 = vmatmul.mubr.bf16.vlgmr.msra.gmra.mrb[32].mxu1 %v5459_v38  ;;  %2864 = vmatpush1.bf16.msra.mxu0 %v4515_v24 }
 0x190   : > { %4117 = vmatpush1.bf16.msra.mxu1 %v4515_v24  ;;  %2865 = vmatprep.subr.bf16.mxu0 %v4520_v25 }
 0x191   : > { %4106 = vmatprep.subr.bf16.mxu1 %v4520_v25  ;;  %4005 = vmatprep.mubr.msk.bf16.mxu0 %vm2259_vm0, %v5470_v43 }
 0x192   : > { %4008 = vmatprep.mubr.msk.bf16.mxu1 %vm2259_vm0, %v5470_v43 }
 0x193   : > { %2866 = vmatpush1.bf16.msra.mxu0 %v4518_v26 }
 0x194   : > { %4118 = vmatpush1.bf16.msra.mxu1 %v4518_v26  ;;  %2867 = vmatprep.subr.bf16.mxu0 %v4523_v27 }
 0x195   : > { %4107 = vmatprep.subr.bf16.mxu1 %v4523_v27 }
 0x196   : > { %2800 = vmatmul.mubr.bf16.gmra.mrb[36].mxu0 %v5542_v32 }
 0x197   : > { %2853 = vmatmul.mubr.bf16.gmra.mrb[36].mxu1 %v5542_v32  ;;  %2868 = vmatpush1.bf16.msra.mxu0 %v4521_v28 }
 0x198   : > { %4119 = vmatpush1.bf16.msra.mxu1 %v4521_v28  ;;  %2869 = vmatprep.subr.bf16.mxu0 %v4526_v29  ;;  %v4539_v28 = vld [vmem:[%s5168_s9 + $0x5d0] ss:$88 sps:$4 sm:$0xff]  }
 0x199   : > { %4108 = vmatprep.subr.bf16.mxu1 %v4526_v29  ;;  %4010 = vmatprep.mubr.msk.bf16.mxu0 %vm2259_vm0, %v5412_v60  ;;  %v5559_v60 = vpop.permute.xlu0 %3034 }
 0x19a   : > { %4011 = vmatprep.mubr.msk.bf16.mxu1 %vm2259_vm0, %v5470_v43 }
 0x19b   : > { %2870 = vmatpush1.bf16.msra.mxu0 %v4524_v33 }
 0x19c   : > { %4120 = vmatpush1.bf16.msra.mxu1 %v4524_v33  ;;  %2871 = vmatprep.subr.bf16.mxu0 %v4529_v34 }
 0x19d   : > { %4109 = vmatprep.subr.bf16.mxu1 %v4529_v34  ;;  %v5590_v15 = vpop.permute.xlu0 %3044 }
 0x19f   : > { %2872 = vmatpush1.bf16.msra.mxu0 %v4527_v37 }
 0x1a0   : > { %4121 = vmatpush1.bf16.msra.mxu1 %v4527_v37  ;;  %2873 = vmatprep.subr.bf16.mxu0 %v4532_v39  ;;  %v4544_v37 = vld [vmem:[%s5168_s9 + $0x684] ss:$88 sps:$4 sm:$0xff]  }
 0x1a1   : > { %4110 = vmatprep.subr.bf16.mxu1 %v4532_v39  ;;  %v2367_v43 = vpop.f32.mrb[0].mxu0 }
 0x1a2   : > { %v2420_v44 = vpop.f32.mrb[0].mxu1  ;;  %v2940_v45 = vmul.f32 %v5535_v30, %v2367_v43  ;;  %v2369_v47 = vpop.f32.mrb[1].mxu0 }
 0x1a3   : > { %v2942_v46 = vmul.f32 %v5535_v30, %v2420_v44  ;;  %v2422_v48 = vpop.f32.mrb[1].mxu1  ;;  %v2941_v49 = vmul.f32 %v5535_v30, %v2369_v47  ;;  %v2371_v51 = vpop.f32.mrb[2].mxu0  ;;  %2874 = vmatpush1.bf16.msra.mxu0 %v4530_v40 }
 0x1a4   : > { %v2943_v50 = vmul.f32 %v5535_v30, %v2422_v48  ;;  %v2424_v1 = vpop.f32.mrb[2].mxu1  ;;  %4122 = vmatpush1.bf16.msra.mxu1 %v4530_v40  ;;  %v2962_v52 = vmul.f32 %v5552_v35, %v2371_v51  ;;  %v3052_v55 = vadd.f32 %v5559_v60, %v2940_v45  ;;  %v2373_v57 = vpop.f32.mrb[3].mxu0  ;;  %2875 = vmatprep.subr.bf16.mxu0 %v4535_v42 }
 0x1a5   : > { %v2964_v54 = vmul.f32 %v5552_v35, %v2424_v1  ;;  %v3054_v56 = vadd.f32 %v5559_v60, %v2942_v46  ;;  %v2426_v58 = vpop.f32.mrb[3].mxu1  ;;  %v3053_v62 = vadd.f32 %v5559_v60, %v2941_v49  ;;  %v2963_v0 = vmul.f32 %v5552_v35, %v2373_v57  ;;  %4111 = vmatprep.subr.bf16.mxu1 %v4535_v42  ;;  %v4547_v57 = vld [vmem:[%s5168_s9 + $0x734] ss:$88 sps:$4 sm:$0xff]  }
 0x1a6   : > { %v3055_v63 = vadd.f32 %v5559_v60, %v2943_v50  ;;  %v2965_v2 = vmul.f32 %v5552_v35, %v2426_v58  ;;  %v3140_v3 = vmax.f32 %v3052_v55, 0.0  ;;  %v3074_v5 = vadd.f32 %v5561_v41, %v2962_v52 }
 0x1a7   : > { %v3142_v4 = vmax.f32 %v3054_v56, 0.0  ;;  %v3076_v6 = vadd.f32 %v5561_v41, %v2964_v54  ;;  %v3141_v7 = vmax.f32 %v3053_v62, 0.0  ;;  %v3075_v9 = vadd.f32 %v5561_v41, %v2963_v0  ;;  %2876 = vmatpush1.bf16.msra.mxu0 %v4533_v53  ;;  %v975_v0 = vld [vmem:[%s5168_s9 + $0x7e0] sm:$0x33] }
 0x1a8   : > { %v3143_v8 = vmax.f32 %v3055_v63, 0.0  ;;  %v3077_v10 = vadd.f32 %v5561_v41, %v2965_v2  ;;  %4123 = vmatpush1.bf16.msra.mxu1 %v4533_v53  ;;  %v3162_v61 = vmax.f32 %v3074_v5, 0.0  ;;  %2877 = vmatprep.subr.bf16.mxu0 %v4538_v59  ;;  %v4542_v53 = vld [vmem:[%s5168_s9 + $0x680] ss:$88 sps:$4 sm:$0xff]  }
 0x1a9   : > { %v3164_v12 = vmax.f32 %v3076_v6, 0.0  ;;  %4112 = vmatprep.subr.bf16.mxu1 %v4538_v59  ;;  %v4060_v16 = vpack.c.bf16 %v3141_v7, %v3140_v3  ;;  %v3163_v18 = vmax.f32 %v3075_v9, 0.0  ;;  %v2377_v20 = vpop.f32.mrb[4].mxu0  ;;  %v4545_v6 = vld [vmem:[%s5168_s9 + $0x730] ss:$88 sps:$4 sm:$0xff]   ;;  %v3978_v9 = vcombine.high %v975_v0, %v975_v0  ;;  %s5823_s9 = scalar_lea.vmem (%p4634_p5), %s5921_s4, %s4104_s5 }
 0x1aa   : > { %v4061_v17 = vpack.c.bf16 %v3143_v8, %v3142_v4  ;;  %v3165_v19 = vmax.f32 %v3077_v10, 0.0  ;;  %v2430_v21 = vpop.f32.mrb[4].mxu1  ;;  %v2984_v22 = vmul.f32 %v5537_v31, %v2377_v20  ;;  %v2379_v24 = vpop.f32.mrb[5].mxu0  ;;  %v3977_v10 = vcombine.low %v975_v0, %v975_v0 }
 0x1ab   : > { %v2986_v23 = vmul.f32 %v5537_v31, %v2430_v21  ;;  %v2432_v25 = vpop.f32.mrb[5].mxu1  ;;  %3492 = vst [vmem:[%s5595_s15] sm:$0xff] %v4060_v16  ;;  %v4071_v26 = vpack.c.bf16 %v3163_v18, %v3162_v61  ;;  %2878 = vmatpush1.bf16.msra.mxu0 %v4536_v11  ;;  %v2985_v29 = vmul.f32 %v5537_v31, %v2379_v24  ;;  %v2381_v33 = vpop.f32.mrb[6].mxu0 }
 0x1ac   : > { %3493 = vst [vmem:[%s5595_s15 + $0x8] sm:$0xff] %v4061_v17  ;;  %v4072_v27 = vpack.c.bf16 %v3165_v19, %v3164_v12  ;;  %4124 = vmatpush1.bf16.msra.mxu1 %v4536_v11  ;;  %v2434_v34 = vpop.f32.mrb[6].mxu1  ;;  %2879 = vmatprep.subr.bf16.mxu0 %v4541_v13  ;;  %v2987_v39 = vmul.f32 %v5537_v31, %v2432_v25  ;;  %v2383_v43 = vpop.f32.mrb[7].mxu0  ;;  %v2328_v11 = vsel %vm2266_vm1, %v3977_v10, 0 }
 0x1ad   : > { %4113 = vmatprep.subr.bf16.mxu1 %v4541_v13  ;;  %v3006_v40 = vmul.f32 %v5554_v36, %v2381_v33  ;;  %v3008_v42 = vmul.f32 %v5554_v36, %v2434_v34  ;;  %v2436_v44 = vpop.f32.mrb[7].mxu1  ;;  %3503 = vst [vmem:[%s5595_s15 + $0x58] sm:$0xff] %v4071_v26  ;;  %v3007_v45 = vmul.f32 %v5554_v36, %v2383_v43 }
 0x1ae   : > { %3504 = vst [vmem:[%s5595_s15 + $0x60] sm:$0xff] %v4072_v27  ;;  %v3009_v46 = vmul.f32 %v5554_v36, %v2436_v44  ;;  %v3096_v47 = vadd.f32 %v5590_v15, %v2984_v22  ;;  %v3097_v48 = vadd.f32 %v5590_v15, %v2985_v29  ;;  %v3098_v51 = vadd.f32 %v5590_v15, %v2986_v23 }
 0x1af   : > { %v3118_v49 = vadd.f32 %v5588_v14, %v3006_v40  ;;  %v3120_v50 = vadd.f32 %v5588_v14, %v3008_v42  ;;  %v3099_v1 = vadd.f32 %v5590_v15, %v2987_v39  ;;  %2880 = vmatpush1.bf16.msra.mxu0 %v4539_v28  ;;  %v3119_v52 = vadd.f32 %v5588_v14, %v3007_v45 }
 0x1b0   : > { %4125 = vmatpush1.bf16.msra.mxu1 %v4539_v28  ;;  %v3121_v54 = vadd.f32 %v5588_v14, %v3009_v46  ;;  %v3184_v55 = vmax.f32 %v3096_v47, 0.0  ;;  %v3185_v56 = vmax.f32 %v3097_v48, 0.0  ;;  %2881 = vmatprep.subr.bf16.mxu0 %v4544_v37  ;;  %v3186_v62 = vmax.f32 %v3098_v51, 0.0 }
 0x1b1   : > { %4114 = vmatprep.subr.bf16.mxu1 %v4544_v37  ;;  %v3206_v58 = vmax.f32 %v3118_v49, 0.0  ;;  %v3208_v59 = vmax.f32 %v3120_v50, 0.0  ;;  %v3187_v63 = vmax.f32 %v3099_v1, 0.0  ;;  %v3207_v2 = vmax.f32 %v3119_v52, 0.0 }
 0x1b2   : > { %v3209_v3 = vmax.f32 %v3121_v54, 0.0  ;;  %v4082_v4 = vpack.c.bf16 %v3185_v56, %v3184_v55 }
 0x1b3   : > { %v4083_v5 = vpack.c.bf16 %v3187_v63, %v3186_v62  ;;  %2882 = vmatpush1.bf16.msra.mxu0 %v4542_v53  ;;  %v4093_v7 = vpack.c.bf16 %v3207_v2, %v3206_v58 }
 0x1b4   : > { %4126 = vmatpush1.bf16.msra.mxu1 %v4542_v53  ;;  %v4094_v8 = vpack.c.bf16 %v3209_v3, %v3208_v59  ;;  %3514 = vst [vmem:[%s5595_s15 + $0xb0] sm:$0xff] %v4082_v4  ;;  %2883 = vmatprep.subr.bf16.mxu0 %v4547_v57 }
 0x1b5   : > { %4115 = vmatprep.subr.bf16.mxu1 %v4547_v57  ;;  %3515 = vst [vmem:[%s5595_s15 + $0xb8] sm:$0xff] %v4083_v5  ;;  %3525 = vst [vmem:[%s5595_s15 + $0x108] sm:$0xff] %v4093_v7 }
 0x1b6   : > { %3526 = vst [vmem:[%s5595_s15 + $0x110] sm:$0xff] %v4094_v8 }
 0x1b7   : > { %2884 = vmatpush1.bf16.msra.mxu0 %v4545_v6 }
 0x1b8   : > { %4127 = vmatpush1.bf16.msra.mxu1 %v4545_v6  ;;  %4009 = vmatprep.subr.msk.bf16.mxu0 %vm2266_vm1, %v3978_v9 }
 0x1b9   : > { %4116 = vmatprep.subr.msk.bf16.mxu1 %vm2266_vm1, %v3978_v9 }
 0x1bb   : > { %2886 = vmatpush1.bf16.msra.mxu0 %v2328_v11 }
 0x1bc   : > { %4128 = vmatpush1.bf16.msra.mxu1 %v2328_v11 }
 0x1be   : > { %2896 = vmatmul.mubr.bf16.vlgmr.msra.gmra.mrb[40].mxu0 %v5459_v38 }
 0x1bf   : > { %2906 = vmatmul.mubr.bf16.vlgmr.msra.gmra.mrb[40].mxu1 %v5542_v32 }
 0x1d1   : > { %v2473_v61 = vpop.f32.mrb[8].mxu0 }
 0x1d2   : > { %v2526_v12 = vpop.f32.mrb[8].mxu1  ;;  %v2944_v13 = vmul.f32 %v5535_v30, %v2473_v61  ;;  %v2475_v17 = vpop.f32.mrb[9].mxu0 }
 0x1d3   : > { %v2946_v16 = vmul.f32 %v5535_v30, %v2526_v12  ;;  %v2528_v18 = vpop.f32.mrb[9].mxu1  ;;  %v2945_v19 = vmul.f32 %v5535_v30, %v2475_v17  ;;  %v2477_v21 = vpop.f32.mrb[10].mxu0 }
 0x1d4   : > { %v2947_v20 = vmul.f32 %v5535_v30, %v2528_v18  ;;  %v2530_v22 = vpop.f32.mrb[10].mxu1  ;;  %v3056_v23 = vadd.f32 %v5559_v60, %v2944_v13  ;;  %v2966_v32 = vmul.f32 %v5552_v35, %v2477_v21  ;;  %v2479_v25 = vpop.f32.mrb[11].mxu0 }
 0x1d5   : > { %v3058_v38 = vadd.f32 %v5559_v60, %v2946_v16  ;;  %v2968_v24 = vmul.f32 %v5552_v35, %v2530_v22  ;;  %v2532_v26 = vpop.f32.mrb[11].mxu1  ;;  %v3057_v27 = vadd.f32 %v5559_v60, %v2945_v19  ;;  %v2967_v29 = vmul.f32 %v5552_v35, %v2479_v25 }
 0x1d6   : > { %v3059_v28 = vadd.f32 %v5559_v60, %v2947_v20  ;;  %v2969_v33 = vmul.f32 %v5552_v35, %v2532_v26  ;;  %v3144_v34 = vmax.f32 %v3056_v23, 0.0  ;;  %v3078_v39 = vadd.f32 %v5561_v41, %v2966_v32 }
 0x1d7   : > { %v3146_v37 = vmax.f32 %v3058_v38, 0.0  ;;  %v3080_v40 = vadd.f32 %v5561_v41, %v2968_v24  ;;  %v3145_v42 = vmax.f32 %v3057_v27, 0.0  ;;  %v3079_v44 = vadd.f32 %v5561_v41, %v2967_v29 }
 0x1d8   : > { %v3147_v43 = vmax.f32 %v3059_v28, 0.0  ;;  %v3081_v45 = vadd.f32 %v5561_v41, %v2969_v33  ;;  %v3166_v46 = vmax.f32 %v3078_v39, 0.0 }
 0x1d9   : > { %v3168_v47 = vmax.f32 %v3080_v40, 0.0  ;;  %v4062_v48 = vpack.c.bf16 %v3145_v42, %v3144_v34  ;;  %v3167_v50 = vmax.f32 %v3079_v44, 0.0  ;;  %v2483_v1 = vpop.f32.mrb[12].mxu0 }
 0x1da   : > { %v4063_v49 = vpack.c.bf16 %v3147_v43, %v3146_v37  ;;  %v3169_v51 = vmax.f32 %v3081_v45, 0.0  ;;  %v2536_v53 = vpop.f32.mrb[12].mxu1  ;;  %v2988_v52 = vmul.f32 %v5537_v31, %v2483_v1  ;;  %v2485_v55 = vpop.f32.mrb[13].mxu0 }
 0x1db   : > { %v2990_v54 = vmul.f32 %v5537_v31, %v2536_v53  ;;  %v2538_v56 = vpop.f32.mrb[13].mxu1  ;;  %3494 = vst [vmem:[%s5595_s15 + $0x10] sm:$0xff] %v4062_v48  ;;  %v4073_v57 = vpack.c.bf16 %v3167_v50, %v3166_v46  ;;  %v2989_v59 = vmul.f32 %v5537_v31, %v2485_v55  ;;  %v2487_v63 = vpop.f32.mrb[14].mxu0 }
 0x1dc   : > { %3495 = vst [vmem:[%s5595_s15 + $0x18] sm:$0xff] %v4063_v49  ;;  %v4074_v58 = vpack.c.bf16 %v3169_v51, %v3168_v47  ;;  %v2991_v62 = vmul.f32 %v5537_v31, %v2538_v56  ;;  %v2540_v0 = vpop.f32.mrb[14].mxu1  ;;  %v3100_v2 = vadd.f32 %v5590_v15, %v2988_v52  ;;  %v3010_v4 = vmul.f32 %v5554_v36, %v2487_v63  ;;  %v2489_v6 = vpop.f32.mrb[15].mxu0 }
 0x1dd   : > { %v3102_v3 = vadd.f32 %v5590_v15, %v2990_v54  ;;  %v3012_v5 = vmul.f32 %v5554_v36, %v2540_v0  ;;  %v2542_v7 = vpop.f32.mrb[15].mxu1  ;;  %3505 = vst [vmem:[%s5595_s15 + $0x68] sm:$0xff] %v4073_v57  ;;  %v3101_v8 = vadd.f32 %v5590_v15, %v2989_v59  ;;  %v3011_v10 = vmul.f32 %v5554_v36, %v2489_v6 }
 0x1de   : > { %3506 = vst [vmem:[%s5595_s15 + $0x70] sm:$0xff] %v4074_v58  ;;  %v3103_v9 = vadd.f32 %v5590_v15, %v2991_v62  ;;  %v3013_v11 = vmul.f32 %v5554_v36, %v2542_v7  ;;  %v3188_v61 = vmax.f32 %v3100_v2, 0.0  ;;  %v3122_v13 = vadd.f32 %v5588_v14, %v3010_v4 }
 0x1df   : > { %v3190_v12 = vmax.f32 %v3102_v3, 0.0  ;;  %v3124_v16 = vadd.f32 %v5588_v14, %v3012_v5  ;;  %v3189_v17 = vmax.f32 %v3101_v8, 0.0  ;;  %v3123_v19 = vadd.f32 %v5588_v14, %v3011_v10 }
 0x1e0   : > { %v3191_v18 = vmax.f32 %v3103_v9, 0.0  ;;  %v3125_v20 = vadd.f32 %v5588_v14, %v3013_v11  ;;  %v3210_v21 = vmax.f32 %v3122_v13, 0.0 }
 0x1e1   : > { %v3212_v22 = vmax.f32 %v3124_v16, 0.0  ;;  %v4084_v23 = vpack.c.bf16 %v3189_v17, %v3188_v61  ;;  %v3211_v32 = vmax.f32 %v3123_v19, 0.0 }
 0x1e2   : > { %v4085_v38 = vpack.c.bf16 %v3191_v18, %v3190_v12  ;;  %v3213_v24 = vmax.f32 %v3125_v20, 0.0 }
 0x1e3   : > { %3516 = vst [vmem:[%s5595_s15 + $0xc0] sm:$0xff] %v4084_v23  ;;  %v4095_v25 = vpack.c.bf16 %v3211_v32, %v3210_v21 }
 0x1e4   : > { %3517 = vst [vmem:[%s5595_s15 + $0xc8] sm:$0xff] %v4085_v38  ;;  %v4096_v26 = vpack.c.bf16 %v3213_v24, %v3212_v22 }
 0x1e5   : > { %3527 = vst [vmem:[%s5595_s15 + $0x118] sm:$0xff] %v4095_v25 }
 0x1e6   : > { %3528 = vst [vmem:[%s5595_s15 + $0x120] sm:$0xff] %v4096_v26 }
 0x201   : > { %v2579_v27 = vpop.f32.mrb[16].mxu0 }
 0x202   : > { %v2632_v28 = vpop.f32.mrb[16].mxu1  ;;  %v2948_v29 = vmul.f32 %v5535_v30, %v2579_v27  ;;  %v2581_v34 = vpop.f32.mrb[17].mxu0 }
 0x203   : > { %v2950_v33 = vmul.f32 %v5535_v30, %v2632_v28  ;;  %v2634_v37 = vpop.f32.mrb[17].mxu1  ;;  %v2949_v39 = vmul.f32 %v5535_v30, %v2581_v34  ;;  %v2583_v42 = vpop.f32.mrb[18].mxu0 }
 0x204   : > { %v2951_v40 = vmul.f32 %v5535_v30, %v2634_v37  ;;  %v2636_v43 = vpop.f32.mrb[18].mxu1  ;;  %v3060_v44 = vadd.f32 %v5559_v60, %v2948_v29  ;;  %v2970_v46 = vmul.f32 %v5552_v35, %v2583_v42  ;;  %v2585_v48 = vpop.f32.mrb[19].mxu0 }
 0x205   : > { %v3062_v45 = vadd.f32 %v5559_v60, %v2950_v33  ;;  %v2972_v47 = vmul.f32 %v5552_v35, %v2636_v43  ;;  %v2638_v49 = vpop.f32.mrb[19].mxu1  ;;  %v3061_v50 = vadd.f32 %v5559_v60, %v2949_v39  ;;  %v2971_v1 = vmul.f32 %v5552_v35, %v2585_v48 }
 0x206   : > { %v3063_v51 = vadd.f32 %v5559_v60, %v2951_v40  ;;  %v2973_v53 = vmul.f32 %v5552_v35, %v2638_v49  ;;  %v3148_v52 = vmax.f32 %v3060_v44, 0.0  ;;  %v3082_v55 = vadd.f32 %v5561_v41, %v2970_v46 }
 0x207   : > { %v3150_v54 = vmax.f32 %v3062_v45, 0.0  ;;  %v3084_v56 = vadd.f32 %v5561_v41, %v2972_v47  ;;  %v3149_v57 = vmax.f32 %v3061_v50, 0.0  ;;  %v3083_v59 = vadd.f32 %v5561_v41, %v2971_v1 }
 0x208   : > { %v3151_v58 = vmax.f32 %v3063_v51, 0.0  ;;  %v3085_v62 = vadd.f32 %v5561_v41, %v2973_v53  ;;  %v3170_v63 = vmax.f32 %v3082_v55, 0.0 }
 0x209   : > { %v3172_v0 = vmax.f32 %v3084_v56, 0.0  ;;  %v4064_v2 = vpack.c.bf16 %v3149_v57, %v3148_v52  ;;  %v3171_v4 = vmax.f32 %v3083_v59, 0.0  ;;  %v2589_v6 = vpop.f32.mrb[20].mxu0 }
 0x20a   : > { %v4065_v3 = vpack.c.bf16 %v3151_v58, %v3150_v54  ;;  %v3173_v5 = vmax.f32 %v3085_v62, 0.0  ;;  %v2642_v7 = vpop.f32.mrb[20].mxu1  ;;  %v2992_v8 = vmul.f32 %v5537_v31, %v2589_v6  ;;  %v2591_v10 = vpop.f32.mrb[21].mxu0 }
 0x20b   : > { %v2994_v9 = vmul.f32 %v5537_v31, %v2642_v7  ;;  %v2644_v11 = vpop.f32.mrb[21].mxu1  ;;  %3496 = vst [vmem:[%s5595_s15 + $0x20] sm:$0xff] %v4064_v2  ;;  %v4075_v61 = vpack.c.bf16 %v3171_v4, %v3170_v63  ;;  %v2993_v13 = vmul.f32 %v5537_v31, %v2591_v10  ;;  %v2593_v17 = vpop.f32.mrb[22].mxu0 }
 0x20c   : > { %3497 = vst [vmem:[%s5595_s15 + $0x28] sm:$0xff] %v4065_v3  ;;  %v4076_v12 = vpack.c.bf16 %v3173_v5, %v3172_v0  ;;  %v2995_v16 = vmul.f32 %v5537_v31, %v2644_v11  ;;  %v2646_v18 = vpop.f32.mrb[22].mxu1  ;;  %v3104_v19 = vadd.f32 %v5590_v15, %v2992_v8  ;;  %v3014_v21 = vmul.f32 %v5554_v36, %v2593_v17  ;;  %v2595_v23 = vpop.f32.mrb[23].mxu0 }
 0x20d   : > { %v3106_v20 = vadd.f32 %v5590_v15, %v2994_v9  ;;  %v3016_v22 = vmul.f32 %v5554_v36, %v2646_v18  ;;  %v2648_v38 = vpop.f32.mrb[23].mxu1  ;;  %3507 = vst [vmem:[%s5595_s15 + $0x78] sm:$0xff] %v4075_v61  ;;  %v3105_v32 = vadd.f32 %v5590_v15, %v2993_v13  ;;  %v3015_v25 = vmul.f32 %v5554_v36, %v2595_v23 }
 0x20e   : > { %3508 = vst [vmem:[%s5595_s15 + $0x80] sm:$0xff] %v4076_v12  ;;  %v3107_v24 = vadd.f32 %v5590_v15, %v2995_v16  ;;  %v3017_v26 = vmul.f32 %v5554_v36, %v2648_v38  ;;  %v3192_v27 = vmax.f32 %v3104_v19, 0.0  ;;  %v3126_v29 = vadd.f32 %v5588_v14, %v3014_v21 }
 0x20f   : > { %v3194_v28 = vmax.f32 %v3106_v20, 0.0  ;;  %v3128_v33 = vadd.f32 %v5588_v14, %v3016_v22  ;;  %v3193_v34 = vmax.f32 %v3105_v32, 0.0  ;;  %v3127_v39 = vadd.f32 %v5588_v14, %v3015_v25 }
 0x210   : > { %v3195_v37 = vmax.f32 %v3107_v24, 0.0  ;;  %v3129_v40 = vadd.f32 %v5588_v14, %v3017_v26  ;;  %v3214_v42 = vmax.f32 %v3126_v29, 0.0 }
 0x211   : > { %v3216_v43 = vmax.f32 %v3128_v33, 0.0  ;;  %v4086_v44 = vpack.c.bf16 %v3193_v34, %v3192_v27  ;;  %v3215_v46 = vmax.f32 %v3127_v39, 0.0 }
 0x212   : > { %v4087_v45 = vpack.c.bf16 %v3195_v37, %v3194_v28  ;;  %v3217_v47 = vmax.f32 %v3129_v40, 0.0 }
 0x213   : > { %3518 = vst [vmem:[%s5595_s15 + $0xd0] sm:$0xff] %v4086_v44  ;;  %v4097_v48 = vpack.c.bf16 %v3215_v46, %v3214_v42 }
 0x214   : > { %3519 = vst [vmem:[%s5595_s15 + $0xd8] sm:$0xff] %v4087_v45  ;;  %v4098_v49 = vpack.c.bf16 %v3217_v47, %v3216_v43 }
 0x215   : > { %3529 = vst [vmem:[%s5595_s15 + $0x128] sm:$0xff] %v4097_v48 }
 0x216   : > { %3530 = vst [vmem:[%s5595_s15 + $0x130] sm:$0xff] %v4098_v49 }
 0x231   : > { %v2685_v50 = vpop.f32.mrb[24].mxu0 }
 0x232   : > { %v2738_v51 = vpop.f32.mrb[24].mxu1  ;;  %v2952_v1 = vmul.f32 %v5535_v30, %v2685_v50  ;;  %v2687_v52 = vpop.f32.mrb[25].mxu0 }
 0x233   : > { %v2954_v53 = vmul.f32 %v5535_v30, %v2738_v51  ;;  %v2740_v54 = vpop.f32.mrb[25].mxu1  ;;  %v2953_v55 = vmul.f32 %v5535_v30, %v2687_v52  ;;  %v2689_v57 = vpop.f32.mrb[26].mxu0 }
 0x234   : > { %v2955_v56 = vmul.f32 %v5535_v30, %v2740_v54  ;;  %v2742_v58 = vpop.f32.mrb[26].mxu1  ;;  %v3064_v59 = vadd.f32 %v5559_v60, %v2952_v1  ;;  %v2974_v63 = vmul.f32 %v5552_v35, %v2689_v57  ;;  %v2691_v2 = vpop.f32.mrb[27].mxu0 }
 0x235   : > { %v3066_v62 = vadd.f32 %v5559_v60, %v2954_v53  ;;  %v2976_v0 = vmul.f32 %v5552_v35, %v2742_v58  ;;  %v2744_v3 = vpop.f32.mrb[27].mxu1  ;;  %v3065_v4 = vadd.f32 %v5559_v60, %v2953_v55  ;;  %v2975_v6 = vmul.f32 %v5552_v35, %v2691_v2 }
 0x236   : > { %v3067_v5 = vadd.f32 %v5559_v60, %v2955_v56  ;;  %v2977_v7 = vmul.f32 %v5552_v35, %v2744_v3  ;;  %v3152_v8 = vmax.f32 %v3064_v59, 0.0  ;;  %v3086_v10 = vadd.f32 %v5561_v41, %v2974_v63 }
 0x237   : > { %v3154_v9 = vmax.f32 %v3066_v62, 0.0  ;;  %v3088_v11 = vadd.f32 %v5561_v41, %v2976_v0  ;;  %v3153_v61 = vmax.f32 %v3065_v4, 0.0  ;;  %v3087_v13 = vadd.f32 %v5561_v41, %v2975_v6 }
 0x238   : > { %v3155_v12 = vmax.f32 %v3067_v5, 0.0  ;;  %v3089_v16 = vadd.f32 %v5561_v41, %v2977_v7  ;;  %v3174_v17 = vmax.f32 %v3086_v10, 0.0 }
 0x239   : > { %v3176_v18 = vmax.f32 %v3088_v11, 0.0  ;;  %v4066_v19 = vpack.c.bf16 %v3153_v61, %v3152_v8  ;;  %v3175_v21 = vmax.f32 %v3087_v13, 0.0  ;;  %v2695_v23 = vpop.f32.mrb[28].mxu0 }
 0x23a   : > { %v4067_v20 = vpack.c.bf16 %v3155_v12, %v3154_v9  ;;  %v3177_v22 = vmax.f32 %v3089_v16, 0.0  ;;  %v2748_v38 = vpop.f32.mrb[28].mxu1  ;;  %v2996_v32 = vmul.f32 %v5537_v31, %v2695_v23  ;;  %v2697_v25 = vpop.f32.mrb[29].mxu0 }
 0x23b   : > { %v2998_v24 = vmul.f32 %v5537_v31, %v2748_v38  ;;  %v2750_v26 = vpop.f32.mrb[29].mxu1  ;;  %3498 = vst [vmem:[%s5595_s15 + $0x30] sm:$0xff] %v4066_v19  ;;  %v4077_v27 = vpack.c.bf16 %v3175_v21, %v3174_v17  ;;  %v2997_v29 = vmul.f32 %v5537_v31, %v2697_v25  ;;  %v2699_v34 = vpop.f32.mrb[30].mxu0 }
 0x23c   : > { %3499 = vst [vmem:[%s5595_s15 + $0x38] sm:$0xff] %v4067_v20  ;;  %v4078_v28 = vpack.c.bf16 %v3177_v22, %v3176_v18  ;;  %v2999_v33 = vmul.f32 %v5537_v31, %v2750_v26  ;;  %v2752_v37 = vpop.f32.mrb[30].mxu1  ;;  %v3108_v39 = vadd.f32 %v5590_v15, %v2996_v32  ;;  %v3018_v42 = vmul.f32 %v5554_v36, %v2699_v34  ;;  %v2701_v44 = vpop.f32.mrb[31].mxu0 }
 0x23d   : > { %v3110_v40 = vadd.f32 %v5590_v15, %v2998_v24  ;;  %v3020_v43 = vmul.f32 %v5554_v36, %v2752_v37  ;;  %v2754_v45 = vpop.f32.mrb[31].mxu1  ;;  %3509 = vst [vmem:[%s5595_s15 + $0x88] sm:$0xff] %v4077_v27  ;;  %v3109_v46 = vadd.f32 %v5590_v15, %v2997_v29  ;;  %v3019_v48 = vmul.f32 %v5554_v36, %v2701_v44 }
 0x23e   : > { %3510 = vst [vmem:[%s5595_s15 + $0x90] sm:$0xff] %v4078_v28  ;;  %v3111_v47 = vadd.f32 %v5590_v15, %v2999_v33  ;;  %v3021_v49 = vmul.f32 %v5554_v36, %v2754_v45  ;;  %v3196_v50 = vmax.f32 %v3108_v39, 0.0  ;;  %v3130_v1 = vadd.f32 %v5588_v14, %v3018_v42 }
 0x23f   : > { %v3198_v51 = vmax.f32 %v3110_v40, 0.0  ;;  %v3132_v53 = vadd.f32 %v5588_v14, %v3020_v43  ;;  %v3197_v52 = vmax.f32 %v3109_v46, 0.0  ;;  %v3131_v55 = vadd.f32 %v5588_v14, %v3019_v48 }
 0x240   : > { %v3199_v54 = vmax.f32 %v3111_v47, 0.0  ;;  %v3133_v56 = vadd.f32 %v5588_v14, %v3021_v49  ;;  %v3218_v57 = vmax.f32 %v3130_v1, 0.0 }
 0x241   : > { %v3220_v58 = vmax.f32 %v3132_v53, 0.0  ;;  %v4088_v59 = vpack.c.bf16 %v3197_v52, %v3196_v50  ;;  %v3219_v63 = vmax.f32 %v3131_v55, 0.0 }
 0x242   : > { %v4089_v62 = vpack.c.bf16 %v3199_v54, %v3198_v51  ;;  %v3221_v0 = vmax.f32 %v3133_v56, 0.0 }
 0x243   : > { %3520 = vst [vmem:[%s5595_s15 + $0xe0] sm:$0xff] %v4088_v59  ;;  %v4099_v2 = vpack.c.bf16 %v3219_v63, %v3218_v57 }
 0x244   : > { %3521 = vst [vmem:[%s5595_s15 + $0xe8] sm:$0xff] %v4089_v62  ;;  %v4100_v3 = vpack.c.bf16 %v3221_v0, %v3220_v58 }
 0x245   : > { %3531 = vst [vmem:[%s5595_s15 + $0x138] sm:$0xff] %v4099_v2 }
 0x246   : > { %3532 = vst [vmem:[%s5595_s15 + $0x140] sm:$0xff] %v4100_v3 }
 0x261   : > { %v2791_v4 = vpop.f32.mrb[32].mxu0 }
 0x262   : > { %v2844_v5 = vpop.f32.mrb[32].mxu1  ;;  %v2956_v6 = vmul.f32 %v5535_v30, %v2791_v4  ;;  %v2793_v8 = vpop.f32.mrb[33].mxu0 }
 0x263   : > { %v2958_v7 = vmul.f32 %v5535_v30, %v2844_v5  ;;  %v2846_v9 = vpop.f32.mrb[33].mxu1  ;;  %v2957_v10 = vmul.f32 %v5535_v30, %v2793_v8  ;;  %v2795_v61 = vpop.f32.mrb[34].mxu0 }
 0x264   : > { %v2959_v11 = vmul.f32 %v5535_v30, %v2846_v9  ;;  %v2848_v12 = vpop.f32.mrb[34].mxu1  ;;  %v3068_v13 = vadd.f32 %v5559_v60, %v2956_v6  ;;  %v2978_v17 = vmul.f32 %v5552_v35, %v2795_v61  ;;  %v2797_v19 = vpop.f32.mrb[35].mxu0 }
 0x265   : > { %v3070_v16 = vadd.f32 %v5559_v60, %v2958_v7  ;;  %v2980_v18 = vmul.f32 %v5552_v35, %v2848_v12  ;;  %v2850_v20 = vpop.f32.mrb[35].mxu1  ;;  %v3069_v21 = vadd.f32 %v5559_v60, %v2957_v10  ;;  %v2979_v23 = vmul.f32 %v5552_v35, %v2797_v19 }
 0x266   : > { %v3071_v22 = vadd.f32 %v5559_v60, %v2959_v11  ;;  %v2981_v38 = vmul.f32 %v5552_v35, %v2850_v20  ;;  %v3156_v32 = vmax.f32 %v3068_v13, 0.0  ;;  %v3090_v25 = vadd.f32 %v5561_v41, %v2978_v17 }
 0x267   : > { %v3158_v24 = vmax.f32 %v3070_v16, 0.0  ;;  %v3092_v26 = vadd.f32 %v5561_v41, %v2980_v18  ;;  %v3157_v27 = vmax.f32 %v3069_v21, 0.0  ;;  %v3091_v29 = vadd.f32 %v5561_v41, %v2979_v23 }
 0x268   : > { %v3159_v28 = vmax.f32 %v3071_v22, 0.0  ;;  %v3093_v33 = vadd.f32 %v5561_v41, %v2981_v38  ;;  %v3178_v34 = vmax.f32 %v3090_v25, 0.0 }
 0x269   : > { %v3180_v37 = vmax.f32 %v3092_v26, 0.0  ;;  %v4068_v39 = vpack.c.bf16 %v3157_v27, %v3156_v32  ;;  %v3179_v42 = vmax.f32 %v3091_v29, 0.0  ;;  %v2801_v44 = vpop.f32.mrb[36].mxu0 }
 0x26a   : > { %v4069_v40 = vpack.c.bf16 %v3159_v28, %v3158_v24  ;;  %v3181_v43 = vmax.f32 %v3093_v33, 0.0  ;;  %v2854_v45 = vpop.f32.mrb[36].mxu1  ;;  %v3000_v46 = vmul.f32 %v5537_v31, %v2801_v44  ;;  %v2803_v48 = vpop.f32.mrb[37].mxu0 }
 0x26b   : > { %v3002_v47 = vmul.f32 %v5537_v31, %v2854_v45  ;;  %v2856_v49 = vpop.f32.mrb[37].mxu1  ;;  %3500 = vst [vmem:[%s5595_s15 + $0x40] sm:$0xff] %v4068_v39  ;;  %v4079_v50 = vpack.c.bf16 %v3179_v42, %v3178_v34  ;;  %v3001_v1 = vmul.f32 %v5537_v31, %v2803_v48  ;;  %v2805_v52 = vpop.f32.mrb[38].mxu0 }
 0x26c   : > { %3501 = vst [vmem:[%s5595_s15 + $0x48] sm:$0xff] %v4069_v40  ;;  %v4080_v51 = vpack.c.bf16 %v3181_v43, %v3180_v37  ;;  %v3003_v53 = vmul.f32 %v5537_v31, %v2856_v49  ;;  %v2858_v54 = vpop.f32.mrb[38].mxu1  ;;  %v3112_v55 = vadd.f32 %v5590_v15, %v3000_v46  ;;  %v3022_v57 = vmul.f32 %v5554_v36, %v2805_v52  ;;  %v2807_v59 = vpop.f32.mrb[39].mxu0 }
 0x26d   : > { %v3114_v56 = vadd.f32 %v5590_v15, %v3002_v47  ;;  %v3024_v58 = vmul.f32 %v5554_v36, %v2858_v54  ;;  %v2860_v62 = vpop.f32.mrb[39].mxu1  ;;  %3511 = vst [vmem:[%s5595_s15 + $0x98] sm:$0xff] %v4079_v50  ;;  %v3113_v63 = vadd.f32 %v5590_v15, %v3001_v1  ;;  %v3023_v2 = vmul.f32 %v5554_v36, %v2807_v59  ;;  %v3570_v59 = vld [vmem:[%s5595_s15 + $0x30] sm:$0xff] (%p4634_p5) }
 0x26e   : > { %3512 = vst [vmem:[%s5595_s15 + $0xa0] sm:$0xff] %v4080_v51  ;;  %v3115_v0 = vadd.f32 %v5590_v15, %v3003_v53  ;;  %v3025_v3 = vmul.f32 %v5554_v36, %v2860_v62  ;;  %v3200_v4 = vmax.f32 %v3112_v55, 0.0  ;;  %v3134_v6 = vadd.f32 %v5588_v14, %v3022_v57  ;;  %v3562_v55 = vld [vmem:[%s5595_s15 + $0x10] sm:$0xff] (%p4634_p5)  ;;  %v3566_v57 = vld [vmem:[%s5595_s15 + $0x20] sm:$0xff] (%p4634_p5)  ;;  %v3572_v62 = vld [vmem:[%s5595_s15 + $0x38] sm:$0xff] (%p4634_p5) }
 0x26f   : > { %v3202_v5 = vmax.f32 %v3114_v56, 0.0  ;;  %v3136_v7 = vadd.f32 %v5588_v14, %v3024_v58  ;;  %v3201_v8 = vmax.f32 %v3113_v63, 0.0  ;;  %v3135_v10 = vadd.f32 %v5588_v14, %v3023_v2  ;;  %v3564_v56 = vld [vmem:[%s5595_s15 + $0x18] sm:$0xff] (%p4634_p5)  ;;  %v3568_v58 = vld [vmem:[%s5595_s15 + $0x28] sm:$0xff] (%p4634_p5)  ;;  %3563 = vst [vmem:[%s5823_s9 + $0x10] sm:$0xff] (%p4634_p5), %v3562_v55  ;;  %3567 = vst [vmem:[%s5823_s9 + $0x20] sm:$0xff] (%p4634_p5), %v3566_v57 }
 0x270   : > { %v3203_v9 = vmax.f32 %v3115_v0, 0.0  ;;  %v3137_v11 = vadd.f32 %v5588_v14, %v3025_v3  ;;  %v3222_v61 = vmax.f32 %v3134_v6, 0.0  ;;  %3565 = vst [vmem:[%s5823_s9 + $0x18] sm:$0xff] (%p4634_p5), %v3564_v56  ;;  %3569 = vst [vmem:[%s5823_s9 + $0x28] sm:$0xff] (%p4634_p5), %v3568_v58  ;;  %v3580_v3 = vld [vmem:[%s5595_s15 + $0x58] sm:$0xff] (%p4634_p5)  ;;  %v3586_v6 = vld [vmem:[%s5595_s15 + $0x70] sm:$0xff] (%p4634_p5) }
 0x271   : > { %v3224_v12 = vmax.f32 %v3136_v7, 0.0  ;;  %v4090_v13 = vpack.c.bf16 %v3201_v8, %v3200_v4  ;;  %v3223_v17 = vmax.f32 %v3135_v10, 0.0  ;;  %3571 = vst [vmem:[%s5823_s9 + $0x30] sm:$0xff] (%p4634_p5), %v3570_v59  ;;  %3573 = vst [vmem:[%s5823_s9 + $0x38] sm:$0xff] (%p4634_p5), %v3572_v62  ;;  %v3582_v4 = vld [vmem:[%s5595_s15 + $0x60] sm:$0xff] (%p4634_p5)  ;;  %v3588_v7 = vld [vmem:[%s5595_s15 + $0x78] sm:$0xff] (%p4634_p5) }
 0x272   : > { %v4091_v16 = vpack.c.bf16 %v3203_v9, %v3202_v5  ;;  %v3225_v18 = vmax.f32 %v3137_v11, 0.0  ;;  %v3574_v63 = vld [vmem:[%s5595_s15 + $0x40] sm:$0xff] (%p4634_p5)  ;;  %3581 = vst [vmem:[%s5823_s9 + $0x160] sm:$0xff] (%p4634_p5), %v3580_v3  ;;  %v3584_v5 = vld [vmem:[%s5595_s15 + $0x68] sm:$0xff] (%p4634_p5)  ;;  %3583 = vst [vmem:[%s5823_s9 + $0x168] sm:$0xff] (%p4634_p5), %v3582_v4 }
 0x273   : > { %3522 = vst [vmem:[%s5595_s15 + $0xf0] sm:$0xff] %v4090_v13  ;;  %v4101_v19 = vpack.c.bf16 %v3223_v17, %v3222_v61  ;;  %3575 = vst [vmem:[%s5823_s9 + $0x40] sm:$0xff] (%p4634_p5), %v3574_v63  ;;  %v3576_v0 = vld [vmem:[%s5595_s15 + $0x48] sm:$0xff] (%p4634_p5)  ;;  %v3590_v8 = vld [vmem:[%s5595_s15 + $0x80] sm:$0xff] (%p4634_p5) }
 0x274   : > { %3523 = vst [vmem:[%s5595_s15 + $0xf8] sm:$0xff] %v4091_v16  ;;  %v4102_v20 = vpack.c.bf16 %v3225_v18, %v3224_v12  ;;  %3577 = vst [vmem:[%s5823_s9 + $0x48] sm:$0xff] (%p4634_p5), %v3576_v0  ;;  %v3592_v9 = vld [vmem:[%s5595_s15 + $0x88] sm:$0xff] (%p4634_p5)  ;;  %v3594_v10 = vld [vmem:[%s5595_s15 + $0x90] sm:$0xff] (%p4634_p5) }
 0x275   : > { %3533 = vst [vmem:[%s5595_s15 + $0x148] sm:$0xff] %v4101_v19  ;;  %3585 = vst [vmem:[%s5823_s9 + $0x170] sm:$0xff] (%p4634_p5), %v3584_v5  ;;  %v3596_v11 = vld [vmem:[%s5595_s15 + $0x98] sm:$0xff] (%p4634_p5)  ;;  %v3598_v61 = vld [vmem:[%s5595_s15 + $0xa0] sm:$0xff] (%p4634_p5) }
 0x276   : > { %3534 = vst [vmem:[%s5595_s15 + $0x150] sm:$0xff] %v4102_v20  ;;  %3587 = vst [vmem:[%s5823_s9 + $0x178] sm:$0xff] (%p4634_p5), %v3586_v6  ;;  %v3602_v13 = vld [vmem:[%s5595_s15 + $0xb0] sm:$0xff] (%p4634_p5)  ;;  %v3604_v16 = vld [vmem:[%s5595_s15 + $0xb8] sm:$0xff] (%p4634_p5) }
 0x277   : > { %3589 = vst [vmem:[%s5823_s9 + $0x180] sm:$0xff] (%p4634_p5), %v3588_v7  ;;  %3591 = vst [vmem:[%s5823_s9 + $0x188] sm:$0xff] (%p4634_p5), %v3590_v8  ;;  %v3606_v17 = vld [vmem:[%s5595_s15 + $0xc0] sm:$0xff] (%p4634_p5)  ;;  %v3608_v18 = vld [vmem:[%s5595_s15 + $0xc8] sm:$0xff] (%p4634_p5) }
 0x278   : > { %3593 = vst [vmem:[%s5823_s9 + $0x190] sm:$0xff] (%p4634_p5), %v3592_v9  ;;  %3595 = vst [vmem:[%s5823_s9 + $0x198] sm:$0xff] (%p4634_p5), %v3594_v10  ;;  %v3610_v19 = vld [vmem:[%s5595_s15 + $0xd0] sm:$0xff] (%p4634_p5)  ;;  %v3612_v20 = vld [vmem:[%s5595_s15 + $0xd8] sm:$0xff] (%p4634_p5) }
 0x279   : > { %3597 = vst [vmem:[%s5823_s9 + $0x1a0] sm:$0xff] (%p4634_p5), %v3596_v11  ;;  %3599 = vst [vmem:[%s5823_s9 + $0x1a8] sm:$0xff] (%p4634_p5), %v3598_v61 }
 0x27a   : > { %3603 = vst [vmem:[%s5823_s9 + $0x2c0] sm:$0xff] (%p4634_p5), %v3602_v13  ;;  %3605 = vst [vmem:[%s5823_s9 + $0x2c8] sm:$0xff] (%p4634_p5), %v3604_v16 }
 0x27b   : > { %3607 = vst [vmem:[%s5823_s9 + $0x2d0] sm:$0xff] (%p4634_p5), %v3606_v17  ;;  %3609 = vst [vmem:[%s5823_s9 + $0x2d8] sm:$0xff] (%p4634_p5), %v3608_v18 }
 0x27c   : > { %3611 = vst [vmem:[%s5823_s9 + $0x2e0] sm:$0xff] (%p4634_p5), %v3610_v19  ;;  %3613 = vst [vmem:[%s5823_s9 + $0x2e8] sm:$0xff] (%p4634_p5), %v3612_v20 }
 0x291   : > { %v2897_v21 = vpop.f32.mrb[40].mxu0 }
 0x292   : > { %v2907_v22 = vpop.f32.mrb[40].mxu1  ;;  %v2960_v23 = vmul.f32 %v5535_v30, %v2897_v21  ;;  %v2899_v32 = vpop.f32.mrb[41].mxu0  ;;  %v3614_v21 = vld [vmem:[%s5595_s15 + $0xe0] sm:$0xff] (%p4634_p5) }
 0x293   : > { %v3004_v38 = vmul.f32 %v5537_v31, %v2907_v22  ;;  %v2909_v24 = vpop.f32.mrb[41].mxu1  ;;  %v2961_v25 = vmul.f32 %v5535_v30, %v2899_v32  ;;  %v2901_v27 = vpop.f32.mrb[42].mxu0  ;;  %v3616_v22 = vld [vmem:[%s5595_s15 + $0xe8] sm:$0xff] (%p4634_p5)  ;;  %3615 = vst [vmem:[%s5823_s9 + $0x2f0] sm:$0xff] (%p4634_p5), %v3614_v21 }
 0x294   : > { %v3005_v26 = vmul.f32 %v5537_v31, %v2909_v24  ;;  %v2911_v28 = vpop.f32.mrb[42].mxu1  ;;  %v3072_v29 = vadd.f32 %v5559_v60, %v2960_v23  ;;  %v2982_v34 = vmul.f32 %v5552_v35, %v2901_v27  ;;  %v2903_v39 = vpop.f32.mrb[43].mxu0  ;;  %3617 = vst [vmem:[%s5823_s9 + $0x2f8] sm:$0xff] (%p4634_p5), %v3616_v22  ;;  %v3618_v23 = vld [vmem:[%s5595_s15 + $0xf0] sm:$0xff] (%p4634_p5)  ;;  %v3624_v24 = vld [vmem:[%s5595_s15 + $0x108] sm:$0xff] (%p4634_p5)  ;;  %v3630_v27 = vld [vmem:[%s5595_s15 + $0x120] sm:$0xff] (%p4634_p5) }
 0x295   : > { %v3116_v33 = vadd.f32 %v5590_v15, %v3004_v38  ;;  %v3026_v37 = vmul.f32 %v5554_v36, %v2911_v28  ;;  %v2913_v40 = vpop.f32.mrb[43].mxu1  ;;  %v3073_v42 = vadd.f32 %v5559_v60, %v2961_v25  ;;  %v2983_v30 = vmul.f32 %v5552_v35, %v2903_v39  ;;  %v3620_v38 = vld [vmem:[%s5595_s15 + $0xf8] sm:$0xff] (%p4634_p5)  ;;  %3619 = vst [vmem:[%s5823_s9 + $0x300] sm:$0xff] (%p4634_p5), %v3618_v23  ;;  %v3626_v25 = vld [vmem:[%s5595_s15 + $0x110] sm:$0xff] (%p4634_p5)  ;;  %v3632_v28 = vld [vmem:[%s5595_s15 + $0x128] sm:$0xff] (%p4634_p5) }
 0x296   : > { %v3117_v43 = vadd.f32 %v5590_v15, %v3005_v26  ;;  %v3027_v31 = vmul.f32 %v5554_v36, %v2913_v40  ;;  %v3160_v44 = vmax.f32 %v3072_v29, 0.0  ;;  %v3094_v46 = vadd.f32 %v5561_v41, %v2982_v34  ;;  %3621 = vst [vmem:[%s5823_s9 + $0x308] sm:$0xff] (%p4634_p5), %v3620_v38  ;;  %v3628_v26 = vld [vmem:[%s5595_s15 + $0x118] sm:$0xff] (%p4634_p5)  ;;  %3625 = vst [vmem:[%s5823_s9 + $0x420] sm:$0xff] (%p4634_p5), %v3624_v24  ;;  %v3634_v29 = vld [vmem:[%s5595_s15 + $0x130] sm:$0xff] (%p4634_p5) }
 0x297   : > { %v3204_v45 = vmax.f32 %v3116_v33, 0.0  ;;  %v3138_v47 = vadd.f32 %v5588_v14, %v3026_v37  ;;  %v3161_v48 = vmax.f32 %v3073_v42, 0.0  ;;  %v3095_v60 = vadd.f32 %v5561_v41, %v2983_v30  ;;  %v3558_v41 = vld [vmem:[%s5595_s15] sm:$0xff] (%p4634_p5)  ;;  %3627 = vst [vmem:[%s5823_s9 + $0x428] sm:$0xff] (%p4634_p5), %v3626_v25  ;;  %3629 = vst [vmem:[%s5823_s9 + $0x430] sm:$0xff] (%p4634_p5), %v3628_v26  ;;  %v3636_v33 = vld [vmem:[%s5595_s15 + $0x138] sm:$0xff] (%p4634_p5) }
 0x298   : > { %v3205_v49 = vmax.f32 %v3117_v43, 0.0  ;;  %v3139_v15 = vadd.f32 %v5588_v14, %v3027_v31  ;;  %v3182_v50 = vmax.f32 %v3094_v46, 0.0  ;;  %3542 = sbr.rel (!%p4634_p5) target bundleno = 679 (0x2a7), region = 63  ;;  %v3560_v14 = vld [vmem:[%s5595_s15 + $0x8] sm:$0xff] (%p4634_p5)  ;;  %3559 = vst [vmem:[%s5823_s9] sm:$0xff] (%p4634_p5), %v3558_v41  ;;  %3631 = vst [vmem:[%s5823_s9 + $0x438] sm:$0xff] (%p4634_p5), %v3630_v27  ;;  %v3638_v34 = vld [vmem:[%s5595_s15 + $0x140] sm:$0xff] (%p4634_p5) }
 0x299   : > { %v3226_v35 = vmax.f32 %v3138_v47, 0.0  ;;  %v4070_v51 = vpack.c.bf16 %v3161_v48, %v3160_v44  ;;  %v3183_v36 = vmax.f32 %v3095_v60, 0.0  ;;  %3561 = vst [vmem:[%s5823_s9 + $0x8] sm:$0xff] (%p4634_p5), %v3560_v14  ;;  %3633 = vst [vmem:[%s5823_s9 + $0x440] sm:$0xff] (%p4634_p5), %v3632_v28  ;;  %v3640_v37 = vld [vmem:[%s5595_s15 + $0x148] sm:$0xff] (%p4634_p5)  ;;  %v3642_v39 = vld [vmem:[%s5595_s15 + $0x150] sm:$0xff] (%p4634_p5) }
 0x29a   : > { %v4092_v1 = vpack.c.bf16 %v3205_v49, %v3204_v45  ;;  %v3227_v53 = vmax.f32 %v3139_v15, 0.0  ;;  %3635 = vst [vmem:[%s5823_s9 + $0x448] sm:$0xff] (%p4634_p5), %v3634_v29  ;;  %3637 = vst [vmem:[%s5823_s9 + $0x450] sm:$0xff] (%p4634_p5), %v3636_v33 }
 0x29b   : > { %3502 = vst [vmem:[%s5595_s15 + $0x50] sm:$0xff] %v4070_v51  ;;  %v4081_v52 = vpack.c.bf16 %v3183_v36, %v3182_v50  ;;  %3639 = vst [vmem:[%s5823_s9 + $0x458] sm:$0xff] (%p4634_p5), %v3638_v34 }
 0x29c   : > { %3524 = vst [vmem:[%s5595_s15 + $0x100] sm:$0xff] %v4092_v1  ;;  %v4103_v54 = vpack.c.bf16 %v3227_v53, %v3226_v35  ;;  %3641 = vst [vmem:[%s5823_s9 + $0x460] sm:$0xff] (%p4634_p5), %v3640_v37 }
 0x29d   : > { %3513 = vst [vmem:[%s5595_s15 + $0xa8] sm:$0xff] %v4081_v52  ;;  %3643 = vst [vmem:[%s5823_s9 + $0x468] sm:$0xff] (%p4634_p5), %v3642_v39 }
 0x29e   : > { %3535 = vst [vmem:[%s5595_s15 + $0x158] sm:$0xff] %v4103_v54 }
 0x2a2   : > { %v3578_v2 = vld [vmem:[%s5595_s15 + $0x50] sm:$0xff] }
 0x2a3   : > { %3579 = vst [vmem:[%s5823_s9 + $0x50] sm:$0xff] %v3578_v2  ;;  %v3622_v32 = vld [vmem:[%s5595_s15 + $0x100] sm:$0xff] }
 0x2a4   : > { %v3600_v12 = vld [vmem:[%s5595_s15 + $0xa8] sm:$0xff]  ;;  %3623 = vst [vmem:[%s5823_s9 + $0x310] sm:$0xff] %v3622_v32 }
 0x2a5   : > { %3601 = vst [vmem:[%s5823_s9 + $0x1b0] sm:$0xff] %v3600_v12  ;;  %v3644_v40 = vld [vmem:[%s5595_s15 + $0x158] sm:$0xff] }
 0x2a6   : > { %3645 = vst [vmem:[%s5823_s9 + $0x470] sm:$0xff] %v3644_v40 }
 0x2a7 PF: > { %p11_p10 = scmp.ge.s32.totalorder %s4621_s19, 6   ;;  %s5923_s15 = smov %s4572_s16 }
 0x2a8   : > { %s5924_s16 = smov %s4632_s22  ;;  %s5925_s17 = smov %s4621_s19 }
 0x2a9   :  { %13 = sbr.rel (!%p11_p10) target bundleno = 2 (0x2), region = 117 }

// kernel: convnet_forward.9
= control target key start
LH: loop header
LB: loop body
LE: loop exit
PB: predicated region body
PF: predicated region fallthrough
CT: control target
= control target key end

     0   :  { %8 = vsyncpa [#allocation3], 0  ;;  %s2484_s12 = smov 0   ;;  %s2625_s0 = inlined_call_operand.vmem [shape: bf16[2,180224], index: 0, kind: input, shape index: {}]   ;;  %s2626_s1 = inlined_call_operand.vmem [shape: bf16[6,180224], index: 1, kind: input, shape index: {}]   ;;  %s2627_s2 = inlined_call_operand.vmem [shape: f32[1,6], index: 2, kind: input, shape index: {}]   ;;  %s2628_s3 = inlined_call_operand.hbm [shape: f32[2,6], index: 3, kind: output, shape index: {}]  }
   0x1 LB: > { %s2490_s13 = sadd.s32 4294967295, %s2460_s12   ;;  %p2262_p0 = scmp.ge.s32.totalorder %s2460_s12, 1  ;;  %s2460_s12 = sphi %s2484_s12, %s14_s12  }
   0x2   : > { %p144_p1 = scmp.lt.s32.totalorder %s2460_s12, 23 }
   0x4   : > { %p145_p2 = pnand %p2262_p0, %p144_p1 }
   0x5   : > { %s2263_s14 = sshll.u32 (!%p145_p2), %s2490_s13, 6  ;;  %p2266_p4 = scmp.ne.s32.totalorder (!%p145_p2), %s2490_s13, 0 }
   0x6   : > { %148 = sbr.rel (%p145_p2) target bundleno = 389 (0x185), region = 32  ;;  %p168_p3 = scmp.lt.s32.totalorder (!%p145_p2), %s2263_s14, 1407 }
   0xd   : > { %s2630_s14 = smov (!%p168_p3, %s2263_s14), 1407  ;;  %182 = sbr.rel (%p2266_p4) target bundleno = 20 (0x14), region = 36 }
   0xe   : > { %s2498_s17 = scalar_lea.vmem %s2625_s0, %s2630_s14  ;;  %s2265_s18 = sshll.u32 %s2630_s14, 2  ;;  %v2267_v0 = vld [vmem:[%s2627_s2] ss:$0 sm:$0xff] (!%p2266_p4)  ;;  %vm190_vm0 = vcmask (!%p2266_p4), 41984  }
   0xf   : > { %s2503_s21 = scalar_lea.vmem %s2626_s1, %s2265_s18  ;;  %191 = vst.msk [vmem:[#allocation2] sm:$0x3] (!%p2266_p4), %vm190_vm0, %v2267_v0 }
  0x14 PF: > { %v201_v1 = vld [vmem:[%s2503_s21] sm:$0x77]  ;;  %v202_v2 = vld [vmem:[%s2503_s21 + $0x8] sm:$0x77]  ;;  %v245_v3 = vlaneseq  ;;  %v203_v8 = vld [vmem:[%s2503_s21 + $0x10] sm:$0x77] }
  0x15   : > { %v2269_v4 = vcombine.high %v201_v1, %v201_v1  ;;  %v2268_v5 = vcombine.low %v201_v1, %v201_v1  ;;  %v2271_v6 = vcombine.high %v202_v2, %v202_v2  ;;  %v2270_v7 = vcombine.low %v202_v2, %v202_v2  ;;  %v204_v9 = vld [vmem:[%s2503_s21 + $0x18] sm:$0x77]  ;;  %v193_v15 = vld [vmem:[%s2498_s17] sm:$0xff]  ;;  %v194_v19 = vld [vmem:[%s2498_s17 + $0x8] sm:$0xff]  ;;  %s2463_s24 = smov [#allocation2]   ;;  %p2340_p5 = scmp.eq.s32.totalorder %s2490_s13, 21 }
  0x16   : > { %v2462_v10 = vmov 1966171168   ;;  %v246_v12 = vshrl.u32 %v245_v3, 7  ;;  %v2273_v13 = vcombine.high %v203_v8, %v203_v8  ;;  %v2275_v14 = vcombine.high %v204_v9, %v204_v9  ;;  %v205_v26 = vld [vmem:[%s2503_s21 + $0x20] sm:$0x77]  ;;  %v195_v51 = vld [vmem:[%s2498_s17 + $0x10] sm:$0xff] }
  0x17   : > { %921 = vmatprep.subr.bf16.mxu0 %v2269_v4  ;;  %961 = vmatprep.subr.bf16.mxu1 %v2271_v6  ;;  %v243_v11 = vunpack.c.l.s4 %v2462_v10  ;;  %v241_v16 = vcombine.high %v193_v15, %v193_v15  ;;  %v2272_v28 = vcombine.low %v203_v8, %v203_v8  ;;  %v206_v30 = vld [vmem:[%s2503_s21 + $0x28] sm:$0x77]  ;;  %v2274_v31 = vcombine.low %v204_v9, %v204_v9  ;;  %v207_v41 = vld [vmem:[%s2503_s21 + $0x30] sm:$0x77]  ;;  %v208_v44 = vld [vmem:[%s2503_s21 + $0x38] sm:$0x77] }
  0x18   : > { %922 = vmatpush1.bf16.xpose.msra.mxu0 %v2268_v5  ;;  %962 = vmatpush1.bf16.xpose.msra.mxu1 %v2270_v7  ;;  %v2277_v34 = vcombine.high %v205_v26, %v205_v26  ;;  %v290_v36 = vcombine.high %v194_v19, %v194_v19  ;;  %v2279_v38 = vcombine.high %v206_v30, %v206_v30  ;;  %v209_v54 = vld [vmem:[%s2503_s21 + $0x40] sm:$0x77]  ;;  %v210_v57 = vld [vmem:[%s2503_s21 + $0x48] sm:$0x77]  ;;  %v211_v3 = vld [vmem:[%s2503_s21 + $0x50] sm:$0x77] }
  0x19   : > { %v244_v17 = vunpack.c.0.s8 %v243_v11  ;;  %1001 = vmatprep.subr.bf16.mxu0 %v2273_v13  ;;  %1041 = vmatprep.subr.bf16.mxu1 %v2275_v14  ;;  %v2276_v43 = vcombine.low %v205_v26, %v205_v26  ;;  %v2281_v46 = vcombine.high %v207_v41, %v207_v41  ;;  %v2278_v47 = vcombine.low %v206_v30, %v206_v30  ;;  %v212_v6 = vld [vmem:[%s2503_s21 + $0x58] sm:$0x77]  ;;  %v215_v30 = vld [vmem:[%s2503_s21 + $0x70] sm:$0x77]  ;;  %s2211_s25 = sshll.u32 %s2463_s24, 4  ;;  %s2212_s25 = int_to_ptr.vmem [resolvable:$true] %s2211_s25 }
  0x1a   : > { %v2283_v50 = vcombine.high %v208_v44, %v208_v44  ;;  %v2280_v56 = vcombine.low %v207_v41, %v207_v41  ;;  %v2285_v59 = vcombine.high %v209_v54, %v209_v54  ;;  %v2282_v60 = vcombine.low %v208_v44, %v208_v44  ;;  %v196_v13 = vld [vmem:[%s2498_s17 + $0x18] sm:$0xff]  ;;  %s2424_s26 = scalar_lea.vmem %s2212_s25, 32  ;;  %p2431_p9 = scmp.lt.s32.totalorder %s2212_s25, %s2212_s25 }
  0x1b   : > { %v2514_v18 = vsub.s32 %v244_v17, %v246_v12  ;;  %v339_v63 = vcombine.high %v195_v51, %v195_v51  ;;  %v2287_v0 = vcombine.high %v210_v57, %v210_v57  ;;  %v2284_v5 = vcombine.low %v209_v54, %v209_v54  ;;  %p2425_p6 = scmp.ne.s32.totalorder %s2212_s25, %s2424_s26  ;;  %p2432_p10 = scmp.lt.s32.totalorder %s2424_s26, %s2424_s26 }
  0x1c   : > { %v2289_v8 = vcombine.high %v211_v3, %v211_v3  ;;  %v2286_v9 = vcombine.low %v210_v57, %v210_v57  ;;  %v2291_v12 = vcombine.high %v212_v6, %v212_v6  ;;  %v388_v26 = vcombine.high %v196_v13, %v196_v13 }
  0x1d   : > { %v248_v20 = vrot.slane %v193_v15, %v2514_v18  ;;  %v255_v21 = vrot.slane %v241_v16, %v2514_v18  ;;  %v297_v25 = vrot.slane %v194_v19, %v2514_v18  ;;  %v304_v42 = vrot.slane %v290_v36, %v2514_v18  ;;  %v213_v16 = vld [vmem:[%s2503_s21 + $0x60] sm:$0x77]  ;;  %p2426_p7 = pnand %p2425_p6, %p2340_p5  ;;  %p2433_p11 = por %p2432_p10, %p2431_p9 }
  0x1e   : > { %v346_v55 = vrot.slane %v195_v51, %v2514_v18  ;;  %v353_v4 = vrot.slane %v339_v63, %v2514_v18  ;;  %v395_v17 = vrot.slane %v196_v13, %v2514_v18  ;;  %v2288_v19 = vcombine.low %v211_v3, %v211_v3 }
  0x1f   : > { %v256_v22 = vcombine.high %v248_v20, %v248_v20  ;;  %v264_v23 = vrot.slane %v248_v20, %v2514_v18  ;;  %v257_v24 = vcombine.high %v255_v21, %v255_v21  ;;  %v305_v35 = vcombine.high %v297_v25, %v297_v25  ;;  %v214_v20 = vld [vmem:[%s2503_s21 + $0x68] sm:$0x77]  ;;  %p2427_p8 = pneg %p2426_p7 }
  0x20   : > { %v271_v39 = vrot.slane %v255_v21, %v2514_v18  ;;  %v306_v49 = vcombine.high %v304_v42, %v304_v42  ;;  %v313_v52 = vrot.slane %v297_v25, %v2514_v18  ;;  %v354_v62 = vcombine.high %v346_v55, %v346_v55 }
  0x21   : > { %v278_v27 = vrot.slane %v256_v22, %v2514_v18  ;;  %v285_v29 = vrot.slane %v257_v24, %v2514_v18  ;;  %v286_v32 = vcombine.high %v264_v23, %v264_v23  ;;  %v327_v40 = vrot.slane %v305_v35, %v2514_v18  ;;  %p2434_p12 = pnand %p2433_p11, %p2427_p8 }
  0x22   : > { %v287_v45 = vcombine.high %v271_v39, %v271_v39  ;;  %v334_v53 = vrot.slane %v306_v49, %v2514_v18  ;;  %v335_v58 = vcombine.high %v313_v52, %v313_v52  ;;  %v320_v1 = vrot.slane %v304_v42, %v2514_v18 }
  0x23   : > { %953 = vmatprep.mubr.bf16.mxu0 %v278_v27  ;;  %v288_v33 = vcombine.high %v278_v27, %v278_v27  ;;  %v289_v37 = vcombine.high %v285_v29, %v285_v29  ;;  %v337_v48 = vcombine.high %v327_v40, %v327_v40  ;;  %v376_v2 = vrot.slane %v354_v62, %v2514_v18 }
  0x24   : > { %954 = vmatmul.mubr.bf16.vlgmr.msra.gmra.mrb[0].mxu0 %v264_v23  ;;  %v338_v61 = vcombine.high %v334_v53, %v334_v53  ;;  %v336_v7 = vcombine.high %v320_v1, %v320_v1  ;;  %v355_v11 = vcombine.high %v353_v4, %v353_v4  ;;  %v362_v14 = vrot.slane %v346_v55, %v2514_v18 }
  0x25   : > { %1002 = vmatpush1.bf16.xpose.msra.mxu0 %v2272_v28  ;;  %993 = vmatprep.mubr.bf16.mxu1 %v288_v33  ;;  %v386_v10 = vcombine.high %v376_v2, %v376_v2  ;;  %v2293_v22 = vcombine.high %v213_v16, %v213_v16  ;;  %v2290_v23 = vcombine.low %v212_v6, %v212_v6  ;;  %v216_v33 = vld [vmem:[%s2503_s21 + $0x78] sm:$0x77]  ;;  %vm2202_vm1 = vcmask 41984  }
  0x26   : > { %994 = vmatmul.mubr.bf16.vlgmr.msra.gmra.mrb[0].mxu1 %v286_v32  ;;  %1033 = vmatprep.mubr.bf16.mxu0 %v285_v29  ;;  %v383_v15 = vrot.slane %v355_v11, %v2514_v18  ;;  %v384_v21 = vcombine.high %v362_v14, %v362_v14  ;;  %v403_v25 = vcombine.high %v395_v17, %v395_v17 }
  0x27   : > { %1042 = vmatpush1.bf16.xpose.msra.mxu1 %v2274_v31  ;;  %1081 = vmatprep.subr.bf16.mxu0 %v2277_v34  ;;  %v2295_v27 = vcombine.high %v214_v20, %v214_v20  ;;  %v369_v28 = vrot.slane %v353_v4, %v2514_v18  ;;  %v402_v31 = vrot.slane %v388_v26, %v2514_v18 }
  0x28   : > { %1073 = vmatprep.mubr.bf16.mxu1 %v289_v37  ;;  %1121 = vmatprep.subr.bf16.mxu1 %v2279_v38  ;;  %v387_v24 = vcombine.high %v383_v15, %v383_v15  ;;  %v425_v29 = vrot.slane %v403_v25, %v2514_v18  ;;  %v2292_v32 = vcombine.low %v213_v16, %v213_v16 }
  0x29   : > { %v385_v34 = vcombine.high %v369_v28, %v369_v28  ;;  %v2297_v35 = vcombine.high %v215_v30, %v215_v30  ;;  %v2294_v36 = vcombine.low %v214_v20, %v214_v20  ;;  %v404_v38 = vcombine.high %v402_v31, %v402_v31 }
  0x2a   : > { %v435_v37 = vcombine.high %v425_v29, %v425_v29  ;;  %v411_v41 = vrot.slane %v395_v17, %v2514_v18  ;;  %v2298_v49 = vcombine.low %v216_v33, %v216_v33  ;;  %v418_v54 = vrot.slane %v402_v31, %v2514_v18 }
  0x2b   : > { %v432_v42 = vrot.slane %v404_v38, %v2514_v18 }
  0x2c   : > { %1034 = vmatmul.mubr.bf16.vlgmr.msra.gmra.mrb[4].mxu0 %v271_v39  ;;  %v2299_v39 = vcombine.high %v216_v33, %v216_v33 }
  0x2d   : > { %1082 = vmatpush1.bf16.xpose.msra.mxu0 %v2276_v43  ;;  %1113 = vmatprep.mubr.bf16.mxu0 %v327_v40  ;;  %v197_v40 = vld [vmem:[%s2498_s17 + $0x20] sm:$0xff] }
  0x2e   : > { %1074 = vmatmul.mubr.bf16.vlgmr.msra.gmra.mrb[4].mxu1 %v287_v45  ;;  %1161 = vmatprep.subr.bf16.mxu0 %v2281_v46  ;;  %v217_v43 = vld [vmem:[%s2503_s21 + $0x80] sm:$0x77]  ;;  %v444_v44 = vrot.slane %v197_v40, %v2514_v18  ;;  %v2296_v45 = vcombine.low %v215_v30, %v215_v30  ;;  %v218_v46 = vld [vmem:[%s2503_s21 + $0x88] sm:$0x77] }
  0x2f   : > { %1122 = vmatpush1.bf16.xpose.msra.mxu1 %v2278_v47  ;;  %1153 = vmatprep.mubr.bf16.mxu1 %v337_v48  ;;  %v433_v47 = vcombine.high %v411_v41, %v411_v41  ;;  %v2301_v48 = vcombine.high %v217_v43, %v217_v43  ;;  %v2302_v62 = vcombine.low %v218_v46, %v218_v46 }
  0x30   : > { %1201 = vmatprep.subr.bf16.mxu1 %v2283_v50  ;;  %v436_v50 = vcombine.high %v432_v42, %v432_v42  ;;  %v452_v51 = vcombine.high %v444_v44, %v444_v44  ;;  %v460_v3 = vrot.slane %v444_v44, %v2514_v18 }
  0x32   : > { %v474_v55 = vrot.slane %v452_v51, %v2514_v18 }
  0x34   : > { %1114 = vmatmul.mubr.bf16.vlgmr.msra.gmra.mrb[8].mxu0 %v313_v52  ;;  %v437_v52 = vcombine.high %v197_v40, %v197_v40  ;;  %v484_v63 = vcombine.high %v474_v55, %v474_v55 }
  0x35   : > { %1162 = vmatpush1.bf16.xpose.msra.mxu0 %v2280_v56  ;;  %1193 = vmatprep.mubr.bf16.mxu0 %v334_v53  ;;  %v2303_v53 = vcombine.high %v218_v46, %v218_v46  ;;  %v219_v56 = vld [vmem:[%s2503_s21 + $0x90] sm:$0x77] }
  0x36   : > { %1154 = vmatmul.mubr.bf16.vlgmr.msra.gmra.mrb[8].mxu1 %v335_v58  ;;  %1241 = vmatprep.subr.bf16.mxu0 %v2285_v59  ;;  %v451_v57 = vrot.slane %v437_v52, %v2514_v18  ;;  %v2300_v58 = vcombine.low %v217_v43, %v217_v43  ;;  %v220_v59 = vld [vmem:[%s2503_s21 + $0x98] sm:$0x77] }
  0x37   : > { %1202 = vmatpush1.bf16.xpose.msra.mxu1 %v2282_v60  ;;  %1233 = vmatprep.mubr.bf16.mxu1 %v338_v61  ;;  %v434_v60 = vcombine.high %v418_v54, %v418_v54  ;;  %v2305_v61 = vcombine.high %v219_v56, %v219_v56  ;;  %v2306_v11 = vcombine.low %v220_v59, %v220_v59 }
  0x38   : > { %1281 = vmatprep.subr.bf16.mxu1 %v2287_v0  ;;  %v453_v0 = vcombine.high %v451_v57, %v451_v57  ;;  %v467_v16 = vrot.slane %v451_v57, %v2514_v18 }
  0x3a   : > { %v481_v4 = vrot.slane %v453_v0, %v2514_v18 }
  0x3c   : > { %1194 = vmatmul.mubr.bf16.vlgmr.msra.gmra.mrb[12].mxu0 %v320_v1  ;;  %v2307_v1 = vcombine.high %v220_v59, %v220_v59 }
  0x3d   : > { %1242 = vmatpush1.bf16.xpose.msra.mxu0 %v2284_v5  ;;  %1273 = vmatprep.mubr.bf16.mxu0 %v376_v2  ;;  %v198_v2 = vld [vmem:[%s2498_s17 + $0x28] sm:$0xff]  ;;  %v221_v5 = vld [vmem:[%s2503_s21 + $0xa0] sm:$0x77] }
  0x3e   : > { %1234 = vmatmul.mubr.bf16.vlgmr.msra.gmra.mrb[12].mxu1 %v336_v7  ;;  %1321 = vmatprep.subr.bf16.mxu0 %v2289_v8  ;;  %v493_v6 = vrot.slane %v198_v2, %v2514_v18  ;;  %v2304_v7 = vcombine.low %v219_v56, %v219_v56  ;;  %v222_v8 = vld [vmem:[%s2503_s21 + $0xa8] sm:$0x77] }
  0x3f   : > { %1282 = vmatpush1.bf16.xpose.msra.mxu1 %v2286_v9  ;;  %1313 = vmatprep.mubr.bf16.mxu1 %v386_v10  ;;  %v482_v9 = vcombine.high %v460_v3, %v460_v3  ;;  %v2309_v10 = vcombine.high %v221_v5, %v221_v5  ;;  %v2310_v25 = vcombine.low %v222_v8, %v222_v8 }
  0x40   : > { %1361 = vmatprep.subr.bf16.mxu1 %v2291_v12  ;;  %v485_v12 = vcombine.high %v481_v4, %v481_v4  ;;  %v501_v13 = vcombine.high %v493_v6, %v493_v6  ;;  %v509_v30 = vrot.slane %v493_v6, %v2514_v18 }
  0x42   : > { %v523_v17 = vrot.slane %v501_v13, %v2514_v18 }
  0x44   : > { %1274 = vmatmul.mubr.bf16.vlgmr.msra.gmra.mrb[16].mxu0 %v362_v14  ;;  %v486_v14 = vcombine.high %v198_v2, %v198_v2  ;;  %v533_v26 = vcombine.high %v523_v17, %v523_v17 }
  0x45   : > { %1322 = vmatpush1.bf16.xpose.msra.mxu0 %v2288_v19  ;;  %1353 = vmatprep.mubr.bf16.mxu0 %v383_v15  ;;  %v2311_v15 = vcombine.high %v222_v8, %v222_v8  ;;  %v223_v19 = vld [vmem:[%s2503_s21 + $0xb0] sm:$0x77] }
  0x46   : > { %1314 = vmatmul.mubr.bf16.vlgmr.msra.gmra.mrb[16].mxu1 %v384_v21  ;;  %1401 = vmatprep.subr.bf16.mxu0 %v2293_v22  ;;  %v500_v20 = vrot.slane %v486_v14, %v2514_v18  ;;  %v2308_v21 = vcombine.low %v221_v5, %v221_v5  ;;  %v224_v22 = vld [vmem:[%s2503_s21 + $0xb8] sm:$0x77] }
  0x47   : > { %1362 = vmatpush1.bf16.xpose.msra.mxu1 %v2290_v23  ;;  %1393 = vmatprep.mubr.bf16.mxu1 %v387_v24  ;;  %v483_v23 = vcombine.high %v467_v16, %v467_v16  ;;  %v2313_v24 = vcombine.high %v223_v19, %v223_v19  ;;  %v2314_v38 = vcombine.low %v224_v22, %v224_v22 }
  0x48   : > { %1441 = vmatprep.subr.bf16.mxu1 %v2295_v27  ;;  %v502_v27 = vcombine.high %v500_v20, %v500_v20  ;;  %v516_v43 = vrot.slane %v500_v20, %v2514_v18 }
  0x4a   : > { %v530_v31 = vrot.slane %v502_v27, %v2514_v18 }
  0x4c   : > { %1354 = vmatmul.mubr.bf16.vlgmr.msra.gmra.mrb[20].mxu0 %v369_v28  ;;  %v2315_v28 = vcombine.high %v224_v22, %v224_v22 }
  0x4d   : > { %1402 = vmatpush1.bf16.xpose.msra.mxu0 %v2292_v32  ;;  %1433 = vmatprep.mubr.bf16.mxu0 %v425_v29  ;;  %v199_v29 = vld [vmem:[%s2498_s17 + $0x30] sm:$0xff]  ;;  %v225_v32 = vld [vmem:[%s2503_s21 + $0xc0] sm:$0x77] }
  0x4e   : > { %1394 = vmatmul.mubr.bf16.vlgmr.msra.gmra.mrb[20].mxu1 %v385_v34  ;;  %1481 = vmatprep.subr.bf16.mxu0 %v2297_v35  ;;  %v542_v33 = vrot.slane %v199_v29, %v2514_v18  ;;  %v2312_v34 = vcombine.low %v223_v19, %v223_v19  ;;  %v226_v35 = vld [vmem:[%s2503_s21 + $0xc8] sm:$0x77] }
  0x4f   : > { %1442 = vmatpush1.bf16.xpose.msra.mxu1 %v2294_v36  ;;  %1473 = vmatprep.mubr.bf16.mxu1 %v435_v37  ;;  %v531_v36 = vcombine.high %v509_v30, %v509_v30  ;;  %v2317_v37 = vcombine.high %v225_v32, %v225_v32  ;;  %v2318_v51 = vcombine.low %v226_v35, %v226_v35 }
  0x50   : > { %1521 = vmatprep.subr.bf16.mxu1 %v2299_v39  ;;  %v534_v39 = vcombine.high %v530_v31, %v530_v31  ;;  %v550_v40 = vcombine.high %v542_v33, %v542_v33  ;;  %v558_v56 = vrot.slane %v542_v33, %v2514_v18 }
  0x52   : > { %v572_v44 = vrot.slane %v550_v40, %v2514_v18 }
  0x54   : > { %1434 = vmatmul.mubr.bf16.vlgmr.msra.gmra.mrb[24].mxu0 %v411_v41  ;;  %v535_v41 = vcombine.high %v199_v29, %v199_v29  ;;  %v582_v52 = vcombine.high %v572_v44, %v572_v44 }
  0x55   : > { %1482 = vmatpush1.bf16.xpose.msra.mxu0 %v2296_v45  ;;  %1513 = vmatprep.mubr.bf16.mxu0 %v432_v42  ;;  %v2319_v42 = vcombine.high %v226_v35, %v226_v35  ;;  %v227_v45 = vld [vmem:[%s2503_s21 + $0xd0] sm:$0x77] }
  0x56   : > { %1474 = vmatmul.mubr.bf16.vlgmr.msra.gmra.mrb[24].mxu1 %v433_v47  ;;  %1561 = vmatprep.subr.bf16.mxu0 %v2301_v48  ;;  %v549_v46 = vrot.slane %v535_v41, %v2514_v18  ;;  %v2316_v47 = vcombine.low %v225_v32, %v225_v32  ;;  %v228_v48 = vld [vmem:[%s2503_s21 + $0xd8] sm:$0x77] }
  0x57   : > { %1522 = vmatpush1.bf16.xpose.msra.mxu1 %v2298_v49  ;;  %1553 = vmatprep.mubr.bf16.mxu1 %v436_v50  ;;  %v532_v49 = vcombine.high %v516_v43, %v516_v43  ;;  %v2321_v50 = vcombine.high %v227_v45, %v227_v45  ;;  %v2322_v0 = vcombine.low %v228_v48, %v228_v48 }
  0x58   : > { %1601 = vmatprep.subr.bf16.mxu1 %v2303_v53  ;;  %v551_v53 = vcombine.high %v549_v46, %v549_v46  ;;  %v565_v5 = vrot.slane %v549_v46, %v2514_v18 }
  0x5a   : > { %v579_v57 = vrot.slane %v551_v53, %v2514_v18 }
  0x5c   : > { %1514 = vmatmul.mubr.bf16.vlgmr.msra.gmra.mrb[28].mxu0 %v418_v54  ;;  %v2323_v54 = vcombine.high %v228_v48, %v228_v48 }
  0x5d   : > { %1562 = vmatpush1.bf16.xpose.msra.mxu0 %v2300_v58  ;;  %1593 = vmatprep.mubr.bf16.mxu0 %v474_v55  ;;  %v200_v55 = vld [vmem:[%s2498_s17 + $0x38] sm:$0xff]  ;;  %v229_v58 = vld [vmem:[%s2503_s21 + $0xe0] sm:$0x77] }
  0x5e   : > { %1554 = vmatmul.mubr.bf16.vlgmr.msra.gmra.mrb[28].mxu1 %v434_v60  ;;  %1641 = vmatprep.subr.bf16.mxu0 %v2305_v61  ;;  %v591_v59 = vrot.slane %v200_v55, %v2514_v18  ;;  %v2320_v60 = vcombine.low %v227_v45, %v227_v45  ;;  %v230_v61 = vld [vmem:[%s2503_s21 + $0xe8] sm:$0x77] }
  0x5f   : > { %1602 = vmatpush1.bf16.xpose.msra.mxu1 %v2302_v62  ;;  %1633 = vmatprep.mubr.bf16.mxu1 %v484_v63  ;;  %v580_v62 = vcombine.high %v558_v56, %v558_v56  ;;  %v2325_v63 = vcombine.high %v229_v58, %v229_v58  ;;  %v2326_v13 = vcombine.low %v230_v61, %v230_v61 }
  0x60   : > { %1681 = vmatprep.subr.bf16.mxu1 %v2307_v1  ;;  %v583_v1 = vcombine.high %v579_v57, %v579_v57  ;;  %v599_v2 = vcombine.high %v591_v59, %v591_v59 }
  0x62   : > { %v621_v6 = vrot.slane %v599_v2, %v2514_v18 }
  0x64   : > { %1594 = vmatmul.mubr.bf16.vlgmr.msra.gmra.mrb[32].mxu0 %v460_v3  ;;  %v584_v3 = vcombine.high %v200_v55, %v200_v55  ;;  %v631_v14 = vcombine.high %v621_v6, %v621_v6 }
  0x65   : > { %1642 = vmatpush1.bf16.xpose.msra.mxu0 %v2304_v7  ;;  %1673 = vmatprep.mubr.bf16.mxu0 %v481_v4  ;;  %v2327_v4 = vcombine.high %v230_v61, %v230_v61  ;;  %v231_v7 = vld [vmem:[%s2503_s21 + $0xf0] sm:$0x77] }
  0x66   : > { %1634 = vmatmul.mubr.bf16.vlgmr.msra.gmra.mrb[32].mxu1 %v482_v9  ;;  %1721 = vmatprep.subr.bf16.mxu0 %v2309_v10  ;;  %v598_v8 = vrot.slane %v584_v3, %v2514_v18  ;;  %v2324_v9 = vcombine.low %v229_v58, %v229_v58  ;;  %v232_v10 = vld [vmem:[%s2503_s21 + $0xf8] sm:$0x77]  ;;  %v2328_v20 = vcombine.low %v231_v7, %v231_v7 }
  0x67   : > { %1682 = vmatpush1.bf16.xpose.msra.mxu1 %v2306_v11  ;;  %1713 = vmatprep.mubr.bf16.mxu1 %v485_v12  ;;  %v581_v11 = vcombine.high %v565_v5, %v565_v5  ;;  %v2329_v12 = vcombine.high %v231_v7, %v231_v7  ;;  %v2330_v22 = vcombine.low %v232_v10, %v232_v10 }
  0x68   : > { %1761 = vmatprep.subr.bf16.mxu1 %v2311_v15  ;;  %v600_v15 = vcombine.high %v598_v8, %v598_v8 }
  0x6a   : > { %v628_v19 = vrot.slane %v600_v15, %v2514_v18 }
  0x6c   : > { %1674 = vmatmul.mubr.bf16.vlgmr.msra.gmra.mrb[36].mxu0 %v467_v16  ;;  %v2331_v16 = vcombine.high %v232_v10, %v232_v10 }
  0x6d   : > { %1722 = vmatpush1.bf16.xpose.msra.mxu0 %v2308_v21  ;;  %1753 = vmatprep.mubr.bf16.mxu0 %v523_v17  ;;  %v607_v17 = vrot.slane %v591_v59, %v2514_v18 }
  0x6e   : > { %1714 = vmatmul.mubr.bf16.vlgmr.msra.gmra.mrb[36].mxu1 %v483_v23  ;;  %1801 = vmatprep.subr.bf16.mxu0 %v2313_v24  ;;  %v632_v23 = vcombine.high %v628_v19, %v628_v19  ;;  %v614_v24 = vrot.slane %v598_v8, %v2514_v18 }
  0x6f   : > { %1762 = vmatpush1.bf16.xpose.msra.mxu1 %v2310_v25  ;;  %1793 = vmatprep.mubr.bf16.mxu1 %v533_v26  ;;  %v629_v21 = vcombine.high %v607_v17, %v607_v17 }
  0x70   : > { %1841 = vmatprep.subr.bf16.mxu1 %v2315_v28  ;;  %v630_v25 = vcombine.high %v614_v24, %v614_v24 }
  0x74   : > { %1754 = vmatmul.mubr.bf16.vlgmr.msra.gmra.mrb[40].mxu0 %v509_v30 }
  0x75   : > { %1802 = vmatpush1.bf16.xpose.msra.mxu0 %v2312_v34  ;;  %1833 = vmatprep.mubr.bf16.mxu0 %v530_v31 }
  0x76   : > { %1794 = vmatmul.mubr.bf16.vlgmr.msra.gmra.mrb[40].mxu1 %v531_v36  ;;  %1881 = vmatprep.subr.bf16.mxu0 %v2317_v37 }
  0x77   : > { %1842 = vmatpush1.bf16.xpose.msra.mxu1 %v2314_v38  ;;  %1873 = vmatprep.mubr.bf16.mxu1 %v534_v39 }
  0x78   : > { %1921 = vmatprep.subr.bf16.mxu1 %v2319_v42 }
  0x7c   : > { %1834 = vmatmul.mubr.bf16.vlgmr.msra.gmra.mrb[44].mxu0 %v516_v43 }
  0x7d   : > { %1882 = vmatpush1.bf16.xpose.msra.mxu0 %v2316_v47  ;;  %1913 = vmatprep.mubr.bf16.mxu0 %v572_v44 }
  0x7e   : > { %1874 = vmatmul.mubr.bf16.vlgmr.msra.gmra.mrb[44].mxu1 %v532_v49  ;;  %1961 = vmatprep.subr.bf16.mxu0 %v2321_v50 }
  0x7f   : > { %1922 = vmatpush1.bf16.xpose.msra.mxu1 %v2318_v51  ;;  %1953 = vmatprep.mubr.bf16.mxu1 %v582_v52 }
  0x80   : > { %2001 = vmatprep.subr.bf16.mxu1 %v2323_v54 }
  0x84   : > { %1914 = vmatmul.mubr.bf16.vlgmr.msra.gmra.mrb[48].mxu0 %v558_v56 }
  0x85   : > { %1962 = vmatpush1.bf16.xpose.msra.mxu0 %v2320_v60  ;;  %1993 = vmatprep.mubr.bf16.mxu0 %v579_v57 }
  0x86   : > { %1954 = vmatmul.mubr.bf16.vlgmr.msra.gmra.mrb[48].mxu1 %v580_v62  ;;  %2041 = vmatprep.subr.bf16.mxu0 %v2325_v63 }
  0x87   : > { %2002 = vmatpush1.bf16.xpose.msra.mxu1 %v2322_v0  ;;  %2033 = vmatprep.mubr.bf16.mxu1 %v583_v1 }
  0x88   : > { %2081 = vmatprep.subr.bf16.mxu1 %v2327_v4 }
  0x8c   : > { %1994 = vmatmul.mubr.bf16.vlgmr.msra.gmra.mrb[52].mxu0 %v565_v5 }
  0x8d   : > { %2042 = vmatpush1.bf16.xpose.msra.mxu0 %v2324_v9  ;;  %2073 = vmatprep.mubr.bf16.mxu0 %v621_v6 }
  0x8e   : > { %2034 = vmatmul.mubr.bf16.vlgmr.msra.gmra.mrb[52].mxu1 %v581_v11  ;;  %2121 = vmatprep.subr.bf16.mxu0 %v2329_v12 }
  0x8f   : > { %2082 = vmatpush1.bf16.xpose.msra.mxu1 %v2326_v13  ;;  %2113 = vmatprep.mubr.bf16.mxu1 %v631_v14 }
  0x90   : > { %2161 = vmatprep.subr.bf16.mxu1 %v2331_v16 }
  0x94   : > { %2074 = vmatmul.mubr.bf16.vlgmr.msra.gmra.mrb[56].mxu0 %v607_v17 }
  0x95   : > { %2122 = vmatpush1.bf16.xpose.msra.mxu0 %v2328_v20  ;;  %2153 = vmatprep.mubr.bf16.mxu0 %v628_v19 }
  0x96   : > { %2114 = vmatmul.mubr.bf16.vlgmr.msra.gmra.mrb[56].mxu1 %v629_v21 }
  0x97   : > { %2162 = vmatpush1.bf16.xpose.msra.mxu1 %v2330_v22  ;;  %2193 = vmatprep.mubr.bf16.mxu1 %v632_v23 }
  0x9c   : > { %2154 = vmatmul.mubr.bf16.vlgmr.msra.gmra.mrb[60].mxu0 %v614_v24 }
  0x9e   : > { %2194 = vmatmul.mubr.bf16.vlgmr.msra.gmra.mrb[60].mxu1 %v630_v25 }
  0xf7   : > { %v955_v26 = vpop.f32.mrb[0].mxu0 }
  0xf8   : > { %v957_v27 = vpop.f32.mrb[1].mxu0 }
  0xf9   : > { %v958_v28 = vpop.f32.mrb[2].mxu0  ;;  %v995_v29 = vpop.f32.mrb[0].mxu1 }
  0xfa   : > { %v996_v30 = vadd.f32 %v995_v29, %v955_v26  ;;  %v959_v31 = vpop.f32.mrb[3].mxu0  ;;  %v997_v32 = vpop.f32.mrb[1].mxu1 }
  0xfb   : > { %v998_v33 = vpop.f32.mrb[2].mxu1 }
  0xfc   : > { %v999_v34 = vpop.f32.mrb[3].mxu1 }
  0xff   : > { %v1035_v35 = vpop.f32.mrb[4].mxu0 }
 0x100   : > { %v1036_v36 = vadd.f32 %v1035_v35, %v996_v30  ;;  %v1037_v37 = vpop.f32.mrb[5].mxu0 }
 0x101   : > { %v1038_v38 = vpop.f32.mrb[6].mxu0  ;;  %v1075_v39 = vpop.f32.mrb[4].mxu1 }
 0x102   : > { %v1076_v18 = vadd.f32 %v1075_v39, %v1036_v36  ;;  %v1039_v40 = vpop.f32.mrb[7].mxu0  ;;  %v1077_v41 = vpop.f32.mrb[5].mxu1 }
 0x103   : > { %v1078_v42 = vpop.f32.mrb[6].mxu1 }
 0x104   : > { %v1079_v43 = vpop.f32.mrb[7].mxu1 }
 0x107   : > { %v1115_v44 = vpop.f32.mrb[8].mxu0 }
 0x108   : > { %v1116_v45 = vadd.f32 %v1115_v44, %v1076_v18  ;;  %v1117_v46 = vpop.f32.mrb[9].mxu0 }
 0x109   : > { %v1118_v47 = vpop.f32.mrb[10].mxu0  ;;  %v1155_v48 = vpop.f32.mrb[8].mxu1 }
 0x10a   : > { %v1156_v49 = vadd.f32 %v1155_v48, %v1116_v45  ;;  %v1119_v50 = vpop.f32.mrb[11].mxu0  ;;  %v1157_v51 = vpop.f32.mrb[9].mxu1 }
 0x10b   : > { %v1158_v52 = vpop.f32.mrb[10].mxu1 }
 0x10c   : > { %v1159_v53 = vpop.f32.mrb[11].mxu1 }
 0x10f   : > { %v1195_v54 = vpop.f32.mrb[12].mxu0 }
 0x110   : > { %v1196_v55 = vadd.f32 %v1195_v54, %v1156_v49  ;;  %v1197_v56 = vpop.f32.mrb[13].mxu0 }
 0x111   : > { %v1198_v57 = vpop.f32.mrb[14].mxu0  ;;  %v1235_v58 = vpop.f32.mrb[12].mxu1 }
 0x112   : > { %v1236_v59 = vadd.f32 %v1235_v58, %v1196_v55  ;;  %v1199_v60 = vpop.f32.mrb[15].mxu0  ;;  %v1237_v61 = vpop.f32.mrb[13].mxu1 }
 0x113   : > { %v1238_v62 = vpop.f32.mrb[14].mxu1 }
 0x114   : > { %v1239_v63 = vpop.f32.mrb[15].mxu1 }
 0x117   : > { %v1275_v0 = vpop.f32.mrb[16].mxu0 }
 0x118   : > { %v1276_v1 = vadd.f32 %v1275_v0, %v1236_v59  ;;  %v1277_v2 = vpop.f32.mrb[17].mxu0 }
 0x119   : > { %v1278_v3 = vpop.f32.mrb[18].mxu0  ;;  %v1315_v4 = vpop.f32.mrb[16].mxu1 }
 0x11a   : > { %v1316_v5 = vadd.f32 %v1315_v4, %v1276_v1  ;;  %v1279_v6 = vpop.f32.mrb[19].mxu0  ;;  %v1317_v7 = vpop.f32.mrb[17].mxu1 }
 0x11b   : > { %v1318_v8 = vpop.f32.mrb[18].mxu1 }
 0x11c   : > { %v1319_v9 = vpop.f32.mrb[19].mxu1 }
 0x11f   : > { %v1355_v10 = vpop.f32.mrb[20].mxu0 }
 0x120   : > { %v1356_v11 = vadd.f32 %v1355_v10, %v1316_v5  ;;  %v1357_v12 = vpop.f32.mrb[21].mxu0 }
 0x121   : > { %v1358_v13 = vpop.f32.mrb[22].mxu0  ;;  %v1395_v14 = vpop.f32.mrb[20].mxu1 }
 0x122   : > { %v1396_v15 = vadd.f32 %v1395_v14, %v1356_v11  ;;  %v1359_v16 = vpop.f32.mrb[23].mxu0  ;;  %v1397_v17 = vpop.f32.mrb[21].mxu1 }
 0x123   : > { %v1398_v19 = vpop.f32.mrb[22].mxu1 }
 0x124   : > { %v1399_v20 = vpop.f32.mrb[23].mxu1 }
 0x127   : > { %v1435_v21 = vpop.f32.mrb[24].mxu0 }
 0x128   : > { %v1436_v22 = vadd.f32 %v1435_v21, %v1396_v15  ;;  %v1437_v23 = vpop.f32.mrb[25].mxu0 }
 0x129   : > { %v1438_v24 = vpop.f32.mrb[26].mxu0  ;;  %v1475_v25 = vpop.f32.mrb[24].mxu1 }
 0x12a   : > { %v1476_v26 = vadd.f32 %v1475_v25, %v1436_v22  ;;  %v1439_v27 = vpop.f32.mrb[27].mxu0  ;;  %v1477_v28 = vpop.f32.mrb[25].mxu1 }
 0x12b   : > { %v1478_v29 = vpop.f32.mrb[26].mxu1 }
 0x12c   : > { %v1479_v30 = vpop.f32.mrb[27].mxu1 }
 0x12f   : > { %v1515_v31 = vpop.f32.mrb[28].mxu0 }
 0x130   : > { %v1516_v32 = vadd.f32 %v1515_v31, %v1476_v26  ;;  %v1517_v33 = vpop.f32.mrb[29].mxu0 }
 0x131   : > { %v1518_v34 = vpop.f32.mrb[30].mxu0  ;;  %v1555_v35 = vpop.f32.mrb[28].mxu1 }
 0x132   : > { %v1556_v36 = vadd.f32 %v1555_v35, %v1516_v32  ;;  %v1519_v37 = vpop.f32.mrb[31].mxu0  ;;  %v1557_v38 = vpop.f32.mrb[29].mxu1 }
 0x133   : > { %v1558_v39 = vpop.f32.mrb[30].mxu1 }
 0x134   : > { %v1559_v18 = vpop.f32.mrb[31].mxu1 }
 0x137   : > { %v1595_v40 = vpop.f32.mrb[32].mxu0 }
 0x138   : > { %v1596_v41 = vadd.f32 %v1595_v40, %v1556_v36  ;;  %v1597_v42 = vpop.f32.mrb[33].mxu0 }
 0x139   : > { %v1598_v43 = vpop.f32.mrb[34].mxu0  ;;  %v1635_v44 = vpop.f32.mrb[32].mxu1 }
 0x13a   : > { %v1636_v45 = vadd.f32 %v1635_v44, %v1596_v41  ;;  %v1599_v46 = vpop.f32.mrb[35].mxu0  ;;  %v1637_v47 = vpop.f32.mrb[33].mxu1 }
 0x13b   : > { %v1638_v48 = vpop.f32.mrb[34].mxu1 }
 0x13c   : > { %v1639_v49 = vpop.f32.mrb[35].mxu1 }
 0x13f   : > { %v1675_v50 = vpop.f32.mrb[36].mxu0 }
 0x140   : > { %v1676_v51 = vadd.f32 %v1675_v50, %v1636_v45  ;;  %v1677_v52 = vpop.f32.mrb[37].mxu0  ;;  %v192_v50 = vld [vmem:[#allocation2] sm:$0x3] }
 0x141   : > { %v1678_v53 = vpop.f32.mrb[38].mxu0  ;;  %v1715_v54 = vpop.f32.mrb[36].mxu1 }
 0x142   : > { %v1716_v55 = vadd.f32 %v1715_v54, %v1676_v51  ;;  %v1679_v56 = vpop.f32.mrb[39].mxu0  ;;  %v1717_v57 = vpop.f32.mrb[37].mxu1 }
 0x143   : > { %v1718_v58 = vpop.f32.mrb[38].mxu1 }
 0x144   : > { %v1719_v59 = vpop.f32.mrb[39].mxu1 }
 0x147   : > { %v1755_v60 = vpop.f32.mrb[40].mxu0 }
 0x148   : > { %v1756_v61 = vadd.f32 %v1755_v60, %v1716_v55  ;;  %v1757_v62 = vpop.f32.mrb[41].mxu0 }
 0x149   : > { %v1758_v63 = vpop.f32.mrb[42].mxu0  ;;  %v1795_v0 = vpop.f32.mrb[40].mxu1 }
 0x14a   : > { %v1796_v1 = vadd.f32 %v1795_v0, %v1756_v61  ;;  %v1759_v2 = vpop.f32.mrb[43].mxu0  ;;  %v1797_v3 = vpop.f32.mrb[41].mxu1 }
 0x14b   : > { %v1798_v4 = vpop.f32.mrb[42].mxu1 }
 0x14c   : > { %v1799_v5 = vpop.f32.mrb[43].mxu1 }
 0x14f   : > { %v1835_v6 = vpop.f32.mrb[44].mxu0 }
 0x150   : > { %v1836_v7 = vadd.f32 %v1835_v6, %v1796_v1  ;;  %v1837_v8 = vpop.f32.mrb[45].mxu0 }
 0x151   : > { %v1838_v9 = vpop.f32.mrb[46].mxu0  ;;  %v1875_v10 = vpop.f32.mrb[44].mxu1 }
 0x152   : > { %v1876_v11 = vadd.f32 %v1875_v10, %v1836_v7  ;;  %v1839_v12 = vpop.f32.mrb[47].mxu0  ;;  %v1877_v13 = vpop.f32.mrb[45].mxu1 }
 0x153   : > { %v1878_v14 = vpop.f32.mrb[46].mxu1 }
 0x154   : > { %v1879_v15 = vpop.f32.mrb[47].mxu1 }
 0x157   : > { %v1915_v16 = vpop.f32.mrb[48].mxu0 }
 0x158   : > { %v1916_v17 = vadd.f32 %v1915_v16, %v1876_v11  ;;  %v1917_v19 = vpop.f32.mrb[49].mxu0 }
 0x159   : > { %v1918_v20 = vpop.f32.mrb[50].mxu0  ;;  %v1955_v21 = vpop.f32.mrb[48].mxu1 }
 0x15a   : > { %v1956_v22 = vadd.f32 %v1955_v21, %v1916_v17  ;;  %v1919_v23 = vpop.f32.mrb[51].mxu0  ;;  %v1957_v24 = vpop.f32.mrb[49].mxu1 }
 0x15b   : > { %v1958_v25 = vpop.f32.mrb[50].mxu1 }
 0x15c   : > { %v1959_v26 = vpop.f32.mrb[51].mxu1 }
 0x15f   : > { %v1995_v27 = vpop.f32.mrb[52].mxu0 }
 0x160   : > { %v1996_v28 = vadd.f32 %v1995_v27, %v1956_v22  ;;  %v1997_v29 = vpop.f32.mrb[53].mxu0 }
 0x161   : > { %v1998_v30 = vpop.f32.mrb[54].mxu0  ;;  %v2035_v31 = vpop.f32.mrb[52].mxu1 }
 0x162   : > { %v2036_v32 = vadd.f32 %v2035_v31, %v1996_v28  ;;  %v1999_v33 = vpop.f32.mrb[55].mxu0  ;;  %v2037_v34 = vpop.f32.mrb[53].mxu1 }
 0x163   : > { %v2038_v35 = vpop.f32.mrb[54].mxu1 }
 0x164   : > { %v2039_v36 = vpop.f32.mrb[55].mxu1 }
 0x167   : > { %v2075_v37 = vpop.f32.mrb[56].mxu0 }
 0x168   : > { %v2076_v38 = vadd.f32 %v2075_v37, %v2036_v32  ;;  %v2077_v39 = vpop.f32.mrb[57].mxu0 }
 0x169   : > { %v2078_v18 = vpop.f32.mrb[58].mxu0  ;;  %v2115_v40 = vpop.f32.mrb[56].mxu1 }
 0x16a   : > { %v2116_v41 = vadd.f32 %v2115_v40, %v2076_v38  ;;  %v2079_v42 = vpop.f32.mrb[59].mxu0  ;;  %v2117_v43 = vpop.f32.mrb[57].mxu1 }
 0x16b   : > { %v2118_v44 = vpop.f32.mrb[58].mxu1 }
 0x16c   : > { %v2119_v45 = vpop.f32.mrb[59].mxu1 }
 0x16f   : > { %v2155_v46 = vpop.f32.mrb[60].mxu0 }
 0x170   : > { %v2156_v47 = vadd.f32 %v2155_v46, %v2116_v41  ;;  %v2157_v48 = vpop.f32.mrb[61].mxu0 }
 0x171   : > { %v2158_v49 = vpop.f32.mrb[62].mxu0  ;;  %v2195_v51 = vpop.f32.mrb[60].mxu1 }
 0x172   : > { %v2196_v52 = vadd.f32 %v2195_v51, %v2156_v47  ;;  %v2159_v53 = vpop.f32.mrb[63].mxu0  ;;  %v2197_v54 = vpop.f32.mrb[61].mxu1 }
 0x173   : > { %v2198_v55 = vpop.f32.mrb[62].mxu1 }
 0x174   : > { %v2201_v56 = vadd.f32 %v2196_v52, %v192_v50  ;;  %v2199_v57 = vpop.f32.mrb[63].mxu1 }
 0x176   : > { %2203 = vst.msk [vmem:[#allocation2] sm:$0x3] %vm2202_vm1, %v2201_v56 }
 0x177   : > { %2437 = shalt.err (!%p2434_p12)
}
 0x178   : > { %s2438_s29 = scalar_lea.hbm %s2628_s3, 32 }
 0x179   : > { %p2439_p13 = scmp.ne.s32.totalorder %s2628_s3, %s2438_s29  ;;  %p2444_p2 = scmp.lt.u32.totalorder %s2438_s29, %s2628_s3 }
 0x17b   : > { %p2440_p0 = pnand %p2439_p13, %p2340_p5 }
 0x17d   : > { %p2441_p1 = pneg %p2440_p0 }
 0x17f   : > { %p2446_p3 = pnand %p2444_p2, %p2441_p1 }
 0x181   : > { %2449 = shalt.err (!%p2446_p3)
}
 0x182   : > { %2337 = dma.vmem_to_hbm [thread:$0]  (%p2340_p5), %s2212_s25, 32, %s2628_s3, [#allocation3]  }
 0x183   : > { %2455 = dma.done.wait (%p2340_p5), [#allocation3], 32  }
 0x184   : > { %2457 = vsyncadd (%p2340_p5), [#allocation3], 4294967264 }
 0x185 PF: > { %s14_s12 = sadd.s32 1, %s2460_s12  }
 0x186   : > { %p11_p4 = scmp.ge.s32.totalorder %s14_s12, 24  }
 0x188   :  { %13 = sbr.rel (!%p11_p4) target bundleno = 1 (0x1), region = 66 }
 0x18f   :  { %2224 = vsyncpa [#allocation3], 1 }
 0x190   :  { %2226 = vsyncpa [#allocation3 + $0x1], 1 }

</bundles_post_ra>
